<compile_context>
chip_gen: v6e
topology: v6e:2x2x1
jax: 0.10.0
libtpu: 0.0.40
codegen_flags: <defaults>
</compile_context>

<pallas_src>
import functools

import jax
import jax.numpy as jnp
from jax import lax
from jax.experimental import pallas as pl
from jax.experimental.pallas import tpu as pltpu

EPS = 1e-5


def _vmem_budgets():
    """Generation-aware VMEM numbers (v5e/v6e: 128 MiB, v7x: 64 MiB per TensorCore)."""
    cap = 64 * 1024 * 1024                      # conservative default (v7x-safe)
    try:
        info = pltpu.get_tpu_info()
        cap = int(getattr(info, "vmem_capacity_bytes", cap)) or cap
    except Exception:                            # query unavailable -> stay conservative
        pass
    vmem_limit = (cap * 3) // 4                  # 96 MiB on 128-MiB parts, 48 MiB on v7x
    tile_budget = cap // 5                       # ~25 MiB / ~12.8 MiB per-tile working set
    return vmem_limit, tile_budget


_VMEM_LIMIT, _TILE_VMEM_BUDGET = _vmem_budgets()


def _compiler_params():
    return pltpu.CompilerParams(
        dimension_semantics=("parallel",),       # batch tiles independent -> megacore split
        vmem_limit_bytes=_VMEM_LIMIT,
    )


def _pick_tile_n(N, s, Ho, Wo, Cin, C2, budget):
    """Largest batch tile that (a) keeps the lane-dense (tile_n*Ho, Wo*C2) blocks
    sublane-aligned for bf16 (16 | tile_n*Ho, unless the block spans the whole array),
    (b) fits a conservative per-tile VMEM working-set budget and (c) when the batch
    allows it leaves >= 4 grid steps so both v7x TensorCores get pipelined work."""
    PH = Ho + (2 // s)     # == max in-kernel H-slice end: max(kh // s) + Ho  (s in {1,2})
    PW = Wo + (2 // s)

    def fits(t):
        m = t * Ho * Wo
        need = (2 * (s * s) * t * PH * PW * Cin * 2      # double-buffered bf16 input phases
                + 8 * m * C2 * 2                         # double-buffered bf16 act blocks
                + 2 * m * 9 * max(Cin, C2) * 2           # im2col slab (bf16) + headroom
                + t * (Ho + 2) * (Wo + 2) * C2 * 2       # conv2 padded scratch (bf16)
                + 4 * m * max(C2, 128) * 4)              # f32 matmul out / lane-padded temps
        return need <= budget

    legal = [t for t in range(1, N + 1)
             if N % t == 0 and (t == N or (t * Ho) % 16 == 0)]
    fitting = [t for t in legal if fits(t)] or [min(legal)]
    want_steps = min(4, N)
    pipelined = [t for t in fitting if N // t >= want_steps]
    return max(pipelined) if pipelined else max(fitting)


def _cmin_to_dense(x, Wo):
    """(M, C) channel-minor -> (M // Wo, Wo*C) lane-dense, using only supported ops
    (leading-dim reshape, static middle-axis index, minor-dim concat)."""
    m, c = x.shape
    x3 = x.reshape(m // Wo, Wo, c)
    return jnp.concatenate([x3[:, w, :] for w in range(Wo)], axis=-1)


# --------------------------------------------------------------------------------------
# pass 1: conv1 (3x3 / stride s) fused with the downsample 1x1 conv, raw bf16 outputs
#         (lane-dense) + f32 (sum, sumsq) stat partials
# --------------------------------------------------------------------------------------
def _pass1_kernel(s, tile_n, Ho, Wo, Cin, C2, has_ds, *refs):
    n_ph = s * s
    phase_refs = refs[:n_ph]
    w_ref = refs[n_ph]
    y1_ref, st1_ref = refs[n_ph + 1], refs[n_ph + 2]

    Mt = tile_n * Ho * Wo

    # (Mt, 9*Cin) im2col slab in VMEM, built directly in bf16 (phases are bf16 already).
    taps = []
    for kh in range(3):
        for kw in range(3):
            ph = phase_refs[(kh % s) * s + (kw % s)]
            taps.append(
                ph[:, kh // s:kh // s + Ho, kw // s:kw // s + Wo, :].reshape(Mt, Cin))
    slab = jnp.concatenate(taps, axis=-1)                                  # (Mt, 9*Cin) bf16
    # One matmul produces conv1 (cols [:C2]) and, when present, the fused downsample
    # 1x1 conv (cols [C2:], weight only on the centre-tap rows).
    y = jnp.dot(slab, w_ref[...], preferred_element_type=jnp.float32)      # (Mt, C2|2*C2) f32

    y1 = y[:, :C2]
    st1_ref[...] = jnp.concatenate(
        [jnp.sum(y1, axis=0, keepdims=True),
         jnp.sum(y1 * y1, axis=0, keepdims=True)], axis=0).reshape(1, 2, C2)
    y1_ref[...] = _cmin_to_dense(y1.astype(jnp.bfloat16), Wo)              # dense bf16 store

    if has_ds:
        ds_ref, std_ref = refs[n_ph + 3], refs[n_ph + 4]
        ds = y[:, C2:]
        std_ref[...] = jnp.concatenate(
            [jnp.sum(ds, axis=0, keepdims=True),
             jnp.sum(ds * ds, axis=0, keepdims=True)], axis=0).reshape(1, 2, C2)
        ds_ref[...] = _cmin_to_dense(ds.astype(jnp.bfloat16), Wo)


# --------------------------------------------------------------------------------------
# pass 2: folded BN1 + ReLU (lane-dense f32 math), conv2 (3x3 / stride 1) via a bf16
#         padded VMEM scratch, raw bf16 output + f32 stat partials
# --------------------------------------------------------------------------------------
def _pass2_kernel(tile_n, Ho, Wo, C2, y1_ref, a1_ref, c1_ref, w2_ref,
                  y2_ref, st2_ref, pscr):
    R = tile_n * Ho
    Mt = R * Wo

    # BN1 (folded scale/shift, tiled along W by the wrapper) + ReLU, one bf16 cast.
    h = jnp.maximum(y1_ref[...].astype(jnp.float32) * a1_ref[...] + c1_ref[...], 0.0)
    h = h.astype(jnp.bfloat16)                                             # (R, Wo*C2)

    # conv2 zero padding: only the 1-pixel border is cleared, interior fully overwritten.
    # NOTE: re-done every grid step on purpose -- a once-only init under
    # pl.when(program_id == 0) is unsafe when the "parallel" batch axis is split across
    # TensorCores (each core owns a private scratch copy and may never see step 0).
    pscr[:, 0:1, :, :] = jnp.zeros((tile_n, 1, Wo + 2, C2), jnp.bfloat16)
    pscr[:, Ho + 1:Ho + 2, :, :] = jnp.zeros((tile_n, 1, Wo + 2, C2), jnp.bfloat16)
    pscr[:, :, 0:1, :] = jnp.zeros((tile_n, Ho + 2, 1, C2), jnp.bfloat16)
    pscr[:, :, Wo + 1:Wo + 2, :] = jnp.zeros((tile_n, Ho + 2, 1, C2), jnp.bfloat16)

    # lane-dense (R, Wo*C2) -> channel-minor NHWC interior of the padded scratch.
    for w in range(Wo):
        col = h[:, w * C2:(w + 1) * C2]                                    # (R, C2) bf16
        pscr[:, 1:Ho + 1, w + 1, :] = col.reshape(tile_n, Ho, C2)

    # 9-tap im2col slab straight from the bf16 scratch (no casts) -> one deep matmul.
    taps = [pscr[:, kh:kh + Ho, kw:kw + Wo, :].reshape(Mt, C2)
            for kh in range(3) for kw in range(3)]
    slab = jnp.concatenate(taps, axis=-1)                                  # (Mt, 9*C2) bf16
    y2 = jnp.dot(slab, w2_ref[...], preferred_element_type=jnp.float32)    # (Mt, C2) f32

    # BN2 statistics from the f32 accumulator (before the bf16 cast), single store.
    st2_ref[...] = jnp.concatenate(
        [jnp.sum(y2, axis=0, keepdims=True),
         jnp.sum(y2 * y2, axis=0, keepdims=True)], axis=0).reshape(1, 2, C2)
    y2_ref[...] = _cmin_to_dense(y2.astype(jnp.bfloat16), Wo)


# --------------------------------------------------------------------------------------
# pass 3: folded BN2 + shortcut (folded BN on downsample conv, or f32 identity) + ReLU
#         -- pure lane-dense elementwise, zero relayouts
# --------------------------------------------------------------------------------------
def _pass3_kernel(has_ds, *refs):
    if has_ds:
        y2_ref, a2_ref, c2_ref, ds_ref, ad_ref, cd_ref, o_ref = refs
        idn = ds_ref[...].astype(jnp.float32) * ad_ref[...] + cd_ref[...]
    else:
        y2_ref, a2_ref, c2_ref, xid_ref, o_ref = refs
        idn = xid_ref[...].astype(jnp.float32)
    out = y2_ref[...].astype(jnp.float32) * a2_ref[...] + c2_ref[...]
    o_ref[...] = jnp.maximum(out + idn, 0.0)


def _fold_bn(stats, gamma, beta, m_total):
    """(T, 2, C) per-tile (sum, sumsq) partials -> per-channel scale a, shift c (f32)."""
    tot = jnp.sum(stats.astype(jnp.float32), axis=0)             # (2, C)
    mean = tot[0] / m_total
    var = tot[1] / m_total - mean * mean                         # biased, training-mode BN
    a = gamma.astype(jnp.float32) * lax.rsqrt(var + EPS)
    c = beta.astype(jnp.float32) - mean * a
    return a.reshape(1, -1), c.reshape(1, -1)


@functools.partial(jax.jit, static_argnames=("stride",))
def resnet18_block(x_nchw, params, *, stride):
    """Forward pass of ResNet18Block (training-mode BatchNorm). x_nchw: (N, Cin, H, W)."""
    N, Cin, H, W = x_nchw.shape
    C2 = params["w1"].shape[0]
    s = int(stride)
    Ho = (H + 2 - 3) // s + 1
    Wo = (W + 2 - 3) // s + 1
    M = N * Ho * Wo
    has_ds = (s != 1) or (Cin != C2)

    # ---- host glue: layout + zero pad + stride-phase decomposition (no 9x im2col) ----
    # (Boundary NCHW<->NHWC transposes kept to mirror PyTorch; drop them if the
    #  surrounding network is NHWC end-to-end.)
    x_nhwc = jnp.transpose(x_nchw, (0, 2, 3, 1)).astype(jnp.float32)
    x_pad = jnp.pad(x_nhwc, ((0, 0), (1, 1), (1, 1), (0, 0)))
    PH = Ho + (2 // s)        # == max in-kernel H-slice end: max(kh // s) + Ho
    PW = Wo + (2 // s)
    phase_arrays = []
    for p in range(s):
        for q in range(s):
            ph = x_pad[:, p::s, q::s, :][:, :PH, :PW, :]
            pad_h, pad_w = PH - ph.shape[1], PW - ph.shape[2]
            if pad_h or pad_w:
                ph = jnp.pad(ph, ((0, 0), (0, pad_h), (0, pad_w), (0, 0)))
            phase_arrays.append(ph.astype(jnp.bfloat16))

    # weights: OIHW -> (kh, kw, cin, cout) -> (9*cin, cout); bf16 for the MXU.
    # Downsample 1x1 conv fused as extra output columns on the centre-tap rows.
    w1m = jnp.transpose(params["w1"], (2, 3, 1, 0)).reshape(9 * Cin, C2)
    if has_ds:
        wdm = jnp.transpose(params["wd"], (2, 3, 1, 0)).reshape(Cin, C2)
        w1f = jnp.zeros((9 * Cin, 2 * C2), jnp.float32)
        w1f = w1f.at[:, :C2].set(w1m).at[4 * Cin:5 * Cin, C2:].set(wdm)
        Cf = 2 * C2
    else:
        w1f, Cf = w1m, C2
    w1f = w1f.astype(jnp.bfloat16)
    w2m = jnp.transpose(params["w2"], (2, 3, 1, 0)).reshape(9 * C2, C2).astype(jnp.bfloat16)

    tile_n = _pick_tile_n(N, s, Ho, Wo, Cin, C2, _TILE_VMEM_BUDGET)
    T = N // tile_n
    cp = _compiler_params()

    # lane-dense 2-D activation blocks: full array width -> unmasked dense stores/DMAs
    act2d = pl.BlockSpec((tile_n * Ho, Wo * C2), lambda i: (i, 0))
    stat_block = pl.BlockSpec((1, 2, C2), lambda i: (i, 0, 0))
    phase_block = pl.BlockSpec((tile_n, PH, PW, Cin), lambda i: (i, 0, 0, 0))

    def const2d(shape):        # weights / BN vectors: loaded once, resident across tiles
        return pl.BlockSpec(shape, lambda i: (0, 0))

    # ---------------- pass 1: conv1 (+ fused downsample conv) + stat partials ----------------
    p1_in = list(phase_arrays) + [w1f]
    p1_in_specs = [phase_block] * (s * s) + [const2d((9 * Cin, Cf))]
    p1_out_shape = [jax.ShapeDtypeStruct((N * Ho, Wo * C2), jnp.bfloat16),
                    jax.ShapeDtypeStruct((T, 2, C2), jnp.float32)]
    p1_out_specs = [act2d, stat_block]
    if has_ds:
        p1_out_shape += [jax.ShapeDtypeStruct((N * Ho, Wo * C2), jnp.bfloat16),
                         jax.ShapeDtypeStruct((T, 2, C2), jnp.float32)]
        p1_out_specs += [act2d, stat_block]

    p1_out = pl.pallas_call(
        functools.partial(_pass1_kernel, s, tile_n, Ho, Wo, Cin, C2, has_ds),
        grid=(T,),
        in_specs=p1_in_specs,
        out_specs=tuple(p1_out_specs),
        out_shape=tuple(p1_out_shape),
        compiler_params=cp,
    )(*p1_in)
    if has_ds:
        y1raw, st1, dsraw, std = p1_out
    else:
        y1raw, st1 = p1_out

    a1, c1 = _fold_bn(st1, params["g1"], params["b1"], M)
    a1t, c1t = jnp.tile(a1, (1, Wo)), jnp.tile(c1, (1, Wo))    # tiled along W -> lane-dense

    # ------------- pass 2: fused BN1+ReLU, conv2, BN2 stat partials -------------
    y2raw, st2 = pl.pallas_call(
        functools.partial(_pass2_kernel, tile_n, Ho, Wo, C2),
        grid=(T,),
        in_specs=[act2d, const2d((1, Wo * C2)), const2d((1, Wo * C2)),
                  const2d((9 * C2, C2))],
        out_specs=(act2d, stat_block),
        out_shape=(jax.ShapeDtypeStruct((N * Ho, Wo * C2), jnp.bfloat16),
                   jax.ShapeDtypeStruct((T, 2, C2), jnp.float32)),
        scratch_shapes=[pltpu.VMEM((tile_n, Ho + 2, Wo + 2, C2), jnp.bfloat16)],
        compiler_params=cp,
    )(y1raw, a1t, c1t, w2m)

    a2, c2 = _fold_bn(st2, params["g2"], params["b2"], M)
    a2t, c2t = jnp.tile(a2, (1, Wo)), jnp.tile(c2, (1, Wo))

    # ---------------- pass 3: BN2 + shortcut + final ReLU ----------------
    if has_ds:
        ad, cd = _fold_bn(std, params["gd"], params["bd"], M)
        adt, cdt = jnp.tile(ad, (1, Wo)), jnp.tile(cd, (1, Wo))
        p3_in = (y2raw, a2t, c2t, dsraw, adt, cdt)
        p3_specs = [act2d, const2d((1, Wo * C2)), const2d((1, Wo * C2)),
                    act2d, const2d((1, Wo * C2)), const2d((1, Wo * C2))]
    else:
        x_id2d = x_nhwc.reshape(N * H, W * Cin)     # identity read once, f32, lane-dense
        p3_in = (y2raw, a2t, c2t, x_id2d)
        p3_specs = [act2d, const2d((1, Wo * C2)), const2d((1, Wo * C2)), act2d]

    out2d = pl.pallas_call(
        functools.partial(_pass3_kernel, has_ds),
        grid=(T,),
        in_specs=p3_specs,
        out_specs=act2d,
        out_shape=jax.ShapeDtypeStruct((N * Ho, Wo * C2), jnp.float32),
        compiler_params=cp,
    )(*p3_in)

    out_nhwc = out2d.reshape(N, Ho, Wo, C2)
    return jnp.transpose(out_nhwc, (0, 3, 1, 2))    # NCHW at the API boundary (PyTorch)


def init_params(key, cin, cout, stride):
    ks = jax.random.split(key, 9)
    p = {
        "w1": jax.random.normal(ks[0], (cout, cin, 3, 3), jnp.float32) * (2.0 / (cin * 9)) ** 0.5,
        "g1": 1.0 + 0.1 * jax.random.normal(ks[1], (cout,), jnp.float32),
        "b1": 0.1 * jax.random.normal(ks[2], (cout,), jnp.float32),
        "w2": jax.random.normal(ks[3], (cout, cout, 3, 3), jnp.float32) * (2.0 / (cout * 9)) ** 0.5,
        "g2": 1.0 + 0.1 * jax.random.normal(ks[4], (cout,), jnp.float32),
        "b2": 0.1 * jax.random.normal(ks[5], (cout,), jnp.float32),
    }
    if stride != 1 or cin != cout:
        p["wd"] = jax.random.normal(ks[6], (cout, cin, 1, 1), jnp.float32) * (2.0 / cin) ** 0.5
        p["gd"] = 1.0 + 0.1 * jax.random.normal(ks[7], (cout,), jnp.float32)
        p["bd"] = 0.1 * jax.random.normal(ks[8], (cout,), jnp.float32)
    return p


def ref_forward(x, params, stride, *, match_kernel=False):
    """Pure-JAX reference mirroring PyTorch (training-mode BatchNorm).
    match_kernel=True mirrors the kernel's numerics: bf16 MXU operands, f32 accumulation,
    BN statistics from the f32 conv output, bf16-stored conv outputs, folded BN."""
    cdt = jnp.bfloat16 if match_kernel else jnp.float32

    def conv(x, w, s, pad):
        return lax.conv_general_dilated(
            x.astype(cdt), w.astype(cdt), (s, s), ((pad, pad), (pad, pad)),
            dimension_numbers=("NCHW", "OIHW", "NCHW"),
            preferred_element_type=jnp.float32)

    def bn(y_f32, g, b):
        mu = jnp.mean(y_f32, axis=(0, 2, 3), keepdims=True)
        var = jnp.mean(y_f32 * y_f32, axis=(0, 2, 3), keepdims=True) - mu * mu
        a = g.reshape(1, -1, 1, 1) * lax.rsqrt(var + EPS)
        c = b.reshape(1, -1, 1, 1) - mu * a
        yq = y_f32.astype(cdt).astype(jnp.float32) if match_kernel else y_f32
        return yq * a + c

    out = jax.nn.relu(bn(conv(x, params["w1"], stride, 1), params["g1"], params["b1"]))
    out = bn(conv(out, params["w2"], 1, 1), params["g2"], params["b2"])
    if "wd" in params:
        idn = bn(conv(x, params["wd"], stride, 0), params["gd"], params["bd"])
    else:
        idn = x
    return jax.nn.relu(out + idn)


if __name__ == "__main__":
    key = jax.random.PRNGKey(0)
    kx, kp1, kp2 = jax.random.split(key, 3)
    x = jax.random.normal(kx, (2, 4, 16, 16), jnp.float32)

    # Case 1: stride-2 block with channel expansion (downsample path active).
    params = init_params(kp1, 4, 8, 2)
    out = resnet18_block(x, params, stride=2)
    jax.block_until_ready(out)
    assert out.shape == (2, 8, 8, 8), out.shape
    err_m = float(jnp.max(jnp.abs(out - ref_forward(x, params, 2, match_kernel=True))))
    err_f = float(jnp.max(jnp.abs(out - ref_forward(x, params, 2))))
    assert err_m < 2e-3, f"downsample block vs quantization-matched reference: {err_m}"
    assert err_f < 1e-1, f"downsample block vs f32 reference: {err_f}"

    # Case 2: stride-1 block with same channels (identity shortcut).
    params2 = init_params(kp2, 4, 4, 1)
    out2 = resnet18_block(x, params2, stride=1)
    jax.block_until_ready(out2)
    assert out2.shape == (2, 4, 16, 16), out2.shape
    err2_m = float(jnp.max(jnp.abs(out2 - ref_forward(x, params2, 1, match_kernel=True))))
    err2_f = float(jnp.max(jnp.abs(out2 - ref_forward(x, params2, 1))))
    assert err2_m < 2e-3, f"identity block vs quantization-matched reference: {err2_m}"
    assert err2_f < 1e-1, f"identity block vs f32 reference: {err2_f}"

    print("KERNEL_OK")
</pallas_src>

<mosaic_0001>
module attributes {stable_mosaic.version = 11 : i64} {
  func.func @_pass1_kernel(%arg0: i32, %arg1: memref<2x9x9x4xbf16, #tpu.memory_space<vmem>>, %arg2: memref<2x9x9x4xbf16, #tpu.memory_space<vmem>>, %arg3: memref<2x9x9x4xbf16, #tpu.memory_space<vmem>>, %arg4: memref<2x9x9x4xbf16, #tpu.memory_space<vmem>>, %arg5: memref<36x16xbf16, #tpu.memory_space<vmem>>, %arg6: memref<16x64xbf16, #tpu.memory_space<vmem>>, %arg7: memref<1x2x8xf32, #tpu.memory_space<vmem>>, %arg8: memref<16x64xbf16, #tpu.memory_space<vmem>>, %arg9: memref<1x2x8xf32, #tpu.memory_space<vmem>>) attributes {dimension_semantics = [#tpu.dimension_semantics<parallel>], iteration_bounds = array<i64: 1>, scalar_prefetch = 0 : i64, scratch_operands = 0 : i64, tpu.core_type = #tpu.core_type<tc>, window_params = [{transform_indices = @transform_0, window_bounds = array<i64: 2, 9, 9, 4>}, {transform_indices = @transform_1, window_bounds = array<i64: 2, 9, 9, 4>}, {transform_indices = @transform_2, window_bounds = array<i64: 2, 9, 9, 4>}, {transform_indices = @transform_3, window_bounds = array<i64: 2, 9, 9, 4>}, {pipeline_mode = #tpu.pipeline_mode<synchronous>, transform_indices = @transform_4, window_bounds = array<i64: 36, 16>}, {transform_indices = @transform_5, window_bounds = array<i64: 16, 64>}, {transform_indices = @transform_6, window_bounds = array<i64: 1, 2, 8>}, {transform_indices = @transform_7, window_bounds = array<i64: 16, 64>}, {transform_indices = @transform_8, window_bounds = array<i64: 1, 2, 8>}]} {
    %c0 = arith.constant 0 : index
    %c0_0 = arith.constant 0 : index
    %c0_1 = arith.constant 0 : index
    %c0_2 = arith.constant 0 : index
    %0 = vector.load %arg1[%c0, %c0_0, %c0_1, %c0_2] : memref<2x9x9x4xbf16, #tpu.memory_space<vmem>>, vector<2x8x8x4xbf16>
    %1 = vector.shape_cast %0 : vector<2x8x8x4xbf16> to vector<128x4xbf16>
    %c0_3 = arith.constant 0 : index
    %c0_4 = arith.constant 0 : index
    %c0_5 = arith.constant 0 : index
    %c0_6 = arith.constant 0 : index
    %2 = vector.load %arg2[%c0_3, %c0_4, %c0_5, %c0_6] : memref<2x9x9x4xbf16, #tpu.memory_space<vmem>>, vector<2x8x8x4xbf16>
    %3 = vector.shape_cast %2 : vector<2x8x8x4xbf16> to vector<128x4xbf16>
    %c0_7 = arith.constant 0 : index
    %c0_8 = arith.constant 0 : index
    %c1 = arith.constant 1 : index
    %c0_9 = arith.constant 0 : index
    %4 = vector.load %arg1[%c0_7, %c0_8, %c1, %c0_9] : memref<2x9x9x4xbf16, #tpu.memory_space<vmem>>, vector<2x8x8x4xbf16>
    %5 = vector.shape_cast %4 : vector<2x8x8x4xbf16> to vector<128x4xbf16>
    %c0_10 = arith.constant 0 : index
    %c0_11 = arith.constant 0 : index
    %c0_12 = arith.constant 0 : index
    %c0_13 = arith.constant 0 : index
    %6 = vector.load %arg3[%c0_10, %c0_11, %c0_12, %c0_13] : memref<2x9x9x4xbf16, #tpu.memory_space<vmem>>, vector<2x8x8x4xbf16>
    %7 = vector.shape_cast %6 : vector<2x8x8x4xbf16> to vector<128x4xbf16>
    %c0_14 = arith.constant 0 : index
    %c0_15 = arith.constant 0 : index
    %c0_16 = arith.constant 0 : index
    %c0_17 = arith.constant 0 : index
    %8 = vector.load %arg4[%c0_14, %c0_15, %c0_16, %c0_17] : memref<2x9x9x4xbf16, #tpu.memory_space<vmem>>, vector<2x8x8x4xbf16>
    %9 = vector.shape_cast %8 : vector<2x8x8x4xbf16> to vector<128x4xbf16>
    %c0_18 = arith.constant 0 : index
    %c0_19 = arith.constant 0 : index
    %c1_20 = arith.constant 1 : index
    %c0_21 = arith.constant 0 : index
    %10 = vector.load %arg3[%c0_18, %c0_19, %c1_20, %c0_21] : memref<2x9x9x4xbf16, #tpu.memory_space<vmem>>, vector<2x8x8x4xbf16>
    %11 = vector.shape_cast %10 : vector<2x8x8x4xbf16> to vector<128x4xbf16>
    %c0_22 = arith.constant 0 : index
    %c1_23 = arith.constant 1 : index
    %c0_24 = arith.constant 0 : index
    %c0_25 = arith.constant 0 : index
    %12 = vector.load %arg1[%c0_22, %c1_23, %c0_24, %c0_25] : memref<2x9x9x4xbf16, #tpu.memory_space<vmem>>, vector<2x8x8x4xbf16>
    %13 = vector.shape_cast %12 : vector<2x8x8x4xbf16> to vector<128x4xbf16>
    %c0_26 = arith.constant 0 : index
    %c1_27 = arith.constant 1 : index
    %c0_28 = arith.constant 0 : index
    %c0_29 = arith.constant 0 : index
    %14 = vector.load %arg2[%c0_26, %c1_27, %c0_28, %c0_29] : memref<2x9x9x4xbf16, #tpu.memory_space<vmem>>, vector<2x8x8x4xbf16>
    %15 = vector.shape_cast %14 : vector<2x8x8x4xbf16> to vector<128x4xbf16>
    %c0_30 = arith.constant 0 : index
    %c1_31 = arith.constant 1 : index
    %c1_32 = arith.constant 1 : index
    %c0_33 = arith.constant 0 : index
    %16 = vector.load %arg1[%c0_30, %c1_31, %c1_32, %c0_33] : memref<2x9x9x4xbf16, #tpu.memory_space<vmem>>, vector<2x8x8x4xbf16>
    %17 = vector.shape_cast %16 : vector<2x8x8x4xbf16> to vector<128x4xbf16>
    %18 = tpu.concatenate %1, %3, %5, %7, %9, %11, %13, %15, %17 in 1 : vector<128x4xbf16>, vector<128x4xbf16>, vector<128x4xbf16>, vector<128x4xbf16>, vector<128x4xbf16>, vector<128x4xbf16>, vector<128x4xbf16>, vector<128x4xbf16>, vector<128x4xbf16> -> vector<128x36xbf16>
    %c0_34 = arith.constant 0 : index
    %c0_35 = arith.constant 0 : index
    %19 = vector.load %arg5[%c0_34, %c0_35] : memref<36x16xbf16, #tpu.memory_space<vmem>>, vector<36x16xbf16>
    %cst = arith.constant dense<0.000000e+00> : vector<128x16xf32>
    %20 = tpu.matmul %18, %19, %cst {dimension_numbers = #tpu.dot_dimension_numbers<[1], [0], [0], [1], [0, 0, 1, 1], [], []>} : vector<128x36xbf16>, vector<36x16xbf16>, vector<128x16xf32> -> vector<128x16xf32>
    %21 = vector.extract_strided_slice %20 {offsets = [0, 0], sizes = [128, 8], strides = [1, 1]} : vector<128x16xf32> to vector<128x8xf32>
    %cst_36 = arith.constant dense<0.000000e+00> : vector<8xf32>
    %22 = vector.multi_reduction <add>, %21, %cst_36 [0] : vector<128x8xf32> to vector<8xf32>
    %23 = vector.shape_cast %22 : vector<8xf32> to vector<1x8xf32>
    %24 = arith.mulf %21, %21 : vector<128x8xf32>
    %cst_37 = arith.constant dense<0.000000e+00> : vector<8xf32>
    %25 = vector.multi_reduction <add>, %24, %cst_37 [0] : vector<128x8xf32> to vector<8xf32>
    %26 = vector.shape_cast %25 : vector<8xf32> to vector<1x8xf32>
    %27 = tpu.concatenate %23, %26 in 0 : vector<1x8xf32>, vector<1x8xf32> -> vector<2x8xf32>
    %28 = vector.shape_cast %27 : vector<2x8xf32> to vector<1x2x8xf32>
    %c0_38 = arith.constant 0 : index
    %c0_39 = arith.constant 0 : index
    %c0_40 = arith.constant 0 : index
    %29 = vector.load %arg7[%c0_38, %c0_39, %c0_40] : memref<1x2x8xf32, #tpu.memory_space<vmem>>, vector<1x2x8xf32>
    tpu.vector_store %arg7[%c0_38, %c0_39, %c0_40], %28 {strides = array<i32>} : memref<1x2x8xf32, #tpu.memory_space<vmem>>, vector<1x2x8xf32>,
    %30 = arith.truncf %21 : vector<128x8xf32> to vector<128x8xbf16>
    %31 = vector.shape_cast %30 : vector<128x8xbf16> to vector<16x8x8xbf16>
    %32 = vector.extract_strided_slice %31 {offsets = [0, 0, 0], sizes = [16, 1, 8], strides = [1, 1, 1]} : vector<16x8x8xbf16> to vector<16x1x8xbf16>
    %33 = vector.shape_cast %32 : vector<16x1x8xbf16> to vector<16x8xbf16>
    %34 = vector.extract_strided_slice %31 {offsets = [0, 1, 0], sizes = [16, 1, 8], strides = [1, 1, 1]} : vector<16x8x8xbf16> to vector<16x1x8xbf16>
    %35 = vector.shape_cast %34 : vector<16x1x8xbf16> to vector<16x8xbf16>
    %36 = vector.extract_strided_slice %31 {offsets = [0, 2, 0], sizes = [16, 1, 8], strides = [1, 1, 1]} : vector<16x8x8xbf16> to vector<16x1x8xbf16>
    %37 = vector.shape_cast %36 : vector<16x1x8xbf16> to vector<16x8xbf16>
    %38 = vector.extract_strided_slice %31 {offsets = [0, 3, 0], sizes = [16, 1, 8], strides = [1, 1, 1]} : vector<16x8x8xbf16> to vector<16x1x8xbf16>
    %39 = vector.shape_cast %38 : vector<16x1x8xbf16> to vector<16x8xbf16>
    %40 = vector.extract_strided_slice %31 {offsets = [0, 4, 0], sizes = [16, 1, 8], strides = [1, 1, 1]} : vector<16x8x8xbf16> to vector<16x1x8xbf16>
    %41 = vector.shape_cast %40 : vector<16x1x8xbf16> to vector<16x8xbf16>
    %42 = vector.extract_strided_slice %31 {offsets = [0, 5, 0], sizes = [16, 1, 8], strides = [1, 1, 1]} : vector<16x8x8xbf16> to vector<16x1x8xbf16>
    %43 = vector.shape_cast %42 : vector<16x1x8xbf16> to vector<16x8xbf16>
    %44 = vector.extract_strided_slice %31 {offsets = [0, 6, 0], sizes = [16, 1, 8], strides = [1, 1, 1]} : vector<16x8x8xbf16> to vector<16x1x8xbf16>
    %45 = vector.shape_cast %44 : vector<16x1x8xbf16> to vector<16x8xbf16>
    %46 = vector.extract_strided_slice %31 {offsets = [0, 7, 0], sizes = [16, 1, 8], strides = [1, 1, 1]} : vector<16x8x8xbf16> to vector<16x1x8xbf16>
    %47 = vector.shape_cast %46 : vector<16x1x8xbf16> to vector<16x8xbf16>
    %48 = tpu.concatenate %33, %35, %37, %39, %41, %43, %45, %47 in 1 : vector<16x8xbf16>, vector<16x8xbf16>, vector<16x8xbf16>, vector<16x8xbf16>, vector<16x8xbf16>, vector<16x8xbf16>, vector<16x8xbf16>, vector<16x8xbf16> -> vector<16x64xbf16>
    %c0_41 = arith.constant 0 : index
    %c0_42 = arith.constant 0 : index
    %49 = vector.load %arg6[%c0_41, %c0_42] : memref<16x64xbf16, #tpu.memory_space<vmem>>, vector<16x64xbf16>
    tpu.vector_store %arg6[%c0_41, %c0_42], %48 {strides = array<i32>} : memref<16x64xbf16, #tpu.memory_space<vmem>>, vector<16x64xbf16>,
    %50 = vector.extract_strided_slice %20 {offsets = [0, 8], sizes = [128, 8], strides = [1, 1]} : vector<128x16xf32> to vector<128x8xf32>
    %cst_43 = arith.constant dense<0.000000e+00> : vector<8xf32>
    %51 = vector.multi_reduction <add>, %50, %cst_43 [0] : vector<128x8xf32> to vector<8xf32>
    %52 = vector.shape_cast %51 : vector<8xf32> to vector<1x8xf32>
    %53 = arith.mulf %50, %50 : vector<128x8xf32>
    %cst_44 = arith.constant dense<0.000000e+00> : vector<8xf32>
    %54 = vector.multi_reduction <add>, %53, %cst_44 [0] : vector<128x8xf32> to vector<8xf32>
    %55 = vector.shape_cast %54 : vector<8xf32> to vector<1x8xf32>
    %56 = tpu.concatenate %52, %55 in 0 : vector<1x8xf32>, vector<1x8xf32> -> vector<2x8xf32>
    %57 = vector.shape_cast %56 : vector<2x8xf32> to vector<1x2x8xf32>
    %c0_45 = arith.constant 0 : index
    %c0_46 = arith.constant 0 : index
    %c0_47 = arith.constant 0 : index
    %58 = vector.load %arg9[%c0_45, %c0_46, %c0_47] : memref<1x2x8xf32, #tpu.memory_space<vmem>>, vector<1x2x8xf32>
    tpu.vector_store %arg9[%c0_45, %c0_46, %c0_47], %57 {strides = array<i32>} : memref<1x2x8xf32, #tpu.memory_space<vmem>>, vector<1x2x8xf32>,
    %59 = arith.truncf %50 : vector<128x8xf32> to vector<128x8xbf16>
    %60 = vector.shape_cast %59 : vector<128x8xbf16> to vector<16x8x8xbf16>
    %61 = vector.extract_strided_slice %60 {offsets = [0, 0, 0], sizes = [16, 1, 8], strides = [1, 1, 1]} : vector<16x8x8xbf16> to vector<16x1x8xbf16>
    %62 = vector.shape_cast %61 : vector<16x1x8xbf16> to vector<16x8xbf16>
    %63 = vector.extract_strided_slice %60 {offsets = [0, 1, 0], sizes = [16, 1, 8], strides = [1, 1, 1]} : vector<16x8x8xbf16> to vector<16x1x8xbf16>
    %64 = vector.shape_cast %63 : vector<16x1x8xbf16> to vector<16x8xbf16>
    %65 = vector.extract_strided_slice %60 {offsets = [0, 2, 0], sizes = [16, 1, 8], strides = [1, 1, 1]} : vector<16x8x8xbf16> to vector<16x1x8xbf16>
    %66 = vector.shape_cast %65 : vector<16x1x8xbf16> to vector<16x8xbf16>
    %67 = vector.extract_strided_slice %60 {offsets = [0, 3, 0], sizes = [16, 1, 8], strides = [1, 1, 1]} : vector<16x8x8xbf16> to vector<16x1x8xbf16>
    %68 = vector.shape_cast %67 : vector<16x1x8xbf16> to vector<16x8xbf16>
    %69 = vector.extract_strided_slice %60 {offsets = [0, 4, 0], sizes = [16, 1, 8], strides = [1, 1, 1]} : vector<16x8x8xbf16> to vector<16x1x8xbf16>
    %70 = vector.shape_cast %69 : vector<16x1x8xbf16> to vector<16x8xbf16>
    %71 = vector.extract_strided_slice %60 {offsets = [0, 5, 0], sizes = [16, 1, 8], strides = [1, 1, 1]} : vector<16x8x8xbf16> to vector<16x1x8xbf16>
    %72 = vector.shape_cast %71 : vector<16x1x8xbf16> to vector<16x8xbf16>
    %73 = vector.extract_strided_slice %60 {offsets = [0, 6, 0], sizes = [16, 1, 8], strides = [1, 1, 1]} : vector<16x8x8xbf16> to vector<16x1x8xbf16>
    %74 = vector.shape_cast %73 : vector<16x1x8xbf16> to vector<16x8xbf16>
    %75 = vector.extract_strided_slice %60 {offsets = [0, 7, 0], sizes = [16, 1, 8], strides = [1, 1, 1]} : vector<16x8x8xbf16> to vector<16x1x8xbf16>
    %76 = vector.shape_cast %75 : vector<16x1x8xbf16> to vector<16x8xbf16>
    %77 = tpu.concatenate %62, %64, %66, %68, %70, %72, %74, %76 in 1 : vector<16x8xbf16>, vector<16x8xbf16>, vector<16x8xbf16>, vector<16x8xbf16>, vector<16x8xbf16>, vector<16x8xbf16>, vector<16x8xbf16>, vector<16x8xbf16> -> vector<16x64xbf16>
    %c0_48 = arith.constant 0 : index
    %c0_49 = arith.constant 0 : index
    %78 = vector.load %arg8[%c0_48, %c0_49] : memref<16x64xbf16, #tpu.memory_space<vmem>>, vector<16x64xbf16>
    tpu.vector_store %arg8[%c0_48, %c0_49], %77 {strides = array<i32>} : memref<16x64xbf16, #tpu.memory_space<vmem>>, vector<16x64xbf16>,
    return
  }
  func.func @transform_0(%arg0: i32) -> (i32, i32, i32, i32) {
    %c0_i32 = arith.constant 0 : i32
    %c0_i32_0 = arith.constant 0 : i32
    %c0_i32_1 = arith.constant 0 : i32
    %c0_i32_2 = arith.constant 0 : i32
    return %arg0, %c0_i32, %c0_i32_0, %c0_i32_1 : i32, i32, i32, i32
  }
  func.func @transform_1(%arg0: i32) -> (i32, i32, i32, i32) {
    %c0_i32 = arith.constant 0 : i32
    %c0_i32_0 = arith.constant 0 : i32
    %c0_i32_1 = arith.constant 0 : i32
    %c0_i32_2 = arith.constant 0 : i32
    return %arg0, %c0_i32, %c0_i32_0, %c0_i32_1 : i32, i32, i32, i32
  }
  func.func @transform_2(%arg0: i32) -> (i32, i32, i32, i32) {
    %c0_i32 = arith.constant 0 : i32
    %c0_i32_0 = arith.constant 0 : i32
    %c0_i32_1 = arith.constant 0 : i32
    %c0_i32_2 = arith.constant 0 : i32
    return %arg0, %c0_i32, %c0_i32_0, %c0_i32_1 : i32, i32, i32, i32
  }
  func.func @transform_3(%arg0: i32) -> (i32, i32, i32, i32) {
    %c0_i32 = arith.constant 0 : i32
    %c0_i32_0 = arith.constant 0 : i32
    %c0_i32_1 = arith.constant 0 : i32
    %c0_i32_2 = arith.constant 0 : i32
    return %arg0, %c0_i32, %c0_i32_0, %c0_i32_1 : i32, i32, i32, i32
  }
  func.func @transform_4(%arg0: i32) -> (i32, i32) {
    %c0_i32 = arith.constant 0 : i32
    %c0_i32_0 = arith.constant 0 : i32
    %c0_i32_1 = arith.constant 0 : i32
    return %c0_i32, %c0_i32_0 : i32, i32
  }
  func.func @transform_5(%arg0: i32) -> (i32, i32) {
    %c0_i32 = arith.constant 0 : i32
    %c0_i32_0 = arith.constant 0 : i32
    return %arg0, %c0_i32 : i32, i32
  }
  func.func @transform_6(%arg0: i32) -> (i32, i32, i32) {
    %c0_i32 = arith.constant 0 : i32
    %c0_i32_0 = arith.constant 0 : i32
    %c0_i32_1 = arith.constant 0 : i32
    return %arg0, %c0_i32, %c0_i32_0 : i32, i32, i32
  }
  func.func @transform_7(%arg0: i32) -> (i32, i32) {
    %c0_i32 = arith.constant 0 : i32
    %c0_i32_0 = arith.constant 0 : i32
    return %arg0, %c0_i32 : i32, i32
  }
  func.func @transform_8(%arg0: i32) -> (i32, i32, i32) {
    %c0_i32 = arith.constant 0 : i32
    %c0_i32_0 = arith.constant 0 : i32
    %c0_i32_1 = arith.constant 0 : i32
    return %arg0, %c0_i32, %c0_i32_0 : i32, i32, i32
  }
}

module attributes {stable_mosaic.version = 11 : i64} {
  func.func @_pass2_kernel(%arg0: i32, %arg1: memref<16x64xbf16, #tpu.memory_space<vmem>>, %arg2: memref<1x64xf32, #tpu.memory_space<vmem>>, %arg3: memref<1x64xf32, #tpu.memory_space<vmem>>, %arg4: memref<72x8xbf16, #tpu.memory_space<vmem>>, %arg5: memref<16x64xbf16, #tpu.memory_space<vmem>>, %arg6: memref<1x2x8xf32, #tpu.memory_space<vmem>>, %arg7: memref<2x10x10x8xbf16, #tpu.memory_space<vmem>>) attributes {dimension_semantics = [#tpu.dimension_semantics<parallel>], iteration_bounds = array<i64: 1>, scalar_prefetch = 0 : i64, scratch_operands = 1 : i64, tpu.core_type = #tpu.core_type<tc>, window_params = [{transform_indices = @transform_0, window_bounds = array<i64: 16, 64>}, {pipeline_mode = #tpu.pipeline_mode<synchronous>, transform_indices = @transform_1, window_bounds = array<i64: 1, 64>}, {pipeline_mode = #tpu.pipeline_mode<synchronous>, transform_indices = @transform_2, window_bounds = array<i64: 1, 64>}, {pipeline_mode = #tpu.pipeline_mode<synchronous>, transform_indices = @transform_3, window_bounds = array<i64: 72, 8>}, {transform_indices = @transform_4, window_bounds = array<i64: 16, 64>}, {transform_indices = @transform_5, window_bounds = array<i64: 1, 2, 8>}]} {
    %c0 = arith.constant 0 : index
    %c0_0 = arith.constant 0 : index
    %0 = vector.load %arg1[%c0, %c0_0] : memref<16x64xbf16, #tpu.memory_space<vmem>>, vector<16x64xbf16>
    %1 = arith.extf %0 : vector<16x64xbf16> to vector<16x64xf32>
    %c0_1 = arith.constant 0 : index
    %c0_2 = arith.constant 0 : index
    %2 = vector.load %arg2[%c0_1, %c0_2] : memref<1x64xf32, #tpu.memory_space<vmem>>, vector<1x64xf32>
    %3 = vector.broadcast %2 : vector<1x64xf32> to vector<16x64xf32>
    %4 = arith.mulf %1, %3 : vector<16x64xf32>
    %c0_3 = arith.constant 0 : index
    %c0_4 = arith.constant 0 : index
    %5 = vector.load %arg3[%c0_3, %c0_4] : memref<1x64xf32, #tpu.memory_space<vmem>>, vector<1x64xf32>
    %6 = vector.broadcast %5 : vector<1x64xf32> to vector<16x64xf32>
    %7 = arith.addf %4, %6 : vector<16x64xf32>
    %cst = arith.constant 0.000000e+00 : f32
    %8 = vector.broadcast %cst : f32 to vector<16x64xf32>
    %9 = arith.maximumf %7, %8 : vector<16x64xf32>
    %10 = arith.truncf %9 : vector<16x64xf32> to vector<16x64xbf16>
    %cst_5 = arith.constant 0.000000e+00 : bf16
    %11 = vector.broadcast %cst_5 : bf16 to vector<2x1x10x8xbf16>
    %c0_6 = arith.constant 0 : index
    %c0_7 = arith.constant 0 : index
    %c0_8 = arith.constant 0 : index
    %c0_9 = arith.constant 0 : index
    %12 = vector.load %arg7[%c0_6, %c0_7, %c0_8, %c0_9] : memref<2x10x10x8xbf16, #tpu.memory_space<vmem>>, vector<2x1x10x8xbf16>
    tpu.vector_store %arg7[%c0_6, %c0_7, %c0_8, %c0_9], %11 {strides = array<i32>} : memref<2x10x10x8xbf16, #tpu.memory_space<vmem>>, vector<2x1x10x8xbf16>,
    %cst_10 = arith.constant 0.000000e+00 : bf16
    %13 = vector.broadcast %cst_10 : bf16 to vector<2x1x10x8xbf16>
    %c0_11 = arith.constant 0 : index
    %c9 = arith.constant 9 : index
    %c0_12 = arith.constant 0 : index
    %c0_13 = arith.constant 0 : index
    %14 = vector.load %arg7[%c0_11, %c9, %c0_12, %c0_13] : memref<2x10x10x8xbf16, #tpu.memory_space<vmem>>, vector<2x1x10x8xbf16>
    tpu.vector_store %arg7[%c0_11, %c9, %c0_12, %c0_13], %13 {strides = array<i32>} : memref<2x10x10x8xbf16, #tpu.memory_space<vmem>>, vector<2x1x10x8xbf16>,
    %cst_14 = arith.constant 0.000000e+00 : bf16
    %15 = vector.broadcast %cst_14 : bf16 to vector<2x10x1x8xbf16>
    %c0_15 = arith.constant 0 : index
    %c0_16 = arith.constant 0 : index
    %c0_17 = arith.constant 0 : index
    %c0_18 = arith.constant 0 : index
    %16 = vector.load %arg7[%c0_15, %c0_16, %c0_17, %c0_18] : memref<2x10x10x8xbf16, #tpu.memory_space<vmem>>, vector<2x10x1x8xbf16>
    tpu.vector_store %arg7[%c0_15, %c0_16, %c0_17, %c0_18], %15 {strides = array<i32>} : memref<2x10x10x8xbf16, #tpu.memory_space<vmem>>, vector<2x10x1x8xbf16>,
    %cst_19 = arith.constant 0.000000e+00 : bf16
    %17 = vector.broadcast %cst_19 : bf16 to vector<2x10x1x8xbf16>
    %c0_20 = arith.constant 0 : index
    %c0_21 = arith.constant 0 : index
    %c9_22 = arith.constant 9 : index
    %c0_23 = arith.constant 0 : index
    %18 = vector.load %arg7[%c0_20, %c0_21, %c9_22, %c0_23] : memref<2x10x10x8xbf16, #tpu.memory_space<vmem>>, vector<2x10x1x8xbf16>
    tpu.vector_store %arg7[%c0_20, %c0_21, %c9_22, %c0_23], %17 {strides = array<i32>} : memref<2x10x10x8xbf16, #tpu.memory_space<vmem>>, vector<2x10x1x8xbf16>,
    %19 = vector.extract_strided_slice %10 {offsets = [0, 0], sizes = [16, 8], strides = [1, 1]} : vector<16x64xbf16> to vector<16x8xbf16>
    %20 = vector.shape_cast %19 : vector<16x8xbf16> to vector<2x8x8xbf16>
    %c0_24 = arith.constant 0 : index
    %c1 = arith.constant 1 : index
    %c1_25 = arith.constant 1 : index
    %c0_26 = arith.constant 0 : index
    %21 = vector.load %arg7[%c0_24, %c1, %c1_25, %c0_26] : memref<2x10x10x8xbf16, #tpu.memory_space<vmem>>, vector<2x8x1x8xbf16>
    %22 = vector.shape_cast %21 : vector<2x8x1x8xbf16> to vector<2x8x8xbf16>
    %23 = vector.shape_cast %20 : vector<2x8x8xbf16> to vector<2x8x1x8xbf16>
    tpu.vector_store %arg7[%c0_24, %c1, %c1_25, %c0_26], %23 {strides = array<i32>} : memref<2x10x10x8xbf16, #tpu.memory_space<vmem>>, vector<2x8x1x8xbf16>,
    %24 = vector.extract_strided_slice %10 {offsets = [0, 8], sizes = [16, 8], strides = [1, 1]} : vector<16x64xbf16> to vector<16x8xbf16>
    %25 = vector.shape_cast %24 : vector<16x8xbf16> to vector<2x8x8xbf16>
    %c0_27 = arith.constant 0 : index
    %c1_28 = arith.constant 1 : index
    %c2 = arith.constant 2 : index
    %c0_29 = arith.constant 0 : index
    %26 = vector.load %arg7[%c0_27, %c1_28, %c2, %c0_29] : memref<2x10x10x8xbf16, #tpu.memory_space<vmem>>, vector<2x8x1x8xbf16>
    %27 = vector.shape_cast %26 : vector<2x8x1x8xbf16> to vector<2x8x8xbf16>
    %28 = vector.shape_cast %25 : vector<2x8x8xbf16> to vector<2x8x1x8xbf16>
    tpu.vector_store %arg7[%c0_27, %c1_28, %c2, %c0_29], %28 {strides = array<i32>} : memref<2x10x10x8xbf16, #tpu.memory_space<vmem>>, vector<2x8x1x8xbf16>,
    %29 = vector.extract_strided_slice %10 {offsets = [0, 16], sizes = [16, 8], strides = [1, 1]} : vector<16x64xbf16> to vector<16x8xbf16>
    %30 = vector.shape_cast %29 : vector<16x8xbf16> to vector<2x8x8xbf16>
    %c0_30 = arith.constant 0 : index
    %c1_31 = arith.constant 1 : index
    %c3 = arith.constant 3 : index
    %c0_32 = arith.constant 0 : index
    %31 = vector.load %arg7[%c0_30, %c1_31, %c3, %c0_32] : memref<2x10x10x8xbf16, #tpu.memory_space<vmem>>, vector<2x8x1x8xbf16>
    %32 = vector.shape_cast %31 : vector<2x8x1x8xbf16> to vector<2x8x8xbf16>
    %33 = vector.shape_cast %30 : vector<2x8x8xbf16> to vector<2x8x1x8xbf16>
    tpu.vector_store %arg7[%c0_30, %c1_31, %c3, %c0_32], %33 {strides = array<i32>} : memref<2x10x10x8xbf16, #tpu.memory_space<vmem>>, vector<2x8x1x8xbf16>,
    %34 = vector.extract_strided_slice %10 {offsets = [0, 24], sizes = [16, 8], strides = [1, 1]} : vector<16x64xbf16> to vector<16x8xbf16>
    %35 = vector.shape_cast %34 : vector<16x8xbf16> to vector<2x8x8xbf16>
    %c0_33 = arith.constant 0 : index
    %c1_34 = arith.constant 1 : index
    %c4 = arith.constant 4 : index
    %c0_35 = arith.constant 0 : index
    %36 = vector.load %arg7[%c0_33, %c1_34, %c4, %c0_35] : memref<2x10x10x8xbf16, #tpu.memory_space<vmem>>, vector<2x8x1x8xbf16>
    %37 = vector.shape_cast %36 : vector<2x8x1x8xbf16> to vector<2x8x8xbf16>
    %38 = vector.shape_cast %35 : vector<2x8x8xbf16> to vector<2x8x1x8xbf16>
    tpu.vector_store %arg7[%c0_33, %c1_34, %c4, %c0_35], %38 {strides = array<i32>} : memref<2x10x10x8xbf16, #tpu.memory_space<vmem>>, vector<2x8x1x8xbf16>,
    %39 = vector.extract_strided_slice %10 {offsets = [0, 32], sizes = [16, 8], strides = [1, 1]} : vector<16x64xbf16> to vector<16x8xbf16>
    %40 = vector.shape_cast %39 : vector<16x8xbf16> to vector<2x8x8xbf16>
    %c0_36 = arith.constant 0 : index
    %c1_37 = arith.constant 1 : index
    %c5 = arith.constant 5 : index
    %c0_38 = arith.constant 0 : index
    %41 = vector.load %arg7[%c0_36, %c1_37, %c5, %c0_38] : memref<2x10x10x8xbf16, #tpu.memory_space<vmem>>, vector<2x8x1x8xbf16>
    %42 = vector.shape_cast %41 : vector<2x8x1x8xbf16> to vector<2x8x8xbf16>
    %43 = vector.shape_cast %40 : vector<2x8x8xbf16> to vector<2x8x1x8xbf16>
    tpu.vector_store %arg7[%c0_36, %c1_37, %c5, %c0_38], %43 {strides = array<i32>} : memref<2x10x10x8xbf16, #tpu.memory_space<vmem>>, vector<2x8x1x8xbf16>,
    %44 = vector.extract_strided_slice %10 {offsets = [0, 40], sizes = [16, 8], strides = [1, 1]} : vector<16x64xbf16> to vector<16x8xbf16>
    %45 = vector.shape_cast %44 : vector<16x8xbf16> to vector<2x8x8xbf16>
    %c0_39 = arith.constant 0 : index
    %c1_40 = arith.constant 1 : index
    %c6 = arith.constant 6 : index
    %c0_41 = arith.constant 0 : index
    %46 = vector.load %arg7[%c0_39, %c1_40, %c6, %c0_41] : memref<2x10x10x8xbf16, #tpu.memory_space<vmem>>, vector<2x8x1x8xbf16>
    %47 = vector.shape_cast %46 : vector<2x8x1x8xbf16> to vector<2x8x8xbf16>
    %48 = vector.shape_cast %45 : vector<2x8x8xbf16> to vector<2x8x1x8xbf16>
    tpu.vector_store %arg7[%c0_39, %c1_40, %c6, %c0_41], %48 {strides = array<i32>} : memref<2x10x10x8xbf16, #tpu.memory_space<vmem>>, vector<2x8x1x8xbf16>,
    %49 = vector.extract_strided_slice %10 {offsets = [0, 48], sizes = [16, 8], strides = [1, 1]} : vector<16x64xbf16> to vector<16x8xbf16>
    %50 = vector.shape_cast %49 : vector<16x8xbf16> to vector<2x8x8xbf16>
    %c0_42 = arith.constant 0 : index
    %c1_43 = arith.constant 1 : index
    %c7 = arith.constant 7 : index
    %c0_44 = arith.constant 0 : index
    %51 = vector.load %arg7[%c0_42, %c1_43, %c7, %c0_44] : memref<2x10x10x8xbf16, #tpu.memory_space<vmem>>, vector<2x8x1x8xbf16>
    %52 = vector.shape_cast %51 : vector<2x8x1x8xbf16> to vector<2x8x8xbf16>
    %53 = vector.shape_cast %50 : vector<2x8x8xbf16> to vector<2x8x1x8xbf16>
    tpu.vector_store %arg7[%c0_42, %c1_43, %c7, %c0_44], %53 {strides = array<i32>} : memref<2x10x10x8xbf16, #tpu.memory_space<vmem>>, vector<2x8x1x8xbf16>,
    %54 = vector.extract_strided_slice %10 {offsets = [0, 56], sizes = [16, 8], strides = [1, 1]} : vector<16x64xbf16> to vector<16x8xbf16>
    %55 = vector.shape_cast %54 : vector<16x8xbf16> to vector<2x8x8xbf16>
    %c0_45 = arith.constant 0 : index
    %c1_46 = arith.constant 1 : index
    %c8 = arith.constant 8 : index
    %c0_47 = arith.constant 0 : index
    %56 = vector.load %arg7[%c0_45, %c1_46, %c8, %c0_47] : memref<2x10x10x8xbf16, #tpu.memory_space<vmem>>, vector<2x8x1x8xbf16>
    %57 = vector.shape_cast %56 : vector<2x8x1x8xbf16> to vector<2x8x8xbf16>
    %58 = vector.shape_cast %55 : vector<2x8x8xbf16> to vector<2x8x1x8xbf16>
    tpu.vector_store %arg7[%c0_45, %c1_46, %c8, %c0_47], %58 {strides = array<i32>} : memref<2x10x10x8xbf16, #tpu.memory_space<vmem>>, vector<2x8x1x8xbf16>,
    %c0_48 = arith.constant 0 : index
    %c0_49 = arith.constant 0 : index
    %c0_50 = arith.constant 0 : index
    %c0_51 = arith.constant 0 : index
    %59 = vector.load %arg7[%c0_48, %c0_49, %c0_50, %c0_51] : memref<2x10x10x8xbf16, #tpu.memory_space<vmem>>, vector<2x8x8x8xbf16>
    %60 = vector.shape_cast %59 : vector<2x8x8x8xbf16> to vector<128x8xbf16>
    %c0_52 = arith.constant 0 : index
    %c0_53 = arith.constant 0 : index
    %c1_54 = arith.constant 1 : index
    %c0_55 = arith.constant 0 : index
    %61 = vector.load %arg7[%c0_52, %c0_53, %c1_54, %c0_55] : memref<2x10x10x8xbf16, #tpu.memory_space<vmem>>, vector<2x8x8x8xbf16>
    %62 = vector.shape_cast %61 : vector<2x8x8x8xbf16> to vector<128x8xbf16>
    %c0_56 = arith.constant 0 : index
    %c0_57 = arith.constant 0 : index
    %c2_58 = arith.constant 2 : index
    %c0_59 = arith.constant 0 : index
    %63 = vector.load %arg7[%c0_56, %c0_57, %c2_58, %c0_59] : memref<2x10x10x8xbf16, #tpu.memory_space<vmem>>, vector<2x8x8x8xbf16>
    %64 = vector.shape_cast %63 : vector<2x8x8x8xbf16> to vector<128x8xbf16>
    %c0_60 = arith.constant 0 : index
    %c1_61 = arith.constant 1 : index
    %c0_62 = arith.constant 0 : index
    %c0_63 = arith.constant 0 : index
    %65 = vector.load %arg7[%c0_60, %c1_61, %c0_62, %c0_63] : memref<2x10x10x8xbf16, #tpu.memory_space<vmem>>, vector<2x8x8x8xbf16>
    %66 = vector.shape_cast %65 : vector<2x8x8x8xbf16> to vector<128x8xbf16>
    %c0_64 = arith.constant 0 : index
    %c1_65 = arith.constant 1 : index
    %c1_66 = arith.constant 1 : index
    %c0_67 = arith.constant 0 : index
    %67 = vector.load %arg7[%c0_64, %c1_65, %c1_66, %c0_67] : memref<2x10x10x8xbf16, #tpu.memory_space<vmem>>, vector<2x8x8x8xbf16>
    %68 = vector.shape_cast %67 : vector<2x8x8x8xbf16> to vector<128x8xbf16>
    %c0_68 = arith.constant 0 : index
    %c1_69 = arith.constant 1 : index
    %c2_70 = arith.constant 2 : index
    %c0_71 = arith.constant 0 : index
    %69 = vector.load %arg7[%c0_68, %c1_69, %c2_70, %c0_71] : memref<2x10x10x8xbf16, #tpu.memory_space<vmem>>, vector<2x8x8x8xbf16>
    %70 = vector.shape_cast %69 : vector<2x8x8x8xbf16> to vector<128x8xbf16>
    %c0_72 = arith.constant 0 : index
    %c2_73 = arith.constant 2 : index
    %c0_74 = arith.constant 0 : index
    %c0_75 = arith.constant 0 : index
    %71 = vector.load %arg7[%c0_72, %c2_73, %c0_74, %c0_75] : memref<2x10x10x8xbf16, #tpu.memory_space<vmem>>, vector<2x8x8x8xbf16>
    %72 = vector.shape_cast %71 : vector<2x8x8x8xbf16> to vector<128x8xbf16>
    %c0_76 = arith.constant 0 : index
    %c2_77 = arith.constant 2 : index
    %c1_78 = arith.constant 1 : index
    %c0_79 = arith.constant 0 : index
    %73 = vector.load %arg7[%c0_76, %c2_77, %c1_78, %c0_79] : memref<2x10x10x8xbf16, #tpu.memory_space<vmem>>, vector<2x8x8x8xbf16>
    %74 = vector.shape_cast %73 : vector<2x8x8x8xbf16> to vector<128x8xbf16>
    %c0_80 = arith.constant 0 : index
    %c2_81 = arith.constant 2 : index
    %c2_82 = arith.constant 2 : index
    %c0_83 = arith.constant 0 : index
    %75 = vector.load %arg7[%c0_80, %c2_81, %c2_82, %c0_83] : memref<2x10x10x8xbf16, #tpu.memory_space<vmem>>, vector<2x8x8x8xbf16>
    %76 = vector.shape_cast %75 : vector<2x8x8x8xbf16> to vector<128x8xbf16>
    %77 = tpu.concatenate %60, %62, %64, %66, %68, %70, %72, %74, %76 in 1 : vector<128x8xbf16>, vector<128x8xbf16>, vector<128x8xbf16>, vector<128x8xbf16>, vector<128x8xbf16>, vector<128x8xbf16>, vector<128x8xbf16>, vector<128x8xbf16>, vector<128x8xbf16> -> vector<128x72xbf16>
    %c0_84 = arith.constant 0 : index
    %c0_85 = arith.constant 0 : index
    %78 = vector.load %arg4[%c0_84, %c0_85] : memref<72x8xbf16, #tpu.memory_space<vmem>>, vector<72x8xbf16>
    %cst_86 = arith.constant dense<0.000000e+00> : vector<128x8xf32>
    %79 = tpu.matmul %77, %78, %cst_86 {dimension_numbers = #tpu.dot_dimension_numbers<[1], [0], [0], [1], [0, 0, 1, 1], [], []>} : vector<128x72xbf16>, vector<72x8xbf16>, vector<128x8xf32> -> vector<128x8xf32>
    %cst_87 = arith.constant dense<0.000000e+00> : vector<8xf32>
    %80 = vector.multi_reduction <add>, %79, %cst_87 [0] : vector<128x8xf32> to vector<8xf32>
    %81 = vector.shape_cast %80 : vector<8xf32> to vector<1x8xf32>
    %82 = arith.mulf %79, %79 : vector<128x8xf32>
    %cst_88 = arith.constant dense<0.000000e+00> : vector<8xf32>
    %83 = vector.multi_reduction <add>, %82, %cst_88 [0] : vector<128x8xf32> to vector<8xf32>
    %84 = vector.shape_cast %83 : vector<8xf32> to vector<1x8xf32>
    %85 = tpu.concatenate %81, %84 in 0 : vector<1x8xf32>, vector<1x8xf32> -> vector<2x8xf32>
    %86 = vector.shape_cast %85 : vector<2x8xf32> to vector<1x2x8xf32>
    %c0_89 = arith.constant 0 : index
    %c0_90 = arith.constant 0 : index
    %c0_91 = arith.constant 0 : index
    %87 = vector.load %arg6[%c0_89, %c0_90, %c0_91] : memref<1x2x8xf32, #tpu.memory_space<vmem>>, vector<1x2x8xf32>
    tpu.vector_store %arg6[%c0_89, %c0_90, %c0_91], %86 {strides = array<i32>} : memref<1x2x8xf32, #tpu.memory_space<vmem>>, vector<1x2x8xf32>,
    %88 = arith.truncf %79 : vector<128x8xf32> to vector<128x8xbf16>
    %89 = vector.shape_cast %88 : vector<128x8xbf16> to vector<16x8x8xbf16>
    %90 = vector.extract_strided_slice %89 {offsets = [0, 0, 0], sizes = [16, 1, 8], strides = [1, 1, 1]} : vector<16x8x8xbf16> to vector<16x1x8xbf16>
    %91 = vector.shape_cast %90 : vector<16x1x8xbf16> to vector<16x8xbf16>
    %92 = vector.extract_strided_slice %89 {offsets = [0, 1, 0], sizes = [16, 1, 8], strides = [1, 1, 1]} : vector<16x8x8xbf16> to vector<16x1x8xbf16>
    %93 = vector.shape_cast %92 : vector<16x1x8xbf16> to vector<16x8xbf16>
    %94 = vector.extract_strided_slice %89 {offsets = [0, 2, 0], sizes = [16, 1, 8], strides = [1, 1, 1]} : vector<16x8x8xbf16> to vector<16x1x8xbf16>
    %95 = vector.shape_cast %94 : vector<16x1x8xbf16> to vector<16x8xbf16>
    %96 = vector.extract_strided_slice %89 {offsets = [0, 3, 0], sizes = [16, 1, 8], strides = [1, 1, 1]} : vector<16x8x8xbf16> to vector<16x1x8xbf16>
    %97 = vector.shape_cast %96 : vector<16x1x8xbf16> to vector<16x8xbf16>
    %98 = vector.extract_strided_slice %89 {offsets = [0, 4, 0], sizes = [16, 1, 8], strides = [1, 1, 1]} : vector<16x8x8xbf16> to vector<16x1x8xbf16>
    %99 = vector.shape_cast %98 : vector<16x1x8xbf16> to vector<16x8xbf16>
    %100 = vector.extract_strided_slice %89 {offsets = [0, 5, 0], sizes = [16, 1, 8], strides = [1, 1, 1]} : vector<16x8x8xbf16> to vector<16x1x8xbf16>
    %101 = vector.shape_cast %100 : vector<16x1x8xbf16> to vector<16x8xbf16>
    %102 = vector.extract_strided_slice %89 {offsets = [0, 6, 0], sizes = [16, 1, 8], strides = [1, 1, 1]} : vector<16x8x8xbf16> to vector<16x1x8xbf16>
    %103 = vector.shape_cast %102 : vector<16x1x8xbf16> to vector<16x8xbf16>
    %104 = vector.extract_strided_slice %89 {offsets = [0, 7, 0], sizes = [16, 1, 8], strides = [1, 1, 1]} : vector<16x8x8xbf16> to vector<16x1x8xbf16>
    %105 = vector.shape_cast %104 : vector<16x1x8xbf16> to vector<16x8xbf16>
    %106 = tpu.concatenate %91, %93, %95, %97, %99, %101, %103, %105 in 1 : vector<16x8xbf16>, vector<16x8xbf16>, vector<16x8xbf16>, vector<16x8xbf16>, vector<16x8xbf16>, vector<16x8xbf16>, vector<16x8xbf16>, vector<16x8xbf16> -> vector<16x64xbf16>
    %c0_92 = arith.constant 0 : index
    %c0_93 = arith.constant 0 : index
    %107 = vector.load %arg5[%c0_92, %c0_93] : memref<16x64xbf16, #tpu.memory_space<vmem>>, vector<16x64xbf16>
    tpu.vector_store %arg5[%c0_92, %c0_93], %106 {strides = array<i32>} : memref<16x64xbf16, #tpu.memory_space<vmem>>, vector<16x64xbf16>,
    return
  }
  func.func @transform_0(%arg0: i32) -> (i32, i32) {
    %c0_i32 = arith.constant 0 : i32
    %c0_i32_0 = arith.constant 0 : i32
    return %arg0, %c0_i32 : i32, i32
  }
  func.func @transform_1(%arg0: i32) -> (i32, i32) {
    %c0_i32 = arith.constant 0 : i32
    %c0_i32_0 = arith.constant 0 : i32
    %c0_i32_1 = arith.constant 0 : i32
    return %c0_i32, %c0_i32_0 : i32, i32
  }
  func.func @transform_2(%arg0: i32) -> (i32, i32) {
    %c0_i32 = arith.constant 0 : i32
    %c0_i32_0 = arith.constant 0 : i32
    %c0_i32_1 = arith.constant 0 : i32
    return %c0_i32, %c0_i32_0 : i32, i32
  }
  func.func @transform_3(%arg0: i32) -> (i32, i32) {
    %c0_i32 = arith.constant 0 : i32
    %c0_i32_0 = arith.constant 0 : i32
    %c0_i32_1 = arith.constant 0 : i32
    return %c0_i32, %c0_i32_0 : i32, i32
  }
  func.func @transform_4(%arg0: i32) -> (i32, i32) {
    %c0_i32 = arith.constant 0 : i32
    %c0_i32_0 = arith.constant 0 : i32
    return %arg0, %c0_i32 : i32, i32
  }
  func.func @transform_5(%arg0: i32) -> (i32, i32, i32) {
    %c0_i32 = arith.constant 0 : i32
    %c0_i32_0 = arith.constant 0 : i32
    %c0_i32_1 = arith.constant 0 : i32
    return %arg0, %c0_i32, %c0_i32_0 : i32, i32, i32
  }
}

module attributes {stable_mosaic.version = 11 : i64} {
  func.func @_pass3_kernel(%arg0: i32, %arg1: memref<16x64xbf16, #tpu.memory_space<vmem>>, %arg2: memref<1x64xf32, #tpu.memory_space<vmem>>, %arg3: memref<1x64xf32, #tpu.memory_space<vmem>>, %arg4: memref<16x64xbf16, #tpu.memory_space<vmem>>, %arg5: memref<1x64xf32, #tpu.memory_space<vmem>>, %arg6: memref<1x64xf32, #tpu.memory_space<vmem>>, %arg7: memref<16x64xf32, #tpu.memory_space<vmem>>) attributes {dimension_semantics = [#tpu.dimension_semantics<parallel>], iteration_bounds = array<i64: 1>, scalar_prefetch = 0 : i64, scratch_operands = 0 : i64, tpu.core_type = #tpu.core_type<tc>, window_params = [{transform_indices = @transform_0, window_bounds = array<i64: 16, 64>}, {pipeline_mode = #tpu.pipeline_mode<synchronous>, transform_indices = @transform_1, window_bounds = array<i64: 1, 64>}, {pipeline_mode = #tpu.pipeline_mode<synchronous>, transform_indices = @transform_2, window_bounds = array<i64: 1, 64>}, {transform_indices = @transform_3, window_bounds = array<i64: 16, 64>}, {pipeline_mode = #tpu.pipeline_mode<synchronous>, transform_indices = @transform_4, window_bounds = array<i64: 1, 64>}, {pipeline_mode = #tpu.pipeline_mode<synchronous>, transform_indices = @transform_5, window_bounds = array<i64: 1, 64>}, {transform_indices = @transform_6, window_bounds = array<i64: 16, 64>}]} {
    %c0 = arith.constant 0 : index
    %c0_0 = arith.constant 0 : index
    %0 = vector.load %arg4[%c0, %c0_0] : memref<16x64xbf16, #tpu.memory_space<vmem>>, vector<16x64xbf16>
    %1 = arith.extf %0 : vector<16x64xbf16> to vector<16x64xf32>
    %c0_1 = arith.constant 0 : index
    %c0_2 = arith.constant 0 : index
    %2 = vector.load %arg5[%c0_1, %c0_2] : memref<1x64xf32, #tpu.memory_space<vmem>>, vector<1x64xf32>
    %3 = vector.broadcast %2 : vector<1x64xf32> to vector<16x64xf32>
    %4 = arith.mulf %1, %3 : vector<16x64xf32>
    %c0_3 = arith.constant 0 : index
    %c0_4 = arith.constant 0 : index
    %5 = vector.load %arg6[%c0_3, %c0_4] : memref<1x64xf32, #tpu.memory_space<vmem>>, vector<1x64xf32>
    %6 = vector.broadcast %5 : vector<1x64xf32> to vector<16x64xf32>
    %7 = arith.addf %4, %6 : vector<16x64xf32>
    %c0_5 = arith.constant 0 : index
    %c0_6 = arith.constant 0 : index
    %8 = vector.load %arg1[%c0_5, %c0_6] : memref<16x64xbf16, #tpu.memory_space<vmem>>, vector<16x64xbf16>
    %9 = arith.extf %8 : vector<16x64xbf16> to vector<16x64xf32>
    %c0_7 = arith.constant 0 : index
    %c0_8 = arith.constant 0 : index
    %10 = vector.load %arg2[%c0_7, %c0_8] : memref<1x64xf32, #tpu.memory_space<vmem>>, vector<1x64xf32>
    %11 = vector.broadcast %10 : vector<1x64xf32> to vector<16x64xf32>
    %12 = arith.mulf %9, %11 : vector<16x64xf32>
    %c0_9 = arith.constant 0 : index
    %c0_10 = arith.constant 0 : index
    %13 = vector.load %arg3[%c0_9, %c0_10] : memref<1x64xf32, #tpu.memory_space<vmem>>, vector<1x64xf32>
    %14 = vector.broadcast %13 : vector<1x64xf32> to vector<16x64xf32>
    %15 = arith.addf %12, %14 : vector<16x64xf32>
    %16 = arith.addf %15, %7 : vector<16x64xf32>
    %cst = arith.constant 0.000000e+00 : f32
    %17 = vector.broadcast %cst : f32 to vector<16x64xf32>
    %18 = arith.maximumf %16, %17 : vector<16x64xf32>
    %c0_11 = arith.constant 0 : index
    %c0_12 = arith.constant 0 : index
    %19 = vector.load %arg7[%c0_11, %c0_12] : memref<16x64xf32, #tpu.memory_space<vmem>>, vector<16x64xf32>
    tpu.vector_store %arg7[%c0_11, %c0_12], %18 {strides = array<i32>} : memref<16x64xf32, #tpu.memory_space<vmem>>, vector<16x64xf32>,
    return
  }
  func.func @transform_0(%arg0: i32) -> (i32, i32) {
    %c0_i32 = arith.constant 0 : i32
    %c0_i32_0 = arith.constant 0 : i32
    return %arg0, %c0_i32 : i32, i32
  }
  func.func @transform_1(%arg0: i32) -> (i32, i32) {
    %c0_i32 = arith.constant 0 : i32
    %c0_i32_0 = arith.constant 0 : i32
    %c0_i32_1 = arith.constant 0 : i32
    return %c0_i32, %c0_i32_0 : i32, i32
  }
  func.func @transform_2(%arg0: i32) -> (i32, i32) {
    %c0_i32 = arith.constant 0 : i32
    %c0_i32_0 = arith.constant 0 : i32
    %c0_i32_1 = arith.constant 0 : i32
    return %c0_i32, %c0_i32_0 : i32, i32
  }
  func.func @transform_3(%arg0: i32) -> (i32, i32) {
    %c0_i32 = arith.constant 0 : i32
    %c0_i32_0 = arith.constant 0 : i32
    return %arg0, %c0_i32 : i32, i32
  }
  func.func @transform_4(%arg0: i32) -> (i32, i32) {
    %c0_i32 = arith.constant 0 : i32
    %c0_i32_0 = arith.constant 0 : i32
    %c0_i32_1 = arith.constant 0 : i32
    return %c0_i32, %c0_i32_0 : i32, i32
  }
  func.func @transform_5(%arg0: i32) -> (i32, i32) {
    %c0_i32 = arith.constant 0 : i32
    %c0_i32_0 = arith.constant 0 : i32
    %c0_i32_1 = arith.constant 0 : i32
    return %c0_i32, %c0_i32_0 : i32, i32
  }
  func.func @transform_6(%arg0: i32) -> (i32, i32) {
    %c0_i32 = arith.constant 0 : i32
    %c0_i32_0 = arith.constant 0 : i32
    return %arg0, %c0_i32 : i32, i32
  }
}

</mosaic_0001>

<bundles_post_ra>
// kernel: resnet18_block.5
= control target key start
LH: loop header
LB: loop body
LE: loop exit
PB: predicated region body
PF: predicated region fallthrough
CT: control target
= control target key end

     0   :  { %vm71_vm0 = vcmask 523264   ;;  %s149_s0 = inlined_call_operand.vmem [shape: bf16[16,64], index: 0, kind: input, shape index: {}]   ;;  %s150_s1 = inlined_call_operand.vmem [shape: f32[1,64], index: 1, kind: input, shape index: {}]   ;;  %s151_s3 = inlined_call_operand.vmem [shape: bf16[16,64], index: 3, kind: input, shape index: {}]   ;;  %s152_s4 = inlined_call_operand.vmem [shape: f32[1,64], index: 4, kind: input, shape index: {}]   ;;  %s153_s5 = inlined_call_operand.vmem [shape: f32[1,64], index: 5, kind: input, shape index: {}]   ;;  %s154_s2 = inlined_call_operand.vmem [shape: f32[1,64], index: 2, kind: input, shape index: {}]   ;;  %s155_s6 = inlined_call_operand.vmem [shape: f32[16,64], index: 6, kind: output, shape index: {}]  }
   0x1   :  { %v83_v0 = vld [vmem:[%s151_s3] sm:$0xff]  }
   0x2   :  { %v78_v1 = vld [vmem:[%s152_s4] ss:$0 sm:$0xff]  ;;  %v84_v2 = vunpack.c.l.bf16 %v83_v0  ;;  %v85_v5 = vunpack.c.h.bf16 %v83_v0 }
   0x3   :  { %v87_v3 = vld [vmem:[%s149_s0] sm:$0xff]  }
   0x4   :  { %v80_v4 = vld [vmem:[%s150_s1] ss:$0 sm:$0xff]  ;;  %v88_v7 = vunpack.c.l.bf16 %v87_v3  ;;  %v89_v8 = vunpack.c.h.bf16 %v87_v3  ;;  %v34_v9 = vmul.f32 %v84_v2, %v78_v1  ;;  %v35_v11 = vmul.f32 %v85_v5, %v78_v1 }
   0x5   :  { %v79_v6 = vld [vmem:[%s153_s5] ss:$0 sm:$0xff] }
   0x6   :  { %v81_v10 = vld [vmem:[%s154_s2] ss:$0 sm:$0xff]  ;;  %v56_v12 = vmul.f32 %v88_v7, %v80_v4  ;;  %v57_v13 = vmul.f32 %v89_v8, %v80_v4  ;;  %v43_v14 = vadd.f32 %v79_v6, %v34_v9  ;;  %v44_v15 = vadd.f32 %v79_v6, %v35_v11 }
   0x8   :  { %v65_v16 = vadd.f32 %v81_v10, %v56_v12  ;;  %v66_v17 = vadd.f32 %v81_v10, %v57_v13 }
   0xa   :  { %v67_v18 = vadd.f32 %v65_v16, %v43_v14  ;;  %v68_v19 = vadd.f32 %v66_v17, %v44_v15 }
   0xc   :  { %v69_v20 = vmax.f32 %v67_v18, 0.0  ;;  %v70_v21 = vmax.f32 %v68_v19, 0.0 }
   0xe   :  { %72 = vst.msk [vmem:[%s155_s6] sm:$0xff] %vm71_vm0, %v69_v20  ;;  %73 = vst.msk [vmem:[%s155_s6 + $0x8] sm:$0xff] %vm71_vm0, %v70_v21 }

// kernel: resnet18_block.3
= control target key start
LH: loop header
LB: loop body
LE: loop exit
PB: predicated region body
PF: predicated region fallthrough
CT: control target
= control target key end

     0   :  { %s2413_s11 = smov 4   ;;  %vm73_vm0 = vsmask.f32 3328  ;;  %vm74_vm1 = vsmask.f32 7440  ;;  %s2414_s14 = smov 12   ;;  %s3820_s1 = inlined_call_operand.vmem [shape: bf16[2,9,9,4], index: 1, kind: input, shape index: {}]   ;;  %s3821_s2 = inlined_call_operand.vmem [shape: bf16[2,9,9,4], index: 2, kind: input, shape index: {}]   ;;  %s3822_s3 = inlined_call_operand.vmem [shape: bf16[2,9,9,4], index: 3, kind: input, shape index: {}]   ;;  %s3823_s0 = inlined_call_operand.vmem [shape: bf16[2,9,9,4], index: 0, kind: input, shape index: {}]   ;;  %s3824_s4 = inlined_call_operand.vmem [shape: bf16[36,16], index: 4, kind: input, shape index: {}]   ;;  %s3825_s6 = inlined_call_operand.vmem [shape: f32[1,2,8], index: 6, kind: output, shape index: {1}]   ;;  %s3826_s5 = inlined_call_operand.vmem [shape: bf16[16,64], index: 5, kind: output, shape index: {0}]   ;;  %s3827_s8 = inlined_call_operand.vmem [shape: f32[1,2,8], index: 8, kind: output, shape index: {3}]   ;;  %s3828_s7 = inlined_call_operand.vmem [shape: bf16[16,64], index: 7, kind: output, shape index: {2}]  }
   0x1   :  { %v2362_v0 = vld [vmem:[%s3820_s1] ss:$8 sps:$4 sm:$0xff]   ;;  %v302_v1 = vld [vmem:[%s3821_s2 + $0x10] sm:$0xf]  ;;  %v303_v2 = vld [vmem:[%s3821_s2 + $0x18] sm:$0xf] }
   0x2   :  { %926 = vrot.lane.b32.xlu0 %v2362_v0, %s2413_s11  ;;  %v391_v3 = vshrl.u32 %v303_v2, 16  ;;  %v394_v4 = vshll.u32 %v303_v2, 16  ;;  %v2215_v5 = vcombine.low %v302_v1, %v303_v2  ;;  %v377_v6 = vshrl.u32 %v302_v1, 16  ;;  %v2364_v8 = vld [vmem:[%s3820_s1 + $0x10] ss:$8 sps:$4 sm:$0xff]   ;;  %s2415_s27 = smov 16   ;;  %vm2545_vm2 = vmor %vm73_vm0, %vm74_vm1 }
   0x3   :  { %v380_v7 = vshll.u32 %v302_v1, 16  ;;  %v2365_v13 = vld [vmem:[%s3822_s3 + $0x10] ss:$8 sps:$4 sm:$0xff]   ;;  %v300_v14 = vld [vmem:[%s3821_s2] sm:$0xf]  ;;  %s2416_s12 = smov 8  }
   0x4   :  { %v393_v9 = vrot.slane %v391_v3, 4  ;;  %v396_v10 = vrot.slane %v394_v4, 5  ;;  %1024 = vrot.lane.b32.xlu1 %v2215_v5, %s2414_s14  ;;  %v379_v11 = vrot.slane %v377_v6, 4  ;;  %v301_v16 = vld [vmem:[%s3821_s2 + $0x8] sm:$0xf]  ;;  %v349_v17 = vshrl.u32 %v300_v14, 16 }
   0x5   :  { %v382_v12 = vrot.slane %v380_v7, 5  ;;  %v352_v18 = vshll.u32 %v300_v14, 16  ;;  %v2497_v19 = vld [vmem:[%s3823_s0] sm:$0xf]  ;;  %v363_v21 = vshrl.u32 %v301_v16, 16  ;;  %v366_v22 = vshll.u32 %v301_v16, 16 }
   0x6   :  { %v397_v15 = vor.u32 %v396_v10, %v393_v9  ;;  %928 = vrot.lane.b32.xlu0 %v2364_v8, %s2413_s11  ;;  %v2214_v23 = vcombine.low %v300_v14, %v301_v16  ;;  %v2502_v24 = vld [vmem:[%s3823_s0 + $0x8] sm:$0xf]  ;;  %v57_v25 = vld [vmem:[%s3823_s0 + $0x4] sm:$0x1]  ;;  %v351_v27 = vrot.slane %v349_v17, 4  ;;  %v77_v30 = vshrl.u32 %v2497_v19, 16 }
   0x7   :  { %v383_v20 = vor.u32 %v382_v12, %v379_v11  ;;  %v354_v28 = vrot.slane %v352_v18, 5  ;;  %v58_v29 = vld [vmem:[%s3823_s0 + $0xc] sm:$0x1]  ;;  %v365_v32 = vrot.slane %v363_v21, 4  ;;  %v368_v33 = vrot.slane %v366_v22, 5  ;;  %s2417_s22 = smov 20  }
   0x8   :  { %v2507_v26 = vrot.slane %v397_v15, 4  ;;  %1080 = vrot.lane.b32.xlu1 %v2365_v13, %s2415_s27  ;;  %v80_v34 = vshll.u32 %v2497_v19, 16  ;;  %v79_v35 = vrot.slane %v77_v30, 4  ;;  %v86_v36 = vshll.u32 %v57_v25, 16  ;;  %v2367_v41 = vld [vmem:[%s3822_s3] ss:$8 sps:$4 sm:$0xff]  }
   0x9   :  { %v2514_v31 = vrot.slane %v383_v20, 4  ;;  %v91_v37 = vshrl.u32 %v2502_v24, 16  ;;  %v94_v38 = vshll.u32 %v2502_v24, 16  ;;  %v100_v40 = vshll.u32 %v58_v29, 16  ;;  %v2526_v42 = vld [vmem:[%s3823_s0 + $0x10] sm:$0xf] }
   0xa   :  { %1022 = vrot.lane.b32.xlu0 %v2214_v23, %s2414_s14  ;;  %v82_v39 = vrot.slane %v80_v34, 5  ;;  %v355_v43 = vor.u32 %v354_v28, %v351_v27  ;;  %v369_v44 = vor.u32 %v368_v33, %v365_v32  ;;  %v88_v45 = vrot.slane %v86_v36, 5  ;;  %v2531_v48 = vld [vmem:[%s3823_s0 + $0x18] sm:$0xf]  ;;  %v59_v52 = vld [vmem:[%s3823_s0 + $0x14] sm:$0x1] }
   0xb   :  { %v93_v46 = vrot.slane %v91_v37, 4  ;;  %v96_v47 = vrot.slane %v94_v38, 5  ;;  %v105_v49 = vshrl.u32 %v2526_v42, 16  ;;  %v102_v51 = vrot.slane %v100_v40, 5  ;;  %v60_v53 = vld [vmem:[%s3823_s0 + $0x1c] sm:$0x1] }
   0xc   :  { %v83_v50 = vor.u32 %v82_v39, %v79_v35  ;;  %v108_v54 = vshll.u32 %v2526_v42, 16  ;;  %v2190_v55 = vcombine.low %v2497_v19, %v2502_v24  ;;  %v114_v59 = vshll.u32 %v59_v52, 16  ;;  %v332_v61 = vld [vmem:[%s3821_s2 + $0x4] sm:$0x1]  ;;  %v333_v2 = vld [vmem:[%s3821_s2 + $0xc] sm:$0x1] }
   0xd   :  { %v97_v57 = vor.u32 %v96_v47, %v93_v46  ;;  %v107_v58 = vrot.slane %v105_v49, 4  ;;  %v119_v60 = vshrl.u32 %v2531_v48, 16  ;;  %v122_v0 = vshll.u32 %v2531_v48, 16  ;;  %v334_v7 = vld [vmem:[%s3821_s2 + $0x14] sm:$0x1]  ;;  %s2418_s28 = smov 24  }
   0xe   :  { %1078 = vrot.lane.b32.xlu0 %v2367_v41, %s2415_s27  ;;  %v84_v62 = vrot.slane %v83_v50, 4  ;;  %v110_v63 = vrot.slane %v108_v54, 5  ;;  %v128_v1 = vshll.u32 %v60_v53, 16  ;;  %v116_v4 = vrot.slane %v114_v59, 5  ;;  %v335_v12 = vld [vmem:[%s3821_s2 + $0x1c] sm:$0x1] }
   0xf   :  { %v98_v3 = vrot.slane %v97_v57, 4  ;;  %v121_v5 = vrot.slane %v119_v60, 4  ;;  %v356_v6 = vrot.slane %v355_v43, 4  ;;  %v124_v10 = vrot.slane %v122_v0, 5  ;;  %v2143_v17 = vld [vmem:[%s3823_s0 + $0x10] sm:$0xf] }
  0x10   :  { %v89_v8 = vsel %vm2545_vm2, %v84_v62, %v88_v45  ;;  %v111_v9 = vor.u32 %v110_v63, %v107_v58  ;;  %v130_v11 = vrot.slane %v128_v1, 5  ;;  %v358_v14 = vshll.u32 %v332_v61, 16  ;;  %v2142_v23 = vld [vmem:[%s3823_s0 + $0x8] sm:$0xf]  ;;  %v2584_v39 = vld [vmem:[%s3823_s0 + $0x18] sm:$0xf] }
  0x11   :  { %v103_v13 = vsel %vm2545_vm2, %v98_v3, %v102_v51  ;;  %v370_v15 = vrot.slane %v369_v44, 4  ;;  %v372_v16 = vshll.u32 %v333_v2, 16  ;;  %v125_v21 = vor.u32 %v124_v10, %v121_v5  ;;  %v2145_v45 = vld [vmem:[%s3823_s0 + $0x20] sm:$0xf]  ;;  %v2174_v51 = vld [vmem:[%s3823_s0 + $0xc] sm:$0x1] }
  0x12   :  { %v2206_v18 = vcombine.low %v89_v8, %v103_v13  ;;  %v112_v20 = vrot.slane %v111_v9, 4  ;;  %v386_v22 = vshll.u32 %v334_v7, 16  ;;  %v360_v25 = vrot.slane %v358_v14, 5  ;;  %v2370_v0 = vld [vmem:[%s3820_s1 + $0x8] ss:$8 sps:$4 sm:$0xff]   ;;  %s2419_s18 = smov 28  }
  0x13   :  { %v374_v27 = vrot.slane %v372_v16, 5  ;;  %v400_v28 = vshll.u32 %v335_v12, 16  ;;  %v637_v29 = vshrl.u32 %v2143_v17, 16  ;;  %v126_v32 = vrot.slane %v125_v21, 4  ;;  %v2177_v9 = vld [vmem:[%s3823_s0 + $0x24] sm:$0x1] }
  0x14   :  { %966 = vrot.lane.b32.xlu1 %v2206_v18, %s2416_s12  ;;  %v117_v30 = vsel %vm2545_vm2, %v112_v20, %v116_v4  ;;  %v388_v33 = vrot.slane %v386_v22, 5  ;;  %v640_v34 = vshll.u32 %v2143_v17, 16  ;;  %v361_v35 = vsel %vm2545_vm2, %v356_v6, %v360_v25  ;;  %v2176_v6 = vld [vmem:[%s3823_s0 + $0x1c] sm:$0x1]  ;;  %v2371_v20 = vld [vmem:[%s3820_s1 + $0x18] ss:$8 sps:$4 sm:$0xff]  }
  0x15   :  { %v375_v36 = vsel %vm2545_vm2, %v370_v15, %v374_v27  ;;  %v402_v37 = vrot.slane %v400_v28, 5  ;;  %v639_v38 = vrot.slane %v637_v29, 4  ;;  %v131_v40 = vsel %vm2545_vm2, %v126_v32, %v130_v11  ;;  %v2627_v25 = vld [vmem:[%s3823_s0 + $0x20] sm:$0xf]  ;;  %v2632_v27 = vld [vmem:[%s3823_s0 + $0x28] sm:$0xf] }
  0x16   :  { %v2230_v41 = vcombine.low %v361_v35, %v375_v36  ;;  %v389_v43 = vsel %vm2545_vm2, %v2514_v31, %v388_v33  ;;  %v642_v44 = vrot.slane %v640_v34, 5  ;;  %v2207_v46 = vcombine.low %v117_v30, %v131_v40  ;;  %v2175_v31 = vld [vmem:[%s3823_s0 + $0x14] sm:$0x1]  ;;  %v61_v32 = vld [vmem:[%s3823_s0 + $0x24] sm:$0x1]  ;;  %s2420_s15 = smov 32  }
  0x17   :  { %v403_v47 = vsel %vm2545_vm2, %v2507_v26, %v402_v37  ;;  %v2238_v49 = vcombine.low %v2142_v23, %v2143_v17  ;;  %v623_v50 = vshrl.u32 %v2142_v23, 16  ;;  %v626_v53 = vshll.u32 %v2142_v23, 16  ;;  %v62_v33 = vld [vmem:[%s3823_s0 + $0x2c] sm:$0x1]  ;;  %v2656_v40 = vld [vmem:[%s3823_s0 + $0x30] sm:$0xf] }
  0x18   :  { %1118 = vrot.lane.b32.xlu0 %v2230_v41, %s2417_s22  ;;  %v2231_v52 = vcombine.low %v389_v43, %v403_v47  ;;  %v651_v54 = vshrl.u32 %v2584_v39, 16  ;;  %v654_v57 = vshll.u32 %v2584_v39, 16  ;;  %968 = vrot.lane.b32.xlu1 %v2207_v46, %s2416_s12  ;;  %v665_v58 = vshrl.u32 %v2145_v45, 16  ;;  %v2661_v41 = vld [vmem:[%s3823_s0 + $0x38] sm:$0xf] }
  0x19   :  { %v625_v26 = vrot.slane %v623_v50, 4  ;;  %v668_v59 = vshll.u32 %v2145_v45, 16  ;;  %v2239_v60 = vcombine.low %v2584_v39, %v2145_v45  ;;  %v628_v61 = vrot.slane %v626_v53, 5  ;;  %v63_v47 = vld [vmem:[%s3823_s0 + $0x34] sm:$0x1] }
  0x1a   :  { %v653_v62 = vrot.slane %v651_v54, 4  ;;  %v656_v63 = vrot.slane %v654_v57, 5  ;;  %v632_v1 = vshll.u32 %v2174_v51, 16  ;;  %v667_v2 = vrot.slane %v665_v58, 4  ;;  %v2676_v58 = vld [vmem:[%s3821_s2 + $0x20] sm:$0xf] }
  0x1b   :  { %v670_v3 = vrot.slane %v668_v59, 5  ;;  %v643_v4 = vor.u32 %v642_v44, %v639_v38  ;;  %v646_v5 = vshll.u32 %v2175_v31, 16  ;;  %v629_v7 = vor.u32 %v628_v61, %v625_v26  ;;  %v64_v31 = vld [vmem:[%s3823_s0 + $0x3c] sm:$0x1]  ;;  %v2372_v59 = vld [vmem:[%s3820_s1 + $0x20] ss:$8 sps:$4 sm:$0xff]  }
  0x1c   :  { %1174 = vrot.lane.b32.xlu0 %v2238_v49, %s2418_s28  ;;  %v634_v8 = vrot.slane %v632_v1, 5  ;;  %v657_v10 = vor.u32 %v656_v63, %v653_v62  ;;  %v660_v11 = vshll.u32 %v2176_v6, 16  ;;  %1120 = vrot.lane.b32.xlu1 %v2231_v52, %s2417_s22  ;;  %v674_v15 = vshll.u32 %v2177_v9, 16 }
  0x1d   :  { %v644_v12 = vrot.slane %v643_v4, 4  ;;  %v648_v13 = vrot.slane %v646_v5, 5  ;;  %v671_v14 = vor.u32 %v670_v3, %v667_v2  ;;  %v630_v16 = vrot.slane %v629_v7, 4  ;;  %v305_v4 = vld [vmem:[%s3821_s2 + $0x28] sm:$0xf] }
  0x1e   :  { %v658_v17 = vrot.slane %v657_v10, 4  ;;  %v662_v18 = vrot.slane %v660_v11, 5  ;;  %v676_v23 = vrot.slane %v674_v15, 5  ;;  %v2191_v28 = vcombine.low %v2526_v42, %v2531_v48  ;;  %v2373_v5 = vld [vmem:[%s3820_s1 + $0x30] ss:$8 sps:$4 sm:$0xff]  }
  0x1f   :  { %v649_v21 = vsel %vm2545_vm2, %v644_v12, %v648_v13  ;;  %v672_v22 = vrot.slane %v671_v14, 4  ;;  %v635_v29 = vsel %vm2545_vm2, %v630_v16, %v634_v8  ;;  %v133_v34 = vshrl.u32 %v2627_v25, 16  ;;  %v2694_v10 = vld [vmem:[%s3821_s2 + $0x30] sm:$0xf] }
  0x20   :  { %1230 = vrot.lane.b32.xlu0 %v2370_v0, %s2419_s18  ;;  %v663_v30 = vsel %vm2545_vm2, %v658_v17, %v662_v18  ;;  %v136_v35 = vshll.u32 %v2627_v25, 16  ;;  %1176 = vrot.lane.b32.xlu1 %v2239_v60, %s2418_s28  ;;  %v2254_v36 = vcombine.low %v635_v29, %v649_v21  ;;  %v142_v38 = vshll.u32 %v61_v32, 16 }
  0x21   :  { %v677_v37 = vsel %vm2545_vm2, %v672_v22, %v676_v23  ;;  %v147_v39 = vshrl.u32 %v2632_v27, 16  ;;  %v135_v44 = vrot.slane %v133_v34, 4  ;;  %v150_v46 = vshll.u32 %v2632_v27, 16 }
  0x22   :  { %v2255_v43 = vcombine.low %v663_v30, %v677_v37  ;;  %v138_v45 = vrot.slane %v136_v35, 5  ;;  %v144_v49 = vrot.slane %v142_v38, 5  ;;  %v156_v51 = vshll.u32 %v62_v33, 16 }
  0x23   :  { %v149_v50 = vrot.slane %v147_v39, 4  ;;  %v161_v52 = vshrl.u32 %v2656_v40, 16  ;;  %v152_v54 = vrot.slane %v150_v46, 5  ;;  %v164_v57 = vshll.u32 %v2656_v40, 16  ;;  %v336_v39 = vld [vmem:[%s3821_s2 + $0x24] sm:$0x1] }
  0x24   :  { %1270 = vrot.lane.b32.xlu0 %v2254_v36, %s2420_s15  ;;  %v139_v53 = vor.u32 %v138_v45, %v135_v44  ;;  %v170_v26 = vshll.u32 %v63_v47, 16  ;;  %1232 = vrot.lane.b32.xlu1 %v2371_v20, %s2419_s18  ;;  %v158_v60 = vrot.slane %v156_v51, 5  ;;  %v175_v62 = vshrl.u32 %v2661_v41, 16  ;;  %v307_v20 = vld [vmem:[%s3821_s2 + $0x38] sm:$0xf] }
  0x25   :  { %v163_v61 = vrot.slane %v161_v52, 4  ;;  %v178_v63 = vshll.u32 %v2661_v41, 16  ;;  %v153_v1 = vor.u32 %v152_v54, %v149_v50  ;;  %v166_v2 = vrot.slane %v164_v57, 5  ;;  %v337_v47 = vld [vmem:[%s3821_s2 + $0x2c] sm:$0x1] }
  0x26   :  { %v140_v0 = vrot.slane %v139_v53, 4  ;;  %v172_v3 = vrot.slane %v170_v26, 5  ;;  %v177_v6 = vrot.slane %v175_v62, 4  ;;  %v184_v8 = vshll.u32 %v64_v31, 16  ;;  %v339_v53 = vld [vmem:[%s3821_s2 + $0x3c] sm:$0x1] }
  0x27   :  { %v180_v7 = vrot.slane %v178_v63, 5  ;;  %v405_v9 = vshrl.u32 %v2676_v58, 16  ;;  %v154_v12 = vrot.slane %v153_v1, 4  ;;  %v167_v13 = vor.u32 %v166_v2, %v163_v61  ;;  %v2376_v26 = vld [vmem:[%s3822_s3 + $0x20] ss:$8 sps:$4 sm:$0xff]  }
  0x28   :  { %1272 = vrot.lane.b32.xlu0 %v2255_v43, %s2420_s15  ;;  %v145_v11 = vsel %vm2545_vm2, %v140_v0, %v144_v49  ;;  %v408_v14 = vshll.u32 %v2676_v58, 16  ;;  %930 = vrot.lane.b32.xlu1 %v2372_v59, %s2413_s11  ;;  %v186_v16 = vrot.slane %v184_v8, 5  ;;  %v419_v18 = vshrl.u32 %v305_v4, 16  ;;  %v338_v49 = vld [vmem:[%s3821_s2 + $0x34] sm:$0x1] }
  0x29   :  { %v181_v15 = vor.u32 %v180_v7, %v177_v6  ;;  %v407_v17 = vrot.slane %v405_v9, 4  ;;  %v159_v21 = vsel %vm2545_vm2, %v154_v12, %v158_v60  ;;  %v168_v22 = vrot.slane %v167_v13, 4  ;;  %v2734_v60 = vld [vmem:[%s3823_s0 + $0x28] sm:$0xf]  ;;  %v2739_v1 = vld [vmem:[%s3823_s0 + $0x30] sm:$0xf] }
  0x2a   :  { %v410_v23 = vrot.slane %v408_v14, 5  ;;  %v422_v29 = vshll.u32 %v305_v4, 16  ;;  %v2208_v30 = vcombine.low %v145_v11, %v159_v21  ;;  %v421_v33 = vrot.slane %v419_v18, 4  ;;  %v2746_v6 = vld [vmem:[%s3823_s0 + $0x38] sm:$0xf] }
  0x2b   :  { %v182_v32 = vrot.slane %v181_v15, 4  ;;  %v2216_v34 = vcombine.low %v2676_v58, %v305_v4  ;;  %v173_v35 = vsel %vm2545_vm2, %v168_v22, %v172_v3  ;;  %v433_v37 = vshrl.u32 %v2694_v10, 16  ;;  %v2377_v21 = vld [vmem:[%s3822_s3 + $0x30] ss:$8 sps:$4 sm:$0xff]  }
  0x2c   :  { %v424_v36 = vrot.slane %v422_v29, 5  ;;  %v436_v38 = vshll.u32 %v2694_v10, 16  ;;  %932 = vrot.lane.b32.xlu1 %v2373_v5, %s2413_s11  ;;  %970 = vrot.lane.b32.xlu0 %v2208_v30, %s2416_s12  ;;  %v447_v44 = vshrl.u32 %v307_v20, 16  ;;  %v450_v45 = vshll.u32 %v307_v20, 16 }
  0x2d   :  { %v187_v43 = vsel %vm2545_vm2, %v182_v32, %v186_v16  ;;  %v2217_v46 = vcombine.low %v2694_v10, %v307_v20  ;;  %v435_v51 = vrot.slane %v433_v37, 4  ;;  %v411_v52 = vor.u32 %v410_v23, %v407_v17  ;;  %v2760_v20 = vld [vmem:[%s3823_s0 + $0x40] sm:$0xf]  ;;  %v2179_v37 = vld [vmem:[%s3823_s0 + $0x34] sm:$0x1] }
  0x2e   :  { %v2209_v50 = vcombine.low %v173_v35, %v187_v43  ;;  %v438_v31 = vrot.slane %v436_v38, 5  ;;  %v449_v54 = vrot.slane %v447_v44, 4  ;;  %v452_v57 = vrot.slane %v450_v45, 5 }
  0x2f   :  { %v414_v58 = vshll.u32 %v336_v39, 16  ;;  %v425_v59 = vor.u32 %v424_v36, %v421_v33  ;;  %v412_v61 = vrot.slane %v411_v52, 4  ;;  %v428_v62 = vshll.u32 %v337_v47, 16  ;;  %v2178_v36 = vld [vmem:[%s3823_s0 + $0x2c] sm:$0x1] }
  0x30   :  { %v439_v63 = vor.u32 %v438_v31, %v435_v51  ;;  %v442_v0 = vshll.u32 %v338_v49, 16  ;;  %972 = vrot.lane.b32.xlu1 %v2209_v50, %s2416_s12  ;;  %1026 = vrot.lane.b32.xlu0 %v2216_v34, %s2414_s14  ;;  %v453_v4 = vor.u32 %v452_v57, %v449_v54  ;;  %v456_v5 = vshll.u32 %v339_v53, 16  ;;  %v2180_v53 = vld [vmem:[%s3823_s0 + $0x3c] sm:$0x1] }
  0x31   :  { %v416_v2 = vrot.slane %v414_v58, 5  ;;  %v426_v3 = vrot.slane %v425_v59, 4  ;;  %v430_v7 = vrot.slane %v428_v62, 5  ;;  %v679_v10 = vshrl.u32 %v2734_v60, 16  ;;  %v2181_v58 = vld [vmem:[%s3823_s0 + $0x44] sm:$0x1] }
  0x32   :  { %v440_v8 = vrot.slane %v439_v63, 4  ;;  %v444_v9 = vrot.slane %v442_v0, 5  ;;  %v454_v12 = vrot.slane %v453_v4, 4  ;;  %v458_v13 = vrot.slane %v456_v5, 5  ;;  %v2380_v0 = vld [vmem:[%s3820_s1 + $0x28] ss:$8 sps:$4 sm:$0xff]  }
  0x33   :  { %v417_v11 = vsel %vm2545_vm2, %v412_v61, %v416_v2  ;;  %v682_v14 = vshll.u32 %v2734_v60, 16  ;;  %v431_v15 = vsel %vm2545_vm2, %v426_v3, %v430_v7  ;;  %v681_v17 = vrot.slane %v679_v10, 4  ;;  %v2800_v4 = vld [vmem:[%s3823_s0 + $0x48] sm:$0xf] }
  0x34   :  { %v445_v16 = vsel %vm2545_vm2, %v440_v8, %v444_v9  ;;  %v693_v18 = vshrl.u32 %v2739_v1, 16  ;;  %1028 = vrot.lane.b32.xlu1 %v2217_v46, %s2414_s14  ;;  %1082 = vrot.lane.b32.xlu0 %v2376_v26, %s2415_s27  ;;  %v2232_v22 = vcombine.low %v417_v11, %v431_v15  ;;  %v459_v23 = vsel %vm2545_vm2, %v454_v12, %v458_v13  ;;  %v2809_v9 = vld [vmem:[%s3823_s0 + $0x50] sm:$0xf]  ;;  %v65_v12 = vld [vmem:[%s3823_s0 + $0x4c] sm:$0x1] }
  0x35   :  { %v684_v29 = vrot.slane %v682_v14, 5  ;;  %v696_v30 = vshll.u32 %v2739_v1, 16  ;;  %v2233_v32 = vcombine.low %v445_v16, %v459_v23  ;;  %v2240_v34 = vcombine.low %v2734_v60, %v2739_v1  ;;  %v66_v13 = vld [vmem:[%s3823_s0 + $0x54] sm:$0x1]  ;;  %v2834_v23 = vld [vmem:[%s3823_s0 + $0x58] sm:$0xf] }
  0x36   :  { %v695_v33 = vrot.slane %v693_v18, 4  ;;  %v707_v35 = vshrl.u32 %v2746_v6, 16  ;;  %v710_v39 = vshll.u32 %v2746_v6, 16  ;;  %v721_v43 = vshrl.u32 %v2760_v20, 16 }
  0x37   :  { %v698_v38 = vrot.slane %v696_v30, 5  ;;  %v724_v44 = vshll.u32 %v2760_v20, 16  ;;  %v2241_v46 = vcombine.low %v2746_v6, %v2760_v20  ;;  %v685_v47 = vor.u32 %v684_v29, %v681_v17  ;;  %v2381_v17 = vld [vmem:[%s3820_s1 + $0x38] ss:$8 sps:$4 sm:$0xff]  }
  0x38   :  { %v709_v45 = vrot.slane %v707_v35, 4  ;;  %v688_v49 = vshll.u32 %v2178_v36, 16  ;;  %1084 = vrot.lane.b32.xlu1 %v2377_v21, %s2415_s27  ;;  %1122 = vrot.lane.b32.xlu0 %v2232_v22, %s2417_s22  ;;  %v712_v50 = vrot.slane %v710_v39, 5  ;;  %v723_v51 = vrot.slane %v721_v43, 4  ;;  %v2839_v29 = vld [vmem:[%s3823_s0 + $0x60] sm:$0xf] }
  0x39   :  { %v726_v31 = vrot.slane %v724_v44, 5  ;;  %v699_v52 = vor.u32 %v698_v38, %v695_v33  ;;  %v686_v54 = vrot.slane %v685_v47, 4  ;;  %v702_v26 = vshll.u32 %v2179_v37, 16  ;;  %v67_v35 = vld [vmem:[%s3823_s0 + $0x5c] sm:$0x1] }
  0x3a   :  { %v690_v57 = vrot.slane %v688_v49, 5  ;;  %v716_v59 = vshll.u32 %v2180_v53, 16  ;;  %v713_v61 = vor.u32 %v712_v50, %v709_v45  ;;  %v730_v63 = vshll.u32 %v2181_v58, 16  ;;  %v68_v38 = vld [vmem:[%s3823_s0 + $0x64] sm:$0x1] }
  0x3b   :  { %v700_v60 = vrot.slane %v699_v52, 4  ;;  %v727_v62 = vor.u32 %v726_v31, %v723_v51  ;;  %v704_v2 = vrot.slane %v702_v26, 5  ;;  %v2192_v5 = vcombine.low %v2627_v25, %v2632_v27  ;;  %v2861_v53 = vld [vmem:[%s3821_s2 + $0x50] sm:$0xf] }
  0x3c   :  { %v691_v1 = vsel %vm2545_vm2, %v686_v54, %v690_v57  ;;  %v718_v3 = vrot.slane %v716_v59, 5  ;;  %1124 = vrot.lane.b32.xlu1 %v2233_v32, %s2417_s22  ;;  %1178 = vrot.lane.b32.xlu0 %v2240_v34, %s2418_s28  ;;  %v714_v6 = vrot.slane %v713_v61, 4  ;;  %v732_v8 = vrot.slane %v730_v63, 5  ;;  %v2382_v54 = vld [vmem:[%s3820_s1 + $0x48] ss:$8 sps:$4 sm:$0xff]  }
  0x3d   :  { %v728_v7 = vrot.slane %v727_v62, 4  ;;  %v189_v10 = vshrl.u32 %v2800_v4, 16  ;;  %v705_v11 = vsel %vm2545_vm2, %v700_v60, %v704_v2  ;;  %v192_v14 = vshll.u32 %v2800_v4, 16 }
  0x3e   :  { %v203_v15 = vshrl.u32 %v2809_v9, 16  ;;  %v2193_v16 = vcombine.low %v2656_v40, %v2661_v41  ;;  %v2256_v18 = vcombine.low %v691_v1, %v705_v11  ;;  %v719_v20 = vsel %vm2545_vm2, %v714_v6, %v718_v3 }
  0x3f   :  { %v733_v21 = vsel %vm2545_vm2, %v728_v7, %v732_v8  ;;  %v191_v22 = vrot.slane %v189_v10, 4  ;;  %v194_v32 = vrot.slane %v192_v14, 5  ;;  %v198_v33 = vshll.u32 %v65_v12, 16  ;;  %v2882_v12 = vld [vmem:[%s3821_s2 + $0x60] sm:$0xf] }
  0x40   :  { %v2257_v30 = vcombine.low %v719_v20, %v733_v21  ;;  %v205_v34 = vrot.slane %v203_v15, 4  ;;  %1180 = vrot.lane.b32.xlu1 %v2241_v46, %s2418_s28  ;;  %1234 = vrot.lane.b32.xlu0 %v2380_v0, %s2419_s18  ;;  %v206_v36 = vshll.u32 %v2809_v9, 16  ;;  %v212_v37 = vshll.u32 %v66_v13, 16  ;;  %v2856_v46 = vld [vmem:[%s3821_s2 + $0x48] sm:$0xf] }
  0x41   :  { %v217_v39 = vshrl.u32 %v2834_v23, 16  ;;  %v220_v43 = vshll.u32 %v2834_v23, 16  ;;  %v195_v44 = vor.u32 %v194_v32, %v191_v22  ;;  %v200_v45 = vrot.slane %v198_v33, 5  ;;  %v2873_v0 = vld [vmem:[%s3821_s2 + $0x58] sm:$0xf] }
  0x42   :  { %v226_v47 = vshll.u32 %v67_v35, 16  ;;  %v231_v49 = vshrl.u32 %v2839_v29, 16  ;;  %v208_v50 = vrot.slane %v206_v36, 5  ;;  %v214_v51 = vrot.slane %v212_v37, 5  ;;  %v340_v36 = vld [vmem:[%s3821_s2 + $0x4c] sm:$0x1] }
  0x43   :  { %v219_v31 = vrot.slane %v217_v39, 4  ;;  %v222_v52 = vrot.slane %v220_v43, 5  ;;  %v196_v57 = vrot.slane %v195_v44, 4  ;;  %v234_v59 = vshll.u32 %v2839_v29, 16  ;;  %v341_v44 = vld [vmem:[%s3821_s2 + $0x54] sm:$0x1] }
  0x44   :  { %v228_v26 = vrot.slane %v226_v47, 5  ;;  %v233_v58 = vrot.slane %v231_v49, 4  ;;  %1236 = vrot.lane.b32.xlu1 %v2381_v17, %s2419_s18  ;;  %1274 = vrot.lane.b32.xlu0 %v2256_v18, %s2420_s15  ;;  %v209_v60 = vor.u32 %v208_v50, %v205_v34  ;;  %v240_v62 = vshll.u32 %v68_v38, 16  ;;  %v2383_v18 = vld [vmem:[%s3820_s1 + $0x58] ss:$8 sps:$4 sm:$0xff]  }
  0x45   :  { %v223_v61 = vor.u32 %v222_v52, %v219_v31  ;;  %v461_v63 = vshrl.u32 %v2856_v46, 16  ;;  %v201_v1 = vsel %vm2545_vm2, %v196_v57, %v200_v45  ;;  %v236_v2 = vrot.slane %v234_v59, 5  ;;  %v342_v50 = vld [vmem:[%s3821_s2 + $0x5c] sm:$0x1]  ;;  %v2921_v57 = vld [vmem:[%s3823_s0 + $0x50] sm:$0xf] }
  0x46   :  { %v464_v3 = vshll.u32 %v2856_v46, 16  ;;  %v475_v6 = vshrl.u32 %v2861_v53, 16  ;;  %v210_v7 = vrot.slane %v209_v60, 4  ;;  %v242_v10 = vrot.slane %v240_v62, 5 }
  0x47   :  { %v224_v8 = vrot.slane %v223_v61, 4  ;;  %v463_v11 = vrot.slane %v461_v63, 4  ;;  %v237_v13 = vor.u32 %v236_v2, %v233_v58  ;;  %v478_v17 = vshll.u32 %v2861_v53, 16  ;;  %v2386_v61 = vld [vmem:[%s3822_s3 + $0x48] ss:$8 sps:$4 sm:$0xff]  }
  0x48   :  { %v466_v14 = vrot.slane %v464_v3, 5  ;;  %v477_v15 = vrot.slane %v475_v6, 4  ;;  %934 = vrot.lane.b32.xlu1 %v2382_v54, %s2413_s11  ;;  %1276 = vrot.lane.b32.xlu0 %v2257_v30, %s2420_s15  ;;  %v215_v20 = vsel %vm2545_vm2, %v210_v7, %v214_v51  ;;  %v2218_v22 = vcombine.low %v2856_v46, %v2861_v53  ;;  %v343_v51 = vld [vmem:[%s3821_s2 + $0x64] sm:$0x1]  ;;  %v2929_v2 = vld [vmem:[%s3823_s0 + $0x58] sm:$0xf] }
  0x49   :  { %v229_v21 = vsel %vm2545_vm2, %v224_v8, %v228_v26  ;;  %v489_v32 = vshrl.u32 %v2873_v0, 16  ;;  %v2210_v33 = vcombine.low %v201_v1, %v215_v20  ;;  %v238_v34 = vrot.slane %v237_v13, 4 }
  0x4a   :  { %v480_v35 = vrot.slane %v478_v17, 5  ;;  %v492_v30 = vshll.u32 %v2873_v0, 16  ;;  %v503_v38 = vshrl.u32 %v2882_v12, 16  ;;  %v506_v39 = vshll.u32 %v2882_v12, 16 }
  0x4b   :  { %v491_v37 = vrot.slane %v489_v32, 4  ;;  %v2219_v43 = vcombine.low %v2873_v0, %v2882_v12  ;;  %v243_v45 = vsel %vm2545_vm2, %v238_v34, %v242_v10  ;;  %v467_v49 = vor.u32 %v466_v14, %v463_v11  ;;  %v2937_v10 = vld [vmem:[%s3823_s0 + $0x60] sm:$0xf] }
  0x4c   :  { %v494_v47 = vrot.slane %v492_v30, 5  ;;  %v470_v46 = vshll.u32 %v340_v36, 16  ;;  %936 = vrot.lane.b32.xlu1 %v2383_v18, %s2413_s11  ;;  %974 = vrot.lane.b32.xlu0 %v2210_v33, %s2416_s12  ;;  %v2211_v31 = vcombine.low %v229_v21, %v243_v45  ;;  %v505_v52 = vrot.slane %v503_v38, 4  ;;  %v2949_v21 = vld [vmem:[%s3823_s0 + $0x68] sm:$0xf] }
  0x4d   :  { %v508_v53 = vrot.slane %v506_v39, 5  ;;  %v481_v54 = vor.u32 %v480_v35, %v477_v15  ;;  %v468_v26 = vrot.slane %v467_v49, 4  ;;  %v484_v59 = vshll.u32 %v341_v44, 16  ;;  %v2387_v34 = vld [vmem:[%s3822_s3 + $0x58] ss:$8 sps:$4 sm:$0xff]  }
  0x4e   :  { %v472_v58 = vrot.slane %v470_v46, 5  ;;  %v495_v60 = vor.u32 %v494_v47, %v491_v37  ;;  %v498_v63 = vshll.u32 %v342_v50, 16  ;;  %v512_v1 = vshll.u32 %v343_v51, 16  ;;  %v2182_v37 = vld [vmem:[%s3823_s0 + $0x54] sm:$0x1] }
  0x4f   :  { %v482_v62 = vrot.slane %v481_v54, 4  ;;  %v509_v0 = vor.u32 %v508_v53, %v505_v52  ;;  %v486_v6 = vrot.slane %v484_v59, 5  ;;  %v735_v8 = vshrl.u32 %v2921_v57, 16  ;;  %v2183_v47 = vld [vmem:[%s3823_s0 + $0x5c] sm:$0x1] }
  0x50   :  { %v473_v3 = vsel %vm2545_vm2, %v468_v26, %v472_v58  ;;  %v496_v7 = vrot.slane %v495_v60, 4  ;;  %976 = vrot.lane.b32.xlu1 %v2211_v31, %s2416_s12  ;;  %1030 = vrot.lane.b32.xlu0 %v2218_v22, %s2414_s14  ;;  %v500_v11 = vrot.slane %v498_v63, 5  ;;  %v514_v13 = vrot.slane %v512_v1, 5  ;;  %v2184_v60 = vld [vmem:[%s3823_s0 + $0x64] sm:$0x1] }
  0x51   :  { %v510_v12 = vrot.slane %v509_v0, 4  ;;  %v738_v14 = vshll.u32 %v2921_v57, 16  ;;  %v487_v15 = vsel %vm2545_vm2, %v482_v62, %v486_v6  ;;  %v737_v17 = vrot.slane %v735_v8, 4  ;;  %v2185_v62 = vld [vmem:[%s3823_s0 + $0x6c] sm:$0x1] }
  0x52   :  { %v749_v18 = vshrl.u32 %v2929_v2, 16  ;;  %v752_v20 = vshll.u32 %v2929_v2, 16  ;;  %v501_v22 = vsel %vm2545_vm2, %v496_v7, %v500_v11  ;;  %v2234_v35 = vcombine.low %v473_v3, %v487_v15 }
  0x53   :  { %v515_v32 = vsel %vm2545_vm2, %v510_v12, %v514_v13  ;;  %v740_v33 = vrot.slane %v738_v14, 5  ;;  %v763_v38 = vshrl.u32 %v2937_v10, 16  ;;  %v766_v39 = vshll.u32 %v2937_v10, 16  ;;  %v2992_v14 = vld [vmem:[%s3823_s0 + $0x68] sm:$0xf] }
  0x54   :  { %v751_v30 = vrot.slane %v749_v18, 4  ;;  %v754_v36 = vrot.slane %v752_v20, 5  ;;  %1032 = vrot.lane.b32.xlu1 %v2219_v43, %s2414_s14  ;;  %1086 = vrot.lane.b32.xlu0 %v2386_v61, %s2415_s27  ;;  %v777_v44 = vshrl.u32 %v2949_v21, 16  ;;  %v780_v45 = vshll.u32 %v2949_v21, 16  ;;  %v69_v18 = vld [vmem:[%s3823_s0 + $0x6c] sm:$0x1] }
  0x55   :  { %v2235_v49 = vcombine.low %v501_v22, %v515_v32  ;;  %v741_v46 = vor.u32 %v740_v33, %v737_v17  ;;  %v744_v50 = vshll.u32 %v2182_v37, 16  ;;  %v765_v31 = vrot.slane %v763_v38, 4  ;;  %v70_v33 = vld [vmem:[%s3823_s0 + $0x74] sm:$0x1] }
  0x56   :  { %v755_v51 = vor.u32 %v754_v36, %v751_v30  ;;  %v768_v43 = vrot.slane %v766_v39, 5  ;;  %v779_v52 = vrot.slane %v777_v44, 4  ;;  %v782_v53 = vrot.slane %v780_v45, 5  ;;  %v3018_v30 = vld [vmem:[%s3823_s0 + $0x78] sm:$0xf] }
  0x57   :  { %v742_v54 = vrot.slane %v741_v46, 4  ;;  %v746_v26 = vrot.slane %v744_v50, 5  ;;  %v758_v59 = vshll.u32 %v2183_v47, 16  ;;  %v2242_v61 = vcombine.low %v2921_v57, %v2929_v2  ;;  %v2390_v57 = vld [vmem:[%s3820_s1 + $0x50] ss:$8 sps:$4 sm:$0xff]  }
  0x58   :  { %v756_v58 = vrot.slane %v755_v51, 4  ;;  %1088 = vrot.lane.b32.xlu1 %v2387_v34, %s2415_s27  ;;  %1126 = vrot.lane.b32.xlu0 %v2234_v35, %s2417_s22  ;;  %v769_v63 = vor.u32 %v768_v43, %v765_v31  ;;  %v772_v0 = vshll.u32 %v2184_v60, 16  ;;  %v783_v1 = vor.u32 %v782_v53, %v779_v52  ;;  %v3027_v44 = vld [vmem:[%s3823_s0 + $0x80] sm:$0xf]  ;;  %v71_v51 = vld [vmem:[%s3823_s0 + $0x7c] sm:$0x1] }
  0x59   :  { %v747_v3 = vsel %vm2545_vm2, %v742_v54, %v746_v26  ;;  %v760_v6 = vrot.slane %v758_v59, 5  ;;  %v786_v7 = vshll.u32 %v2185_v62, 16  ;;  %v2194_v8 = vcombine.low %v2800_v4, %v2809_v9  ;;  %v2391_v45 = vld [vmem:[%s3820_s1 + $0x60] ss:$8 sps:$4 sm:$0xff]   ;;  %v72_v52 = vld [vmem:[%s3823_s0 + $0x84] sm:$0x1] }
  0x5a   :  { %v2243_v11 = vcombine.low %v2937_v10, %v2949_v21  ;;  %v770_v2 = vrot.slane %v769_v63, 4  ;;  %v774_v12 = vrot.slane %v772_v0, 5  ;;  %v784_v13 = vrot.slane %v783_v1, 4  ;;  %v2999_v10 = vld [vmem:[%s3823_s0 + $0x70] sm:$0xf] }
  0x5b   :  { %v761_v15 = vsel %vm2545_vm2, %v756_v58, %v760_v6  ;;  %v788_v17 = vrot.slane %v786_v7, 5  ;;  %v245_v20 = vshrl.u32 %v2992_v14, 16  ;;  %v2195_v21 = vcombine.low %v2834_v23, %v2839_v29  ;;  %v2392_v6 = vld [vmem:[%s3820_s1 + $0x68] ss:$8 sps:$4 sm:$0xff]  }
  0x5c   :  { %1128 = vrot.lane.b32.xlu1 %v2235_v49, %s2417_s22  ;;  %1182 = vrot.lane.b32.xlu0 %v2242_v61, %s2418_s28  ;;  %v2258_v22 = vcombine.low %v747_v3, %v761_v15  ;;  %v775_v32 = vsel %vm2545_vm2, %v770_v2, %v774_v12  ;;  %v248_v34 = vshll.u32 %v2992_v14, 16  ;;  %v254_v35 = vshll.u32 %v69_v18, 16  ;;  %v3046_v61 = vld [vmem:[%s3821_s2 + $0x68] sm:$0xf]  ;;  %v3052_v3 = vld [vmem:[%s3821_s2 + $0x70] sm:$0xf] }
  0x5d   :  { %v789_v36 = vsel %vm2545_vm2, %v784_v13, %v788_v17  ;;  %v247_v37 = vrot.slane %v245_v20, 4  ;;  %v259_v38 = vshrl.u32 %v2999_v10, 16  ;;  %v262_v39 = vshll.u32 %v2999_v10, 16  ;;  %v3061_v18 = vld [vmem:[%s3821_s2 + $0x78] sm:$0xf] }
  0x5e   :  { %v2259_v47 = vcombine.low %v775_v32, %v789_v36  ;;  %v250_v49 = vrot.slane %v248_v34, 5  ;;  %v256_v46 = vrot.slane %v254_v35, 5  ;;  %v268_v50 = vshll.u32 %v70_v33, 16 }
  0x5f   :  { %v261_v31 = vrot.slane %v259_v38, 4  ;;  %v264_v43 = vrot.slane %v262_v39, 5  ;;  %v273_v53 = vshrl.u32 %v3018_v30, 16  ;;  %v276_v54 = vshll.u32 %v3018_v30, 16  ;;  %v3074_v39 = vld [vmem:[%s3821_s2 + $0x80] sm:$0xf] }
  0x60   :  { %1184 = vrot.lane.b32.xlu1 %v2243_v11, %s2418_s28  ;;  %1238 = vrot.lane.b32.xlu0 %v2390_v57, %s2419_s18  ;;  %v251_v26 = vor.u32 %v250_v49, %v247_v37  ;;  %v270_v58 = vrot.slane %v268_v50, 5  ;;  %v282_v59 = vshll.u32 %v71_v51, 16  ;;  %v287_v60 = vshrl.u32 %v3027_v44, 16 }
  0x61   :  { %v265_v62 = vor.u32 %v264_v43, %v261_v31  ;;  %v275_v63 = vrot.slane %v273_v53, 4  ;;  %v278_v0 = vrot.slane %v276_v54, 5  ;;  %v290_v1 = vshll.u32 %v3027_v44, 16 }
  0x62   :  { %v252_v7 = vrot.slane %v251_v26, 4  ;;  %v284_v11 = vrot.slane %v282_v59, 5  ;;  %v289_v57 = vrot.slane %v287_v60, 4  ;;  %v296_v2 = vshll.u32 %v72_v52, 16 }
  0x63   :  { %v266_v12 = vrot.slane %v265_v62, 4  ;;  %v279_v13 = vor.u32 %v278_v0, %v275_v63  ;;  %v292_v15 = vrot.slane %v290_v1, 5  ;;  %v517_v17 = vshrl.u32 %v3046_v61, 16  ;;  %v346_v0 = vld [vmem:[%s3821_s2 + $0x7c] sm:$0x1] }
  0x64   :  { %1240 = vrot.lane.b32.xlu1 %v2391_v45, %s2419_s18  ;;  %1278 = vrot.lane.b32.xlu0 %v2258_v22, %s2420_s15  ;;  %v257_v20 = vsel %vm2545_vm2, %v252_v7, %v256_v46  ;;  %v298_v32 = vrot.slane %v296_v2, 5  ;;  %v520_v33 = vshll.u32 %v3046_v61, 16  ;;  %v531_v34 = vshrl.u32 %v3052_v3, 16  ;;  %v2393_v22 = vld [vmem:[%s3820_s1 + $0x78] ss:$8 sps:$4 sm:$0xff]  }
  0x65   :  { %v271_v35 = vsel %vm2545_vm2, %v266_v12, %v270_v58  ;;  %v280_v36 = vrot.slane %v279_v13, 4  ;;  %v293_v37 = vor.u32 %v292_v15, %v289_v57  ;;  %v519_v38 = vrot.slane %v517_v17, 4  ;;  %v344_v58 = vld [vmem:[%s3821_s2 + $0x6c] sm:$0x1]  ;;  %v347_v57 = vld [vmem:[%s3821_s2 + $0x84] sm:$0x1] }
  0x66   :  { %v2212_v45 = vcombine.low %v257_v20, %v271_v35  ;;  %v522_v49 = vrot.slane %v520_v33, 5  ;;  %v534_v46 = vshll.u32 %v3052_v3, 16  ;;  %v533_v31 = vrot.slane %v531_v34, 4  ;;  %v3107_v13 = vld [vmem:[%s3823_s0 + $0x70] sm:$0xf] }
  0x67   :  { %v285_v50 = vsel %vm2545_vm2, %v280_v36, %v284_v11  ;;  %v294_v51 = vrot.slane %v293_v37, 4  ;;  %v545_v43 = vshrl.u32 %v3061_v18, 16  ;;  %v548_v53 = vshll.u32 %v3061_v18, 16  ;;  %v3114_v33 = vld [vmem:[%s3823_s0 + $0x78] sm:$0xf] }
  0x68   :  { %938 = vrot.lane.b32.xlu1 %v2392_v6, %s2413_s11  ;;  %1280 = vrot.lane.b32.xlu0 %v2259_v47, %s2420_s15  ;;  %v536_v52 = vrot.slane %v534_v46, 5  ;;  %v559_v54 = vshrl.u32 %v3074_v39, 16  ;;  %v562_v26 = vshll.u32 %v3074_v39, 16  ;;  %v2220_v60 = vcombine.low %v3046_v61, %v3052_v3  ;;  %v345_v47 = vld [vmem:[%s3821_s2 + $0x74] sm:$0x1] }
  0x69   :  { %v299_v59 = vsel %vm2545_vm2, %v294_v51, %v298_v32  ;;  %v547_v62 = vrot.slane %v545_v43, 4  ;;  %v523_v63 = vor.u32 %v522_v49, %v519_v38  ;;  %v550_v6 = vrot.slane %v548_v53, 5  ;;  %v3120_v38 = vld [vmem:[%s3823_s0 + $0x80] sm:$0xf] }
  0x6a   :  { %v2213_v1 = vcombine.low %v285_v50, %v299_v59  ;;  %v561_v7 = vrot.slane %v559_v54, 4  ;;  %v564_v11 = vrot.slane %v562_v26, 5  ;;  %v526_v61 = vshll.u32 %v344_v58, 16 }
  0x6b   :  { %v524_v2 = vrot.slane %v523_v63, 4  ;;  %v537_v3 = vor.u32 %v536_v52, %v533_v31  ;;  %v540_v12 = vshll.u32 %v345_v47, 16  ;;  %v551_v15 = vor.u32 %v550_v6, %v547_v62  ;;  %v3133_v52 = vld [vmem:[%s3823_s0 + $0x88] sm:$0xf]  ;;  %v2186_v47 = vld [vmem:[%s3823_s0 + $0x74] sm:$0x1] }
  0x6c   :  { %940 = vrot.lane.b32.xlu1 %v2393_v22, %s2413_s11  ;;  %978 = vrot.lane.b32.xlu0 %v2212_v45, %s2416_s12  ;;  %v554_v17 = vshll.u32 %v346_v0, 16  ;;  %v565_v20 = vor.u32 %v564_v11, %v561_v7  ;;  %v568_v32 = vshll.u32 %v347_v57, 16  ;;  %v528_v34 = vrot.slane %v526_v61, 5  ;;  %v2396_v22 = vld [vmem:[%s3822_s3 + $0x68] ss:$8 sps:$4 sm:$0xff]  }
  0x6d   :  { %v538_v35 = vrot.slane %v537_v3, 4  ;;  %v542_v36 = vrot.slane %v540_v12, 5  ;;  %v791_v37 = vshrl.u32 %v3107_v13, 16  ;;  %v552_v45 = vrot.slane %v551_v15, 4  ;;  %v2397_v6 = vld [vmem:[%s3822_s3 + $0x78] ss:$8 sps:$4 sm:$0xff]  }
  0x6e   :  { %v556_v49 = vrot.slane %v554_v17, 5  ;;  %v566_v46 = vrot.slane %v565_v20, 4  ;;  %v529_v50 = vsel %vm2545_vm2, %v524_v2, %v528_v34  ;;  %v570_v31 = vrot.slane %v568_v32, 5  ;;  %v2188_v61 = vld [vmem:[%s3823_s0 + $0x84] sm:$0x1] }
  0x6f   :  { %v543_v51 = vsel %vm2545_vm2, %v538_v35, %v542_v36  ;;  %v794_v43 = vshll.u32 %v3107_v13, 16  ;;  %v2221_v53 = vcombine.low %v3061_v18, %v3074_v39  ;;  %v793_v54 = vrot.slane %v791_v37, 4  ;;  %v2187_v39 = vld [vmem:[%s3823_s0 + $0x7c] sm:$0x1]  ;;  %v2189_v36 = vld [vmem:[%s3823_s0 + $0x8c] sm:$0x1] }
  0x70   :  { %980 = vrot.lane.b32.xlu1 %v2213_v1, %s2416_s12  ;;  %1034 = vrot.lane.b32.xlu0 %v2220_v60, %s2414_s14  ;;  %v805_v26 = vshrl.u32 %v3114_v33, 16  ;;  %v2236_v58 = vcombine.low %v529_v50, %v543_v51  ;;  %v808_v62 = vshll.u32 %v3114_v33, 16  ;;  %v819_v1 = vshrl.u32 %v3120_v38, 16 }
  0x71   :  { %v796_v59 = vrot.slane %v794_v43, 5  ;;  %v822_v60 = vshll.u32 %v3120_v38, 16  ;;  %v833_v18 = vshrl.u32 %v3133_v52, 16  ;;  %v557_v7 = vsel %vm2545_vm2, %v552_v45, %v556_v49 }
  0x72   :  { %v807_v0 = vrot.slane %v805_v26, 4  ;;  %v571_v11 = vsel %vm2545_vm2, %v566_v46, %v570_v31  ;;  %v810_v57 = vrot.slane %v808_v62, 5  ;;  %v836_v2 = vshll.u32 %v3133_v52, 16 }
  0x73   :  { %v821_v3 = vrot.slane %v819_v1, 4  ;;  %v824_v12 = vrot.slane %v822_v60, 5  ;;  %v835_v15 = vrot.slane %v833_v18, 4  ;;  %v797_v17 = vor.u32 %v796_v59, %v793_v54 }
  0x74   :  { %v3144_v63 = vpop.permute.xlu0 %926  ;;  %1036 = vrot.lane.b32.xlu1 %v2221_v53, %s2414_s14  ;;  %1090 = vrot.lane.b32.xlu0 %v2396_v22, %s2415_s27  ;;  %v838_v20 = vrot.slane %v836_v2, 5  ;;  %v800_v32 = vshll.u32 %v2186_v47, 16  ;;  %v811_v34 = vor.u32 %v810_v57, %v807_v0  ;;  %v814_v35 = vshll.u32 %v2187_v39, 16  ;;  %v2404_v22 = vld [vmem:[%s3824_s4 + $0x10] ss:$0 sps:$4 sm:$0x33]  }
  0x75   :  { %v2237_v37 = vcombine.low %v557_v7, %v571_v11  ;;  %v825_v49 = vor.u32 %v824_v12, %v821_v3  ;;  %v2244_v46 = vcombine.low %v3107_v13, %v3114_v33  ;;  %v798_v50 = vrot.slane %v797_v17, 4  ;;  %v2402_v13 = vld [vmem:[%s3820_s1 + $0x70] ss:$8 sps:$4 sm:$0xff]   ;;  %v2407_v11 = vld [vmem:[%s3824_s4] sm:$0xff]  }
  0x76   :  { %v828_v51 = vshll.u32 %v2188_v61, 16  ;;  %v842_v31 = vshll.u32 %v2189_v36, 16  ;;  %v1025_v43 = vpop.permute.xlu1 %1024  ;;  %v802_v53 = vrot.slane %v800_v32, 5  ;;  %v812_v54 = vrot.slane %v811_v34, 4  ;;  %v2403_v57 = vld [vmem:[%s3820_s1 + $0x80] ss:$8 sps:$4 sm:$0xff]  }
  0x77   :  { %v816_v26 = vrot.slane %v814_v35, 5  ;;  %v839_v59 = vor.u32 %v838_v20, %v835_v15  ;;  %v2245_v62 = vcombine.low %v3120_v38, %v3133_v52  ;;  %v826_v47 = vrot.slane %v825_v49, 4  ;;  %s2421_s1 = smov 40  }
  0x78   :  { %v3168_v45 = vpop.permute.xlu0 %928  ;;  %1092 = vrot.lane.b32.xlu1 %v2397_v6, %s2415_s27  ;;  %1130 = vrot.lane.b32.xlu0 %v2236_v58, %s2417_s22  ;;  %vm1467_vm3 = vcmask 1041408   ;;  %v2405_v58 = vld [vmem:[%s3824_s4 + $0x8] sm:$0xff]   ;;  %v830_v33 = vrot.slane %v828_v51, 5  ;;  %v2196_v1 = vcombine.low %v2992_v14, %v2999_v10  ;;  %v2197_v38 = vcombine.low %v3018_v30, %v3027_v44  ;;  %s2422_s4 = smov 120  }
  0x79   :  { %v1469_v0 = vsel %vm1467_vm3, %v2404_v22, 0  ;;  %v803_v60 = vsel %vm2545_vm2, %v798_v50, %v802_v53  ;;  %v817_v18 = vsel %vm2545_vm2, %v812_v54, %v816_v26  ;;  %v840_v39 = vrot.slane %v839_v59, 4  ;;  %2348 = vmatprep.subr.msk.bf16.mxu0 %vm1467_vm3, %v2404_v22  ;;  %2349 = vmatprep.subr.msk.bf16.mxu1 %vm1467_vm3, %v2404_v22 }
  0x7a   :  { %v844_v6 = vrot.slane %v842_v31, 5  ;;  %2321 = vmatpush3.bf16.msra.mxu0 %v1469_v0  ;;  %2345 = vmatpush3.bf16.msra.mxu1 %v1469_v0  ;;  %v1081_v7 = vpop.permute.xlu1 %1080  ;;  %v2260_v2 = vcombine.low %v803_v60, %v817_v18  ;;  %v831_v61 = vsel %vm2545_vm2, %v826_v47, %v830_v33  ;;  %vm1286_vm4 = vcmask 31744  }
  0x7b   :  { %2322 = vmatprep.subr.bf16.mxu0 %v2405_v58  ;;  %2343 = vmatprep.subr.bf16.mxu1 %v2405_v58  ;;  %vm1311_vm5 = vcmask 64512   ;;  %v1289_v32 = vsel %vm1286_vm4, %v2190_v55, %v3144_v63  ;;  %vm1328_vm6 = vcmask 97280   ;;  %v1292_v35 = vsel %vm1286_vm4, %v2191_v28, %v3168_v45 }
  0x7c   :  { %1132 = vrot.lane.b32.xlu1 %v2237_v37, %s2417_s22  ;;  %1186 = vrot.lane.b32.xlu0 %v2244_v46, %s2418_s28  ;;  %v1023_v52 = vpop.permute.xlu0 %1022  ;;  %v845_v3 = vsel %vm2545_vm2, %v840_v39, %v844_v6  ;;  %vm1345_vm7 = vcmask 130048   ;;  %vm1362_vm8 = vcmask 162816   ;;  %vm1379_vm9 = vcmask 195584  }
  0x7d   :  { %v2261_v15 = vcombine.low %v831_v61, %v845_v3  ;;  %vm1396_vm10 = vcmask 228352   ;;  %vm1413_vm11 = vcmask 261120   ;;  %vm1450_vm12 = vcmask 293888  }
  0x7e   :  { %2323 = vmatpush3.bf16.msra.mxu0 %v2405_v58  ;;  %2346 = vmatpush3.bf16.msra.mxu1 %v2405_v58  ;;  %vm2007_vm13 = vcmask 130112   ;;  %vm1727_vm14 = vcmask 1041409   ;;  %vm1730_vm15 = vcmask 1042434   ;;  %vm1733_vm0 = vcmask 1043459  }
  0x7f   :  { %2324 = vmatprep.subr.bf16.mxu0 %v2407_v11  ;;  %2344 = vmatprep.subr.bf16.mxu1 %v2407_v11  ;;  %vm1736_vm1 = vcmask 1044484   ;;  %vm1739_vm2 = vcmask 1045509   ;;  %vm1742_vm3 = vcmask 1046534  }
  0x80   :  { %1188 = vrot.lane.b32.xlu1 %v2245_v62, %s2418_s28  ;;  %1242 = vrot.lane.b32.xlu0 %v2402_v13, %s2419_s18  ;;  %v1079_v12 = vpop.permute.xlu0 %1078 }
  0x82   :  { %2325 = vmatpush3.bf16.msra.mxu0 %v2407_v11  ;;  %2347 = vmatpush3.bf16.msra.mxu1 %v2407_v11 }
  0x84   :  { %1244 = vrot.lane.b32.xlu1 %v2403_v57, %s2419_s18  ;;  %1282 = vrot.lane.b32.xlu0 %v2260_v2, %s2420_s15 }
  0x86   :  { %v967_v17 = vpop.permute.xlu1 %966 }
  0x87   :  { %v1313_v34 = vsel %vm1311_vm5, %v1289_v32, %v967_v17 }
  0x88   :  { %1284 = vrot.lane.b32.xlu1 %v2261_v15, %s2420_s15  ;;  %v1330_v22 = vsel %vm1328_vm6, %v1313_v34, %v1023_v52 }
  0x89   :  { %v1347_v55 = vsel %vm1345_vm7, %v1330_v22, %v1079_v12 }
  0x8a   :  { %v1119_v20 = vpop.permute.xlu0 %1118  ;;  %v969_v56 = vpop.permute.xlu1 %968 }
  0x8b   :  { %v1315_v37 = vsel %vm1311_vm5, %v1292_v35, %v969_v56  ;;  %v1364_v42 = vsel %vm1362_vm8, %v1347_v55, %v1119_v20 }
  0x8c   :  { %v1332_v19 = vsel %vm1328_vm6, %v1315_v37, %v1025_v43 }
  0x8d   :  { %v1349_v48 = vsel %vm1345_vm7, %v1332_v19, %v1081_v7 }
  0x8e   :  { %v1175_v36 = vpop.permute.xlu0 %1174  ;;  %v1121_v49 = vpop.permute.xlu1 %1120 }
  0x8f   :  { %v1381_v28 = vsel %vm1379_vm9, %v1364_v42, %v1175_v36  ;;  %v1366_v31 = vsel %vm1362_vm8, %v1349_v48, %v1121_v49 }
  0x92   :  { %v1231_v24 = vpop.permute.xlu0 %1230  ;;  %v1177_v63 = vpop.permute.xlu1 %1176 }
  0x93   :  { %v1398_v45 = vsel %vm1396_vm10, %v1381_v28, %v1231_v24  ;;  %v1383_v43 = vsel %vm1379_vm9, %v1366_v31, %v1177_v63 }
  0x96   :  { %v1271_v46 = vpop.permute.xlu0 %1270  ;;  %v1233_v50 = vpop.permute.xlu1 %1232 }
  0x97   :  { %v1415_v51 = vsel %vm1413_vm11, %v1398_v45, %v1271_v46  ;;  %v1400_v53 = vsel %vm1396_vm10, %v1383_v43, %v1233_v50 }
  0x98   :  { %2326 = vmatprep.mubr.msk.bf16.mxu0 %vm1450_vm12, %v1415_v51 }
  0x9a   :  { %v1273_v54 = vpop.permute.xlu0 %1272  ;;  %v931_v26 = vpop.permute.xlu1 %930 }
  0x9b   :  { %v1417_v59 = vsel %vm1413_vm11, %v1400_v53, %v1273_v54  ;;  %v1295_v6 = vsel %vm1286_vm4, %v2192_v5, %v931_v26 }
  0x9c   :  { %2327 = vmatmul.mubr.msk.bf16.vlgmr.msra.gmra.mxu0 %vm1450_vm12, %v1417_v59 }
  0x9e   :  { %v933_v62 = vpop.permute.xlu1 %932  ;;  %v971_v47 = vpop.permute.xlu0 %970 }
  0x9f   :  { %v1317_v7 = vsel %vm1311_vm5, %v1295_v6, %v971_v47  ;;  %v1298_v3 = vsel %vm1286_vm4, %v2193_v16, %v933_v62 }
  0xa2   :  { %v973_v58 = vpop.permute.xlu1 %972  ;;  %v1027_v13 = vpop.permute.xlu0 %1026 }
  0xa3   :  { %v1334_v11 = vsel %vm1328_vm6, %v1317_v7, %v1027_v13  ;;  %v1319_v15 = vsel %vm1311_vm5, %v1298_v3, %v973_v58 }
  0xa6   :  { %v1029_v33 = vpop.permute.xlu1 %1028  ;;  %v1083_v0 = vpop.permute.xlu0 %1082 }
  0xa7   :  { %v1351_v61 = vsel %vm1345_vm7, %v1334_v11, %v1083_v0  ;;  %v1336_v27 = vsel %vm1328_vm6, %v1319_v15, %v1029_v33 }
  0xaa   :  { %v1085_v52 = vpop.permute.xlu1 %1084  ;;  %v1123_v60 = vpop.permute.xlu0 %1122 }
  0xab   :  { %v1368_v12 = vsel %vm1362_vm8, %v1351_v61, %v1123_v60  ;;  %v1353_v56 = vsel %vm1345_vm7, %v1336_v27, %v1085_v52 }
  0xae   :  { %v1125_v18 = vpop.permute.xlu1 %1124  ;;  %v1179_v39 = vpop.permute.xlu0 %1178 }
  0xaf   :  { %v1385_v25 = vsel %vm1379_vm9, %v1368_v12, %v1179_v39  ;;  %v1370_v40 = vsel %vm1362_vm8, %v1353_v56, %v1125_v18 }
  0xb2   :  { %v1181_v57 = vpop.permute.xlu1 %1180  ;;  %v1235_v2 = vpop.permute.xlu0 %1234 }
  0xb3   :  { %v1402_v5 = vsel %vm1396_vm10, %v1385_v25, %v1235_v2  ;;  %v1387_v41 = vsel %vm1379_vm9, %v1370_v40, %v1181_v57 }
  0xb6   :  { %v1237_v17 = vpop.permute.xlu1 %1236  ;;  %v1275_v20 = vpop.permute.xlu0 %1274 }
  0xb7   :  { %v1419_v32 = vsel %vm1413_vm11, %v1402_v5, %v1275_v20  ;;  %v1404_v16 = vsel %vm1396_vm10, %v1387_v41, %v1237_v17 }
  0xb8   :  { %2330 = vmatprep.mubr.msk.bf16.mxu0 %vm1450_vm12, %v1419_v32 }
  0xba   :  { %v935_v34 = vpop.permute.xlu1 %934  ;;  %v1277_v35 = vpop.permute.xlu0 %1276 }
  0xbb   :  { %v1421_v36 = vsel %vm1413_vm11, %v1404_v16, %v1277_v35  ;;  %v1301_v45 = vsel %vm1286_vm4, %v2194_v8, %v935_v34 }
  0xbc   :  { %2331 = vmatmul.mubr.msk.bf16.gmra.mxu0 %vm1450_vm12, %v1421_v36 }
  0xbe   :  { %v937_v37 = vpop.permute.xlu1 %936  ;;  %v975_v49 = vpop.permute.xlu0 %974 }
  0xbf   :  { %v1321_v46 = vsel %vm1311_vm5, %v1301_v45, %v975_v49  ;;  %v1304_v53 = vsel %vm1286_vm4, %v2195_v21, %v937_v37 }
  0xc2   :  { %v977_v22 = vpop.permute.xlu1 %976  ;;  %v1031_v19 = vpop.permute.xlu0 %1030 }
  0xc3   :  { %v1338_v50 = vsel %vm1328_vm6, %v1321_v46, %v1031_v19  ;;  %v1323_v26 = vsel %vm1311_vm5, %v1304_v53, %v977_v22 }
  0xc6   :  { %v1033_v24 = vpop.permute.xlu1 %1032  ;;  %v1087_v55 = vpop.permute.xlu0 %1086 }
  0xc7   :  { %v1355_v43 = vsel %vm1345_vm7, %v1338_v50, %v1087_v55  ;;  %v1340_v9 = vsel %vm1328_vm6, %v1323_v26, %v1033_v24 }
  0xca   :  { %v1089_v63 = vpop.permute.xlu1 %1088  ;;  %v1127_v42 = vpop.permute.xlu0 %1126 }
  0xcb   :  { %v1372_v54 = vsel %vm1362_vm8, %v1355_v43, %v1127_v42  ;;  %v1357_v47 = vsel %vm1345_vm7, %v1340_v9, %v1089_v63 }
  0xce   :  { %v1129_v48 = vpop.permute.xlu1 %1128  ;;  %v1183_v28 = vpop.permute.xlu0 %1182 }
  0xcf   :  { %v1389_v4 = vsel %vm1379_vm9, %v1372_v54, %v1183_v28  ;;  %v1374_v23 = vsel %vm1362_vm8, %v1357_v47, %v1129_v48 }
  0xd2   :  { %v1185_v51 = vpop.permute.xlu1 %1184  ;;  %v1239_v31 = vpop.permute.xlu0 %1238 }
  0xd3   :  { %v1406_v8 = vsel %vm1396_vm10, %v1389_v4, %v1239_v31  ;;  %v1391_v29 = vsel %vm1379_vm9, %v1374_v23, %v1185_v51 }
  0xd6   :  { %v1241_v59 = vpop.permute.xlu1 %1240  ;;  %v1279_v62 = vpop.permute.xlu0 %1278 }
  0xd7   :  { %v1423_v58 = vsel %vm1413_vm11, %v1406_v8, %v1279_v62  ;;  %v1408_v21 = vsel %vm1396_vm10, %v1391_v29, %v1241_v59 }
  0xd8   :  { %2334 = vmatprep.mubr.msk.bf16.mxu1 %vm1450_vm12, %v1423_v58 }
  0xda   :  { %v939_v13 = vpop.permute.xlu1 %938  ;;  %v1281_v33 = vpop.permute.xlu0 %1280 }
  0xdb   :  { %v1425_v0 = vsel %vm1413_vm11, %v1408_v21, %v1281_v33  ;;  %v1307_v3 = vsel %vm1286_vm4, %v2196_v1, %v939_v13 }
  0xdc   :  { %2335 = vmatmul.mubr.msk.bf16.vlgmr.msra.gmra.mxu1 %vm1450_vm12, %v1425_v0 }
  0xde   :  { %v941_v52 = vpop.permute.xlu1 %940  ;;  %v979_v60 = vpop.permute.xlu0 %978 }
  0xdf   :  { %v1325_v12 = vsel %vm1311_vm5, %v1307_v3, %v979_v60  ;;  %v1310_v17 = vsel %vm1286_vm4, %v2197_v38, %v941_v52  ;;  %vm1745_vm4 = vcmask 1047559  }
  0xe2   :  { %v981_v18 = vpop.permute.xlu1 %980  ;;  %v1035_v39 = vpop.permute.xlu0 %1034 }
  0xe3   :  { %v1342_v15 = vsel %vm1328_vm6, %v1325_v12, %v1035_v39  ;;  %v1327_v56 = vsel %vm1311_vm5, %v1310_v17, %v981_v18 }
  0xe6   :  { %v1037_v6 = vpop.permute.xlu1 %1036  ;;  %v1091_v7 = vpop.permute.xlu0 %1090 }
  0xe7   :  { %v1359_v5 = vsel %vm1345_vm7, %v1342_v15, %v1091_v7  ;;  %v1344_v10 = vsel %vm1328_vm6, %v1327_v56, %v1037_v6  ;;  %vm1658_vm6 = vcmask 1040384  }
  0xea   :  { %v1093_v11 = vpop.permute.xlu1 %1092  ;;  %v1131_v57 = vpop.permute.xlu0 %1130 }
  0xeb   :  { %v1376_v20 = vsel %vm1362_vm8, %v1359_v5, %v1131_v57  ;;  %v1361_v41 = vsel %vm1345_vm7, %v1344_v10, %v1093_v11 }
  0xee   :  { %v1133_v2 = vpop.permute.xlu1 %1132  ;;  %v1187_v61 = vpop.permute.xlu0 %1186 }
  0xef   :  { %v1393_v14 = vsel %vm1379_vm9, %v1376_v20, %v1187_v61  ;;  %v1378_v30 = vsel %vm1362_vm8, %v1361_v41, %v1133_v2  ;;  %vm1660_vm8 = vcmask 58368  }
  0xf2   :  { %v1189_v25 = vpop.permute.xlu1 %1188  ;;  %v1243_v27 = vpop.permute.xlu0 %1242 }
  0xf3   :  { %v1410_v1 = vsel %vm1396_vm10, %v1393_v14, %v1243_v27  ;;  %v1395_v44 = vsel %vm1379_vm9, %v1378_v30, %v1189_v25 }
  0xf6   :  { %v1245_v32 = vpop.permute.xlu1 %1244  ;;  %v1283_v40 = vpop.permute.xlu0 %1282 }
  0xf7   :  { %v1427_v16 = vsel %vm1413_vm11, %v1410_v1, %v1283_v40  ;;  %v1412_v38 = vsel %vm1396_vm10, %v1395_v44, %v1245_v32  ;;  %vm1988_vm10 = vcmask 326656  }
  0xf8   :  { %2338 = vmatprep.mubr.msk.bf16.mxu1 %vm1450_vm12, %v1427_v16 }
  0xfa   :  { %v1285_v34 = vpop.permute.xlu1 %1284 }
  0xfb   :  { %v1429_v35 = vsel %vm1413_vm11, %v1412_v38, %v1285_v34 }
  0xfc   :  { %2339 = vmatmul.mubr.msk.bf16.gmra.mxu1 %vm1450_vm12, %v1429_v35  ;;  %vm1991_vm12 = vcmask 392192  }
 0x15c   :  { %v2328_v36 = vpop.f32.mrf.mxu0 }
 0x15d   :  { %v2295_v55 = vpack.c.bf16 %v2328_v36, %v2328_v36  ;;  %v1607_v48 = vmul.f32 %v2328_v36, %v2328_v36  ;;  %v1571_v46 = vsel %vm1311_vm5, %v2328_v36, 0.0  ;;  %v2011_v4 = vsel %vm2007_vm13, %v2328_v36, 0.0 }
 0x15e   :  { %v1505_v37 = vpop.f32.mrf.mxu0 }
 0x15f   :  { %v2293_v19 = vpack.c.bf16 %v1505_v37, %v1505_v37  ;;  %v1568_v50 = vsel %vm1311_vm5, %v1505_v37, 0.0  ;;  %v1605_v51 = vmul.f32 %v1505_v37, %v1505_v37  ;;  %v2008_v31 = vsel %vm2007_vm13, %v1505_v37, 0.0 }
 0x160   :  { %v2329_v49 = vpop.f32.mrf.mxu0  ;;  %v3317_v26 = vunpack.c.l.b16 %v2295_v55  ;;  %v1624_v59 = vsel %vm1311_vm5, %v1607_v48, 0.0  ;;  %v2048_v23 = vsel %vm2007_vm13, %v1607_v48, 0.0 }
 0x161   :  { %v3309_v28 = vunpack.c.l.b16 %v2293_v19  ;;  %v2296_v43 = vpack.c.bf16 %v2329_v49, %v2329_v49  ;;  %v1608_v62 = vmul.f32 %v2329_v49, %v2329_v49  ;;  %v1621_v29 = vsel %vm1311_vm5, %v1605_v51, 0.0 }
 0x162   :  { %v1508_v22 = vpop.f32.mrf.mxu0  ;;  %v2045_v21 = vsel %vm2007_vm13, %v1605_v51, 0.0  ;;  %v1573_v13 = vsel %vm1311_vm5, %v2329_v49, 0.0  ;;  %v1764_v7 = vrot.slane %v3317_v26, 7  ;;  %v2013_v57 = vsel %vm2007_vm13, %v2329_v49, 0.0 }
 0x163   :  { %v2294_v24 = vpack.c.bf16 %v1508_v22, %v1508_v22  ;;  %v1569_v63 = vsel %vm1311_vm5, %v1508_v22, 0.0  ;;  %v1606_v42 = vmul.f32 %v1508_v22, %v1508_v22  ;;  %v2009_v45 = vsel %vm2007_vm13, %v1508_v22, 0.0 }
 0x164   :  { %v1570_v53 = vadd.f32 %v1569_v63, %v1568_v50  ;;  %v2010_v8 = vadd.f32 %v2009_v45, %v2008_v31  ;;  %v1762_v58 = vrot.slane %v3309_v28, 1  ;;  %v3328_v33 = vunpack.c.l.b16 %v2296_v43 }
 0x165   :  { %v3315_v54 = vunpack.c.l.b16 %v2294_v24  ;;  %v1622_v9 = vsel %vm1311_vm5, %v1606_v42, 0.0  ;;  %v2046_v47 = vsel %vm2007_vm13, %v1606_v42, 0.0  ;;  %v1626_v11 = vsel %vm1311_vm5, %v1608_v62, 0.0 }
 0x166   :  { %v1572_v0 = vadd.f32 %v1571_v46, %v1570_v53  ;;  %v1623_v52 = vadd.f32 %v1622_v9, %v1621_v29  ;;  %v2012_v18 = vadd.f32 %v2011_v4, %v2010_v8  ;;  %v2047_v39 = vadd.f32 %v2046_v47, %v2045_v21 }
 0x167   :  { %v1763_v60 = vsel %vm1727_vm14, %v3315_v54, %v1762_v58  ;;  %v1887_v6 = vrot.slane %v3315_v54, 4  ;;  %v1889_v2 = vrot.slane %v3317_v26, 3  ;;  %v1726_v61 = vrot.slane %v3315_v54, 7 }
 0x168   :  { %v2050_v3 = vsel %vm2007_vm13, %v1608_v62, 0.0  ;;  %v1886_v15 = vrot.slane %v3309_v28, 5  ;;  %v1765_v25 = vsel %vm1730_vm15, %v1764_v7, %v1763_v60  ;;  %v1794_v27 = vrot.slane %v3315_v54, 1 }
 0x169   :  { %v1625_v5 = vadd.f32 %v1624_v59, %v1623_v52  ;;  %v3344_v17 = vadd.f32 %v1573_v13, %v1572_v0  ;;  %v1891_v20 = vrot.slane %v3328_v33, 2  ;;  %v1766_v56 = vrot.slane %v3328_v33, 6 }
 0x16a   :  { %v2049_v14 = vadd.f32 %v2048_v23, %v2047_v39  ;;  %v3348_v10 = vadd.f32 %v2013_v57, %v2012_v18  ;;  %v1888_v1 = vsel %vm1727_vm14, %v1887_v6, %v1886_v15  ;;  %v1793_v32 = vrot.slane %v3309_v28, 2 }
 0x16b   :  { %v3353_v40 = vsel %vm1733_vm0, %v1766_v56, %v1765_v25  ;;  %v1728_v41 = vsel %vm1727_vm14, %v1726_v61, %v3309_v28  ;;  %v1825_v16 = vrot.slane %v3315_v54, 2  ;;  %v1856_v30 = vrot.slane %v3315_v54, 3 }
 0x16c   :  { %v1729_v38 = vrot.slane %v3317_v26, 6  ;;  %v1795_v34 = vsel %vm1727_vm14, %v1794_v27, %v1793_v32  ;;  %v1918_v35 = vrot.slane %v3315_v54, 5  ;;  %v1949_v36 = vrot.slane %v3315_v54, 6 }
 0x16d   :  { %v3363_v37 = vadd.f32 %v1626_v11, %v1625_v5  ;;  %v1890_v49 = vsel %vm1730_vm15, %v1889_v2, %v1888_v1  ;;  %v1824_v22 = vrot.slane %v3309_v28, 3  ;;  %v1855_v19 = vrot.slane %v3309_v28, 4 }
 0x16e   :  { %v1731_v24 = vsel %vm1730_vm15, %v1729_v38, %v1728_v41  ;;  %v1732_v55 = vrot.slane %v3328_v33, 5  ;;  %v1917_v63 = vrot.slane %v3309_v28, 6  ;;  %v1948_v42 = vrot.slane %v3309_v28, 7 }
 0x16f   :  { %v1796_v48 = vsel %vm1730_vm15, %v3317_v26, %v1795_v34  ;;  %v1826_v45 = vsel %vm1727_vm14, %v1825_v16, %v1824_v22  ;;  %v1827_v46 = vrot.slane %v3317_v26, 1  ;;  %v1857_v50 = vsel %vm1727_vm14, %v1856_v30, %v1855_v19 }
 0x170   :  { %v1858_v43 = vrot.slane %v3317_v26, 2  ;;  %v1919_v53 = vsel %vm1727_vm14, %v1918_v35, %v1917_v63  ;;  %v1950_v54 = vsel %vm1727_vm14, %v1949_v36, %v1948_v42  ;;  %v2051_v4 = vadd.f32 %v2050_v3, %v2049_v14 }
 0x171   :  { %v1797_v28 = vrot.slane %v3328_v33, 7  ;;  %v1920_v9 = vrot.slane %v3317_v26, 4  ;;  %v1951_v8 = vrot.slane %v3317_v26, 5  ;;  %v1892_v59 = vsel %vm1733_vm0, %v1891_v20, %v1890_v49 }
 0x172   :  { %v3385_v62 = vsel %vm1733_vm0, %v1732_v55, %v1731_v24  ;;  %v1828_v47 = vsel %vm1730_vm15, %v1827_v46, %v1826_v45  ;;  %v1859_v58 = vsel %vm1730_vm15, %v1858_v43, %v1857_v50  ;;  %v1860_v29 = vrot.slane %v3328_v33, 1 }
 0x173   :  { %v3390_v23 = vsel %vm1733_vm0, %v1797_v28, %v1796_v48  ;;  %v1921_v21 = vsel %vm1730_vm15, %v1920_v9, %v1919_v53  ;;  %v1952_v13 = vsel %vm1730_vm15, %v1951_v8, %v1950_v54  ;;  %v1922_v60 = vrot.slane %v3328_v33, 3 }
 0x174   :  { %v1953_v18 = vrot.slane %v3328_v33, 4  ;;  %v3404_v7 = vsel %vm1733_vm0, %v3328_v33, %v1828_v47  ;;  %v3407_v11 = vsel %vm1733_vm0, %v1860_v29, %v1859_v58 }
 0x175   :  { %v3414_v61 = vsel %vm1733_vm0, %v1922_v60, %v1921_v21 }
 0x176   :  { %v3417_v3 = vsel %vm1733_vm0, %v1953_v18, %v1952_v13 }
 0x17c   :  { %v3339_v12 = vpop.f32.mrf.mxu0 }
 0x17d   :  { %v1611_v26 = vmul.f32 %v3339_v12, %v3339_v12  ;;  %v1579_v57 = vsel %vm1311_vm5, %v3339_v12, 0.0  ;;  %v2299_v2 = vpack.c.bf16 %v3339_v12, %v3339_v12  ;;  %v2019_v15 = vsel %vm2007_vm13, %v3339_v12, 0.0 }
 0x17e   :  { %v1521_v44 = vpop.f32.mrf.mxu0 }
 0x17f   :  { %v2297_v51 = vpack.c.bf16 %v1521_v44, %v1521_v44  ;;  %v1575_v39 = vsel %vm1311_vm5, %v1521_v44, 0.0  ;;  %v1609_v6 = vmul.f32 %v1521_v44, %v1521_v44  ;;  %v1632_v5 = vsel %vm1311_vm5, %v1611_v26, 0.0 }
 0x180   :  { %v2333_v31 = vpop.f32.mrf.mxu0  ;;  %v2015_v20 = vsel %vm2007_vm13, %v1521_v44, 0.0  ;;  %v1576_v56 = vadd.f32 %v1575_v39, %v3344_v17  ;;  %v3428_v12 = vunpack.c.l.b16 %v2299_v2  ;;  %v2056_v30 = vsel %vm2007_vm13, %v1611_v26, 0.0 }
 0x181   :  { %v3397_v0 = vunpack.c.l.b16 %v2297_v51  ;;  %v1628_v1 = vsel %vm1311_vm5, %v1609_v6, 0.0  ;;  %v2052_v32 = vsel %vm2007_vm13, %v1609_v6, 0.0  ;;  %v1612_v41 = vmul.f32 %v2333_v31, %v2333_v31 }
 0x182   :  { %v1524_v52 = vpop.f32.mrf.mxu0  ;;  %v2300_v16 = vpack.c.bf16 %v2333_v31, %v2333_v31  ;;  %v2016_v17 = vadd.f32 %v2015_v20, %v3348_v10  ;;  %v1581_v49 = vsel %vm1311_vm5, %v2333_v31, 0.0  ;;  %v1629_v22 = vadd.f32 %v1628_v1, %v3363_v37 }
 0x183   :  { %v1577_v33 = vsel %vm1311_vm5, %v1524_v52, 0.0  ;;  %v1610_v25 = vmul.f32 %v1524_v52, %v1524_v52  ;;  %v2298_v27 = vpack.c.bf16 %v1524_v52, %v1524_v52  ;;  %v1893_v14 = vrot.slane %v3397_v0, 1 }
 0x184   :  { %v1578_v38 = vadd.f32 %v1577_v33, %v1576_v56  ;;  %v2017_v34 = vsel %vm2007_vm13, %v1524_v52, 0.0  ;;  %v2053_v19 = vadd.f32 %v2052_v32, %v2051_v4  ;;  %v1634_v55 = vsel %vm1311_vm5, %v1612_v41, 0.0 }
 0x185   :  { %v1630_v35 = vsel %vm1311_vm5, %v1610_v25, 0.0  ;;  %v3433_v44 = vunpack.c.l.b16 %v2298_v27  ;;  %v2054_v36 = vsel %vm2007_vm13, %v1610_v25, 0.0  ;;  %v1894_v24 = vsel %vm1736_vm1, %v1893_v14, %v1892_v59 }
 0x186   :  { %v3441_v63 = vunpack.c.l.b16 %v2300_v16  ;;  %v2021_v42 = vsel %vm2007_vm13, %v2333_v31, 0.0  ;;  %v2018_v48 = vadd.f32 %v2017_v34, %v2016_v17  ;;  %v1580_v45 = vadd.f32 %v1579_v57, %v1578_v38 }
 0x187   :  { %v1631_v46 = vadd.f32 %v1630_v35, %v1629_v22  ;;  %v2055_v10 = vadd.f32 %v2054_v36, %v2053_v19  ;;  %v1768_v50 = vrot.slane %v3397_v0, 5  ;;  %v1895_v51 = vsel %vm1739_vm2, %v3433_v44, %v1894_v24 }
 0x188   :  { %v1770_v37 = vrot.slane %v3433_v44, 4  ;;  %v1735_v43 = vrot.slane %v3397_v0, 4  ;;  %v1799_v53 = vrot.slane %v3397_v0, 6  ;;  %v1896_v54 = vrot.slane %v3428_v12, 7 }
 0x189   :  { %v1738_v4 = vrot.slane %v3433_v44, 3  ;;  %v1801_v31 = vrot.slane %v3433_v44, 5  ;;  %v1830_v28 = vrot.slane %v3397_v0, 7  ;;  %v2058_v9 = vsel %vm2007_vm13, %v1612_v41, 0.0 }
 0x18a   :  { %v2020_v8 = vadd.f32 %v2019_v15, %v2018_v48  ;;  %v1898_v59 = vrot.slane %v3441_v63, 6  ;;  %v1832_v47 = vrot.slane %v3433_v44, 6  ;;  %v1582_v58 = vadd.f32 %v1581_v49, %v1580_v45 }
 0x18b   :  { %v1633_v29 = vadd.f32 %v1632_v5, %v1631_v46  ;;  %v1897_v13 = vsel %vm1742_vm3, %v1896_v54, %v1895_v51  ;;  %v1769_v26 = vsel %vm1736_vm1, %v1768_v50, %v3353_v40  ;;  %v2057_v52 = vadd.f32 %v2056_v30, %v2055_v10 }
 0x18c   :  { %v1771_v60 = vsel %vm1739_vm2, %v1770_v37, %v1769_v26  ;;  %v1737_v18 = vsel %vm1736_vm1, %v1735_v43, %v3385_v62  ;;  %v1800_v39 = vsel %vm1736_vm1, %v1799_v53, %v3390_v23  ;;  %v1772_v57 = vrot.slane %v3428_v12, 3 }
 0x18d   :  { %v1740_v2 = vsel %vm1739_vm2, %v1738_v4, %v1737_v18  ;;  %v1802_v15 = vsel %vm1739_vm2, %v1801_v31, %v1800_v39  ;;  %v1831_v33 = vsel %vm1736_vm1, %v1830_v28, %v3404_v7  ;;  %v2022_v40 = vadd.f32 %v2021_v42, %v2020_v8 }
 0x18e   :  { %v1741_v25 = vrot.slane %v3428_v12, 2  ;;  %v1803_v27 = vrot.slane %v3428_v12, 4  ;;  %v1833_v62 = vsel %vm1739_vm2, %v1832_v47, %v1831_v33  ;;  %v3478_v23 = vsel %vm1745_vm4, %v1898_v59, %v1897_v13 }
 0x18f   :  { %v1773_v20 = vsel %vm1742_vm3, %v1772_v57, %v1771_v60  ;;  %v1834_v56 = vrot.slane %v3428_v12, 5  ;;  %v1863_v14 = vrot.slane %v3433_v44, 7  ;;  %v1635_v1 = vadd.f32 %v1634_v55, %v1633_v29 }
 0x190   :  { %v1774_v7 = vrot.slane %v3441_v63, 2  ;;  %v1743_v32 = vsel %vm1742_vm3, %v1741_v25, %v1740_v2  ;;  %v1804_v41 = vsel %vm1742_vm3, %v1803_v27, %v1802_v15  ;;  %v2059_v16 = vadd.f32 %v2058_v9, %v2057_v52 }
 0x191   :  { %v1744_v30 = vrot.slane %v3441_v63, 1  ;;  %v1805_v38 = vrot.slane %v3441_v63, 3  ;;  %v1835_v34 = vsel %vm1742_vm3, %v1834_v56, %v1833_v62  ;;  %v1836_v36 = vrot.slane %v3441_v63, 4 }
 0x192   :  { %v3490_v17 = vsel %vm1745_vm4, %v1774_v7, %v1773_v20  ;;  %v1862_v49 = vsel %vm1736_vm1, %v3397_v0, %v3407_v11  ;;  %v1924_v22 = vrot.slane %v3397_v0, 2  ;;  %v1865_v45 = vrot.slane %v3428_v12, 6 }
 0x193   :  { %v3498_v24 = vsel %vm1745_vm4, %v1744_v30, %v1743_v32  ;;  %v3501_v55 = vsel %vm1745_vm4, %v1805_v38, %v1804_v41  ;;  %v1864_v42 = vsel %vm1739_vm2, %v1863_v14, %v1862_v49  ;;  %v3505_v48 = vsel %vm1745_vm4, %v1836_v36, %v1835_v34 }
 0x194   :  { %v1867_v46 = vrot.slane %v3441_v63, 5  ;;  %v1926_v11 = vrot.slane %v3433_v44, 1  ;;  %v1955_v37 = vrot.slane %v3397_v0, 3  ;;  %v3516_v54 = vsel %vm1742_vm3, %v1865_v45, %v1864_v42 }
 0x195   :  { %v3520_v4 = vsel %vm1736_vm1, %v1924_v22, %v3414_v61  ;;  %v1957_v60 = vrot.slane %v3433_v44, 2 }
 0x19c   :  { %v3457_v21 = vpop.f32.mrf.mxu1 }
 0x19d   :  { %v2303_v43 = vpack.c.bf16 %v3457_v21, %v3457_v21  ;;  %v1615_v26 = vmul.f32 %v3457_v21, %v3457_v21  ;;  %v2027_v25 = vsel %vm2007_vm13, %v3457_v21, 0.0 }
 0x19e   :  { %v1537_v6 = vpop.f32.mrf.mxu1 }
 0x19f   :  { %v1613_v19 = vmul.f32 %v1537_v6, %v1537_v6  ;;  %v1583_v10 = vsel %vm1311_vm5, %v1537_v6, 0.0  ;;  %v2023_v50 = vsel %vm2007_vm13, %v1537_v6, 0.0  ;;  %v2301_v53 = vpack.c.bf16 %v1537_v6, %v1537_v6 }
 0x1a0   :  { %v3475_v5 = vpop.f32.mrf.mxu1  ;;  %v1584_v59 = vadd.f32 %v1583_v10, %v1582_v58  ;;  %v2024_v47 = vadd.f32 %v2023_v50, %v2022_v40  ;;  %v3535_v57 = vunpack.c.l.b16 %v2303_v43  ;;  %v1587_v40 = vsel %vm1311_vm5, %v3457_v21, 0.0 }
 0x1a1   :  { %v1636_v31 = vsel %vm1311_vm5, %v1613_v19, 0.0  ;;  %v2060_v29 = vsel %vm2007_vm13, %v1613_v19, 0.0  ;;  %v2304_v13 = vpack.c.bf16 %v3475_v5, %v3475_v5  ;;  %v1616_v61 = vmul.f32 %v3475_v5, %v3475_v5 }
 0x1a2   :  { %v1540_v35 = vpop.f32.mrf.mxu1  ;;  %v1637_v18 = vadd.f32 %v1636_v31, %v1635_v1  ;;  %v3537_v2 = vunpack.c.l.b16 %v2301_v53  ;;  %v2061_v15 = vadd.f32 %v2060_v29, %v2059_v16  ;;  %v1640_v20 = vsel %vm1311_vm5, %v1615_v26, 0.0 }
 0x1a3   :  { %v1614_v51 = vmul.f32 %v1540_v35, %v1540_v35  ;;  %v1585_v28 = vsel %vm1311_vm5, %v1540_v35, 0.0  ;;  %v2302_v9 = vpack.c.bf16 %v1540_v35, %v1540_v35  ;;  %v2025_v8 = vsel %vm2007_vm13, %v1540_v35, 0.0 }
 0x1a4   :  { %v1586_v39 = vadd.f32 %v1585_v28, %v1584_v59  ;;  %v2026_v6 = vadd.f32 %v2025_v8, %v2024_v47  ;;  %v3545_v27 = vunpack.c.l.b16 %v2304_v13  ;;  %v2064_v56 = vsel %vm2007_vm13, %v1615_v26, 0.0 }
 0x1a5   :  { %v1638_v52 = vsel %vm1311_vm5, %v1614_v51, 0.0  ;;  %v2062_v58 = vsel %vm2007_vm13, %v1614_v51, 0.0  ;;  %v3539_v33 = vunpack.c.l.b16 %v2302_v9  ;;  %v1589_v14 = vsel %vm1311_vm5, %v3475_v5, 0.0 }
 0x1a6   :  { %v1639_v62 = vadd.f32 %v1638_v52, %v1637_v18  ;;  %v2063_v1 = vadd.f32 %v2062_v58, %v2061_v15  ;;  %v1642_v7 = vsel %vm1311_vm5, %v1616_v61, 0.0  ;;  %v2029_v32 = vsel %vm2007_vm13, %v3475_v5, 0.0 }
 0x1a7   :  { %v1588_v41 = vadd.f32 %v1587_v40, %v1586_v39  ;;  %v2028_v16 = vadd.f32 %v2027_v25, %v2026_v6  ;;  %v2066_v21 = vsel %vm2007_vm13, %v1616_v61, 0.0  ;;  %v1900_v30 = vrot.slane %v3537_v2, 5 }
 0x1a8   :  { %v1901_v38 = vrot.slane %v3539_v33, 4  ;;  %v1903_v34 = vrot.slane %v3535_v57, 3  ;;  %v1641_v35 = vadd.f32 %v1640_v20, %v1639_v62  ;;  %v1905_v36 = vrot.slane %v3545_v27, 2 }
 0x1a9   :  { %v1776_v49 = vrot.slane %v3537_v2, 1  ;;  %v1747_v22 = vrot.slane %v3539_v33, 7  ;;  %v2065_v19 = vadd.f32 %v2064_v56, %v2063_v1  ;;  %v1778_v5 = vrot.slane %v3535_v57, 7 }
 0x1aa   :  { %v1808_v42 = vrot.slane %v3539_v33, 1  ;;  %v1839_v45 = vrot.slane %v3539_v33, 2  ;;  %v1590_v10 = vadd.f32 %v1589_v14, %v1588_v41  ;;  %v3564_v50 = vadd.f32 %v2029_v32, %v2028_v16 }
 0x1ab   :  { %v1780_v51 = vrot.slane %v3545_v27, 6  ;;  %v1870_v43 = vrot.slane %v3539_v33, 3  ;;  %v1902_v53 = vsel %vm1727_vm14, %v1901_v38, %v1900_v30  ;;  %v1807_v31 = vrot.slane %v3537_v2, 2 }
 0x1ac   :  { %v1838_v28 = vrot.slane %v3537_v2, 3  ;;  %v1932_v9 = vrot.slane %v3539_v33, 5  ;;  %v3572_v8 = vadd.f32 %v1642_v7, %v1641_v35  ;;  %v1777_v59 = vsel %vm1727_vm14, %v3539_v33, %v1776_v49 }
 0x1ad   :  { %v1748_v47 = vsel %vm1727_vm14, %v1747_v22, %v3537_v2  ;;  %v1869_v29 = vrot.slane %v3537_v2, 4  ;;  %v1749_v13 = vrot.slane %v3535_v57, 6  ;;  %v1809_v26 = vsel %vm1727_vm14, %v1808_v42, %v1807_v31 }
 0x1ae   :  { %v1840_v61 = vsel %vm1727_vm14, %v1839_v45, %v1838_v28  ;;  %v1931_v52 = vrot.slane %v3537_v2, 6  ;;  %v2067_v18 = vadd.f32 %v2066_v21, %v2065_v19  ;;  %v1904_v39 = vsel %vm1730_vm15, %v1903_v34, %v1902_v53 }
 0x1af   :  { %v1841_v6 = vrot.slane %v3535_v57, 1  ;;  %v1871_v58 = vsel %vm1727_vm14, %v1870_v43, %v1869_v29  ;;  %v1779_v15 = vsel %vm1730_vm15, %v1778_v5, %v1777_v59  ;;  %v1750_v40 = vsel %vm1730_vm15, %v1749_v13, %v1748_v47 }
 0x1b0   :  { %v1872_v25 = vrot.slane %v3535_v57, 2  ;;  %v1933_v62 = vsel %vm1727_vm14, %v1932_v9, %v1931_v52  ;;  %v1751_v20 = vrot.slane %v3545_v27, 5  ;;  %v1810_v56 = vsel %vm1730_vm15, %v3535_v57, %v1809_v26 }
 0x1b1   :  { %v1842_v14 = vsel %vm1730_vm15, %v1841_v6, %v1840_v61  ;;  %v1934_v1 = vrot.slane %v3535_v57, 4  ;;  %v1906_v7 = vsel %vm1733_vm0, %v1905_v36, %v1904_v39  ;;  %v1811_v32 = vrot.slane %v3545_v27, 7 }
 0x1b2   :  { %v1873_v41 = vsel %vm1730_vm15, %v1872_v25, %v1871_v58  ;;  %v1963_v16 = vrot.slane %v3539_v33, 6  ;;  %v3600_v21 = vsel %vm1733_vm0, %v1780_v51, %v1779_v15  ;;  %v3603_v30 = vsel %vm1733_vm0, %v1751_v20, %v1750_v40 }
 0x1b3   :  { %v1874_v38 = vrot.slane %v3545_v27, 1  ;;  %v1935_v34 = vsel %vm1730_vm15, %v1934_v1, %v1933_v62  ;;  %v3608_v49 = vsel %vm1733_vm0, %v1811_v32, %v1810_v56  ;;  %v3612_v36 = vsel %vm1733_vm0, %v3545_v27, %v1842_v14 }
 0x1b4   :  { %v1936_v33 = vrot.slane %v3545_v27, 3  ;;  %v1962_v22 = vrot.slane %v3537_v2, 7  ;;  %v1965_v45 = vrot.slane %v3535_v57, 5  ;;  %v1967_v28 = vrot.slane %v3545_v27, 4 }
 0x1b5   :  { %v3617_v42 = vsel %vm1733_vm0, %v1874_v38, %v1873_v41 }
 0x1b6   :  { %v3622_v53 = vsel %vm1733_vm0, %v1936_v33, %v1935_v34  ;;  %v1964_v31 = vsel %vm1727_vm14, %v1963_v16, %v1962_v22 }
 0x1bc   :  { %v2340_v35 = vpop.f32.mrf.mxu1 }
 0x1bd   :  { %v1619_v19 = vmul.f32 %v2340_v35, %v2340_v35  ;;  %v2307_v5 = vpack.c.bf16 %v2340_v35, %v2340_v35  ;;  %v1595_v51 = vsel %vm1311_vm5, %v2340_v35, 0.0  ;;  %v2035_v59 = vsel %vm2007_vm13, %v2340_v35, 0.0 }
 0x1be   :  { %v1553_v43 = vpop.f32.mrf.mxu1 }
 0x1bf   :  { %v1648_v9 = vsel %vm1311_vm5, %v1619_v19, 0.0  ;;  %v3627_v2 = vunpack.c.l.b16 %v2307_v5  ;;  %v1591_v47 = vsel %vm1311_vm5, %v1553_v43, 0.0  ;;  %v2072_v29 = vsel %vm2007_vm13, %v1619_v19, 0.0 }
 0x1c0   :  { %v1617_v13 = vmul.f32 %v1553_v43, %v1553_v43  ;;  %v2305_v26 = vpack.c.bf16 %v1553_v43, %v1553_v43  ;;  %v2031_v61 = vsel %vm2007_vm13, %v1553_v43, 0.0  ;;  %v2341_v52 = vpop.f32.mrf.mxu1  ;;  %v1592_v15 = vadd.f32 %v1591_v47, %v1590_v10 }
 0x1c1   :  { %v1597_v39 = vsel %vm1311_vm5, %v2341_v52, 0.0  ;;  %v1620_v6 = vmul.f32 %v2341_v52, %v2341_v52  ;;  %v2308_v58 = vpack.c.bf16 %v2341_v52, %v2341_v52  ;;  %v2037_v20 = vsel %vm2007_vm13, %v2341_v52, 0.0 }
 0x1c2   :  { %v1644_v40 = vsel %vm1311_vm5, %v1617_v13, 0.0  ;;  %v3635_v25 = vunpack.c.l.b16 %v2305_v26  ;;  %v2068_v62 = vsel %vm2007_vm13, %v1617_v13, 0.0  ;;  %v1556_v56 = vpop.f32.mrf.mxu1  ;;  %v2032_v41 = vadd.f32 %v2031_v61, %v3564_v50 }
 0x1c3   :  { %v1650_v14 = vsel %vm1311_vm5, %v1620_v6, 0.0  ;;  %v3640_v1 = vunpack.c.l.b16 %v2308_v58  ;;  %v1593_v32 = vsel %vm1311_vm5, %v1556_v56, 0.0  ;;  %v1618_v38 = vmul.f32 %v1556_v56, %v1556_v56 }
 0x1c4   :  { %v1594_v16 = vadd.f32 %v1593_v32, %v1592_v15  ;;  %v1645_v10 = vadd.f32 %v1644_v40, %v3572_v8  ;;  %v2306_v34 = vpack.c.bf16 %v1556_v56, %v1556_v56  ;;  %v2033_v35 = vsel %vm2007_vm13, %v1556_v56, 0.0 }
 0x1c5   :  { %v2069_v33 = vadd.f32 %v2068_v62, %v2067_v18  ;;  %v1907_v22 = vrot.slane %v3635_v25, 1  ;;  %v1910_v19 = vrot.slane %v3627_v2, 7  ;;  %v1646_v43 = vsel %vm1311_vm5, %v1618_v38, 0.0 }
 0x1c6   :  { %v1596_v5 = vadd.f32 %v1595_v51, %v1594_v16  ;;  %v3649_v47 = vunpack.c.l.b16 %v2306_v34  ;;  %v2034_v13 = vadd.f32 %v2033_v35, %v2032_v41  ;;  %v1647_v26 = vadd.f32 %v1646_v43, %v1645_v10 }
 0x1c7   :  { %v2070_v50 = vsel %vm2007_vm13, %v1618_v38, 0.0  ;;  %v1908_v61 = vsel %vm1736_vm1, %v1907_v22, %v1906_v7  ;;  %v1912_v8 = vrot.slane %v3640_v1, 6  ;;  %v1782_v62 = vrot.slane %v3635_v25, 5 }
 0x1c8   :  { %v1598_v52 = vadd.f32 %v1597_v39, %v1596_v5  ;;  %v2036_v58 = vadd.f32 %v2035_v59, %v2034_v13  ;;  %v2071_v18 = vadd.f32 %v2070_v50, %v2069_v33  ;;  %v1909_v15 = vsel %vm1739_vm2, %v3649_v47, %v1908_v61 }
 0x1c9   :  { %v1649_v40 = vadd.f32 %v1648_v9, %v1647_v26  ;;  %v1911_v51 = vsel %vm1742_vm3, %v1910_v19, %v1909_v15  ;;  %v1784_v56 = vrot.slane %v3649_v47, 4  ;;  %v1783_v39 = vsel %vm1736_vm1, %v1782_v62, %v3600_v21 }
 0x1ca   :  { %v1599_v32 = vrot.slane %v1598_v52, 4  ;;  %v3659_v41 = vadd.f32 %v2037_v20, %v2036_v58  ;;  %v2073_v16 = vadd.f32 %v2072_v29, %v2071_v18  ;;  %v1913_v7 = vsel %vm1745_vm4, %v1912_v8, %v1911_v51 }
 0x1cb   :  { %v1651_v38 = vadd.f32 %v1650_v14, %v1649_v40  ;;  %v1914_v59 = vpack.c.b16 %v1913_v7, %v3478_v23  ;;  %v1786_v9 = vrot.slane %v3627_v2, 3  ;;  %v2074_v10 = vsel %vm2007_vm13, %v1620_v6, 0.0 }
 0x1cc   :  { %v1600_v34 = vadd.f32 %v1599_v32, %v1598_v52  ;;  %v1785_v35 = vsel %vm1739_vm2, %v1784_v56, %v1783_v39  ;;  %v3671_v20 = vsel %vm1730_vm15, %v1965_v45, %v1964_v31  ;;  %v1788_v21 = vrot.slane %v3640_v1, 2 }
 0x1cd   :  { %v1652_v29 = vrot.slane %v1651_v38, 4  ;;  %2096 = vrot.lane.b32.xlu1 %v1914_v59, %s2420_s15  ;;  %1915 = vrot.lane.b32.xlu0 %v1914_v59, %s2421_s1  ;;  %v1787_v23 = vsel %vm1742_vm3, %v1786_v9, %v1785_v35  ;;  %v1753_v6 = vrot.slane %v3635_v25, 4  ;;  %v2039_v33 = vrot.slane %v3659_v41, 4 }
 0x1ce   :  { %v1601_v14 = vrot.slane %v1600_v34, 2  ;;  %v3679_v22 = vadd.f32 %v2074_v10, %v2073_v16  ;;  %v1755_v57 = vrot.slane %v3649_v47, 3  ;;  %v1789_v45 = vsel %vm1745_vm4, %v1788_v21, %v1787_v23 }
 0x1cf   :  { %v1754_v31 = vsel %vm1736_vm1, %v1753_v6, %v3603_v30  ;;  %v1757_v19 = vrot.slane %v3627_v2, 2  ;;  %v1813_v5 = vrot.slane %v3635_v25, 6  ;;  %v3688_v43 = vpack.c.b16 %v1789_v45, %v3490_v17 }
 0x1d0   :  { %v1756_v13 = vsel %vm1739_vm2, %v1755_v57, %v1754_v31  ;;  %v1759_v26 = vrot.slane %v3640_v1, 1  ;;  %v1815_v50 = vrot.slane %v3649_v47, 5  ;;  %v1653_v61 = vadd.f32 %v1652_v29, %v1651_v38 }
 0x1d1   :  { %v1758_v8 = vsel %vm1742_vm3, %v1757_v19, %v1756_v13  ;;  %v1814_v52 = vsel %vm1736_vm1, %v1813_v5, %v3608_v49  ;;  %v1817_v30 = vrot.slane %v3627_v2, 4  ;;  %1791 = vrot.lane.b32.xlu0 %v3688_v43, %s2416_s12  ;;  %v1819_v18 = vrot.slane %v3640_v1, 3 }
 0x1d2   :  { %v1760_v17 = vsel %vm1745_vm4, %v1759_v26, %v1758_v8  ;;  %v1816_v58 = vsel %vm1739_vm2, %v1815_v50, %v1814_v52  ;;  %v1844_v15 = vrot.slane %v3635_v25, 7  ;;  %v1602_v40 = vadd.f32 %v1601_v14, %v1600_v34 }
 0x1d3   :  { %v3704_v51 = vpack.c.b16 %v1760_v17, %v3498_v24  ;;  %v1818_v62 = vsel %vm1742_vm3, %v1817_v30, %v1816_v58  ;;  %v1846_v49 = vrot.slane %v3649_v47, 6  ;;  %v1848_v16 = vrot.slane %v3627_v2, 5 }
 0x1d4   :  { %v1820_v56 = vsel %vm1745_vm4, %v1819_v18, %v1818_v62  ;;  %v1845_v32 = vsel %vm1736_vm1, %v1844_v15, %v3612_v36  ;;  %v1850_v7 = vrot.slane %v3640_v1, 4  ;;  %v1876_v59 = vsel %vm1736_vm1, %v3635_v25, %v3617_v42 }
 0x1d5   :  { %2088 = vrot.lane.b32.xlu1 %v3704_v51, %s2422_s4  ;;  %v1821_v24 = vpack.c.b16 %v1820_v56, %v3501_v55  ;;  %v1847_v38 = vsel %vm1739_vm2, %v1846_v49, %v1845_v32  ;;  %v1877_v39 = vrot.slane %v3649_v47, 7  ;;  %v1879_v9 = vrot.slane %v3627_v2, 6 }
 0x1d6   :  { %v1849_v36 = vsel %vm1742_vm3, %v1848_v16, %v1847_v38  ;;  %v1938_v10 = vrot.slane %v3635_v25, 2  ;;  %v1940_v34 = vrot.slane %v3649_v47, 1  ;;  %v1654_v35 = vrot.slane %v1653_v61, 2 }
 0x1d7   :  { %1822 = vrot.lane.b32.xlu0 %v1821_v24, %s2415_s27  ;;  %v1851_v55 = vsel %vm1745_vm4, %v1850_v7, %v1849_v36  ;;  %v1878_v29 = vsel %vm1739_vm2, %v1877_v39, %v1876_v59  ;;  %v1969_v23 = vrot.slane %v3635_v25, 3  ;;  %v1881_v21 = vrot.slane %v3640_v1, 5 }
 0x1d8   :  { %v1880_v42 = vsel %vm1742_vm3, %v1879_v9, %v1878_v29  ;;  %v1939_v6 = vsel %vm1736_vm1, %v1938_v10, %v3622_v53  ;;  %v1971_v14 = vrot.slane %v3649_v47, 2  ;;  %v1852_v57 = vpack.c.b16 %v1851_v55, %v3505_v48 }
 0x1d9   :  { %2090 = vrot.lane.b32.xlu1 %v1821_v24, %s2416_s12  ;;  %v1868_v45 = vsel %vm1745_vm4, %v1867_v46, %v3516_v54  ;;  %v1927_v25 = vsel %vm1739_vm2, %v1926_v11, %v3520_v4  ;;  %v1941_v31 = vsel %vm1739_vm2, %v1940_v34, %v1939_v6  ;;  %v1882_v53 = vsel %vm1745_vm4, %v1881_v21, %v1880_v42 }
 0x1da   :  { %v1956_v47 = vsel %vm1736_vm1, %v1955_v37, %v3417_v3  ;;  %v1968_v48 = vsel %vm1733_vm0, %v1967_v28, %v3671_v20  ;;  %v2040_v46 = vadd.f32 %v2039_v33, %v3659_v41  ;;  %v1942_v11 = vsel %vm1742_vm3, %v3627_v2, %v1941_v31 }
 0x1db   :  { %1853 = vrot.lane.b32.xlu0 %v1852_v57, %s2418_s28  ;;  %v1943_v54 = vrot.slane %v3640_v1, 7  ;;  %v1970_v4 = vsel %vm1736_vm1, %v1969_v23, %v1968_v48  ;;  %v2076_v0 = vrot.slane %v3679_v22, 4  ;;  %v1603_v19 = vrot.slane %v1602_v40, 1 }
 0x1dc   :  { %v1972_v3 = vsel %vm1739_vm2, %v1971_v14, %v1970_v4  ;;  %v2041_v37 = vrot.slane %v2040_v46, 2  ;;  %v1655_v27 = vadd.f32 %v1654_v35, %v1653_v61  ;;  %v1883_v28 = vpack.c.b16 %v1882_v53, %v1868_v45 }
 0x1dd   :  { %2092 = vrot.lane.b32.xlu1 %v1852_v57, %s2415_s27  ;;  %v1928_v41 = vsel %vm1742_vm3, %v3428_v12, %v1927_v25  ;;  %v1973_v20 = vrot.slane %v3627_v2, 1  ;;  %v2077_v33 = vadd.f32 %v2076_v0, %v3679_v22  ;;  %v1929_v5 = vrot.slane %v3441_v63, 7  ;;  %s2423_s27 = smov 48  }
 0x1de   :  { %v1944_v13 = vsel %vm1745_vm4, %v1943_v54, %v1942_v11  ;;  %v1958_v26 = vsel %vm1739_vm2, %v1957_v60, %v1956_v47  ;;  %v1656_v50 = vrot.slane %v1655_v27, 1  ;;  %v1959_v61 = vrot.slane %v3428_v12, 1 }
 0x1df   :  { %1884 = vrot.lane.b32.xlu0 %v1883_v28, %s2420_s15  ;;  %v1974_v8 = vsel %vm1742_vm3, %v1973_v20, %v1972_v3  ;;  %v2078_v52 = vrot.slane %v2077_v33, 2  ;;  %v1930_v2 = vsel %vm1745_vm4, %v1929_v5, %v1928_v41  ;;  %v2042_v22 = vadd.f32 %v2041_v37, %v2040_v46 }
 0x1e0   :  { %v1604_v30 = vadd.f32 %v1603_v19, %v1602_v40  ;;  %v1657_v17 = vadd.f32 %v1656_v50, %v1655_v27  ;;  %v1945_v58 = vpack.c.b16 %v1944_v13, %v1930_v2  ;;  %v1960_v44 = vsel %vm1742_vm3, %v1959_v61, %v1958_v26 }
 0x1e1   :  { %2094 = vrot.lane.b32.xlu1 %v1883_v28, %s2418_s28  ;;  %v2079_v60 = vadd.f32 %v2078_v52, %v2077_v33  ;;  %v1975_v18 = vsel %vm1745_vm4, %v3640_v1, %v1974_v8  ;;  %v1961_v40 = vsel %vm1745_vm4, %v3441_v63, %v1960_v44  ;;  %v2043_v62 = vrot.slane %v2042_v22, 1  ;;  %s2424_s28 = smov 56  }
 0x1e2   :  { %v1659_v12 = vsel %vm1658_vm6, %v1604_v30, %v1657_v17  ;;  %v1976_v49 = vpack.c.b16 %v1975_v18, %v1961_v40  ;;  %vm1994_vm13 = vcmask 457728  }
 0x1e3   :  { %1946 = vrot.lane.b32.xlu0 %v1945_v58, %s2423_s27  ;;  %v2080_v15 = vrot.slane %v2079_v60, 1  ;;  %1661 = vst.msk [vmem:[%s3825_s6] sm:$0x3] %vm1660_vm8, %v1659_v12  ;;  %v2044_v1 = vadd.f32 %v2043_v62, %v2042_v22 }
 0x1e5   :  { %2098 = vrot.lane.b32.xlu1 %v1945_v58, %s2421_s1  ;;  %v2081_v56 = vadd.f32 %v2080_v15, %v2079_v60 }
 0x1e7   :  { %1977 = vrot.lane.b32.xlu0 %v1976_v49, %s2424_s28  ;;  %v2082_v32 = vsel %vm1658_vm6, %v2044_v1, %v2081_v56 }
 0x1e9   :  { %2100 = vrot.lane.b32.xlu1 %v1976_v49, %s2423_s27 }
 0x1eb   :  { %2084 = vrot.lane.b32.xlu0 %v2082_v32, %s2422_s4 }
 0x23f   :  { %v1916_v16 = vpop.permute.xlu0 %1915  ;;  %v2097_v7 = vpop.permute.xlu1 %2096 }
 0x243   :  { %v1792_v24 = vpop.permute.xlu0 %1791 }
 0x244   :  { %v1981_v10 = vsel %vm1311_vm5, %v3704_v51, %v1792_v24 }
 0x247   :  { %v2089_v38 = vpop.permute.xlu1 %2088 }
 0x248   :  { %v2104_v55 = vsel %vm1311_vm5, %v2089_v38, %v3688_v43  ;;  %vm2004_vm5 = vcmask 519168  }
 0x249   :  { %v1823_v59 = vpop.permute.xlu0 %1822 }
 0x24a   :  { %v1983_v34 = vsel %vm1345_vm7, %v1981_v10, %v1823_v59 }
 0x24b   :  { %v2091_v39 = vpop.permute.xlu1 %2090 }
 0x24c   :  { %v2106_v23 = vsel %vm1345_vm7, %v2104_v55, %v2091_v39 }
 0x24d   :  { %v1854_v63 = vpop.permute.xlu0 %1853 }
 0x24e   :  { %v1985_v29 = vsel %vm1379_vm9, %v1983_v34, %v1854_v63 }
 0x24f   :  { %v2093_v36 = vpop.permute.xlu1 %2092 }
 0x250   :  { %v2108_v6 = vsel %vm1379_vm9, %v2106_v23, %v2093_v36 }
 0x251   :  { %v1885_v9 = vpop.permute.xlu0 %1884 }
 0x252   :  { %v1987_v42 = vsel %vm1413_vm11, %v1985_v29, %v1885_v9 }
 0x253   :  { %v2095_v35 = vpop.permute.xlu1 %2094  ;;  %v1990_v57 = vsel %vm1988_vm10, %v1987_v42, %v1916_v16 }
 0x254   :  { %v2110_v14 = vsel %vm1413_vm11, %v2108_v6, %v2095_v35 }
 0x255   :  { %v1947_v21 = vpop.permute.xlu0 %1946  ;;  %v2112_v31 = vsel %vm1988_vm10, %v2110_v14, %v2097_v7 }
 0x256   :  { %v1993_v45 = vsel %vm1991_vm12, %v1990_v57, %v1947_v21 }
 0x257   :  { %v2099_v51 = vpop.permute.xlu1 %2098 }
 0x258   :  { %v2114_v53 = vsel %vm1991_vm12, %v2112_v31, %v2099_v51 }
 0x259   :  { %v1978_v25 = vpop.permute.xlu0 %1977 }
 0x25a   :  { %v1996_v43 = vsel %vm1994_vm13, %v1993_v45, %v1978_v25 }
 0x25b   :  { %v2289_v47 = vcombine.low %v1996_v43, %v1996_v43  ;;  %v2290_v48 = vcombine.high %v1996_v43, %v1996_v43  ;;  %v2101_v46 = vpop.permute.xlu1 %2100 }
 0x25c   :  { %v2116_v11 = vsel %vm1994_vm13, %v2114_v53, %v2101_v46 }
 0x25d   :  { %2005 = vst.msk [vmem:[%s3826_s5] sm:$0xf] %vm2004_vm5, %v2289_v47  ;;  %2006 = vst.msk [vmem:[%s3826_s5 + $0x4] sm:$0xf] %vm2004_vm5, %v2290_v48  ;;  %v2291_v54 = vcombine.low %v2116_v11, %v2116_v11  ;;  %v2292_v4 = vcombine.high %v2116_v11, %v2116_v11  ;;  %v2085_v0 = vpop.permute.xlu0 %2084 }
 0x25e   :  { %2087 = vst.msk [vmem:[%s3827_s8] sm:$0x3] %vm1660_vm8, %v2085_v0 }
 0x25f   :  { %2124 = vst.msk [vmem:[%s3828_s7] sm:$0xf] %vm2004_vm5, %v2291_v54  ;;  %2125 = vst.msk [vmem:[%s3828_s7 + $0x4] sm:$0xf] %vm2004_vm5, %v2292_v4 }

// kernel: resnet18_block.4
= control target key start
LH: loop header
LB: loop body
LE: loop exit
PB: predicated region body
PF: predicated region fallthrough
CT: control target
= control target key end

     0   :  { %v186_v0 = vlaneseq  ;;  %v3662_v3 = vmov 1966171168   ;;  %v3663_v14 = vmov 286326784   ;;  %s3667_s24 = smov 112   ;;  %vm47_vm0 = vcmask 57344   ;;  %s3669_s25 = smov 96   ;;  %s5977_s0 = inlined_call_operand.vmem [shape: bf16[16,64], index: 0, kind: input, shape index: {}]   ;;  %s5978_s1 = inlined_call_operand.vmem [shape: f32[1,64], index: 1, kind: input, shape index: {}]   ;;  %s5979_s2 = inlined_call_operand.vmem [shape: f32[1,64], index: 2, kind: input, shape index: {}]   ;;  %s5980_s3 = inlined_call_operand.vmem [shape: bf16[72,8], index: 3, kind: input, shape index: {}]   ;;  %s5981_s5 = inlined_call_operand.vmem [shape: f32[1,2,8], index: 5, kind: output, shape index: {1}]   ;;  %s5982_s4 = inlined_call_operand.vmem [shape: bf16[16,64], index: 4, kind: output, shape index: {0}]  }
   0x1   :  { %v3550_v1 = vld [vmem:[%s5977_s0] sm:$0xff]   ;;  %v184_v4 = vunpack.c.l.s4 %v3662_v3  ;;  %v264_v15 = vunpack.c.l.s4 %v3663_v14  ;;  %s3664_s0 = smov 104   ;;  %vm57_vm1 = vsmask.f32 256  ;;  %vm45_vm3 = vcmask 60416   ;;  %s3670_s26 = smov 80  }
   0x2   :  { %v3371_v2 = vld [vmem:[%s5978_s1] ss:$0 sm:$0xff]  ;;  %v3551_v5 = vunpack.c.l.bf16 %v3550_v1  ;;  %v3552_v6 = vunpack.c.h.bf16 %v3550_v1  ;;  %v187_v11 = vshrl.u32 %v186_v0, 7  ;;  %s3665_s1 = smov 120   ;;  %vm3844_vm2 = vmand %vm47_vm0, %vm57_vm1  ;;  %vm119_vm4 = vsmask.f32 7938 }
   0x3   :  { %v3372_v7 = vld [vmem:[%s5979_s2] ss:$0 sm:$0xff]  ;;  %v185_v10 = vunpack.c.0.s8 %v184_v4  ;;  %v265_v20 = vunpack.c.0.s8 %v264_v15  ;;  %s3666_s2 = smov 88   ;;  %vm3865_vm5 = vmand %vm47_vm0, %vm119_vm4  ;;  %vm685_vm6 = vcmask 59394   ;;  %vm686_vm7 = vsmask.f32 2304 }
   0x4   :  { %v31_v8 = vmul.f32 %v3551_v5, %v3371_v2  ;;  %v32_v9 = vmul.f32 %v3552_v6, %v3371_v2  ;;  %v92_v6 = vld [vmem:[#allocation2 + $0x58] sm:$0x1]  ;;  %vm488_vm8 = vcmask 58369   ;;  %vm489_vm9 = vsmask.f32 1280  ;;  %vm3934_vm10 = vmand %vm685_vm6, %vm686_vm7  ;;  %s3671_s27 = smov 72  }
   0x5   :  { %v188_v18 = vsub.s32 %v185_v10, %v187_v11  ;;  %v3719_v25 = vsub.s32 %v265_v20, %v187_v11  ;;  %v3668_v10 = vmov 0   ;;  %v65_v20 = vld [vmem:[#allocation2 + $0x10] sm:$0x1]  ;;  %vm3943_vm11 = vmand %vm488_vm8, %vm489_vm9  ;;  %vm882_vm12 = vcmask 60419   ;;  %s3672_s28 = smov 8   ;;  %s3673_s29 = smov 16  }
   0x6   :  { %v40_v12 = vadd.f32 %v3372_v7, %v31_v8  ;;  %v41_v13 = vadd.f32 %v3372_v7, %v32_v9  ;;  %v62_v7 = vld [vmem:[#allocation2 + $0x8] sm:$0x1]  ;;  %v93_v8 = vsel %vm3844_vm2, 0, %v92_v6  ;;  %49 = vst.msk [vmem:[#allocation2 + $0x50] sm:$0xf] %vm45_vm3, %v3668_v10  ;;  %vm1434_vm9 = vcmask 1046532  }
   0x7   :  { %v63_v9 = vsel %vm3844_vm2, 0, %v62_v7  ;;  %50 = vst.msk [vmem:[#allocation2 + $0x54] sm:$0x1] %vm47_vm0, %v3668_v10  ;;  %94 = vst [vmem:[#allocation2 + $0x58] sm:$0x1] %v93_v8  ;;  %s3674_s30 = smov 24  }
   0x8   :  { %v42_v16 = vmax.f32 %v40_v12, 0.0  ;;  %v43_v17 = vmax.f32 %v41_v13, 0.0  ;;  %46 = vst.msk [vmem:[#allocation2] sm:$0xf] %vm45_vm3, %v3668_v10  ;;  %52 = vst.msk [vmem:[#allocation2 + $0x48] sm:$0xf] %vm45_vm3, %v3668_v10 }
   0x9   :  { %48 = vst.msk [vmem:[#allocation2 + $0x4] sm:$0x1] %vm47_vm0, %v3668_v10  ;;  %53 = vst.msk [vmem:[#allocation2 + $0x4c] sm:$0x1] %vm47_vm0, %v3668_v10  ;;  %v6006_v13 = vmov 0  ;;  %s3675_s6 = smov 32  }
   0xa   :  { %v44_v19 = vpack.c.bf16 %v43_v17, %v42_v16  ;;  %v3373_v21 = vpack.c.bf16 %v43_v17, %v43_v17  ;;  %54 = vst.msk [vmem:[#allocation2 + $0x98] sm:$0xf] %vm45_vm3, %v3668_v10  ;;  %64 = vst [vmem:[#allocation2 + $0x8] sm:$0x1] %v63_v9  ;;  %v6007_v13 = vsel %vm3865_vm5, 4294967295, %v6006_v13  ;;  %s3676_s7 = smov 40  }
   0xb   :  { %55 = vst.msk [vmem:[#allocation2 + $0x9c] sm:$0x1] %vm47_vm0, %v3668_v10  ;;  %6008 = vst [vmem:[#allocation3_spill] sm:$0xff] %v6007_v13  ;;  %vm883_vm13 = vsmask.f32 3328  ;;  %s3677_s8 = smov 48  }
   0xc   :  { %v189_v22 = vrot.slane %v44_v19, %v188_v18  ;;  %v196_v23 = vrot.slane %v3373_v21, %v188_v18  ;;  %v68_v21 = vld [vmem:[#allocation2 + $0x18] sm:$0x1]  ;;  %vm3971_vm14 = vmand %vm882_vm12, %vm883_vm13  ;;  %v909_v8 = vld [vmem:[#allocation2 + $0x58] sm:$0x8]  ;;  %vm587_vm15 = vsmask.f32 7942 }
   0xd   :  { %v89_v11 = vld [vmem:[#allocation2 + $0x50] sm:$0x1]  ;;  %v885_v9 = vld [vmem:[#allocation2 + $0x8] sm:$0x8]  ;;  %v154_v10 = vld [vmem:[#allocation2 + $0x5c] sm:$0x1] }
   0xe   :  { %v205_v24 = vrot.slane %v189_v22, %v188_v18  ;;  %v212_v26 = vrot.slane %v196_v23, %v188_v18  ;;  %v197_v29 = vcombine.high %v189_v22, %v189_v22  ;;  %v198_v34 = vcombine.high %v196_v23, %v196_v23  ;;  %v416_v12 = vld [vmem:[#allocation2 + $0x58] sm:$0x1]  ;;  %vm4136_vm0 = vmand %vm488_vm8, %vm587_vm15  ;;  %s3678_s9 = smov 56   ;;  %s3679_s10 = smov 64  }
   0xf   :  { %v90_v14 = vsel %vm3844_vm2, 0, %v89_v11  ;;  %v59_v15 = vld [vmem:[#allocation2] sm:$0x1]  ;;  %v66_v22 = vsel %vm3844_vm2, 0, %v65_v20  ;;  %v69_v23 = vsel %vm3844_vm2, 0, %v68_v21  ;;  %vm1433_vm8 = vcmask 1042432  }
  0x10   :  { %v3374_v27 = vpack.i.b16 %v205_v24, %v205_v24  ;;  %v3378_v28 = vpack.i.b16 %v212_v26, %v212_v26  ;;  %v232_v32 = vunpack.i.h.s16 %v205_v24  ;;  %v219_v33 = vrot.slane %v197_v29, %v188_v18  ;;  %91 = vst [vmem:[#allocation2 + $0x50] sm:$0x1] %v90_v14  ;;  %67 = vst [vmem:[#allocation2 + $0x10] sm:$0x1] %v66_v22  ;;  %v124_v11 = vld [vmem:[#allocation2 + $0xc] sm:$0x1] }
  0x11   :  { %v240_v35 = vunpack.i.h.s16 %v212_v26  ;;  %v226_v38 = vrot.slane %v198_v34, %v188_v18  ;;  %v228_v51 = vcombine.high %v212_v26, %v212_v26  ;;  %v227_v52 = vcombine.high %v205_v24, %v205_v24  ;;  %v392_v16 = vld [vmem:[#allocation2 + $0x8] sm:$0x1]  ;;  %70 = vst [vmem:[#allocation2 + $0x18] sm:$0x1] %v69_v23  ;;  %v95_v24 = vld [vmem:[#allocation2 + $0x60] sm:$0x1]  ;;  %vm4304_vm15 = vmor %vm1433_vm8, %vm1434_vm9 }
  0x12   :  { %v3722_v30 = vrot.slane %v3374_v27, %v3719_v25  ;;  %v3729_v31 = vrot.slane %v3378_v28, %v3719_v25  ;;  %v248_v36 = vpack.i.b16 %v232_v32, %v232_v32  ;;  %v3375_v37 = vpack.i.b16 %v219_v33, %v219_v33  ;;  %v98_v26 = vld [vmem:[#allocation2 + $0x68] sm:$0x1]  ;;  %v497_v20 = vld [vmem:[#allocation2 + $0x18] sm:$0x2]  ;;  %v130_v21 = vld [vmem:[#allocation2 + $0x1c] sm:$0x1] }
  0x13   :  { %v256_v39 = vpack.i.b16 %v240_v35, %v240_v35  ;;  %v3379_v42 = vpack.i.b16 %v226_v38, %v226_v38  ;;  %v242_v45 = vunpack.i.h.s16 %v226_v38  ;;  %v234_v46 = vunpack.i.h.s16 %v219_v33  ;;  %v127_v22 = vld [vmem:[#allocation2 + $0x14] sm:$0x1]  ;;  %v71_v23 = vld [vmem:[#allocation2 + $0x20] sm:$0x1] }
  0x14   :  { %637 = vrot.lane.b32.xlu1 %v3722_v30, %s3664_s0  ;;  %440 = vrot.lane.b32.xlu0 %v3722_v30, %s3665_s1  ;;  %v3740_v40 = vrot.slane %v248_v36, %v3719_v25  ;;  %v3743_v41 = vrot.slane %v3375_v37, %v3719_v25  ;;  %v3380_v53 = vpack.i.b16 %v228_v51, %v228_v51  ;;  %v236_v57 = vunpack.i.h.s16 %v227_v52 }
  0x15   :  { %v3750_v43 = vrot.slane %v256_v39, %v3719_v25  ;;  %v3753_v44 = vrot.slane %v3379_v42, %v3719_v25  ;;  %v258_v47 = vpack.i.b16 %v242_v45, %v242_v45  ;;  %v250_v48 = vpack.i.b16 %v234_v46, %v234_v46  ;;  %v688_v46 = vld [vmem:[#allocation2 + $0x8] sm:$0x4] }
  0x16   :  { %v3376_v54 = vpack.i.b16 %v227_v52, %v227_v52  ;;  %v3794_v55 = vrot.slane %v3380_v53, %v3719_v25  ;;  %v3803_v58 = vcombine.high %v219_v33, %v219_v33  ;;  %v252_v59 = vpack.i.b16 %v236_v57, %v236_v57 }
  0x17   :  { %v3776_v49 = vrot.slane %v258_v47, %v3719_v25  ;;  %v3779_v50 = vrot.slane %v250_v48, %v3719_v25  ;;  %v244_v61 = vunpack.i.h.s16 %v228_v51  ;;  %v3811_v62 = vcombine.high %v226_v38, %v226_v38  ;;  %v395_v29 = vld [vmem:[#allocation2 + $0x10] sm:$0x1]  ;;  %v491_v48 = vld [vmem:[#allocation2 + $0x8] sm:$0x2] }
  0x18   :  { %653 = vrot.lane.b32.xlu1 %v3729_v31, %s3664_s0  ;;  %456 = vrot.lane.b32.xlu0 %v3729_v31, %s3665_s1  ;;  %v3797_v56 = vrot.slane %v3376_v54, %v3719_v25  ;;  %v3377_v60 = vpack.i.b16 %v3803_v58, %v3803_v58  ;;  %v3814_v63 = vrot.slane %v252_v59, %v3719_v25  ;;  %v60_v18 = vsel %vm3844_vm2, 0, %v59_v15  ;;  %v398_v32 = vld [vmem:[#allocation2 + $0x18] sm:$0x1]  ;;  %v712_v59 = vld [vmem:[#allocation2 + $0x58] sm:$0x4] }
  0x19   :  { %v260_v1 = vpack.i.b16 %v244_v61, %v244_v61  ;;  %v3381_v2 = vpack.i.b16 %v3811_v62, %v3811_v62  ;;  %v417_v17 = vsel %vm3865_vm5, %v3729_v31, %v416_v12  ;;  %v393_v19 = vsel %vm3865_vm5, %v3722_v30, %v392_v16  ;;  %61 = vst [vmem:[#allocation2] sm:$0x1] %v60_v18 }
  0x1a   :  { %v3821_v0 = vrot.slane %v3377_v60, %v3719_v25  ;;  %418 = vst [vmem:[#allocation2 + $0x58] sm:$0x1] %v417_v17  ;;  %394 = vst [vmem:[#allocation2 + $0x8] sm:$0x1] %v393_v19  ;;  %v96_v27 = vsel %vm3844_vm2, 0, %v95_v24  ;;  %v99_v28 = vsel %vm3844_vm2, 0, %v98_v26  ;;  %v396_v33 = vsel %vm3865_vm5, %v3740_v40, %v395_v29 }
  0x1b   :  { %v3830_v3 = vrot.slane %v260_v1, %v3719_v25  ;;  %v3833_v4 = vrot.slane %v3381_v2, %v3719_v25  ;;  %97 = vst [vmem:[#allocation2 + $0x60] sm:$0x1] %v96_v27  ;;  %100 = vst [vmem:[#allocation2 + $0x68] sm:$0x1] %v99_v28  ;;  %v399_v34 = vsel %vm3865_vm5, %v3743_v41, %v398_v32  ;;  %v246_v39 = vunpack.i.h.s16 %v3811_v62  ;;  %v515_v60 = vld [vmem:[#allocation2 + $0x58] sm:$0x2] }
  0x1c   :  { %850 = vrot.lane.b32.xlu1 %v3729_v31, %s3666_s2  ;;  %834 = vrot.lane.b32.xlu0 %v3722_v30, %s3666_s2  ;;  %397 = vst [vmem:[#allocation2 + $0x10] sm:$0x1] %v396_v33  ;;  %400 = vst [vmem:[#allocation2 + $0x18] sm:$0x1] %v399_v34  ;;  %v238_v42 = vunpack.i.h.s16 %v3803_v58  ;;  %v155_v15 = vsel %vm3865_vm5, 0, %v154_v10  ;;  %v125_v16 = vsel %vm3865_vm5, 0, %v124_v11 }
  0x1d   :  { %v262_v51 = vpack.i.b16 %v246_v39, %v246_v39  ;;  %156 = vst [vmem:[#allocation2 + $0x5c] sm:$0x1] %v155_v15  ;;  %126 = vst [vmem:[#allocation2 + $0xc] sm:$0x1] %v125_v16  ;;  %v494_v19 = vld [vmem:[#allocation2 + $0x10] sm:$0x2] }
  0x1e   :  { %v254_v52 = vpack.i.b16 %v238_v42, %v238_v42  ;;  %v131_v27 = vsel %vm3865_vm5, 0, %v130_v21  ;;  %v128_v28 = vsel %vm3865_vm5, 0, %v127_v22  ;;  %v72_v29 = vsel %vm3844_vm2, 0, %v71_v23  ;;  %v101_v34 = vld [vmem:[#allocation2 + $0x70] sm:$0x1] }
  0x1f   :  { %v3956_v61 = vrot.slane %v262_v51, %v3719_v25  ;;  %132 = vst [vmem:[#allocation2 + $0x1c] sm:$0x1] %v131_v27  ;;  %129 = vst [vmem:[#allocation2 + $0x14] sm:$0x1] %v128_v28  ;;  %v157_v39 = vld [vmem:[#allocation2 + $0x64] sm:$0x1] }
  0x20   :  { %442 = vrot.lane.b32.xlu0 %v3740_v40, %s3665_s1  ;;  %444 = vrot.lane.b32.xlu1 %v3743_v41, %s3665_s1  ;;  %v3959_v62 = vrot.slane %v254_v52, %v3719_v25  ;;  %73 = vst [vmem:[#allocation2 + $0x20] sm:$0x1] %v72_v29  ;;  %v158_v51 = vsel %vm3865_vm5, 0, %v157_v39  ;;  %v715_v11 = vld [vmem:[#allocation2 + $0x60] sm:$0x4]  ;;  %vm3092_vm8 = vcmask 1043459  }
  0x21   :  { %159 = vst [vmem:[#allocation2 + $0x64] sm:$0x1] %v158_v51  ;;  %v891_v21 = vld [vmem:[#allocation2 + $0x18] sm:$0x8]  ;;  %v912_v27 = vld [vmem:[#allocation2 + $0x60] sm:$0x8] }
  0x22   :  { %v419_v35 = vld [vmem:[#allocation2 + $0x60] sm:$0x1]  ;;  %v422_v36 = vld [vmem:[#allocation2 + $0x68] sm:$0x1]  ;;  %v915_v28 = vld [vmem:[#allocation2 + $0x68] sm:$0x8] }
  0x23   :  { %v420_v37 = vsel %vm3865_vm5, %v3750_v43, %v419_v35  ;;  %v423_v38 = vsel %vm3865_vm5, %v3753_v44, %v422_v36  ;;  %v518_v35 = vld [vmem:[#allocation2 + $0x60] sm:$0x2]  ;;  %v521_v36 = vld [vmem:[#allocation2 + $0x68] sm:$0x2]  ;;  %v163_v29 = vld [vmem:[#allocation2 + $0x74] sm:$0x1] }
  0x24   :  { %458 = vrot.lane.b32.xlu0 %v3750_v43, %s3665_s1  ;;  %460 = vrot.lane.b32.xlu1 %v3753_v44, %s3665_s1  ;;  %421 = vst [vmem:[#allocation2 + $0x60] sm:$0x1] %v420_v37  ;;  %424 = vst [vmem:[#allocation2 + $0x68] sm:$0x1] %v423_v38  ;;  %v102_v37 = vsel %vm3844_vm2, 0, %v101_v34  ;;  %vm3098_vm9 = vcmask 1045509  }
  0x25   :  { %v160_v38 = vld [vmem:[#allocation2 + $0x6c] sm:$0x1]  ;;  %103 = vst [vmem:[#allocation2 + $0x70] sm:$0x1] %v102_v37  ;;  %vm784_vm1 = vsmask.f32 7946 }
  0x26   :  { %vm4169_vm3 = vmand %vm685_vm6, %vm784_vm1  ;;  %vm981_vm4 = vsmask.f32 7950  ;;  %vm1159_vm7 = vsmask.f32 7440  ;;  %vm2739_vm1 = vcmask 457728  }
  0x27   :  { %vm4204_vm6 = vmand %vm882_vm12, %vm981_vm4  ;;  %vm2809_vm4 = vcmask 588800  }
  0x28   :  { %639 = vrot.lane.b32.xlu0 %v3740_v40, %s3664_s0  ;;  %641 = vrot.lane.b32.xlu1 %v3743_v41, %s3664_s0  ;;  %vm4288_vm12 = vmor %vm883_vm13, %vm1159_vm7  ;;  %vm2688_vm13 = vcmask 261120   ;;  %vm3089_vm7 = vcmask 1042434  }
  0x2c   :  { %655 = vrot.lane.b32.xlu0 %v3750_v43, %s3664_s0  ;;  %657 = vrot.lane.b32.xlu1 %v3753_v44, %s3664_s0 }
  0x30   :  { %836 = vrot.lane.b32.xlu0 %v3740_v40, %s3666_s2  ;;  %838 = vrot.lane.b32.xlu1 %v3743_v41, %s3666_s2 }
  0x34   :  { %852 = vrot.lane.b32.xlu0 %v3750_v43, %s3666_s2  ;;  %854 = vrot.lane.b32.xlu1 %v3753_v44, %s3666_s2 }
  0x38   :  { %462 = vrot.lane.b32.xlu1 %v3776_v49, %s3665_s1  ;;  %446 = vrot.lane.b32.xlu0 %v3779_v50, %s3665_s1 }
  0x3c   :  { %659 = vrot.lane.b32.xlu1 %v3776_v49, %s3664_s0  ;;  %643 = vrot.lane.b32.xlu0 %v3779_v50, %s3664_s0 }
  0x40   :  { %856 = vrot.lane.b32.xlu1 %v3776_v49, %s3666_s2  ;;  %840 = vrot.lane.b32.xlu0 %v3779_v50, %s3666_s2 }
  0x44   :  { %464 = vrot.lane.b32.xlu1 %v3794_v55, %s3665_s1  ;;  %448 = vrot.lane.b32.xlu0 %v3797_v56, %s3665_s1 }
  0x48   :  { %661 = vrot.lane.b32.xlu1 %v3794_v55, %s3664_s0  ;;  %645 = vrot.lane.b32.xlu0 %v3797_v56, %s3664_s0 }
  0x4c   :  { %858 = vrot.lane.b32.xlu1 %v3794_v55, %s3666_s2  ;;  %842 = vrot.lane.b32.xlu0 %v3797_v56, %s3666_s2 }
  0x50   :  { %450 = vrot.lane.b32.xlu0 %v3814_v63, %s3665_s1  ;;  %452 = vrot.lane.b32.xlu1 %v3821_v0, %s3665_s1 }
  0x54   :  { %466 = vrot.lane.b32.xlu0 %v3830_v3, %s3665_s1  ;;  %468 = vrot.lane.b32.xlu1 %v3833_v4, %s3665_s1 }
  0x58   :  { %539 = vrot.lane.b32.xlu0 %v3722_v30, %s3667_s24  ;;  %555 = vrot.lane.b32.xlu1 %v3729_v31, %s3667_s24 }
  0x5c   :  { %647 = vrot.lane.b32.xlu0 %v3814_v63, %s3664_s0  ;;  %649 = vrot.lane.b32.xlu1 %v3821_v0, %s3664_s0 }
  0x60   :  { %663 = vrot.lane.b32.xlu0 %v3830_v3, %s3664_s0  ;;  %665 = vrot.lane.b32.xlu1 %v3833_v4, %s3664_s0 }
  0x64   :  { %736 = vrot.lane.b32.xlu0 %v3722_v30, %s3669_s25  ;;  %752 = vrot.lane.b32.xlu1 %v3729_v31, %s3669_s25 }
  0x68   :  { %844 = vrot.lane.b32.xlu0 %v3814_v63, %s3666_s2  ;;  %846 = vrot.lane.b32.xlu1 %v3821_v0, %s3666_s2 }
  0x6c   :  { %860 = vrot.lane.b32.xlu0 %v3830_v3, %s3666_s2  ;;  %862 = vrot.lane.b32.xlu1 %v3833_v4, %s3666_s2 }
  0x70   :  { %933 = vrot.lane.b32.xlu0 %v3722_v30, %s3670_s26  ;;  %949 = vrot.lane.b32.xlu1 %v3729_v31, %s3670_s26 }
  0x74   :  { %541 = vrot.lane.b32.xlu0 %v3740_v40, %s3667_s24  ;;  %543 = vrot.lane.b32.xlu1 %v3743_v41, %s3667_s24 }
  0x78   :  { %557 = vrot.lane.b32.xlu0 %v3750_v43, %s3667_s24  ;;  %559 = vrot.lane.b32.xlu1 %v3753_v44, %s3667_s24 }
  0x7c   :  { %738 = vrot.lane.b32.xlu0 %v3740_v40, %s3669_s25  ;;  %740 = vrot.lane.b32.xlu1 %v3743_v41, %s3669_s25 }
  0x80   :  { %754 = vrot.lane.b32.xlu0 %v3750_v43, %s3669_s25  ;;  %756 = vrot.lane.b32.xlu1 %v3753_v44, %s3669_s25 }
  0x84   :  { %935 = vrot.lane.b32.xlu0 %v3740_v40, %s3670_s26  ;;  %937 = vrot.lane.b32.xlu1 %v3743_v41, %s3670_s26 }
  0x86   :  { %v638_v53 = vpop.permute.xlu1 %637  ;;  %v441_v54 = vpop.permute.xlu0 %440 }
  0x87   :  { %v689_v57 = vsel %vm3934_vm10, %v638_v53, %v688_v46  ;;  %v492_v58 = vsel %vm3943_vm11, %v441_v54, %v491_v48  ;;  %v161_v48 = vsel %vm3865_vm5, 0, %v160_v38  ;;  %v691_v54 = vld [vmem:[#allocation2 + $0x10] sm:$0x4]  ;;  %v500_v38 = vld [vmem:[#allocation2 + $0x20] sm:$0x2] }
  0x88   :  { %690 = vst [vmem:[#allocation2 + $0x8] sm:$0x4] %v689_v57  ;;  %493 = vst [vmem:[#allocation2 + $0x8] sm:$0x2] %v492_v58  ;;  %951 = vrot.lane.b32.xlu0 %v3750_v43, %s3670_s26  ;;  %953 = vrot.lane.b32.xlu1 %v3753_v44, %s3670_s26  ;;  %v151_v57 = vld [vmem:[#allocation2 + $0x54] sm:$0x1] }
  0x89   :  { %162 = vst [vmem:[#allocation2 + $0x6c] sm:$0x1] %v161_v48  ;;  %v694_v58 = vld [vmem:[#allocation2 + $0x18] sm:$0x4] }
  0x8a   :  { %v654_v1 = vpop.permute.xlu1 %653  ;;  %v457_v2 = vpop.permute.xlu0 %456 }
  0x8b   :  { %v713_v6 = vsel %vm3934_vm10, %v654_v1, %v712_v59  ;;  %v516_v7 = vsel %vm3943_vm11, %v457_v2, %v515_v60  ;;  %v152_v59 = vsel %vm3865_vm5, 0, %v151_v57  ;;  %v121_v60 = vld [vmem:[#allocation2 + $0x4] sm:$0x1] }
  0x8c   :  { %714 = vst [vmem:[#allocation2 + $0x58] sm:$0x4] %v713_v6  ;;  %517 = vst [vmem:[#allocation2 + $0x58] sm:$0x2] %v516_v7  ;;  %470 = vrot.lane.b32.xlu1 %v3956_v61, %s3665_s1  ;;  %454 = vrot.lane.b32.xlu0 %v3959_v62, %s3665_s1  ;;  %v122_v1 = vsel %vm3865_vm5, 0, %v121_v60 }
  0x8d   :  { %153 = vst [vmem:[#allocation2 + $0x54] sm:$0x1] %v152_v59  ;;  %123 = vst [vmem:[#allocation2 + $0x4] sm:$0x1] %v122_v1  ;;  %v401_v7 = vld [vmem:[#allocation2 + $0x20] sm:$0x1] }
  0x8e   :  { %v851_v12 = vpop.permute.xlu1 %850  ;;  %v835_v14 = vpop.permute.xlu0 %834  ;;  %v402_v10 = vsel %vm3865_vm5, %v3779_v50, %v401_v7  ;;  %v74_v1 = vld [vmem:[#allocation2 + $0x28] sm:$0x1] }
  0x8f   :  { %v910_v17 = vsel %vm3971_vm14, %v851_v12, %v909_v8  ;;  %v886_v18 = vsel %vm3971_vm14, %v835_v14, %v885_v9  ;;  %v718_v12 = vld [vmem:[#allocation2 + $0x68] sm:$0x4]  ;;  %403 = vst [vmem:[#allocation2 + $0x20] sm:$0x1] %v402_v10  ;;  %v425_v14 = vld [vmem:[#allocation2 + $0x70] sm:$0x1] }
  0x90   :  { %911 = vst [vmem:[#allocation2 + $0x58] sm:$0x8] %v910_v17  ;;  %887 = vst [vmem:[#allocation2 + $0x8] sm:$0x8] %v886_v18  ;;  %667 = vrot.lane.b32.xlu1 %v3956_v61, %s3664_s0  ;;  %651 = vrot.lane.b32.xlu0 %v3959_v62, %s3664_s0  ;;  %v426_v15 = vsel %vm3865_vm5, %v3776_v49, %v425_v14  ;;  %v75_v7 = vsel %vm3844_vm2, 0, %v74_v1 }
  0x91   :  { %427 = vst [vmem:[#allocation2 + $0x70] sm:$0x1] %v426_v15  ;;  %76 = vst [vmem:[#allocation2 + $0x28] sm:$0x1] %v75_v7  ;;  %v700_v14 = vld [vmem:[#allocation2 + $0x28] sm:$0x4] }
  0x92   :  { %v443_v24 = vpop.permute.xlu0 %442  ;;  %v445_v26 = vpop.permute.xlu1 %444 }
  0x93   :  { %v495_v32 = vsel %vm3943_vm11, %v443_v24, %v494_v19  ;;  %v498_v33 = vsel %vm3943_vm11, %v445_v26, %v497_v20  ;;  %v888_v20 = vld [vmem:[#allocation2 + $0x10] sm:$0x8] }
  0x94   :  { %496 = vst [vmem:[#allocation2 + $0x10] sm:$0x2] %v495_v32  ;;  %499 = vst [vmem:[#allocation2 + $0x18] sm:$0x2] %v498_v33  ;;  %864 = vrot.lane.b32.xlu1 %v3956_v61, %s3666_s2  ;;  %848 = vrot.lane.b32.xlu0 %v3959_v62, %s3666_s2  ;;  %v133_v32 = vld [vmem:[#allocation2 + $0x24] sm:$0x1] }
  0x96   :  { %v459_v42 = vpop.permute.xlu0 %458  ;;  %v461_v46 = vpop.permute.xlu1 %460 }
  0x97   :  { %v519_v52 = vsel %vm3943_vm11, %v459_v42, %v518_v35  ;;  %v522_v53 = vsel %vm3943_vm11, %v461_v46, %v521_v36  ;;  %v164_v35 = vsel %vm3865_vm5, 0, %v163_v29  ;;  %v134_v36 = vsel %vm3865_vm5, 0, %v133_v32  ;;  %v509_v29 = vld [vmem:[#allocation2 + $0x38] sm:$0x2] }
  0x98   :  { %520 = vst [vmem:[#allocation2 + $0x60] sm:$0x2] %v519_v52  ;;  %523 = vst [vmem:[#allocation2 + $0x68] sm:$0x2] %v522_v53  ;;  %561 = vrot.lane.b32.xlu1 %v3776_v49, %s3667_s24  ;;  %545 = vrot.lane.b32.xlu0 %v3779_v50, %s3667_s24 }
  0x99   :  { %165 = vst [vmem:[#allocation2 + $0x74] sm:$0x1] %v164_v35  ;;  %135 = vst [vmem:[#allocation2 + $0x24] sm:$0x1] %v134_v36  ;;  %v530_v36 = vld [vmem:[#allocation2 + $0x80] sm:$0x2] }
  0x9a   :  { %v640_v2 = vpop.permute.xlu0 %639  ;;  %v642_v6 = vpop.permute.xlu1 %641 }
  0x9b   :  { %v692_v8 = vsel %vm3934_vm10, %v640_v2, %v691_v54  ;;  %v695_v9 = vsel %vm3934_vm10, %v642_v6, %v694_v58  ;;  %v527_v2 = vld [vmem:[#allocation2 + $0x78] sm:$0x2]  ;;  %v503_v6 = vld [vmem:[#allocation2 + $0x28] sm:$0x2] }
  0x9c   :  { %693 = vst [vmem:[#allocation2 + $0x10] sm:$0x4] %v692_v8  ;;  %696 = vst [vmem:[#allocation2 + $0x18] sm:$0x4] %v695_v9  ;;  %758 = vrot.lane.b32.xlu1 %v3776_v49, %s3669_s25  ;;  %742 = vrot.lane.b32.xlu0 %v3779_v50, %s3669_s25 }
  0x9e   :  { %v656_v16 = vpop.permute.xlu0 %655  ;;  %v658_v17 = vpop.permute.xlu1 %657 }
  0x9f   :  { %v716_v18 = vsel %vm3934_vm10, %v656_v16, %v715_v11  ;;  %v719_v19 = vsel %vm3934_vm10, %v658_v17, %v718_v12  ;;  %v724_v12 = vld [vmem:[#allocation2 + $0x78] sm:$0x4] }
  0xa0   :  { %717 = vst [vmem:[#allocation2 + $0x60] sm:$0x4] %v716_v18  ;;  %720 = vst [vmem:[#allocation2 + $0x68] sm:$0x4] %v719_v19  ;;  %955 = vrot.lane.b32.xlu1 %v3776_v49, %s3670_s26  ;;  %939 = vrot.lane.b32.xlu0 %v3779_v50, %s3670_s26  ;;  %v921_v19 = vld [vmem:[#allocation2 + $0x78] sm:$0x8] }
  0xa2   :  { %v837_v22 = vpop.permute.xlu0 %836  ;;  %v839_v23 = vpop.permute.xlu1 %838 }
  0xa3   :  { %v889_v24 = vsel %vm3971_vm14, %v837_v22, %v888_v20  ;;  %v892_v26 = vsel %vm3971_vm14, %v839_v23, %v891_v21  ;;  %v897_v20 = vld [vmem:[#allocation2 + $0x28] sm:$0x8]  ;;  %v404_v21 = vld [vmem:[#allocation2 + $0x28] sm:$0x1]  ;;  %v104_v22 = vld [vmem:[#allocation2 + $0x78] sm:$0x1] }
  0xa4   :  { %890 = vst [vmem:[#allocation2 + $0x10] sm:$0x8] %v889_v24  ;;  %893 = vst [vmem:[#allocation2 + $0x18] sm:$0x8] %v892_v26  ;;  %1047 = vrot.lane.b32.xlu1 %v3729_v31, %s3671_s27  ;;  %1031 = vrot.lane.b32.xlu0 %v3722_v30, %s3671_s27  ;;  %v524_v30 = vld [vmem:[#allocation2 + $0x70] sm:$0x2]  ;;  %v405_v23 = vsel %vm3865_vm5, %v3797_v56, %v404_v21 }
  0xa5   :  { %v105_v24 = vsel %vm3844_vm2, 0, %v104_v22  ;;  %406 = vst [vmem:[#allocation2 + $0x28] sm:$0x1] %v405_v23  ;;  %v900_v22 = vld [vmem:[#allocation2 + $0x30] sm:$0x8] }
  0xa6   :  { %v853_v33 = vpop.permute.xlu0 %852  ;;  %v855_v34 = vpop.permute.xlu1 %854  ;;  %106 = vst [vmem:[#allocation2 + $0x78] sm:$0x1] %v105_v24  ;;  %v903_v23 = vld [vmem:[#allocation2 + $0x38] sm:$0x8]  ;;  %v142_v24 = vld [vmem:[#allocation2 + $0x3c] sm:$0x1] }
  0xa7   :  { %v913_v37 = vsel %vm3971_vm14, %v853_v33, %v912_v27  ;;  %v916_v31 = vsel %vm3971_vm14, %v855_v34, %v915_v28  ;;  %v506_v28 = vld [vmem:[#allocation2 + $0x30] sm:$0x2] }
  0xa8   :  { %914 = vst [vmem:[#allocation2 + $0x60] sm:$0x8] %v913_v37  ;;  %917 = vst [vmem:[#allocation2 + $0x68] sm:$0x8] %v916_v31  ;;  %1035 = vrot.lane.b32.xlu1 %v3743_v41, %s3671_s27  ;;  %1033 = vrot.lane.b32.xlu0 %v3740_v40, %s3671_s27  ;;  %v721_v41 = vld [vmem:[#allocation2 + $0x70] sm:$0x4] }
  0xa9   :  { %v697_v40 = vld [vmem:[#allocation2 + $0x20] sm:$0x4]  ;;  %v533_v37 = vld [vmem:[#allocation2 + $0x88] sm:$0x2] }
  0xaa   :  { %v463_v39 = vpop.permute.xlu1 %462  ;;  %v447_v42 = vpop.permute.xlu0 %446 }
  0xab   :  { %v525_v46 = vsel %vm3943_vm11, %v463_v39, %v524_v30  ;;  %v501_v48 = vsel %vm3943_vm11, %v447_v42, %v500_v38 }
  0xac   :  { %526 = vst [vmem:[#allocation2 + $0x70] sm:$0x2] %v525_v46  ;;  %502 = vst [vmem:[#allocation2 + $0x20] sm:$0x2] %v501_v48  ;;  %1051 = vrot.lane.b32.xlu1 %v3753_v44, %s3671_s27  ;;  %1049 = vrot.lane.b32.xlu0 %v3750_v43, %s3671_s27  ;;  %v918_v44 = vld [vmem:[#allocation2 + $0x70] sm:$0x8] }
  0xad   :  { %v894_v43 = vld [vmem:[#allocation2 + $0x20] sm:$0x8]  ;;  %v428_v31 = vld [vmem:[#allocation2 + $0x78] sm:$0x1] }
  0xae   :  { %v660_v51 = vpop.permute.xlu1 %659  ;;  %v644_v52 = vpop.permute.xlu0 %643  ;;  %v429_v39 = vsel %vm3865_vm5, %v3794_v55, %v428_v31 }
  0xaf   :  { %v722_v53 = vsel %vm3934_vm10, %v660_v51, %v721_v41  ;;  %v698_v54 = vsel %vm3934_vm10, %v644_v52, %v697_v40  ;;  %430 = vst [vmem:[#allocation2 + $0x78] sm:$0x1] %v429_v39  ;;  %v166_v41 = vld [vmem:[#allocation2 + $0x7c] sm:$0x1]  ;;  %v589_v51 = vld [vmem:[#allocation2 + $0x8] sm:$0x2] }
  0xb0   :  { %723 = vst [vmem:[#allocation2 + $0x70] sm:$0x4] %v722_v53  ;;  %699 = vst [vmem:[#allocation2 + $0x20] sm:$0x4] %v698_v54  ;;  %563 = vrot.lane.b32.xlu1 %v3794_v55, %s3667_s24  ;;  %547 = vrot.lane.b32.xlu0 %v3797_v56, %s3667_s24  ;;  %v167_v40 = vsel %vm3865_vm5, 0, %v166_v41 }
  0xb1   :  { %v613_v53 = vld [vmem:[#allocation2 + $0x58] sm:$0x2]  ;;  %168 = vst [vmem:[#allocation2 + $0x7c] sm:$0x1] %v167_v40  ;;  %v175_v39 = vld [vmem:[#allocation2 + $0x94] sm:$0x1] }
  0xb2   :  { %v857_v57 = vpop.permute.xlu1 %856  ;;  %v841_v58 = vpop.permute.xlu0 %840  ;;  %v983_v41 = vld [vmem:[#allocation2 + $0x8] sm:$0x8] }
  0xb3   :  { %v919_v59 = vsel %vm3971_vm14, %v857_v57, %v918_v44  ;;  %v895_v60 = vsel %vm3971_vm14, %v841_v58, %v894_v43  ;;  %v703_v57 = vld [vmem:[#allocation2 + $0x30] sm:$0x4]  ;;  %v706_v58 = vld [vmem:[#allocation2 + $0x38] sm:$0x4] }
  0xb4   :  { %920 = vst [vmem:[#allocation2 + $0x70] sm:$0x8] %v919_v59  ;;  %896 = vst [vmem:[#allocation2 + $0x20] sm:$0x8] %v895_v60  ;;  %760 = vrot.lane.b32.xlu1 %v3794_v55, %s3669_s25  ;;  %744 = vrot.lane.b32.xlu0 %v3797_v56, %s3669_s25  ;;  %v136_v59 = vld [vmem:[#allocation2 + $0x2c] sm:$0x1] }
  0xb5   :  { %v137_v60 = vsel %vm3865_vm5, 0, %v136_v59  ;;  %v595_v59 = vld [vmem:[#allocation2 + $0x18] sm:$0x2] }
  0xb6   :  { %v465_v8 = vpop.permute.xlu1 %464  ;;  %v449_v9 = vpop.permute.xlu0 %448  ;;  %138 = vst [vmem:[#allocation2 + $0x2c] sm:$0x1] %v137_v60 }
  0xb7   :  { %v528_v10 = vsel %vm3943_vm11, %v465_v8, %v527_v2  ;;  %v504_v11 = vsel %vm3943_vm11, %v449_v9, %v503_v6  ;;  %v727_v8 = vld [vmem:[#allocation2 + $0x80] sm:$0x4]  ;;  %v730_v9 = vld [vmem:[#allocation2 + $0x88] sm:$0x4] }
  0xb8   :  { %529 = vst [vmem:[#allocation2 + $0x78] sm:$0x2] %v528_v10  ;;  %505 = vst [vmem:[#allocation2 + $0x28] sm:$0x2] %v504_v11  ;;  %957 = vrot.lane.b32.xlu1 %v3794_v55, %s3670_s26  ;;  %941 = vrot.lane.b32.xlu0 %v3797_v56, %s3670_s26 }
  0xba   :  { %v662_v15 = vpop.permute.xlu1 %661  ;;  %v646_v16 = vpop.permute.xlu0 %645 }
  0xbb   :  { %v725_v17 = vsel %vm3934_vm10, %v662_v15, %v724_v12  ;;  %v701_v18 = vsel %vm3934_vm10, %v646_v16, %v700_v14  ;;  %v786_v16 = vld [vmem:[#allocation2 + $0x8] sm:$0x4] }
  0xbc   :  { %726 = vst [vmem:[#allocation2 + $0x78] sm:$0x4] %v725_v17  ;;  %702 = vst [vmem:[#allocation2 + $0x28] sm:$0x4] %v701_v18  ;;  %1053 = vrot.lane.b32.xlu1 %v3776_v49, %s3671_s27  ;;  %1037 = vrot.lane.b32.xlu0 %v3779_v50, %s3671_s27  ;;  %v810_v18 = vld [vmem:[#allocation2 + $0x58] sm:$0x4] }
  0xbe   :  { %v859_v26 = vpop.permute.xlu1 %858  ;;  %v843_v27 = vpop.permute.xlu0 %842 }
  0xbf   :  { %v922_v49 = vsel %vm3971_vm14, %v859_v26, %v921_v19  ;;  %v898_v50 = vsel %vm3971_vm14, %v843_v27, %v897_v20  ;;  %v143_v26 = vsel %vm3865_vm5, 0, %v142_v24 }
  0xc0   :  { %923 = vst [vmem:[#allocation2 + $0x78] sm:$0x8] %v922_v49  ;;  %899 = vst [vmem:[#allocation2 + $0x28] sm:$0x8] %v898_v50  ;;  %551 = vrot.lane.b32.xlu1 %v3821_v0, %s3667_s24  ;;  %549 = vrot.lane.b32.xlu0 %v3814_v63, %s3667_s24 }
  0xc1   :  { %144 = vst [vmem:[#allocation2 + $0x3c] sm:$0x1] %v143_v26  ;;  %v792_v26 = vld [vmem:[#allocation2 + $0x18] sm:$0x4] }
  0xc2   :  { %v451_v32 = vpop.permute.xlu0 %450  ;;  %v453_v33 = vpop.permute.xlu1 %452 }
  0xc3   :  { %v507_v34 = vsel %vm3943_vm11, %v451_v32, %v506_v28  ;;  %v510_v35 = vsel %vm3943_vm11, %v453_v33, %v509_v29  ;;  %v924_v29 = vld [vmem:[#allocation2 + $0x80] sm:$0x8]  ;;  %v172_v32 = vld [vmem:[#allocation2 + $0x8c] sm:$0x1] }
  0xc4   :  { %508 = vst [vmem:[#allocation2 + $0x30] sm:$0x2] %v507_v34  ;;  %511 = vst [vmem:[#allocation2 + $0x38] sm:$0x2] %v510_v35  ;;  %567 = vrot.lane.b32.xlu1 %v3833_v4, %s3667_s24  ;;  %565 = vrot.lane.b32.xlu0 %v3830_v3, %s3667_s24  ;;  %v173_v34 = vsel %vm3865_vm5, 0, %v172_v32 }
  0xc5   :  { %174 = vst [vmem:[#allocation2 + $0x8c] sm:$0x1] %v173_v34  ;;  %v4251_v32 = vld [vmem:[#allocation2] sm:$0xe] }
  0xc6   :  { %v467_v30 = vpop.permute.xlu0 %466  ;;  %v469_v38 = vpop.permute.xlu1 %468 }
  0xc7   :  { %v531_v42 = vsel %vm3943_vm11, %v467_v30, %v530_v36  ;;  %v534_v46 = vsel %vm3943_vm11, %v469_v38, %v533_v37  ;;  %v169_v38 = vld [vmem:[#allocation2 + $0x84] sm:$0x1] }
  0xc8   :  { %532 = vst [vmem:[#allocation2 + $0x80] sm:$0x2] %v531_v42  ;;  %535 = vst [vmem:[#allocation2 + $0x88] sm:$0x2] %v534_v46  ;;  %748 = vrot.lane.b32.xlu1 %v3821_v0, %s3669_s25  ;;  %746 = vrot.lane.b32.xlu0 %v3814_v63, %s3669_s25  ;;  %v170_v42 = vsel %vm3865_vm5, 0, %v169_v38  ;;  %v176_v46 = vsel %vm3865_vm5, 0, %v175_v39 }
  0xc9   :  { %171 = vst [vmem:[#allocation2 + $0x84] sm:$0x1] %v170_v42  ;;  %177 = vst [vmem:[#allocation2 + $0x94] sm:$0x1] %v176_v46  ;;  %v816_v39 = vld [vmem:[#allocation2 + $0x68] sm:$0x4] }
  0xca   :  { %v540_v52 = vpop.permute.xlu0 %539  ;;  %v556_v54 = vpop.permute.xlu1 %555  ;;  %v1097_v30 = vld [vmem:[#allocation2 + $0x3c] sm:$0x1] }
  0xcb   :  { %v590_v44 = vsel %vm4136_vm0, %v540_v52, %v589_v51  ;;  %v614_v43 = vsel %vm4136_vm0, %v556_v54, %v613_v53  ;;  %v1007_v51 = vld [vmem:[#allocation2 + $0x58] sm:$0x8] }
  0xcc   :  { %591 = vst [vmem:[#allocation2 + $0x8] sm:$0x2] %v590_v44  ;;  %615 = vst [vmem:[#allocation2 + $0x58] sm:$0x2] %v614_v43  ;;  %764 = vrot.lane.b32.xlu1 %v3833_v4, %s3669_s25  ;;  %762 = vrot.lane.b32.xlu0 %v3830_v3, %s3669_s25  ;;  %v145_v44 = vld [vmem:[#allocation2 + $0x44] sm:$0x1] }
  0xcd   :  { %v146_v43 = vsel %vm3865_vm5, 0, %v145_v44 }
  0xce   :  { %v648_v1 = vpop.permute.xlu0 %647  ;;  %v650_v2 = vpop.permute.xlu1 %649  ;;  %147 = vst [vmem:[#allocation2 + $0x44] sm:$0x1] %v146_v43 }
  0xcf   :  { %v704_v6 = vsel %vm3934_vm10, %v648_v1, %v703_v57  ;;  %v707_v7 = vsel %vm3934_vm10, %v650_v2, %v706_v58  ;;  %v592_v57 = vld [vmem:[#allocation2 + $0x10] sm:$0x2] }
  0xd0   :  { %705 = vst [vmem:[#allocation2 + $0x30] sm:$0x4] %v704_v6  ;;  %708 = vst [vmem:[#allocation2 + $0x38] sm:$0x4] %v707_v7  ;;  %945 = vrot.lane.b32.xlu1 %v3821_v0, %s3670_s26  ;;  %943 = vrot.lane.b32.xlu0 %v3814_v63, %s3670_s26  ;;  %v1135_v6 = vld [vmem:[#allocation2 + $0x50] sm:$0xf] }
  0xd1   :  { %v1274_v7 = vshrl.u32 %v1135_v6, 16 }
  0xd2   :  { %v664_v10 = vpop.permute.xlu0 %663  ;;  %v666_v11 = vpop.permute.xlu1 %665 }
  0xd3   :  { %v728_v12 = vsel %vm3934_vm10, %v664_v10, %v727_v8  ;;  %v731_v14 = vsel %vm3934_vm10, %v666_v11, %v730_v9  ;;  %v1277_v8 = vshll.u32 %v1135_v6, 16  ;;  %v1127_v9 = vld [vmem:[#allocation2] sm:$0xf]  ;;  %v4274_v6 = vld [vmem:[#allocation2 + $0x50] sm:$0xe] }
  0xd4   :  { %729 = vst [vmem:[#allocation2 + $0x80] sm:$0x4] %v728_v12  ;;  %732 = vst [vmem:[#allocation2 + $0x88] sm:$0x4] %v731_v14  ;;  %961 = vrot.lane.b32.xlu1 %v3833_v4, %s3670_s26  ;;  %959 = vrot.lane.b32.xlu0 %v3830_v3, %s3670_s26  ;;  %v616_v10 = vld [vmem:[#allocation2 + $0x60] sm:$0x2] }
  0xd5   :  { %v619_v12 = vld [vmem:[#allocation2 + $0x68] sm:$0x2] }
  0xd6   :  { %v737_v17 = vpop.permute.xlu0 %736  ;;  %v753_v19 = vpop.permute.xlu1 %752 }
  0xd7   :  { %v787_v20 = vsel %vm4169_vm3, %v737_v17, %v786_v16  ;;  %v811_v21 = vsel %vm4169_vm3, %v753_v19, %v810_v18  ;;  %v1162_v16 = vshrl.u32 %v1127_v9, 16  ;;  %v1165_v17 = vshll.u32 %v1127_v9, 16  ;;  %v989_v9 = vld [vmem:[#allocation2 + $0x18] sm:$0x8] }
  0xd8   :  { %788 = vst [vmem:[#allocation2 + $0x8] sm:$0x4] %v787_v20  ;;  %812 = vst [vmem:[#allocation2 + $0x58] sm:$0x4] %v811_v21  ;;  %1055 = vrot.lane.b32.xlu1 %v3794_v55, %s3671_s27  ;;  %1039 = vrot.lane.b32.xlu0 %v3797_v56, %s3671_s27  ;;  %v927_v55 = vld [vmem:[#allocation2 + $0x88] sm:$0x8] }
  0xd9   :  { %v139_v56 = vld [vmem:[#allocation2 + $0x34] sm:$0x1]  ;;  %v1276_v21 = vrot.slane %v1274_v7, 4  ;;  %v986_v7 = vld [vmem:[#allocation2 + $0x10] sm:$0x8] }
  0xda   :  { %v845_v27 = vpop.permute.xlu0 %844  ;;  %v847_v49 = vpop.permute.xlu1 %846  ;;  %v140_v33 = vsel %vm3865_vm5, 0, %v139_v56  ;;  %v4238_v20 = vld [vmem:[#allocation2 + $0x54] sm:$0x1] }
  0xdb   :  { %v901_v50 = vsel %vm3971_vm14, %v845_v27, %v900_v22  ;;  %v904_v28 = vsel %vm3971_vm14, %v847_v49, %v903_v23  ;;  %141 = vst [vmem:[#allocation2 + $0x34] sm:$0x1] %v140_v33  ;;  %v1279_v22 = vrot.slane %v1277_v8, 5  ;;  %v789_v23 = vld [vmem:[#allocation2 + $0x10] sm:$0x4]  ;;  %v4240_v49 = vrot.slane %v1162_v16, 4 }
  0xdc   :  { %902 = vst [vmem:[#allocation2 + $0x30] sm:$0x8] %v901_v50  ;;  %905 = vst [vmem:[#allocation2 + $0x38] sm:$0x8] %v904_v28  ;;  %569 = vrot.lane.b32.xlu1 %v3956_v61, %s3667_s24  ;;  %553 = vrot.lane.b32.xlu0 %v3959_v62, %s3667_s24  ;;  %v1167_v50 = vrot.slane %v1165_v17, 5  ;;  %v1283_v56 = vshll.u32 %v4238_v20, 16 }
  0xdd   :  { %v77_v33 = vld [vmem:[#allocation2 + $0x30] sm:$0x1]  ;;  %v1280_v34 = vor.u32 %v1279_v22, %v1276_v21  ;;  %v3642_v22 = vld [vmem:[%s5980_s3 + $0x18] sm:$0xff]  }
  0xde   :  { %v861_v35 = vpop.permute.xlu0 %860  ;;  %v863_v36 = vpop.permute.xlu1 %862  ;;  %v1168_v46 = vor.u32 %v1167_v50, %v4240_v49  ;;  %v1010_v49 = vld [vmem:[#allocation2 + $0x60] sm:$0x8] }
  0xdf   :  { %v925_v37 = vsel %vm3971_vm14, %v861_v35, %v924_v29  ;;  %v928_v31 = vsel %vm3971_vm14, %v863_v36, %v927_v55  ;;  %v4253_v35 = vld [vmem:[#allocation2 + $0x4] sm:$0x1]  ;;  %v80_v36 = vld [vmem:[#allocation2 + $0x38] sm:$0x1] }
  0xe0   :  { %926 = vst [vmem:[#allocation2 + $0x80] sm:$0x8] %v925_v37  ;;  %929 = vst [vmem:[#allocation2 + $0x88] sm:$0x8] %v928_v31  ;;  %766 = vrot.lane.b32.xlu1 %v3956_v61, %s3669_s25  ;;  %750 = vrot.lane.b32.xlu0 %v3959_v62, %s3669_s25  ;;  %v107_v37 = vld [vmem:[#allocation2 + $0x80] sm:$0x1] }
  0xe1   :  { %v813_v31 = vld [vmem:[#allocation2 + $0x60] sm:$0x4] }
  0xe2   :  { %v934_v40 = vpop.permute.xlu0 %933  ;;  %v950_v52 = vpop.permute.xlu1 %949 }
  0xe3   :  { %v984_v53 = vsel %vm4204_vm6, %v934_v40, %v983_v41  ;;  %v1008_v54 = vsel %vm4204_vm6, %v950_v52, %v1007_v51  ;;  %v110_v41 = vld [vmem:[#allocation2 + $0x88] sm:$0x1] }
  0xe4   :  { %985 = vst [vmem:[#allocation2 + $0x8] sm:$0x8] %v984_v53  ;;  %1009 = vst [vmem:[#allocation2 + $0x58] sm:$0x8] %v1008_v54  ;;  %963 = vrot.lane.b32.xlu1 %v3956_v61, %s3670_s26  ;;  %947 = vrot.lane.b32.xlu0 %v3959_v62, %s3670_s26  ;;  %v78_v54 = vsel %vm3844_vm2, 0, %v77_v33 }
  0xe5   :  { %79 = vst [vmem:[#allocation2 + $0x30] sm:$0x1] %v78_v54  ;;  %v1013_v33 = vld [vmem:[#allocation2 + $0x68] sm:$0x8] }
  0xe6   :  { %v542_v58 = vpop.permute.xlu0 %541  ;;  %v544_v60 = vpop.permute.xlu1 %543 }
  0xe7   :  { %v593_v1 = vsel %vm4136_vm0, %v542_v58, %v592_v57  ;;  %v596_v2 = vsel %vm4136_vm0, %v544_v60, %v595_v59  ;;  %v81_v57 = vsel %vm3844_vm2, 0, %v80_v36  ;;  %v108_v58 = vsel %vm3844_vm2, 0, %v107_v37  ;;  %v512_v36 = vld [vmem:[#allocation2 + $0x40] sm:$0x2] }
  0xe8   :  { %594 = vst [vmem:[#allocation2 + $0x10] sm:$0x2] %v593_v1  ;;  %597 = vst [vmem:[#allocation2 + $0x18] sm:$0x2] %v596_v2  ;;  %1043 = vrot.lane.b32.xlu1 %v3821_v0, %s3671_s27  ;;  %1041 = vrot.lane.b32.xlu0 %v3814_v63, %s3671_s27  ;;  %v111_v59 = vsel %vm3844_vm2, 0, %v110_v41  ;;  %v4270_v60 = vrot.slane %v1280_v34, 4 }
  0xe9   :  { %v1171_v1 = vshll.u32 %v4253_v35, 16  ;;  %v3382_v2 = vrot.slane %v4251_v32, 9  ;;  %82 = vst [vmem:[#allocation2 + $0x38] sm:$0x1] %v81_v57  ;;  %109 = vst [vmem:[#allocation2 + $0x80] sm:$0x1] %v108_v58 }
  0xea   :  { %v558_v11 = vpop.permute.xlu0 %557  ;;  %v560_v14 = vpop.permute.xlu1 %559  ;;  %112 = vst [vmem:[#allocation2 + $0x88] sm:$0x1] %v111_v59 }
  0xeb   :  { %v617_v18 = vsel %vm4136_vm0, %v558_v11, %v616_v10  ;;  %v620_v19 = vsel %vm4136_vm0, %v560_v14, %v619_v12  ;;  %v1136_v55 = vld [vmem:[#allocation2 + $0x58] sm:$0xf]  ;;  %v1128_v53 = vld [vmem:[#allocation2 + $0x8] sm:$0xf]  ;;  %v1438_v12 = vrot.slane %v4253_v35, 5  ;;  %v4300_v50 = vrot.slane %v1171_v1, 5 }
  0xec   :  { %618 = vst [vmem:[#allocation2 + $0x60] sm:$0x2] %v617_v18  ;;  %621 = vst [vmem:[#allocation2 + $0x68] sm:$0x2] %v620_v19  ;;  %1059 = vrot.lane.b32.xlu1 %v3833_v4, %s3671_s27  ;;  %1057 = vrot.lane.b32.xlu0 %v3830_v3, %s3671_s27  ;;  %v1288_v52 = vshrl.u32 %v1136_v55, 16  ;;  %v1291_v44 = vshll.u32 %v1136_v55, 16 }
  0xed   :  { %v4262_v43 = vld [vmem:[#allocation2 + $0x8] sm:$0xf]  ;;  %v1176_v11 = vshrl.u32 %v1128_v53, 16  ;;  %v1179_v17 = vshll.u32 %v1128_v53, 16  ;;  %v4284_v21 = vld [vmem:[#allocation2 + $0x58] sm:$0xf] }
  0xee   :  { %v739_v24 = vpop.permute.xlu0 %738  ;;  %v741_v27 = vpop.permute.xlu1 %740  ;;  %v4281_v18 = vld [vmem:[#allocation2 + $0x8] sm:$0xe]  ;;  %v1533_v19 = vshrl.u32 %v4262_v43, 16  ;;  %6021 = vst [vmem:[#allocation4_spill] sm:$0xff] %v4284_v21  ;;  %v536_v35 = vld [vmem:[#allocation2 + $0x90] sm:$0x2] }
  0xef   :  { %v790_v28 = vsel %vm4169_vm3, %v739_v24, %v789_v23  ;;  %v793_v29 = vsel %vm4169_vm3, %v741_v27, %v792_v26  ;;  %v4292_v23 = vrot.slane %v1283_v56, 5  ;;  %v4294_v24 = vrot.slane %v1288_v52, 4  ;;  %v407_v52 = vld [vmem:[#allocation2 + $0x30] sm:$0x1]  ;;  %v4336_v57 = vld [vmem:[#allocation2 + $0x8] sm:$0xe] }
  0xf0   :  { %791 = vst [vmem:[#allocation2 + $0x10] sm:$0x4] %v790_v28  ;;  %794 = vst [vmem:[#allocation2 + $0x18] sm:$0x4] %v793_v29  ;;  %1061 = vrot.lane.b32.xlu1 %v3956_v61, %s3671_s27  ;;  %1045 = vrot.lane.b32.xlu0 %v3959_v62, %s3671_s27  ;;  %v4296_v26 = vrot.slane %v1291_v44, 5  ;;  %v4298_v27 = vrot.slane %v1168_v46, 4  ;;  %v4334_v44 = vsel %vm4304_vm15, %v3382_v2, %v1438_v12 }
  0xf1   :  { %v1536_v56 = vshll.u32 %v4262_v43, 16  ;;  %v4311_v37 = vrot.slane %v1176_v11, 4  ;;  %v4320_v41 = vrot.slane %v1179_v17, 5  ;;  %6026 = vst [vmem:[#allocation5_spill] sm:$0xff] %v4336_v57  ;;  %v408_v58 = vsel %vm3865_vm5, %v3814_v63, %v407_v52  ;;  %v410_v59 = vld [vmem:[#allocation2 + $0x38] sm:$0x1] }
  0xf2   :  { %v755_v38 = vpop.permute.xlu0 %754  ;;  %v757_v42 = vpop.permute.xlu1 %756  ;;  %v1294_v54 = vor.u32 %v4296_v26, %v4294_v24  ;;  %v431_v1 = vld [vmem:[#allocation2 + $0x80] sm:$0x1]  ;;  %409 = vst [vmem:[#allocation2 + $0x30] sm:$0x1] %v408_v58  ;;  %v113_v63 = vld [vmem:[#allocation2 + $0x90] sm:$0x1] }
  0xf3   :  { %v814_v40 = vsel %vm4169_vm3, %v755_v38, %v813_v31  ;;  %v817_v51 = vsel %vm4169_vm3, %v757_v42, %v816_v39  ;;  %v1645_v38 = vshrl.u32 %v4284_v21, 16  ;;  %v1648_v39 = vshll.u32 %v4284_v21, 16  ;;  %v83_v11 = vld [vmem:[#allocation2 + $0x40] sm:$0x1]  ;;  %v4356_v24 = vld [vmem:[#allocation2 + $0x58] sm:$0xe] }
  0xf4   :  { %815 = vst [vmem:[#allocation2 + $0x60] sm:$0x4] %v814_v40  ;;  %818 = vst [vmem:[#allocation2 + $0x68] sm:$0x4] %v817_v51  ;;  %v4322_v40 = vld [vmem:[#allocation2 + $0x58] sm:$0xe]  ;;  %v432_v2 = vsel %vm3865_vm5, %v3830_v3, %v431_v1 }
  0xf5   :  { %v4324_v51 = vrot.slane %v1533_v19, 4  ;;  %v4352_v17 = vrot.slane %v1645_v38, 4  ;;  %v4354_v19 = vrot.slane %v1648_v39, 5  ;;  %6027 = vst [vmem:[#allocation6_spill] sm:$0xff] %v4356_v24  ;;  %433 = vst [vmem:[#allocation2 + $0x80] sm:$0x1] %v432_v2 }
  0xf6   :  { %v936_v8 = vpop.permute.xlu0 %935  ;;  %v938_v10 = vpop.permute.xlu1 %937  ;;  %v114_v3 = vsel %vm3844_vm2, 0, %v113_v63 }
  0xf7   :  { %v987_v14 = vsel %vm4204_vm6, %v936_v8, %v986_v7  ;;  %v990_v16 = vsel %vm4204_vm6, %v938_v10, %v989_v9  ;;  %v434_v7 = vld [vmem:[#allocation2 + $0x88] sm:$0x1]  ;;  %v4341_v8 = vrot.slane %v1536_v56, 5  ;;  %v411_v9 = vsel %vm3865_vm5, %v3821_v0, %v410_v59  ;;  %115 = vst [vmem:[#allocation2 + $0x90] sm:$0x1] %v114_v3 }
  0xf8   :  { %988 = vst [vmem:[#allocation2 + $0x10] sm:$0x8] %v987_v14  ;;  %991 = vst [vmem:[#allocation2 + $0x18] sm:$0x8] %v990_v16  ;;  %v435_v10 = vsel %vm3865_vm5, %v3833_v4, %v434_v7  ;;  %v733_v16 = vld [vmem:[#allocation2 + $0x90] sm:$0x4] }
  0xf9   :  { %412 = vst [vmem:[#allocation2 + $0x38] sm:$0x1] %v411_v9  ;;  %436 = vst [vmem:[#allocation2 + $0x88] sm:$0x1] %v435_v10  ;;  %v84_v0 = vsel %vm3844_vm2, 0, %v83_v11  ;;  %v1539_v9 = vor.u32 %v4341_v8, %v4324_v51 }
  0xfa   :  { %v952_v32 = vpop.permute.xlu0 %951  ;;  %v954_v34 = vpop.permute.xlu1 %953  ;;  %85 = vst [vmem:[#allocation2 + $0x40] sm:$0x1] %v84_v0  ;;  %v930_v59 = vld [vmem:[#allocation2 + $0x90] sm:$0x8]  ;;  %v906_v51 = vld [vmem:[#allocation2 + $0x40] sm:$0x8] }
  0xfb   :  { %v1011_v42 = vsel %vm4204_vm6, %v952_v32, %v1010_v49  ;;  %v1014_v46 = vsel %vm4204_vm6, %v954_v34, %v1013_v33  ;;  %v1182_v49 = vor.u32 %v4320_v41, %v4311_v37  ;;  %v709_v34 = vld [vmem:[#allocation2 + $0x40] sm:$0x4]  ;;  %v4377_v37 = vrot.slane %v1294_v54, 4 }
  0xfc   :  { %1012 = vst [vmem:[#allocation2 + $0x60] sm:$0x8] %v1011_v42  ;;  %1015 = vst [vmem:[#allocation2 + $0x68] sm:$0x8] %v1014_v46  ;;  %v1651_v54 = vor.u32 %v4354_v19, %v4352_v17  ;;  %v622_v46 = vld [vmem:[#allocation2 + $0x70] sm:$0x2] }
  0xfd   :  { %v4417_v42 = vrot.slane %v1182_v49, 4  ;;  %v598_v49 = vld [vmem:[#allocation2 + $0x20] sm:$0x2] }
  0xfe   :  { %v471_v12 = vpop.permute.xlu1 %470  ;;  %v455_v14 = vpop.permute.xlu0 %454 }
  0xff   :  { %v537_v4 = vsel %vm3943_vm11, %v471_v12, %v536_v35  ;;  %v513_v26 = vsel %vm3943_vm11, %v455_v14, %v512_v36  ;;  %v4368_v56 = vld [vmem:[#allocation2 + $0x10] sm:$0xf]  ;;  %v4370_v32 = vld [vmem:[#allocation2 + $0x18] sm:$0xf]  ;;  %vm2671_vm11 = vcmask 195584  }
 0x100   :  { %6028 = vst [vmem:[#allocation7_spill] sm:$0xff] %v4368_v56  ;;  %6029 = vst [vmem:[#allocation8_spill] sm:$0xff] %v4370_v32  ;;  %v1190_v38 = vshrl.u32 %v4368_v56, 16  ;;  %v1193_v35 = vshll.u32 %v4368_v56, 16  ;;  %v1204_v47 = vshrl.u32 %v4370_v32, 16  ;;  %v1207_v36 = vshll.u32 %v4370_v32, 16 }
 0x101   :  { %538 = vst [vmem:[#allocation2 + $0x90] sm:$0x2] %v537_v4  ;;  %514 = vst [vmem:[#allocation2 + $0x40] sm:$0x2] %v513_v26  ;;  %v4379_v39 = vld [vmem:[#allocation2 + $0x10] sm:$0xf] }
 0x102   :  { %v668_v52 = vpop.permute.xlu1 %667  ;;  %v652_v58 = vpop.permute.xlu0 %651  ;;  %v1192_v1 = vrot.slane %v1190_v38, 4  ;;  %v1195_v7 = vrot.slane %v1193_v35, 5  ;;  %v1547_v12 = vshrl.u32 %v4379_v39, 16  ;;  %v1550_v14 = vshll.u32 %v4379_v39, 16  ;;  %v4407_v26 = vld [vmem:[#allocation2 + $0x10] sm:$0xe] }
 0x103   :  { %v734_v2 = vsel %vm3934_vm10, %v668_v52, %v733_v16  ;;  %v710_v10 = vsel %vm3934_vm10, %v652_v58, %v709_v34  ;;  %v4393_v11 = vld [vmem:[#allocation2 + $0x60] sm:$0xf]  ;;  %v4395_v63 = vld [vmem:[#allocation2 + $0x68] sm:$0xf]  ;;  %v1206_v8 = vrot.slane %v1204_v47, 4  ;;  %v1209_v0 = vrot.slane %v1207_v36, 5 }
 0x104   :  { %6030 = vst [vmem:[#allocation9_spill] sm:$0xff] %v4393_v11  ;;  %6031 = vst [vmem:[#allocation10_spill] sm:$0xff] %v4395_v63  ;;  %v1302_v17 = vshrl.u32 %v4393_v11, 16  ;;  %v1305_v16 = vshll.u32 %v4393_v11, 16  ;;  %v1196_v19 = vor.u32 %v1195_v7, %v1192_v1  ;;  %v1316_v3 = vshrl.u32 %v4395_v63, 16 }
 0x105   :  { %735 = vst [vmem:[#allocation2 + $0x90] sm:$0x4] %v734_v2  ;;  %711 = vst [vmem:[#allocation2 + $0x40] sm:$0x4] %v710_v10  ;;  %v1319_v4 = vshll.u32 %v4395_v63, 16  ;;  %v1549_v52 = vrot.slane %v1547_v12, 4  ;;  %v1210_v45 = vor.u32 %v1209_v0, %v1206_v8 }
 0x106   :  { %v4409_v34 = vld [vmem:[#allocation2 + $0x18] sm:$0xf]  ;;  %v865_v38 = vpop.permute.xlu1 %864  ;;  %v849_v35 = vpop.permute.xlu0 %848  ;;  %v1304_v47 = vrot.slane %v1302_v17, 4  ;;  %v1307_v36 = vrot.slane %v1305_v16, 5  ;;  %v1552_v58 = vrot.slane %v1550_v14, 5  ;;  %v1318_v7 = vrot.slane %v1316_v3, 4 }
 0x107   :  { %v4411_v2 = vld [vmem:[#allocation2 + $0x60] sm:$0xf]  ;;  %v931_v10 = vsel %vm3971_vm14, %v865_v38, %v930_v59  ;;  %v907_v1 = vsel %vm3971_vm14, %v849_v35, %v906_v51  ;;  %v1321_v41 = vrot.slane %v1319_v4, 5  ;;  %v4419_v17 = vld [vmem:[#allocation2 + $0x18] sm:$0xe]  ;;  %v4421_v12 = vrot.slane %v1539_v9, 4 }
 0x108   :  { %6032 = vst [vmem:[#allocation11_spill] sm:$0xff] %v4411_v2  ;;  %932 = vst [vmem:[#allocation2 + $0x90] sm:$0x8] %v931_v10  ;;  %v4423_v14 = vrot.slane %v1651_v54, 4  ;;  %v4426_v59 = vld [vmem:[#allocation2 + $0x60] sm:$0xe]  ;;  %v1308_v8 = vor.u32 %v1307_v36, %v1304_v47  ;;  %v1553_v35 = vor.u32 %v1552_v58, %v1549_v52 }
 0x109   :  { %908 = vst [vmem:[#allocation2 + $0x40] sm:$0x8] %v907_v1  ;;  %6033 = vst [vmem:[#allocation12_spill] sm:$0xff] %v4421_v12  ;;  %v1561_v25 = vshrl.u32 %v4409_v34, 16  ;;  %v1564_v51 = vshll.u32 %v4409_v34, 16  ;;  %v1659_v3 = vshrl.u32 %v4411_v2, 16  ;;  %v1322_v0 = vor.u32 %v1321_v41, %v1318_v7 }
 0x10a   :  { %6034 = vst [vmem:[#allocation13_spill] sm:$0xff] %v4423_v14  ;;  %6035 = vst [vmem:[#allocation14_spill] sm:$0xff] %v4426_v59  ;;  %v562_v4 = vpop.permute.xlu1 %561  ;;  %v546_v38 = vpop.permute.xlu0 %545  ;;  %v1662_v9 = vshll.u32 %v4411_v2, 16  ;;  %v4432_v54 = vld [vmem:[#allocation2 + $0x68] sm:$0xf]  ;;  %v4438_v16 = vrot.slane %v1196_v19, 4 }
 0x10b   :  { %v623_v10 = vsel %vm4136_vm0, %v562_v4, %v622_v46  ;;  %v599_v1 = vsel %vm4136_vm0, %v546_v38, %v598_v49  ;;  %v4441_v33 = vld [vmem:[#allocation2 + $0x68] sm:$0xe]  ;;  %v4443_v31 = vld [vmem:[#allocation2 + $0x10] sm:$0xe]  ;;  %v795_v47 = vld [vmem:[#allocation2 + $0x20] sm:$0x4] }
 0x10c   :  { %6036 = vst [vmem:[#allocation15_spill] sm:$0xff] %v4441_v33  ;;  %6037 = vst [vmem:[#allocation16_spill] sm:$0xff] %v4443_v31  ;;  %v819_v41 = vld [vmem:[#allocation2 + $0x70] sm:$0x4]  ;;  %v4445_v36 = vrot.slane %v1210_v45, 4  ;;  %v4448_v46 = vrot.slane %v1561_v25, 4 }
 0x10d   :  { %624 = vst [vmem:[#allocation2 + $0x70] sm:$0x2] %v623_v10  ;;  %600 = vst [vmem:[#allocation2 + $0x20] sm:$0x2] %v599_v1  ;;  %v4450_v58 = vrot.slane %v1564_v51, 5  ;;  %v1661_v7 = vrot.slane %v1659_v3, 4 }
 0x10e   :  { %v4452_v19 = vld [vmem:[#allocation2 + $0x60] sm:$0xe]  ;;  %v1664_v4 = vrot.slane %v1662_v9, 5  ;;  %v1673_v49 = vshrl.u32 %v4432_v54, 16  ;;  %v1676_v38 = vshll.u32 %v4432_v54, 16  ;;  %v759_v1 = vpop.permute.xlu1 %758  ;;  %v743_v53 = vpop.permute.xlu0 %742  ;;  %v4458_v45 = vrot.slane %v1308_v8, 4 }
 0x10f   :  { %6038 = vst [vmem:[#allocation17_spill] sm:$0xff] %v4452_v19  ;;  %v4456_v10 = vld [vmem:[#allocation2 + $0x10] sm:$0xf]  ;;  %v4460_v29 = vrot.slane %v1322_v0, 4  ;;  %v4463_v51 = vrot.slane %v1553_v35, 4  ;;  %v820_v3 = vsel %vm4169_vm3, %v759_v1, %v819_v41  ;;  %v796_v9 = vsel %vm4169_vm3, %v743_v53, %v795_v47 }
 0x110   :  { %6039 = vst [vmem:[#allocation18_spill] sm:$0xff] %v4456_v10  ;;  %6040 = vst [vmem:[#allocation19_spill] sm:$0xff] %v4458_v45  ;;  %v4465_v52 = vld [vmem:[#allocation2 + $0x18] sm:$0xf]  ;;  %v1675_v55 = vrot.slane %v1673_v49, 4  ;;  %v1678_v32 = vrot.slane %v1676_v38, 5  ;;  %v1665_v41 = vor.u32 %v1664_v4, %v1661_v7  ;;  %v1567_v53 = vor.u32 %v4450_v58, %v4448_v46 }
 0x111   :  { %6041 = vst [vmem:[#allocation20_spill] sm:$0xff] %v4460_v29  ;;  %6042 = vst [vmem:[#allocation21_spill] sm:$0xff] %v4463_v51  ;;  %v4471_v56 = vld [vmem:[#allocation2 + $0x60] sm:$0xf]  ;;  %v1016_v8 = vld [vmem:[#allocation2 + $0x70] sm:$0x8] }
 0x112   :  { %6043 = vst [vmem:[#allocation22_spill] sm:$0xff] %v4465_v52  ;;  %6044 = vst [vmem:[#allocation23_spill] sm:$0xff] %v4471_v56  ;;  %v992_v0 = vld [vmem:[#allocation2 + $0x20] sm:$0x8]  ;;  %v1902_v24 = vshrl.u32 %v4456_v10, 16  ;;  %v1905_v57 = vshll.u32 %v4456_v10, 16  ;;  %v1679_v14 = vor.u32 %v1678_v32, %v1675_v55 }
 0x113   :  { %821 = vst [vmem:[#allocation2 + $0x70] sm:$0x4] %v820_v3  ;;  %797 = vst [vmem:[#allocation2 + $0x20] sm:$0x4] %v796_v9  ;;  %v4479_v47 = vld [vmem:[#allocation2 + $0x18] sm:$0xe]  ;;  %v956_v3 = vpop.permute.xlu1 %955  ;;  %v940_v9 = vpop.permute.xlu0 %939 }
 0x114   :  { %v1916_v49 = vshrl.u32 %v4465_v52, 16  ;;  %v1919_v38 = vshll.u32 %v4465_v52, 16  ;;  %v4483_v1 = vld [vmem:[#allocation2 + $0x68] sm:$0xf]  ;;  %v1904_v35 = vrot.slane %v1902_v24, 4  ;;  %v1907_v19 = vrot.slane %v1905_v57, 5 }
 0x115   :  { %6045 = vst [vmem:[#allocation24_spill] sm:$0xff] %v4483_v1  ;;  %v4485_v25 = vld [vmem:[#allocation2 + $0x68] sm:$0xe]  ;;  %v2014_v31 = vshrl.u32 %v4471_v56, 16  ;;  %v2017_v7 = vshll.u32 %v4471_v56, 16  ;;  %v1017_v46 = vsel %vm4204_vm6, %v956_v3, %v1016_v8  ;;  %v993_v58 = vsel %vm4204_vm6, %v940_v9, %v992_v0 }
 0x116   :  { %v1103_v4 = vld [vmem:[#allocation2 + $0x5c] sm:$0x1]  ;;  %v4493_v51 = vrot.slane %v1916_v49, 4  ;;  %1018 = vst [vmem:[#allocation2 + $0x70] sm:$0x8] %v1017_v46  ;;  %v1921_v29 = vrot.slane %v1919_v38, 5 }
 0x117   :  { %994 = vst [vmem:[#allocation2 + $0x20] sm:$0x8] %v993_v58  ;;  %v1079_v12 = vld [vmem:[#allocation2 + $0xc] sm:$0x1]  ;;  %v2016_v24 = vrot.slane %v2014_v31, 4  ;;  %v2019_v57 = vrot.slane %v2017_v7, 5  ;;  %v1048_v55 = vpop.permute.xlu1 %1047  ;;  %v1032_v32 = vpop.permute.xlu0 %1031  ;;  %v1908_v7 = vor.u32 %v1907_v19, %v1904_v35 }
 0x118   :  { %v2028_v45 = vshrl.u32 %v4483_v1, 16  ;;  %v4496_v33 = vrot.slane %v1665_v41, 4  ;;  %v2031_v0 = vshll.u32 %v4483_v1, 16  ;;  %v4501_v3 = vld [vmem:[#allocation2 + $0x10] sm:$0xe]  ;;  %v6047_v49 = vrot.slane %v4238_v20, 5 }
 0x119   :  { %6046 = vst [vmem:[#allocation25_spill] sm:$0xff] %v4501_v3  ;;  %v6048_v38 = vrot.slane %v4274_v6, 9  ;;  %v413_v46 = vld [vmem:[#allocation2 + $0x40] sm:$0x1]  ;;  %v437_v58 = vld [vmem:[#allocation2 + $0x90] sm:$0x1]  ;;  %v1104_v59 = vsel %vm3844_vm2, %v1048_v55, %v1103_v4  ;;  %v1080_v20 = vsel %vm3844_vm2, %v1032_v32, %v1079_v12  ;;  %v1922_v2 = vor.u32 %v1921_v29, %v4493_v51 }
 0x11a   :  { %v86_v8 = vld [vmem:[#allocation2 + $0x48] sm:$0x1]  ;;  %v4519_v6 = vrot.slane %v1567_v53, 4  ;;  %v116_v41 = vld [vmem:[#allocation2 + $0x98] sm:$0x1]  ;;  %v4525_v35 = vrot.slane %v2028_v45, 4  ;;  %v2020_v21 = vor.u32 %v2019_v57, %v2016_v24  ;;  %v414_v12 = vsel %vm3865_vm5, %v3959_v62, %v413_v46 }
 0x11b   :  { %v4509_v31 = vsel %vm4304_vm15, %v6048_v38, %v6047_v49  ;;  %v4521_v49 = vrot.slane %v1679_v14, 4  ;;  %v4523_v38 = vld [vmem:[#allocation2 + $0x18] sm:$0xe]  ;;  %1105 = vst [vmem:[#allocation2 + $0x5c] sm:$0x1] %v1104_v59  ;;  %v4529_v55 = vrot.slane %v2031_v0, 5  ;;  %v438_v14 = vsel %vm3865_vm5, %v3956_v61, %v437_v58  ;;  %v1036_v45 = vpop.permute.xlu1 %1035  ;;  %v1034_v53 = vpop.permute.xlu0 %1033 }
 0x11c   :  { %6049 = vst [vmem:[#allocation26_spill] sm:$0xff] %v4523_v38  ;;  %1081 = vst [vmem:[#allocation2 + $0xc] sm:$0x1] %v1080_v20  ;;  %v1085_v9 = vld [vmem:[#allocation2 + $0x1c] sm:$0x1]  ;;  %v87_v59 = vsel %vm3844_vm2, 0, %v86_v8 }
 0x11d   :  { %v1082_v19 = vld [vmem:[#allocation2 + $0x14] sm:$0x1]  ;;  %v1109_v32 = vld [vmem:[#allocation2 + $0x6c] sm:$0x1]  ;;  %v1106_v29 = vld [vmem:[#allocation2 + $0x64] sm:$0x1]  ;;  %v1086_v8 = vsel %vm3844_vm2, %v1036_v45, %v1085_v9 }
 0x11e   :  { %v4539_v51 = vrot.slane %v1908_v7, 4  ;;  %v4542_v57 = vld [vmem:[#allocation2 + $0x60] sm:$0xe]  ;;  %415 = vst [vmem:[#allocation2 + $0x40] sm:$0x1] %v414_v12  ;;  %v117_v62 = vsel %vm3844_vm2, 0, %v116_v41  ;;  %v1083_v0 = vsel %vm3844_vm2, %v1034_v53, %v1082_v19 }
 0x11f   :  { %6050 = vst [vmem:[#allocation27_spill] sm:$0xff] %v4542_v57  ;;  %439 = vst [vmem:[#allocation2 + $0x90] sm:$0x1] %v438_v14  ;;  %v4552_v7 = vld [vmem:[#allocation2 + $0x20] sm:$0xf]  ;;  %v4566_v14 = vrot.slane %v1922_v2, 4 }
 0x120   :  { %88 = vst [vmem:[#allocation2 + $0x48] sm:$0x1] %v87_v59  ;;  %v4554_v46 = vld [vmem:[#allocation2 + $0x70] sm:$0xf]  ;;  %v4556_v58 = vld [vmem:[#allocation2 + $0x20] sm:$0xe] }
 0x121   :  { %118 = vst [vmem:[#allocation2 + $0x98] sm:$0x1] %v117_v62  ;;  %1087 = vst [vmem:[#allocation2 + $0x1c] sm:$0x1] %v1086_v8  ;;  %v1575_v9 = vshrl.u32 %v4552_v7, 16  ;;  %v1578_v12 = vshll.u32 %v4552_v7, 16  ;;  %v1052_v8 = vpop.permute.xlu1 %1051 }
 0x122   :  { %1084 = vst [vmem:[#allocation2 + $0x14] sm:$0x1] %v1083_v0  ;;  %v4564_v19 = vld [vmem:[#allocation2 + $0x70] sm:$0xe]  ;;  %v4568_v59 = vrot.slane %v2020_v21, 4  ;;  %v1687_v45 = vshrl.u32 %v4554_v46, 16  ;;  %v1050_v0 = vpop.permute.xlu0 %1049  ;;  %v1110_v4 = vsel %vm3844_vm2, %v1052_v8, %v1109_v32 }
 0x123   :  { %v1690_v53 = vshll.u32 %v4554_v46, 16  ;;  %v4575_v41 = vrot.slane %v1575_v9, 4  ;;  %v4577_v20 = vrot.slane %v1578_v12, 5  ;;  %v4581_v24 = vld [vmem:[#allocation2 + $0x20] sm:$0xf]  ;;  %v1107_v61 = vsel %vm3844_vm2, %v1050_v0, %v1106_v29 }
 0x124   :  { %6051 = vst [vmem:[#allocation28_spill] sm:$0xff] %v4568_v59  ;;  %v1152_v63 = vld [vmem:[#allocation2 + $0x5c] sm:$0x1]  ;;  %v1144_v62 = vld [vmem:[#allocation2 + $0xc] sm:$0x1]  ;;  %v4596_v0 = vrot.slane %v1687_v45, 4 }
 0x125   :  { %v4589_v11 = vld [vmem:[#allocation2 + $0xc] sm:$0x1]  ;;  %1111 = vst [vmem:[#allocation2 + $0x6c] sm:$0x1] %v1110_v4  ;;  %1108 = vst [vmem:[#allocation2 + $0x64] sm:$0x1] %v1107_v61  ;;  %v564_v52 = vpop.permute.xlu1 %563 }
 0x126   :  { %v1297_v21 = vshll.u32 %v1152_v63, 16  ;;  %v1185_v2 = vshll.u32 %v1144_v62, 16  ;;  %v1442_v13 = vrot.slane %v1144_v62, 5  ;;  %v1474_v1 = vrot.slane %v1152_v63, 5  ;;  %v4593_v32 = vld [vmem:[#allocation2 + $0x5c] sm:$0x1]  ;;  %v548_v12 = vpop.permute.xlu0 %547 }
 0x127   :  { %v625_v8 = vld [vmem:[#allocation2 + $0x78] sm:$0x2]  ;;  %v1542_v29 = vshll.u32 %v4589_v11, 16  ;;  %v4598_v56 = vrot.slane %v1690_v53, 5  ;;  %v601_v10 = vld [vmem:[#allocation2 + $0x28] sm:$0x2] }
 0x128   :  { %v1299_v4 = vrot.slane %v1297_v21, 5  ;;  %v1187_v61 = vrot.slane %v1185_v2, 5  ;;  %v626_v62 = vsel %vm4136_vm0, %v564_v52, %v625_v8  ;;  %v602_v45 = vsel %vm4136_vm0, %v548_v12, %v601_v10  ;;  %v1146_v38 = vld [vmem:[#allocation2 + $0x1c] sm:$0x1]  ;;  %v831_v48 = vld [vmem:[#allocation2 + $0x90] sm:$0x4] }
 0x129   :  { %v1145_v53 = vld [vmem:[#allocation2 + $0x14] sm:$0x1]  ;;  %v6052_v9 = vrot.slane %v4281_v18, 9  ;;  %v6053_v2 = vrot.slane %v4322_v40, 9  ;;  %627 = vst [vmem:[#allocation2 + $0x78] sm:$0x2] %v626_v62  ;;  %v6054_v40 = vsel %vm4288_vm12, %v4270_v60, %v4292_v23 }
 0x12a   :  { %603 = vst [vmem:[#allocation2 + $0x28] sm:$0x2] %v602_v45  ;;  %v1300_v52 = vsel %vm4288_vm12, %v4377_v37, %v1299_v4  ;;  %v1188_v18 = vsel %vm4288_vm12, %v4417_v42, %v1187_v61  ;;  %v1199_v10 = vshll.u32 %v1145_v53, 16  ;;  %v1213_v12 = vshll.u32 %v1146_v38, 16  ;;  %v761_v42 = vpop.permute.xlu1 %760  ;;  %v798_v61 = vld [vmem:[#allocation2 + $0x28] sm:$0x4]  ;;  %v745_v45 = vpop.permute.xlu0 %744 }
 0x12b   :  { %v4612_v3 = vsel %vm4304_vm15, %v6052_v9, %v1442_v13  ;;  %v4618_v21 = vsel %vm4304_vm15, %v6053_v2, %v1474_v1  ;;  %v4626_v13 = vld [vmem:[#allocation2 + $0x14] sm:$0x1]  ;;  %v822_v9 = vld [vmem:[#allocation2 + $0x78] sm:$0x4]  ;;  %v3442_v1 = vcombine.low %v6054_v40, %v1300_v52  ;;  %v6055_v37 = vsel %vm4288_vm12, %v4298_v27, %v4300_v50 }
 0x12c   :  { %v3438_v8 = vcombine.low %v6055_v37, %v1188_v18  ;;  %v1446_v4 = vrot.slane %v1145_v53, 5  ;;  %v1450_v62 = vrot.slane %v1146_v38, 5  ;;  %v1201_v2 = vrot.slane %v1199_v10, 5  ;;  %v1153_v27 = vld [vmem:[#allocation2 + $0x64] sm:$0x1] }
 0x12d   :  { %v1215_v63 = vrot.slane %v1213_v12, 5  ;;  %v3446_v57 = vcombine.low %v4334_v44, %v4612_v3  ;;  %v4640_v59 = vrot.slane %v1542_v29, 5  ;;  %v823_v60 = vsel %vm4169_vm3, %v761_v42, %v822_v9  ;;  %2309 = vrot.lane.b32.xlu1 %v3442_v1, %s3672_s28  ;;  %v1154_v50 = vld [vmem:[#allocation2 + $0x6c] sm:$0x1]  ;;  %v1019_v10 = vld [vmem:[#allocation2 + $0x78] sm:$0x8] }
 0x12e   :  { %v799_v23 = vsel %vm4169_vm3, %v745_v45, %v798_v61  ;;  %2301 = vrot.lane.b32.xlu0 %v3438_v8, %s3672_s28  ;;  %v6056_v38 = vrot.slane %v4407_v26, 9  ;;  %v1556_v3 = vshll.u32 %v4626_v13, 16  ;;  %824 = vst [vmem:[#allocation2 + $0x78] sm:$0x4] %v823_v60  ;;  %v1202_v29 = vsel %vm4288_vm12, %v4438_v16, %v1201_v2  ;;  %v995_v26 = vld [vmem:[#allocation2 + $0x28] sm:$0x8]  ;;  %v958_v8 = vpop.permute.xlu1 %957 }
 0x12f   :  { %800 = vst [vmem:[#allocation2 + $0x28] sm:$0x4] %v799_v23  ;;  %v1216_v53 = vsel %vm4288_vm12, %v4445_v36, %v1215_v63  ;;  %v1311_v52 = vshll.u32 %v1153_v27, 16  ;;  %v1325_v18 = vshll.u32 %v1154_v50, 16  ;;  %v6057_v9 = vrot.slane %v4419_v17, 9  ;;  %v6058_v2 = vld [vmem:[#allocation14_spill] sm:$0xff] }
 0x130   :  { %v4652_v44 = vsel %vm4304_vm15, %v6056_v38, %v1446_v4  ;;  %v3439_v12 = vcombine.low %v1202_v29, %v1216_v53  ;;  %v1478_v1 = vrot.slane %v1153_v27, 5  ;;  %v1482_v37 = vrot.slane %v1154_v50, 5  ;;  %v942_v4 = vpop.permute.xlu0 %941  ;;  %v4671_v61 = vld [vmem:[#allocation2 + $0x64] sm:$0x1]  ;;  %v4673_v45 = vld [vmem:[#allocation2 + $0x1c] sm:$0x1] }
 0x131   :  { %v4665_v40 = vsel %vm4304_vm15, %v6057_v9, %v1450_v62  ;;  %v1313_v16 = vrot.slane %v1311_v52, 5  ;;  %v1327_v42 = vrot.slane %v1325_v18, 5  ;;  %v3450_v63 = vcombine.low %v4509_v31, %v4618_v21  ;;  %v6060_v27 = vld [vmem:[#allocation15_spill] sm:$0xff]  ;;  %v4692_v50 = vld [vmem:[#allocation2 + $0x6c] sm:$0x1] }
 0x132   :  { %v3447_v36 = vcombine.low %v4652_v44, %v4665_v40  ;;  %v1020_v17 = vsel %vm4204_vm6, %v958_v8, %v1019_v10  ;;  %v996_v62 = vsel %vm4204_vm6, %v942_v4, %v995_v26  ;;  %2303 = vrot.lane.b32.xlu0 %v3439_v12, %s3672_s28  ;;  %v6059_v60 = vrot.slane %v6058_v2, 9  ;;  %v1112_v38 = vld [vmem:[#allocation2 + $0x74] sm:$0x1]  ;;  %v1088_v44 = vld [vmem:[#allocation2 + $0x24] sm:$0x1]  ;;  %v6063_v52 = vld [vmem:[#allocation20_spill] sm:$0xff]  ;;  %v1054_v4 = vpop.permute.xlu1 %1053 }
 0x133   :  { %v6061_v31 = vrot.slane %v6060_v27, 9  ;;  %1021 = vst [vmem:[#allocation2 + $0x78] sm:$0x8] %v1020_v17  ;;  %997 = vst [vmem:[#allocation2 + $0x28] sm:$0x8] %v996_v62  ;;  %v6062_v29 = vld [vmem:[#allocation19_spill] sm:$0xff]  ;;  %v1328_v18 = vsel %vm4288_vm12, %v6063_v52, %v1327_v42  ;;  %v1113_v2 = vsel %vm3844_vm2, %v1054_v4, %v1112_v38  ;;  %v6067_v27 = vor.u32 %v4577_v20, %v4575_v41 }
 0x134   :  { %v4684_v23 = vsel %vm4304_vm15, %v6059_v60, %v1478_v1  ;;  %v1314_v53 = vsel %vm4288_vm12, %v6062_v29, %v1313_v16  ;;  %v6064_v10 = vld [vmem:[#allocation12_spill] sm:$0xff]  ;;  %v1558_v12 = vrot.slane %v1556_v3, 5  ;;  %v6065_v40 = vshll.u32 %v4593_v32, 16  ;;  %v1038_v16 = vpop.permute.xlu0 %1037  ;;  %v6066_v42 = vld [vmem:[#allocation21_spill] sm:$0xff]  ;;  %1114 = vst [vmem:[#allocation2 + $0x74] sm:$0x1] %v1113_v2 }
 0x135   :  { %v4690_v21 = vsel %vm4304_vm15, %v6061_v31, %v1482_v37  ;;  %v1545_v26 = vsel %vm4288_vm12, %v6064_v10, %v4640_v59  ;;  %v3443_v9 = vcombine.low %v1314_v53, %v1328_v18  ;;  %v1668_v37 = vshll.u32 %v4671_v61, 16  ;;  %v607_v53 = vld [vmem:[#allocation2 + $0x38] sm:$0x2]  ;;  %v604_v18 = vld [vmem:[#allocation2 + $0x30] sm:$0x2] }
 0x136   :  { %v1656_v1 = vrot.slane %v6065_v40, 5  ;;  %v1570_v8 = vshll.u32 %v4673_v45, 16  ;;  %v3451_v17 = vcombine.low %v4684_v23, %v4690_v21  ;;  %v1559_v62 = vsel %vm4288_vm12, %v6066_v42, %v1558_v12  ;;  %2341 = vrot.lane.b32.xlu0 %v3446_v57, %s3673_s29  ;;  %v552_v52 = vpop.permute.xlu1 %551  ;;  %v4785_v2 = vld [vmem:[#allocation2 + $0x70] sm:$0xf] }
 0x137   :  { %v1682_v59 = vshll.u32 %v4692_v50, 16  ;;  %v1693_v3 = vor.u32 %v4598_v56, %v4596_v0  ;;  %v1089_v60 = vsel %vm3844_vm2, %v1038_v16, %v1088_v44  ;;  %2311 = vrot.lane.b32.xlu1 %v3443_v9, %s3672_s28  ;;  %v1670_v23 = vrot.slane %v1668_v37, 5  ;;  %v6068_v0 = vld [vmem:[#allocation13_spill] sm:$0xff] }
 0x138   :  { %v4725_v31 = vrot.slane %v6067_v27, 4  ;;  %1090 = vst [vmem:[#allocation2 + $0x24] sm:$0x1] %v1089_v60  ;;  %v4727_v56 = vcombine.low %v1545_v26, %v1559_v62  ;;  %v1657_v21 = vsel %vm4288_vm12, %v6068_v0, %v1656_v1  ;;  %v4732_v38 = vrot.slane %v1570_v8, 5  ;;  %v550_v10 = vpop.permute.xlu0 %549  ;;  %v6075_v62 = vld [vmem:[#allocation17_spill] sm:$0xff] }
 0x139   :  { %v4734_v44 = vrot.slane %v1682_v59, 5  ;;  %v1671_v57 = vsel %vm4288_vm12, %v4496_v33, %v1670_v23  ;;  %v1806_v20 = vrot.slane %v4589_v11, 5  ;;  %v1810_v41 = vrot.slane %v4626_v13, 5  ;;  %v6069_v13 = vld [vmem:[#allocation5_spill] sm:$0xff]  ;;  %v631_v60 = vld [vmem:[#allocation2 + $0x88] sm:$0x2] }
 0x13a   :  { %v1838_v29 = vrot.slane %v4593_v32, 5  ;;  %v4742_v26 = vcombine.low %v1657_v21, %v1671_v57  ;;  %v1573_v12 = vsel %vm4288_vm12, %v4519_v6, %v4732_v38  ;;  %v4748_v9 = vrot.slane %v1693_v3, 4  ;;  %2343 = vrot.lane.b32.xlu0 %v3447_v36, %s3673_s29  ;;  %v4764_v8 = vld [vmem:[#allocation2 + $0x28] sm:$0xf]  ;;  %v6073_v36 = vld [vmem:[#allocation6_spill] sm:$0xff] }
 0x13b   :  { %v1842_v33 = vrot.slane %v4671_v61, 5  ;;  %v608_v11 = vsel %vm4136_vm0, %v552_v52, %v607_v53  ;;  %v605_v32 = vsel %vm4136_vm0, %v550_v10, %v604_v18  ;;  %2349 = vrot.lane.b32.xlu1 %v3450_v63, %s3673_s29  ;;  %v6070_v40 = vrot.slane %v6069_v13, 9  ;;  %v6071_v61 = vld [vmem:[#allocation16_spill] sm:$0xff] }
 0x13c   :  { %v1814_v37 = vrot.slane %v4673_v45, 5  ;;  %609 = vst [vmem:[#allocation2 + $0x38] sm:$0x2] %v608_v11  ;;  %606 = vst [vmem:[#allocation2 + $0x30] sm:$0x2] %v605_v32  ;;  %v6072_v4 = vrot.slane %v6071_v61, 9  ;;  %v1685_v23 = vsel %vm4288_vm12, %v4521_v49, %v4734_v44  ;;  %v6079_v10 = vcombine.low %v4262_v43, %v4379_v39 }
 0x13d   :  { %v4761_v1 = vsel %vm4304_vm15, %v6070_v40, %v1806_v20  ;;  %v6074_v63 = vrot.slane %v6073_v36, 9  ;;  %v6076_v59 = vrot.slane %v6075_v62, 9  ;;  %v1846_v3 = vrot.slane %v4692_v50, 5  ;;  %v568_v50 = vpop.permute.xlu1 %567  ;;  %v628_v20 = vld [vmem:[#allocation2 + $0x80] sm:$0x2] }
 0x13e   :  { %v4770_v16 = vsel %vm4304_vm15, %v6072_v4, %v1810_v41  ;;  %v6077_v21 = vrot.slane %v4479_v47, 9  ;;  %v566_v41 = vpop.permute.xlu0 %565  ;;  %v1933_v49 = vshll.u32 %v4581_v24, 16  ;;  %v1944_v44 = vshrl.u32 %v4764_v8, 16  ;;  %2397 = vrot.lane.b32.xlu0 %v6079_v10, %s3674_s30  ;;  %v1527_v11 = vld [vmem:[#allocation2 + $0x74] sm:$0x1] }
 0x13f   :  { %v4776_v42 = vsel %vm4304_vm15, %v6074_v63, %v1838_v29  ;;  %v4782_v45 = vsel %vm4304_vm15, %v6076_v59, %v1842_v33  ;;  %v3470_v27 = vcombine.low %v4761_v1, %v4770_v16  ;;  %v6078_v29 = vshrl.u32 %v4581_v24, 16  ;;  %2351 = vrot.lane.b32.xlu1 %v3451_v17, %s3673_s29  ;;  %v1519_v33 = vld [vmem:[#allocation2 + $0x24] sm:$0x1]  ;;  %v4832_v63 = vld [vmem:[#allocation2 + $0x78] sm:$0xf] }
 0x140   :  { %v3474_v0 = vcombine.low %v4776_v42, %v4782_v45  ;;  %v4799_v57 = vsel %vm4304_vm15, %v6077_v21, %v1814_v37  ;;  %v1947_v52 = vshll.u32 %v4764_v8, 16  ;;  %v632_v47 = vsel %vm4136_vm0, %v568_v50, %v631_v60  ;;  %v804_v62 = vld [vmem:[#allocation2 + $0x38] sm:$0x4]  ;;  %v4894_v38 = vld [vmem:[#allocation2 + $0x24] sm:$0x1] }
 0x141   :  { %v4803_v53 = vrot.slane %v6078_v29, 4  ;;  %v629_v18 = vsel %vm4136_vm0, %v566_v41, %v628_v20  ;;  %v6080_v32 = vrot.slane %v4485_v25, 9  ;;  %v2042_v40 = vshrl.u32 %v4785_v2, 16  ;;  %633 = vst [vmem:[#allocation2 + $0x88] sm:$0x2] %v632_v47  ;;  %v749_v59 = vpop.permute.xlu1 %748  ;;  %v6084_v47 = vld [vmem:[#allocation4_spill] sm:$0xff] }
 0x142   :  { %630 = vst [vmem:[#allocation2 + $0x80] sm:$0x2] %v629_v18  ;;  %v1584_v37 = vshll.u32 %v1519_v33, 16  ;;  %v1696_v61 = vshll.u32 %v1527_v11, 16  ;;  %v1818_v4 = vrot.slane %v1519_v33, 5  ;;  %v1850_v36 = vrot.slane %v1527_v11, 5  ;;  %v747_v60 = vpop.permute.xlu0 %746 }
 0x143   :  { %v4821_v13 = vsel %vm4304_vm15, %v6080_v32, %v1846_v3  ;;  %v4824_v43 = vrot.slane %v1933_v49, 5  ;;  %v4826_v39 = vrot.slane %v1944_v44, 4  ;;  %v4828_v17 = vrot.slane %v1947_v52, 5  ;;  %v801_v3 = vld [vmem:[#allocation2 + $0x30] sm:$0x4]  ;;  %v6085_v18 = vld [vmem:[#allocation11_spill] sm:$0xff] }
 0x144   :  { %v3479_v25 = vcombine.low %v4581_v24, %v4764_v8  ;;  %v1586_v21 = vrot.slane %v1584_v37, 5  ;;  %v1698_v50 = vrot.slane %v1696_v61, 5  ;;  %v6081_v20 = vrot.slane %v4556_v58, 9  ;;  %v4861_v11 = vld [vmem:[#allocation2 + $0x14] sm:$0x1] }
 0x145   :  { %v6082_v29 = vrot.slane %v4564_v19, 9  ;;  %v805_v44 = vsel %vm4169_vm3, %v749_v59, %v804_v62  ;;  %v802_v52 = vsel %vm4169_vm3, %v747_v60, %v801_v3  ;;  %v6083_v58 = vcombine.low %v4409_v34, %v4552_v7  ;;  %v4863_v32 = vld [vmem:[#allocation2 + $0x1c] sm:$0x1]  ;;  %v828_v37 = vld [vmem:[#allocation2 + $0x88] sm:$0x4]  ;;  %v765_v60 = vpop.permute.xlu1 %764 }
 0x146   :  { %v4838_v41 = vsel %vm4304_vm15, %v6081_v20, %v1818_v4  ;;  %v6086_v10 = vcombine.low %v6084_v47, %v6085_v18  ;;  %v4858_v19 = vrot.slane %v2042_v40, 4  ;;  %v2045_v33 = vshll.u32 %v4785_v2, 16  ;;  %806 = vst [vmem:[#allocation2 + $0x38] sm:$0x4] %v805_v44  ;;  %803 = vst [vmem:[#allocation2 + $0x30] sm:$0x4] %v802_v52 }
 0x147   :  { %v4844_v49 = vsel %vm4304_vm15, %v6082_v29, %v1850_v36  ;;  %2399 = vrot.lane.b32.xlu0 %v6083_v58, %s3674_s30  ;;  %v1587_v34 = vsel %vm4288_vm12, %v4725_v31, %v1586_v21  ;;  %v1699_v7 = vsel %vm4288_vm12, %v4748_v9, %v1698_v50  ;;  %v3471_v40 = vcombine.low %v4799_v57, %v4838_v41  ;;  %v4874_v4 = vld [vmem:[#allocation2 + $0x64] sm:$0x1]  ;;  %v825_v36 = vld [vmem:[#allocation2 + $0x80] sm:$0x4]  ;;  %v4886_v3 = vld [vmem:[#allocation2 + $0x6c] sm:$0x1]  ;;  %v763_v21 = vpop.permute.xlu0 %762 }
 0x148   :  { %2405 = vrot.lane.b32.xlu1 %v6086_v10, %s3674_s30  ;;  %v2056_v61 = vshrl.u32 %v4832_v63, 16  ;;  %v3463_v62 = vcombine.low %v1573_v12, %v1587_v34  ;;  %v4881_v59 = vcombine.low %v1685_v23, %v1699_v7  ;;  %v3475_v31 = vcombine.low %v4821_v13, %v4844_v49  ;;  %v5025_v57 = vld [vmem:[#allocation2 + $0x20] sm:$0xe]  ;;  %v634_v41 = vld [vmem:[#allocation2 + $0x90] sm:$0x2] }
 0x149   :  { %v2059_v9 = vshll.u32 %v4832_v63, 16  ;;  %v4888_v50 = vrot.slane %v2045_v33, 5  ;;  %v1911_v29 = vshll.u32 %v4861_v11, 16  ;;  %v1925_v6 = vshll.u32 %v4863_v32, 16 }
 0x14a   :  { %v4890_v20 = vrot.slane %v2056_v61, 4  ;;  %v829_v12 = vsel %vm4169_vm3, %v765_v60, %v828_v37  ;;  %v826_v23 = vsel %vm4169_vm3, %v763_v21, %v825_v36  ;;  %v6087_v44 = vcombine.low %v4432_v54, %v4554_v46  ;;  %v4910_v37 = vld [vmem:[#allocation2 + $0x68] sm:$0xe]  ;;  %v946_v61 = vpop.permute.xlu1 %945  ;;  %v998_v36 = vld [vmem:[#allocation2 + $0x30] sm:$0x8] }
 0x14b   :  { %2437 = vrot.lane.b32.xlu0 %v4727_v56, %s3675_s6  ;;  %v3483_v52 = vcombine.low %v4785_v2, %v4832_v63  ;;  %v2023_v58 = vshll.u32 %v4874_v4, 16  ;;  %830 = vst [vmem:[#allocation2 + $0x88] sm:$0x4] %v829_v12  ;;  %827 = vst [vmem:[#allocation2 + $0x80] sm:$0x4] %v826_v23  ;;  %v2061_v47 = vrot.slane %v2059_v9, 5  ;;  %v1936_v54 = vor.u32 %v4824_v43, %v4803_v53  ;;  %v944_v60 = vpop.permute.xlu0 %943 }
 0x14c   :  { %2407 = vrot.lane.b32.xlu1 %v6087_v44, %s3674_s30  ;;  %v1913_v18 = vrot.slane %v1911_v29, 5  ;;  %v1927_v10 = vrot.slane %v1925_v6, 5  ;;  %v2037_v33 = vshll.u32 %v4886_v3, 16  ;;  %v1001_v56 = vld [vmem:[#allocation2 + $0x38] sm:$0x8]  ;;  %v1939_v46 = vshll.u32 %v4894_v38, 16 }
 0x14d   :  { %v2025_v34 = vrot.slane %v2023_v58, 5  ;;  %v1950_v7 = vor.u32 %v4828_v17, %v4826_v39  ;;  %v6088_v29 = vor.u32 %v4529_v55, %v4525_v35  ;;  %v4926_v6 = vld [vmem:[#allocation2 + $0x74] sm:$0x1]  ;;  %v1002_v39 = vsel %vm4204_vm6, %v946_v61, %v1001_v56  ;;  %v1025_v55 = vld [vmem:[#allocation2 + $0x88] sm:$0x8] }
 0x14e   :  { %v1914_v9 = vsel %vm4288_vm12, %v4539_v51, %v1913_v18  ;;  %v1928_v21 = vsel %vm4288_vm12, %v4566_v14, %v1927_v10  ;;  %v2039_v43 = vrot.slane %v2037_v33, 5  ;;  %v999_v17 = vsel %vm4204_vm6, %v944_v60, %v998_v36  ;;  %1003 = vst [vmem:[#allocation2 + $0x38] sm:$0x8] %v1002_v39  ;;  %v1022_v14 = vld [vmem:[#allocation2 + $0x80] sm:$0x8]  ;;  %v6089_v23 = vld [vmem:[#allocation28_spill] sm:$0xff]  ;;  %v962_v33 = vpop.permute.xlu1 %961 }
 0x14f   :  { %v2035_v53 = vrot.slane %v6088_v29, 4  ;;  %2439 = vrot.lane.b32.xlu0 %v3463_v62, %s3675_s6  ;;  %v2048_v51 = vor.u32 %v4888_v50, %v4858_v19  ;;  %v3423_v35 = vrot.slane %v4910_v37, 9  ;;  %1000 = vst [vmem:[#allocation2 + $0x30] sm:$0x8] %v999_v17  ;;  %v4938_v12 = vcombine.low %v1914_v9, %v1928_v21  ;;  %v1131_v10 = vld [vmem:[#allocation2 + $0x20] sm:$0xf]  ;;  %v960_v37 = vpop.permute.xlu0 %959 }
 0x150   :  { %2445 = vrot.lane.b32.xlu1 %v4742_v26, %s3675_s6  ;;  %v2026_v44 = vsel %vm4288_vm12, %v6089_v23, %v2025_v34  ;;  %v4945_v58 = vrot.slane %v1936_v54, 4  ;;  %v4947_v62 = vrot.slane %v1939_v46, 5  ;;  %v4949_v19 = vrot.slane %v1950_v7, 4  ;;  %v1115_v56 = vld [vmem:[#allocation2 + $0x7c] sm:$0x1]  ;;  %v6090_v9 = vld [vmem:[#allocation25_spill] sm:$0xff] }
 0x151   :  { %v2040_v26 = vsel %vm4288_vm12, %v2035_v53, %v2039_v43  ;;  %v2051_v50 = vshll.u32 %v4926_v6, 16  ;;  %v2062_v18 = vor.u32 %v2061_v47, %v4890_v20  ;;  %v1091_v61 = vld [vmem:[#allocation2 + $0x2c] sm:$0x1]  ;;  %v2175_v34 = vrot.slane %v4861_v11, 5  ;;  %v1132_v60 = vld [vmem:[#allocation2 + $0x28] sm:$0xf] }
 0x152   :  { %v4953_v36 = vcombine.low %v2026_v44, %v2040_v26  ;;  %v2179_v54 = vrot.slane %v4863_v32, 5  ;;  %v2207_v46 = vrot.slane %v4874_v4, 5  ;;  %v1026_v7 = vsel %vm4204_vm6, %v962_v33, %v1025_v55  ;;  %v4972_v4 = vld [vmem:[#allocation2 + $0x24] sm:$0x1]  ;;  %v6092_v29 = vld [vmem:[#allocation26_spill] sm:$0xff]  ;;  %v1056_v26 = vpop.permute.xlu1 %1055 }
 0x153   :  { %v1023_v20 = vsel %vm4204_vm6, %v960_v37, %v1022_v14  ;;  %2477 = vrot.lane.b32.xlu0 %v3470_v27, %s3676_s7  ;;  %v4968_v11 = vrot.slane %v2048_v51, 4  ;;  %v4970_v32 = vrot.slane %v2051_v50, 5  ;;  %1027 = vst [vmem:[#allocation2 + $0x88] sm:$0x8] %v1026_v7  ;;  %v4974_v47 = vrot.slane %v2062_v18, 4  ;;  %v6094_v51 = vld [vmem:[#allocation27_spill] sm:$0xff]  ;;  %v1040_v50 = vpop.permute.xlu0 %1039 }
 0x154   :  { %2447 = vrot.lane.b32.xlu1 %v4881_v59, %s3675_s6  ;;  %1024 = vst [vmem:[#allocation2 + $0x80] sm:$0x8] %v1023_v20  ;;  %v6091_v21 = vrot.slane %v6090_v9, 9  ;;  %v6093_v53 = vrot.slane %v6092_v29, 9  ;;  %v2211_v16 = vrot.slane %v4886_v3, 5  ;;  %v1942_v17 = vsel %vm4288_vm12, %v4945_v58, %v4947_v62 }
 0x155   :  { %v1139_v27 = vld [vmem:[#allocation2 + $0x70] sm:$0xf]  ;;  %v1140_v43 = vld [vmem:[#allocation2 + $0x78] sm:$0xf]  ;;  %v4989_v39 = vld [vmem:[#allocation2 + $0x74] sm:$0x1]  ;;  %v2054_v3 = vsel %vm4288_vm12, %v4968_v11, %v4970_v32 }
 0x156   :  { %v4980_v59 = vsel %vm4304_vm15, %v6091_v21, %v2175_v34  ;;  %v4986_v1 = vsel %vm4304_vm15, %v6093_v53, %v2179_v54  ;;  %v6095_v55 = vrot.slane %v6094_v51, 9  ;;  %v1218_v23 = vshrl.u32 %v1131_v10, 16  ;;  %v610_v9 = vld [vmem:[#allocation2 + $0x40] sm:$0x2] }
 0x157   :  { %v1221_v44 = vshll.u32 %v1131_v10, 16  ;;  %v1227_v18 = vshll.u32 %v4972_v4, 16  ;;  %v1232_v33 = vshrl.u32 %v1132_v60, 16  ;;  %v1235_v37 = vshll.u32 %v1132_v60, 16  ;;  %2479 = vrot.lane.b32.xlu0 %v3471_v40, %s3676_s7  ;;  %v570_v40 = vpop.permute.xlu1 %569  ;;  %v554_v21 = vpop.permute.xlu0 %553  ;;  %v1389_v32 = vld [vmem:[#allocation2 + $0x20] sm:$0xe] }
 0x158   :  { %v4999_v14 = vsel %vm4304_vm15, %v6095_v55, %v2207_v46  ;;  %v1116_v34 = vsel %vm3844_vm2, %v1056_v26, %v1115_v56  ;;  %v1092_v54 = vsel %vm3844_vm2, %v1040_v50, %v1091_v61  ;;  %2485 = vrot.lane.b32.xlu1 %v3474_v0, %s3676_s7  ;;  %v3494_v10 = vcombine.low %v4980_v59, %v4986_v1  ;;  %v6096_v55 = vld [vmem:[#allocation18_spill] sm:$0xff] }
 0x159   :  { %v1220_v46 = vrot.slane %v1218_v23, 4  ;;  %1117 = vst [vmem:[#allocation2 + $0x7c] sm:$0x1] %v1116_v34  ;;  %1093 = vst [vmem:[#allocation2 + $0x2c] sm:$0x1] %v1092_v54  ;;  %v5022_v56 = vsel %vm4304_vm15, %v3423_v35, %v2211_v16  ;;  %v1223_v61 = vrot.slane %v1221_v44, 5  ;;  %v635_v16 = vsel %vm4136_vm0, %v570_v40, %v634_v41 }
 0x15a   :  { %v1234_v60 = vrot.slane %v1232_v33, 4  ;;  %v1237_v7 = vrot.slane %v1235_v37, 5  ;;  %v1330_v42 = vshrl.u32 %v1139_v27, 16  ;;  %v1333_v45 = vshll.u32 %v1139_v27, 16  ;;  %v6097_v23 = vld [vmem:[#allocation22_spill] sm:$0xff] }
 0x15b   :  { %v1339_v0 = vshll.u32 %v4989_v39, 16  ;;  %v1344_v20 = vshrl.u32 %v1140_v43, 16  ;;  %v1224_v29 = vor.u32 %v1223_v61, %v1220_v46  ;;  %v5027_v53 = vrot.slane %v1227_v18, 5  ;;  %v5041_v18 = vld [vmem:[#allocation2 + $0x70] sm:$0xe] }
 0x15c   :  { %v1238_v51 = vor.u32 %v1237_v7, %v1234_v60  ;;  %v1347_v35 = vshll.u32 %v1140_v43, 16  ;;  %v611_v27 = vsel %vm4136_vm0, %v554_v21, %v610_v9  ;;  %2487 = vrot.lane.b32.xlu1 %v3475_v31, %s3676_s7  ;;  %v6098_v44 = vcombine.low %v6096_v55, %v6097_v23  ;;  %v2128_v43 = vld [vmem:[#allocation2 + $0x28] sm:$0xe]  ;;  %636 = vst [vmem:[#allocation2 + $0x90] sm:$0x2] %v635_v16  ;;  %v767_v60 = vpop.permute.xlu1 %766  ;;  %v751_v7 = vpop.permute.xlu0 %750  ;;  %v6099_v9 = vld [vmem:[#allocation23_spill] sm:$0xff] }
 0x15d   :  { %v1332_v26 = vrot.slane %v1330_v42, 4  ;;  %v1335_v50 = vrot.slane %v1333_v45, 5  ;;  %612 = vst [vmem:[#allocation2 + $0x40] sm:$0x2] %v611_v27  ;;  %v3498_v33 = vcombine.low %v4999_v14, %v5022_v56  ;;  %v5045_v37 = vrot.slane %v1224_v29, 4  ;;  %v6100_v21 = vld [vmem:[#allocation24_spill] sm:$0xff] }
 0x15e   :  { %2533 = vrot.lane.b32.xlu0 %v6098_v44, %s3677_s8  ;;  %v1346_v13 = vrot.slane %v1344_v20, 4  ;;  %v3416_v49 = vrot.slane %v5025_v57, 9  ;;  %v807_v31 = vld [vmem:[#allocation2 + $0x40] sm:$0x4]  ;;  %v5048_v34 = vrot.slane %v1238_v51, 4  ;;  %v5050_v46 = vrot.slane %v1339_v0, 5 }
 0x15f   :  { %v1336_v54 = vor.u32 %v1335_v50, %v1332_v26  ;;  %v1349_v61 = vrot.slane %v1347_v35, 5  ;;  %v1230_v42 = vsel %vm4288_vm12, %v5045_v37, %v5027_v53  ;;  %v2183_v45 = vrot.slane %v4894_v38, 5  ;;  %v5057_v20 = vld [vmem:[#allocation2 + $0x78] sm:$0xe]  ;;  %v1028_v44 = vld [vmem:[#allocation2 + $0x90] sm:$0x8] }
 0x160   :  { %v3417_v41 = vrot.slane %v2128_v43, 9  ;;  %v3424_v57 = vrot.slane %v5041_v18, 9  ;;  %v832_v40 = vsel %vm4169_vm3, %v767_v60, %v831_v48  ;;  %v808_v0 = vsel %vm4169_vm3, %v751_v7, %v807_v31  ;;  %v1888_v38 = vld [vmem:[#allocation2 + $0x2c] sm:$0x1]  ;;  %v5072_v53 = vld [vmem:[#allocation2 + $0x7c] sm:$0x1]  ;;  %v964_v50 = vpop.permute.xlu1 %963  ;;  %v948_v48 = vpop.permute.xlu0 %947 }
 0x161   :  { %v6101_v29 = vcombine.low %v6099_v9, %v6100_v21  ;;  %v5074_v51 = vld [vmem:[#allocation2 + $0x2c] sm:$0x1]  ;;  %v1350_v35 = vor.u32 %v1349_v61, %v1346_v13  ;;  %833 = vst [vmem:[#allocation2 + $0x90] sm:$0x4] %v832_v40  ;;  %809 = vst [vmem:[#allocation2 + $0x40] sm:$0x4] %v808_v0  ;;  %v1029_v60 = vsel %vm4204_vm6, %v964_v50, %v1028_v44 }
 0x162   :  { %2535 = vrot.lane.b32.xlu0 %v3479_v25, %s3677_s8  ;;  %v1953_v15 = vshll.u32 %v1888_v38, 16  ;;  %v2065_v16 = vshll.u32 %v5072_v53, 16  ;;  %v1241_v27 = vshll.u32 %v5074_v51, 16  ;;  %v5078_v55 = vld [vmem:[#allocation2 + $0x7c] sm:$0x1]  ;;  %v2215_v23 = vrot.slane %v4926_v6, 5 }
 0x163   :  { %2541 = vrot.lane.b32.xlu1 %v6101_v29, %s3677_s8  ;;  %v5081_v24 = vrot.slane %v1336_v54, 4  ;;  %v1353_v8 = vshll.u32 %v5078_v55, 16  ;;  %v2187_v25 = vrot.slane %v1888_v38, 5  ;;  %v3425_v26 = vrot.slane %v5057_v20, 9  ;;  %v1004_v43 = vld [vmem:[#allocation2 + $0x40] sm:$0x8] }
 0x164   :  { %v1955_v37 = vrot.slane %v1953_v15, 5  ;;  %v2067_v13 = vrot.slane %v2065_v16, 5  ;;  %v1243_v31 = vrot.slane %v1241_v27, 5  ;;  %v5085_v61 = vrot.slane %v1350_v35, 4  ;;  %v1133_v20 = vld [vmem:[#allocation2 + $0x30] sm:$0xf] }
 0x165   :  { %v1005_v6 = vsel %vm4204_vm6, %v948_v48, %v1004_v43  ;;  %v5097_v54 = vrot.slane %v1353_v8, 5  ;;  %v5101_v7 = vsel %vm4304_vm15, %v3417_v41, %v2187_v25  ;;  %1030 = vst [vmem:[#allocation2 + $0x90] sm:$0x8] %v1029_v60  ;;  %v1094_v40 = vld [vmem:[#allocation2 + $0x34] sm:$0x1]  ;;  %v2219_v62 = vrot.slane %v5072_v53, 5 }
 0x166   :  { %2573 = vrot.lane.b32.xlu0 %v4938_v12, %s3678_s9  ;;  %1006 = vst [vmem:[#allocation2 + $0x40] sm:$0x8] %v1005_v6  ;;  %v1956_v2 = vsel %vm4288_vm12, %v4949_v19, %v1955_v37  ;;  %v2068_v63 = vsel %vm4288_vm12, %v4974_v47, %v2067_v13  ;;  %v5114_v12 = vsel %vm4304_vm15, %v3416_v49, %v2183_v45  ;;  %v1134_v41 = vld [vmem:[#allocation2 + $0x38] sm:$0xf]  ;;  %v1042_v45 = vpop.permute.xlu0 %1041  ;;  %v1121_v9 = vld [vmem:[#allocation2 + $0x8c] sm:$0x1] }
 0x167   :  { %2543 = vrot.lane.b32.xlu1 %v3483_v52, %s3677_s8  ;;  %v1244_v52 = vsel %vm4288_vm12, %v5048_v34, %v1243_v31  ;;  %v3487_v0 = vcombine.low %v1942_v17, %v1956_v2  ;;  %v3491_v19 = vcombine.low %v2054_v3, %v2068_v63  ;;  %v1342_v47 = vsel %vm4288_vm12, %v5081_v24, %v5050_v46  ;;  %v1044_v34 = vpop.permute.xlu1 %1043  ;;  %v1390_v29 = vld [vmem:[#allocation2 + $0x28] sm:$0xe]  ;;  %v1141_v38 = vld [vmem:[#allocation2 + $0x80] sm:$0xf]  ;;  %v1118_v53 = vld [vmem:[#allocation2 + $0x84] sm:$0x1] }
 0x168   :  { %v3495_v49 = vcombine.low %v5114_v12, %v5101_v7  ;;  %v3440_v21 = vcombine.low %v1230_v42, %v1244_v52  ;;  %v1356_v58 = vsel %vm4288_vm12, %v5085_v61, %v5097_v54  ;;  %v1246_v11 = vshrl.u32 %v1133_v20, 16  ;;  %v1142_v27 = vld [vmem:[#allocation2 + $0x88] sm:$0xf]  ;;  %v1391_v31 = vld [vmem:[#allocation2 + $0x30] sm:$0xe] }
 0x169   :  { %v1098_v17 = vsel %vm3844_vm2, %v1044_v34, %v1097_v30  ;;  %v1095_v3 = vsel %vm3844_vm2, %v1042_v45, %v1094_v40  ;;  %v1249_v46 = vshll.u32 %v1133_v20, 16  ;;  %v1260_v42 = vshrl.u32 %v1134_v41, 16  ;;  %v1100_v61 = vld [vmem:[#allocation2 + $0x44] sm:$0x1]  ;;  %v1397_v40 = vld [vmem:[#allocation2 + $0x70] sm:$0xe] }
 0x16a   :  { %2575 = vrot.lane.b32.xlu0 %v3487_v0, %s3678_s9  ;;  %1099 = vst [vmem:[#allocation2 + $0x3c] sm:$0x1] %v1098_v17  ;;  %1096 = vst [vmem:[#allocation2 + $0x34] sm:$0x1] %v1095_v3  ;;  %v5148_v35 = vsel %vm4304_vm15, %v3424_v57, %v2215_v23  ;;  %v5152_v15 = vsel %vm4304_vm15, %v3425_v26, %v2219_v62  ;;  %v1263_v16 = vshll.u32 %v1134_v41, 16  ;;  %v3386_v8 = vrot.slane %v1389_v32, 9  ;;  %v1058_v43 = vpop.permute.xlu0 %1057 }
 0x16b   :  { %2581 = vrot.lane.b32.xlu1 %v4953_v36, %s3678_s9  ;;  %v1248_v36 = vrot.slane %v1246_v11, 4  ;;  %v1251_v44 = vrot.slane %v1249_v46, 5  ;;  %v1262_v24 = vrot.slane %v1260_v42, 4  ;;  %v1454_v25 = vrot.slane %v4972_v4, 5  ;;  %v1060_v50 = vpop.permute.xlu1 %1059  ;;  %v1398_v42 = vld [vmem:[#allocation2 + $0x78] sm:$0xe] }
 0x16c   :  { %v1265_v48 = vrot.slane %v1263_v16, 5  ;;  %v3387_v18 = vrot.slane %v1390_v29, 9  ;;  %v1458_v37 = vrot.slane %v5074_v51, 5  ;;  %v1358_v57 = vshrl.u32 %v1141_v38, 16  ;;  %v1124_v51 = vld [vmem:[#allocation2 + $0x94] sm:$0x1] }
 0x16d   :  { %v1122_v23 = vsel %vm3844_vm2, %v1060_v50, %v1121_v9  ;;  %v1119_v26 = vsel %vm3844_vm2, %v1058_v43, %v1118_v53  ;;  %v1252_v4 = vor.u32 %v1251_v44, %v1248_v36  ;;  %v1361_v13 = vshll.u32 %v1141_v38, 16  ;;  %v5203_v12 = vld [vmem:[#allocation2 + $0x30] sm:$0xf] }
 0x16e   :  { %2613 = vrot.lane.b32.xlu0 %v3494_v10, %s3679_s10  ;;  %1123 = vst [vmem:[#allocation2 + $0x8c] sm:$0x1] %v1122_v23  ;;  %1120 = vst [vmem:[#allocation2 + $0x84] sm:$0x1] %v1119_v26  ;;  %v3444_v60 = vcombine.low %v1342_v47, %v1356_v58  ;;  %v3499_v6 = vcombine.low %v5148_v35, %v5152_v15  ;;  %v1266_v54 = vor.u32 %v1265_v48, %v1262_v24  ;;  %v1046_v63 = vpop.permute.xlu0 %1045  ;;  %v5185_v35 = vld [vmem:[#allocation2 + $0x28] sm:$0xf] }
 0x16f   :  { %2583 = vrot.lane.b32.xlu1 %v3491_v19, %s3678_s9  ;;  %v1360_v20 = vrot.slane %v1358_v57, 4  ;;  %v5169_v30 = vsel %vm4304_vm15, %v3386_v8, %v1454_v25  ;;  %v5173_v59 = vsel %vm4304_vm15, %v3387_v18, %v1458_v37  ;;  %v1363_v1 = vrot.slane %v1361_v13, 5  ;;  %v1062_v2 = vpop.permute.xlu1 %1061  ;;  %v1392_v19 = vld [vmem:[#allocation2 + $0x38] sm:$0xe]  ;;  %v1399_v23 = vld [vmem:[#allocation2 + $0x80] sm:$0xe] }
 0x170   :  { %v1372_v10 = vshrl.u32 %v1142_v27, 16  ;;  %v1253_v52 = vrot.slane %v1252_v4, 4  ;;  %v1267_v41 = vrot.slane %v1266_v54, 4  ;;  %v1375_v0 = vshll.u32 %v1142_v27, 16 }
 0x171   :  { %v3388_v47 = vrot.slane %v1391_v31, 9  ;;  %v1125_v34 = vsel %vm3844_vm2, %v1062_v2, %v1124_v51  ;;  %v1101_v45 = vsel %vm3844_vm2, %v1046_v63, %v1100_v61  ;;  %v1149_v9 = vld [vmem:[#allocation2 + $0x34] sm:$0x1]  ;;  %v1150_v58 = vld [vmem:[#allocation2 + $0x3c] sm:$0x1]  ;;  %v1364_v62 = vor.u32 %v1363_v1, %v1360_v20 }
 0x172   :  { %2305 = vrot.lane.b32.xlu0 %v3440_v21, %s3672_s28  ;;  %v1374_v11 = vrot.slane %v1372_v10, 4  ;;  %1126 = vst [vmem:[#allocation2 + $0x94] sm:$0x1] %v1125_v34  ;;  %1102 = vst [vmem:[#allocation2 + $0x44] sm:$0x1] %v1101_v45  ;;  %v1255_v32 = vshll.u32 %v1149_v9, 16  ;;  %v3448_v15 = vcombine.low %v5169_v30, %v5173_v59 }
 0x173   :  { %2621 = vrot.lane.b32.xlu1 %v3498_v33, %s3679_s10  ;;  %v1269_v17 = vshll.u32 %v1150_v58, 16  ;;  %v1377_v3 = vrot.slane %v1375_v0, 5  ;;  %v1462_v46 = vrot.slane %v1149_v9, 5  ;;  %v1365_v5 = vrot.slane %v1364_v62, 4  ;;  %v1400_v51 = vld [vmem:[#allocation2 + $0x88] sm:$0xe] }
 0x174   :  { %v3389_v29 = vrot.slane %v1392_v19, 9  ;;  %v1466_v38 = vrot.slane %v1150_v58, 5  ;;  %v1486_v53 = vrot.slane %v4989_v39, 5  ;;  %v1257_v14 = vrot.slane %v1255_v32, 5  ;;  %v5214_v61 = vld [vmem:[#allocation2 + $0x78] sm:$0xf] }
 0x175   :  { %v1271_v56 = vrot.slane %v1269_v17, 5  ;;  %v1378_v33 = vor.u32 %v1377_v3, %v1374_v11  ;;  %v3394_v21 = vrot.slane %v1397_v40, 9  ;;  %v1157_v36 = vld [vmem:[#allocation2 + $0x84] sm:$0x1]  ;;  %v1158_v16 = vld [vmem:[#allocation2 + $0x8c] sm:$0x1]  ;;  %v1463_v39 = vsel %vm4304_vm15, %v3388_v47, %v1462_v46 }
 0x176   :  { %2615 = vrot.lane.b32.xlu0 %v3495_v49, %s3679_s10  ;;  %v3395_v27 = vrot.slane %v1398_v42, 9  ;;  %v1490_v44 = vrot.slane %v5078_v55, 5  ;;  %v1258_v24 = vsel %vm4288_vm12, %v1253_v52, %v1257_v14  ;;  %v1367_v25 = vshll.u32 %v1157_v36, 16  ;;  %v5223_v30 = vld [vmem:[#allocation2 + $0x80] sm:$0xf] }
 0x177   :  { %2313 = vrot.lane.b32.xlu1 %v3444_v60, %s3672_s28  ;;  %v1272_v8 = vsel %vm4288_vm12, %v1267_v41, %v1271_v56  ;;  %v1467_v7 = vsel %vm4304_vm15, %v3389_v29, %v1466_v38  ;;  %v1381_v50 = vshll.u32 %v1158_v16, 16  ;;  %v1487_v43 = vsel %vm4304_vm15, %v3394_v21, %v1486_v53  ;;  %v5229_v2 = vld [vmem:[#allocation2 + $0x38] sm:$0xf]  ;;  %v5232_v19 = vld [vmem:[#allocation2 + $0x40] sm:$0xf] }
 0x178   :  { %v3441_v49 = vcombine.low %v1258_v24, %v1272_v8  ;;  %v1491_v55 = vsel %vm4304_vm15, %v3395_v27, %v1490_v44  ;;  %v1369_v48 = vrot.slane %v1367_v25, 5  ;;  %v1379_v18 = vrot.slane %v1378_v33, 4  ;;  %v5234_v47 = vld [vmem:[#allocation2 + $0x88] sm:$0xf]  ;;  %v5242_v62 = vld [vmem:[#allocation2 + $0x90] sm:$0xf] }
 0x179   :  { %v1589_v37 = vshrl.u32 %v5185_v35, 16  ;;  %v1592_v57 = vshll.u32 %v5185_v35, 16  ;;  %v1383_v26 = vrot.slane %v1381_v50, 5  ;;  %v3449_v4 = vcombine.low %v1463_v39, %v1467_v7  ;;  %v5252_v33 = vld [vmem:[#allocation2 + $0x2c] sm:$0x1] }
 0x17a   :  { %2307 = vrot.lane.b32.xlu0 %v3441_v49, %s3672_s28  ;;  %v3452_v13 = vcombine.low %v1487_v43, %v1491_v55  ;;  %v1603_v31 = vshrl.u32 %v5203_v12, 16  ;;  %v1370_v60 = vsel %vm4288_vm12, %v1365_v5, %v1369_v48  ;;  %v1606_v20 = vshll.u32 %v5203_v12, 16  ;;  %v5265_v8 = vld [vmem:[#allocation2 + $0x34] sm:$0x1]  ;;  %v5269_v50 = vld [vmem:[#allocation2 + $0x84] sm:$0x1] }
 0x17b   :  { %2623 = vrot.lane.b32.xlu1 %v3499_v6, %s3679_s10  ;;  %v5218_v54 = vrot.slane %v1589_v37, 4  ;;  %v3456_v6 = vcombine.low %v5185_v35, %v5203_v12  ;;  %v1384_v59 = vsel %vm4288_vm12, %v1379_v18, %v1383_v26  ;;  %v5227_v1 = vrot.slane %v1592_v57, 5 }
 0x17c   :  { %v3396_v10 = vrot.slane %v1399_v23, 9  ;;  %v1494_v40 = vrot.slane %v1157_v36, 5  ;;  %v3445_v63 = vcombine.low %v1370_v60, %v1384_v59  ;;  %v3397_v52 = vrot.slane %v1400_v51, 9  ;;  %v5281_v60 = vld [vmem:[#allocation2 + $0x44] sm:$0x1] }
 0x17d   :  { %v1498_v41 = vrot.slane %v1158_v16, 5  ;;  %v1701_v0 = vshrl.u32 %v5214_v61, 16  ;;  %v1704_v45 = vshll.u32 %v5214_v61, 16  ;;  %v1715_v9 = vshrl.u32 %v5223_v30, 16  ;;  %v5259_v16 = vld [vmem:[#allocation2 + $0x7c] sm:$0x1] }
 0x17e   :  { %2345 = vrot.lane.b32.xlu0 %v3448_v15, %s3673_s29  ;;  %v1495_v34 = vsel %vm4304_vm15, %v3396_v10, %v1494_v40  ;;  %v1718_v58 = vshll.u32 %v5223_v30, 16  ;;  %v1605_v11 = vrot.slane %v1603_v31, 4  ;;  %v1608_v32 = vrot.slane %v1606_v20, 5 }
 0x17f   :  { %2315 = vrot.lane.b32.xlu1 %v3445_v63, %s3672_s28  ;;  %v1499_v17 = vsel %vm4304_vm15, %v3397_v52, %v1498_v41  ;;  %v1617_v3 = vshrl.u32 %v5229_v2, 16  ;;  %v1703_v42 = vrot.slane %v1701_v0, 4  ;;  %v1706_v5 = vrot.slane %v1704_v45, 5  ;;  %v5290_v0 = vld [vmem:[#allocation2 + $0x8c] sm:$0x1] }
 0x180   :  { %v3453_v46 = vcombine.low %v1495_v34, %v1499_v17  ;;  %v3460_v29 = vcombine.low %v5214_v61, %v5223_v30  ;;  %v1717_v38 = vrot.slane %v1715_v9, 4  ;;  %v1720_v53 = vrot.slane %v1718_v58, 5  ;;  %v1760_v17 = vld [vmem:[#allocation2 + $0x28] sm:$0xe] }
 0x181   :  { %v1620_v14 = vshll.u32 %v5229_v2, 16  ;;  %v1631_v56 = vshrl.u32 %v5232_v19, 16  ;;  %v1634_v21 = vshll.u32 %v5232_v19, 16  ;;  %v1729_v35 = vshrl.u32 %v5234_v47, 16 }
 0x182   :  { %2347 = vrot.lane.b32.xlu0 %v3449_v4, %s3673_s29  ;;  %v1732_v15 = vshll.u32 %v5234_v47, 16  ;;  %v1743_v36 = vshrl.u32 %v5242_v62, 16  ;;  %v1619_v39 = vrot.slane %v1617_v3, 4  ;;  %v3457_v44 = vcombine.low %v5229_v2, %v5232_v19  ;;  %v5277_v4 = vld [vmem:[#allocation2 + $0x3c] sm:$0x1] }
 0x183   :  { %2353 = vrot.lane.b32.xlu1 %v3452_v13, %s3673_s29  ;;  %v1622_v27 = vrot.slane %v1620_v14, 5  ;;  %v1746_v24 = vshll.u32 %v5242_v62, 16  ;;  %v1633_v25 = vrot.slane %v1631_v56, 4  ;;  %v1636_v7 = vrot.slane %v1634_v21, 5  ;;  %v5292_v19 = vld [vmem:[#allocation2 + $0x94] sm:$0x1] }
 0x184   :  { %v1731_v12 = vrot.slane %v1729_v35, 4  ;;  %v3461_v49 = vcombine.low %v5234_v47, %v5242_v62  ;;  %v1734_v43 = vrot.slane %v1732_v15, 5  ;;  %v1595_v55 = vor.u32 %v5227_v1, %v5218_v54  ;;  %v1768_v21 = vld [vmem:[#allocation2 + $0x78] sm:$0xe] }
 0x185   :  { %v1598_v48 = vshll.u32 %v5252_v33, 16  ;;  %v1609_v18 = vor.u32 %v1608_v32, %v1605_v11  ;;  %v1745_v37 = vrot.slane %v1743_v36, 4  ;;  %v1612_v57 = vshll.u32 %v5265_v8, 16 }
 0x186   :  { %2401 = vrot.lane.b32.xlu0 %v3456_v6, %s3674_s30  ;;  %v1710_v23 = vshll.u32 %v5259_v16, 16  ;;  %v1721_v26 = vor.u32 %v1720_v53, %v1717_v38  ;;  %v1748_v13 = vrot.slane %v1746_v24, 5  ;;  %v1707_v51 = vor.u32 %v1706_v5, %v1703_v42 }
 0x187   :  { %2355 = vrot.lane.b32.xlu1 %v3453_v46, %s3673_s29  ;;  %v1600_v31 = vrot.slane %v1598_v48, 5  ;;  %v1724_v61 = vshll.u32 %v5269_v50, 16  ;;  %v1596_v54 = vrot.slane %v1595_v55, 4  ;;  %v1610_v20 = vrot.slane %v1609_v18, 4  ;;  %v1763_v48 = vld [vmem:[#allocation2 + $0x40] sm:$0xe] }
 0x188   :  { %v1614_v6 = vrot.slane %v1612_v57, 5  ;;  %v1712_v30 = vrot.slane %v1710_v23, 5  ;;  %v1722_v59 = vrot.slane %v1721_v26, 4  ;;  %v1623_v10 = vor.u32 %v1622_v27, %v1619_v39  ;;  %v1769_v27 = vld [vmem:[#allocation2 + $0x80] sm:$0xe] }
 0x189   :  { %v1726_v1 = vrot.slane %v1724_v61, 5  ;;  %v1626_v40 = vshll.u32 %v5277_v4, 16  ;;  %v1601_v2 = vsel %vm4288_vm12, %v1596_v54, %v1600_v31  ;;  %v1637_v52 = vor.u32 %v1636_v7, %v1633_v25  ;;  %v1770_v23 = vld [vmem:[#allocation2 + $0x88] sm:$0xe]  ;;  %v1771_v26 = vld [vmem:[#allocation2 + $0x90] sm:$0xe] }
 0x18a   :  { %2403 = vrot.lane.b32.xlu0 %v3457_v44, %s3674_s30  ;;  %v1615_v63 = vsel %vm4288_vm12, %v1610_v20, %v1614_v6  ;;  %v1640_v41 = vshll.u32 %v5281_v60, 16  ;;  %v1708_v34 = vrot.slane %v1707_v51, 4  ;;  %v1624_v58 = vrot.slane %v1623_v10, 4  ;;  %v1873_v61 = vld [vmem:[#allocation2 + $0x30] sm:$0xf] }
 0x18b   :  { %2409 = vrot.lane.b32.xlu1 %v3460_v29, %s3674_s30  ;;  %v3464_v47 = vcombine.low %v1601_v2, %v1615_v63  ;;  %v1727_v45 = vsel %vm4288_vm12, %v1722_v59, %v1726_v1  ;;  %v1628_v9 = vrot.slane %v1626_v40, 5  ;;  %v1638_v62 = vrot.slane %v1637_v52, 4  ;;  %v1761_v29 = vld [vmem:[#allocation2 + $0x30] sm:$0xe]  ;;  %v1874_v59 = vld [vmem:[#allocation2 + $0x38] sm:$0xf] }
 0x18c   :  { %v1642_v11 = vrot.slane %v1640_v41, 5  ;;  %v1735_v32 = vor.u32 %v1734_v43, %v1731_v12  ;;  %v1713_v3 = vsel %vm4288_vm12, %v1708_v34, %v1712_v30  ;;  %v1738_v46 = vshll.u32 %v5290_v0, 16  ;;  %v1762_v12 = vld [vmem:[#allocation2 + $0x38] sm:$0xe]  ;;  %v5334_v52 = vld [vmem:[#allocation2 + $0x80] sm:$0xf] }
 0x18d   :  { %v1749_v42 = vor.u32 %v1748_v13, %v1745_v37  ;;  %v1752_v5 = vshll.u32 %v5292_v19, 16  ;;  %v3468_v38 = vcombine.low %v1713_v3, %v1727_v45  ;;  %v1629_v53 = vsel %vm4288_vm12, %v1624_v58, %v1628_v9  ;;  %v1882_v34 = vld [vmem:[#allocation2 + $0x88] sm:$0xf]  ;;  %v1875_v45 = vld [vmem:[#allocation2 + $0x40] sm:$0xf] }
 0x18e   :  { %2441 = vrot.lane.b32.xlu0 %v3464_v47, %s3675_s6  ;;  %v1643_v14 = vsel %vm4288_vm12, %v1638_v62, %v1642_v11  ;;  %v1822_v56 = vrot.slane %v5252_v33, 5  ;;  %v1740_v35 = vrot.slane %v1738_v46, 5  ;;  %v3402_v39 = vrot.slane %v1760_v17, 9  ;;  %v1876_v46 = vld [vmem:[#allocation2 + $0x48] sm:$0xf] }
 0x18f   :  { %2411 = vrot.lane.b32.xlu1 %v3461_v49, %s3674_s30  ;;  %v1750_v15 = vrot.slane %v1749_v42, 4  ;;  %v1754_v36 = vrot.slane %v1752_v5, 5  ;;  %v3465_v44 = vcombine.low %v1629_v53, %v1643_v14  ;;  %v1736_v24 = vrot.slane %v1735_v32, 4  ;;  %v5344_v53 = vld [vmem:[#allocation2 + $0x90] sm:$0xf] }
 0x190   :  { %v3403_v25 = vrot.slane %v1761_v29, 9  ;;  %v1826_v7 = vrot.slane %v5265_v8, 5  ;;  %v1823_v33 = vsel %vm4304_vm15, %v3402_v39, %v1822_v56  ;;  %v3410_v55 = vrot.slane %v1768_v21, 9 }
 0x191   :  { %v1755_v43 = vsel %vm4288_vm12, %v1750_v15, %v1754_v36  ;;  %v1854_v49 = vrot.slane %v5259_v16, 5  ;;  %v1741_v18 = vsel %vm4288_vm12, %v1736_v24, %v1740_v35  ;;  %v3411_v8 = vrot.slane %v1769_v27, 9  ;;  %v1884_v15 = vld [vmem:[#allocation2 + $0x98] sm:$0xf]  ;;  %v5348_v24 = vld [vmem:[#allocation2 + $0x34] sm:$0x1] }
 0x192   :  { %2443 = vrot.lane.b32.xlu0 %v3465_v44, %s3675_s6  ;;  %v1827_v37 = vsel %vm4304_vm15, %v3403_v25, %v1826_v7  ;;  %v1858_v57 = vrot.slane %v5269_v50, 5  ;;  %v3469_v13 = vcombine.low %v1741_v18, %v1755_v43  ;;  %v3404_v51 = vrot.slane %v1762_v12, 9 }
 0x193   :  { %2449 = vrot.lane.b32.xlu1 %v3468_v38, %s3675_s6  ;;  %v3472_v31 = vcombine.low %v1823_v33, %v1827_v37  ;;  %v1830_v16 = vrot.slane %v5277_v4, 5  ;;  %v1855_v54 = vsel %vm4304_vm15, %v3410_v55, %v1854_v49  ;;  %v3405_v20 = vrot.slane %v1763_v48, 9  ;;  %v5353_v33 = vld [vmem:[#allocation2 + $0x3c] sm:$0x1]  ;;  %v5357_v37 = vld [vmem:[#allocation2 + $0x84] sm:$0x1] }
 0x194   :  { %v1834_v6 = vrot.slane %v5281_v60, 5  ;;  %v1862_v30 = vrot.slane %v5290_v0, 5  ;;  %v1859_v50 = vsel %vm4304_vm15, %v3411_v8, %v1858_v57  ;;  %v3412_v1 = vrot.slane %v1770_v23, 9 }
 0x195   :  { %v3413_v10 = vrot.slane %v1771_v26, 9  ;;  %v1866_v40 = vrot.slane %v5292_v19, 5  ;;  %v1831_v4 = vsel %vm4304_vm15, %v3404_v51, %v1830_v16  ;;  %v1958_v63 = vshrl.u32 %v1873_v61, 16 }
 0x196   :  { %2481 = vrot.lane.b32.xlu0 %v3472_v31, %s3676_s7  ;;  %v1835_v2 = vsel %vm4304_vm15, %v3405_v20, %v1834_v6  ;;  %v1961_v60 = vshll.u32 %v1873_v61, 16  ;;  %v1863_v41 = vsel %vm4304_vm15, %v3412_v1, %v1862_v30  ;;  %v1972_v19 = vshrl.u32 %v1874_v59, 16 }
 0x197   :  { %2451 = vrot.lane.b32.xlu1 %v3469_v13, %s3675_s6  ;;  %v1867_v0 = vsel %vm4304_vm15, %v3413_v10, %v1866_v40  ;;  %v1975_v47 = vshll.u32 %v1874_v59, 16  ;;  %v3476_v9 = vcombine.low %v1855_v54, %v1859_v50  ;;  %v3473_v58 = vcombine.low %v1831_v4, %v1835_v2  ;;  %v5361_v13 = vld [vmem:[#allocation2 + $0x8c] sm:$0x1]  ;;  %v178_v50 = vld [vmem:[#allocation2 + $0x9c] sm:$0x1] }
 0x198   :  { %v3477_v62 = vcombine.low %v1863_v41, %v1867_v0  ;;  %v1960_v11 = vrot.slane %v1958_v63, 4  ;;  %v1963_v32 = vrot.slane %v1961_v60, 5  ;;  %v2070_v17 = vshrl.u32 %v5334_v52, 16  ;;  %v148_v54 = vld [vmem:[#allocation2 + $0x4c] sm:$0x1] }
 0x199   :  { %v2073_v3 = vshll.u32 %v5334_v52, 16  ;;  %v3480_v42 = vcombine.low %v1873_v61, %v1874_v59  ;;  %v2084_v5 = vshrl.u32 %v1882_v34, 16  ;;  %v2087_v29 = vshll.u32 %v1882_v34, 16  ;;  %v5370_v2 = vld [vmem:[#allocation2 + $0x44] sm:$0x1] }
 0x19a   :  { %2483 = vrot.lane.b32.xlu0 %v3473_v58, %s3676_s7  ;;  %v1986_v38 = vshrl.u32 %v1875_v45, 16  ;;  %v1974_v14 = vrot.slane %v1972_v19, 4  ;;  %v1977_v56 = vrot.slane %v1975_v47, 5  ;;  %v1989_v21 = vshll.u32 %v1875_v45, 16 }
 0x19b   :  { %2489 = vrot.lane.b32.xlu1 %v3476_v9, %s3676_s7  ;;  %v2000_v35 = vshrl.u32 %v1876_v46, 16  ;;  %v2072_v36 = vrot.slane %v2070_v17, 4  ;;  %v2075_v39 = vrot.slane %v2073_v3, 5  ;;  %v3484_v27 = vcombine.low %v5334_v52, %v1882_v34 }
 0x19c   :  { %v2003_v44 = vshll.u32 %v1876_v46, 16  ;;  %v2086_v25 = vrot.slane %v2084_v5, 4  ;;  %v2089_v7 = vrot.slane %v2087_v29, 5  ;;  %v5350_v12 = vrot.slane %v1986_v38, 4 }
 0x19d   :  { %v2098_v43 = vshrl.u32 %v5344_v53, 16  ;;  %v1991_v55 = vrot.slane %v1989_v21, 5  ;;  %v2002_v49 = vrot.slane %v2000_v35, 4  ;;  %v3481_v48 = vcombine.low %v1875_v45, %v1876_v46 }
 0x19e   :  { %2537 = vrot.lane.b32.xlu0 %v3480_v42, %s3677_s8  ;;  %v2101_v18 = vshll.u32 %v5344_v53, 16  ;;  %v2005_v8 = vrot.slane %v2003_v44, 5  ;;  %v2112_v57 = vshrl.u32 %v1884_v15, 16  ;;  %v1964_v23 = vor.u32 %v1963_v32, %v1960_v11  ;;  %v5382_v32 = vld [vmem:[#allocation2 + $0x94] sm:$0x1] }
 0x19f   :  { %2491 = vrot.lane.b32.xlu1 %v3477_v62, %s3676_s7  ;;  %v1967_v26 = vshll.u32 %v5348_v24, 16  ;;  %v5363_v31 = vrot.slane %v2098_v43, 4  ;;  %v2115_v51 = vshll.u32 %v1884_v15, 16  ;;  %v3485_v16 = vcombine.low %v5344_v53, %v1884_v15  ;;  %v2129_v15 = vld [vmem:[#allocation2 + $0x30] sm:$0xe] }
 0x1a0   :  { %v1978_v61 = vor.u32 %v1977_v56, %v1974_v14  ;;  %v1965_v20 = vrot.slane %v1964_v23, 4  ;;  %v1981_v30 = vshll.u32 %v5353_v33, 16  ;;  %v2076_v59 = vor.u32 %v2075_v39, %v2072_v36  ;;  %v5391_v29 = vpop.permute.xlu0 %2301  ;;  %v2130_v43 = vld [vmem:[#allocation2 + $0x38] sm:$0xe] }
 0x1a1   :  { %v1969_v6 = vrot.slane %v1967_v26, 5  ;;  %v2103_v1 = vrot.slane %v2101_v18, 5  ;;  %v2079_v10 = vshll.u32 %v5357_v37, 16  ;;  %v2090_v40 = vor.u32 %v2089_v7, %v2086_v25 }
 0x1a2   :  { %2539 = vrot.lane.b32.xlu0 %v3481_v48, %s3677_s8  ;;  %v2093_v4 = vshll.u32 %v5361_v13, 16  ;;  %v1979_v60 = vrot.slane %v1978_v61, 4  ;;  %v1983_v52 = vrot.slane %v1981_v30, 5  ;;  %v149_v0 = vsel %vm3865_vm5, 0, %v148_v54 }
 0x1a3   :  { %2545 = vrot.lane.b32.xlu1 %v3484_v27, %s3677_s8  ;;  %v1970_v63 = vsel %vm4288_vm12, %v1965_v20, %v1969_v6  ;;  %v2077_v19 = vrot.slane %v2076_v59, 4  ;;  %v2081_v47 = vrot.slane %v2079_v10, 5  ;;  %v2091_v34 = vrot.slane %v2090_v40, 4  ;;  %150 = vst [vmem:[#allocation2 + $0x4c] sm:$0x1] %v149_v0  ;;  %v5396_v27 = vpop.permute.xlu1 %2309 }
 0x1a4   :  { %v2095_v45 = vrot.slane %v2093_v4, 5  ;;  %v2114_v9 = vrot.slane %v2112_v57, 4  ;;  %v1984_v58 = vsel %vm4288_vm12, %v1979_v60, %v1983_v52  ;;  %v1995_v62 = vshll.u32 %v5370_v2, 16  ;;  %v5398_v7 = vpop.permute.xlu0 %2303  ;;  %v2137_v57 = vld [vmem:[#allocation2 + $0x80] sm:$0xe] }
 0x1a5   :  { %v179_v11 = vsel %vm3865_vm5, 0, %v178_v50  ;;  %v2117_v17 = vrot.slane %v2115_v51, 5  ;;  %v3488_v3 = vcombine.low %v1970_v63, %v1984_v58  ;;  %v2082_v46 = vsel %vm4288_vm12, %v2077_v19, %v2081_v47  ;;  %v2132_v6 = vld [vmem:[#allocation2 + $0x48] sm:$0xe]  ;;  %v2131_v10 = vld [vmem:[#allocation2 + $0x40] sm:$0xe] }
 0x1a6   :  { %v2096_v42 = vsel %vm4288_vm12, %v2091_v34, %v2095_v45  ;;  %180 = vst [vmem:[#allocation2 + $0x9c] sm:$0x1] %v179_v11  ;;  %v1992_v5 = vor.u32 %v1991_v55, %v5350_v12  ;;  %v2006_v38 = vor.u32 %v2005_v8, %v2002_v49  ;;  %v2107_v53 = vshll.u32 %v5382_v32, 16  ;;  %v2140_v63 = vld [vmem:[#allocation2 + $0x98] sm:$0xe] }
 0x1a7   :  { %2547 = vrot.lane.b32.xlu1 %v3485_v16, %s3677_s8  ;;  %2577 = vrot.lane.b32.xlu0 %v3488_v3, %s3678_s9  ;;  %v3492_v14 = vcombine.low %v2082_v46, %v2096_v42  ;;  %v1997_v56 = vrot.slane %v1995_v62, 5  ;;  %v2104_v21 = vor.u32 %v2103_v1, %v5363_v31  ;;  %v2118_v35 = vor.u32 %v2117_v17, %v2114_v9  ;;  %v2138_v16 = vld [vmem:[#allocation2 + $0x88] sm:$0xe]  ;;  %v3641_v60 = vld [vmem:[%s5980_s3 + $0x20] ss:$0 sps:$4 sm:$0xff]  }
 0x1a8   :  { %v1993_v39 = vrot.slane %v1992_v5, 4  ;;  %v2007_v44 = vrot.slane %v2006_v38, 4  ;;  %v2109_v12 = vrot.slane %v2107_v53, 5  ;;  %v2191_v55 = vrot.slane %v5348_v24, 5  ;;  %v5414_v1 = vpop.permute.xlu0 %2341  ;;  %v2139_v58 = vld [vmem:[#allocation2 + $0x90] sm:$0xe] }
 0x1a9   :  { %v3418_v18 = vrot.slane %v2129_v15, 9  ;;  %v2195_v8 = vrot.slane %v5353_v33, 5  ;;  %v2105_v26 = vrot.slane %v2104_v21, 4  ;;  %v2119_v31 = vrot.slane %v2118_v35, 4  ;;  %v5412_v50 = vpop.permute.xlu1 %2311 }
 0x1aa   :  { %v1892_v36 = vld [vmem:[#allocation2 + $0x4c] sm:$0x1]  ;;  %v1998_v49 = vsel %vm4288_vm12, %v1993_v39, %v1997_v56  ;;  %v3419_v61 = vrot.slane %v2130_v43, 9  ;;  %v2223_v54 = vrot.slane %v5357_v37, 5  ;;  %v2227_v20 = vrot.slane %v5361_v13, 5 }
 0x1ab   :  { %2585 = vrot.lane.b32.xlu1 %v3492_v14, %s3678_s9  ;;  %v2009_v25 = vshll.u32 %v1892_v36, 16  ;;  %v2110_v30 = vsel %vm4288_vm12, %v2105_v26, %v2109_v12  ;;  %v2192_v33 = vsel %vm4304_vm15, %v3418_v18, %v2191_v55  ;;  %v3426_v13 = vrot.slane %v2137_v57, 9  ;;  %v3643_v14 = vld [vmem:[%s5980_s3 + $0x10] sm:$0xff]   ;;  %v3646_v12 = vld [vmem:[%s5980_s3] sm:$0xff]  }
 0x1ac   :  { %v2196_v37 = vsel %vm4304_vm15, %v3419_v61, %v2195_v8  ;;  %v3427_v4 = vrot.slane %v2138_v16, 9  ;;  %v2199_v41 = vrot.slane %v5370_v2, 5  ;;  %v3421_v0 = vrot.slane %v2132_v6, 9  ;;  %v5434_v2 = vpop.permute.xlu0 %2343  ;;  %v3650_v61 = vld [vmem:[#allocation2] sm:$0xf] }
 0x1ad   :  { %v1900_v48 = vld [vmem:[#allocation2 + $0x9c] sm:$0x1]  ;;  %v2011_v23 = vrot.slane %v2009_v25, 5  ;;  %v2203_v19 = vrot.slane %v1892_v36, 5  ;;  %v2224_v34 = vsel %vm4304_vm15, %v3426_v13, %v2223_v54  ;;  %v3420_v9 = vrot.slane %v2131_v10, 9  ;;  %v5432_v62 = vpop.permute.xlu1 %2349 }
 0x1ae   :  { %v2121_v51 = vshll.u32 %v1900_v48, 16  ;;  %v2228_v45 = vsel %vm4304_vm15, %v3427_v4, %v2227_v20  ;;  %v2231_v11 = vrot.slane %v5382_v32, 5  ;;  %v3429_v17 = vrot.slane %v2140_v63, 9  ;;  %v3651_v54 = vld [vmem:[#allocation2 + $0x8] sm:$0xf] }
 0x1af   :  { %v2012_v24 = vsel %vm4288_vm12, %v2007_v44, %v2011_v23  ;;  %v2235_v3 = vrot.slane %v1900_v48, 5  ;;  %vm2826_vm2 = vcmask 1043456   ;;  %v3496_v46 = vcombine.low %v2192_v33, %v2196_v37  ;;  %v3644_v44 = vld [vmem:[%s5980_s3 + $0x8] sm:$0xff]   ;;  %v3652_v33 = vld [vmem:[#allocation2 + $0x50] sm:$0xf] }
 0x1b0   :  { %v2123_v59 = vrot.slane %v2121_v51, 5  ;;  %v3489_v40 = vcombine.low %v1998_v49, %v2012_v24  ;;  %3602 = vmatprep.subr.msk.bf16.mxu0 %vm2826_vm2, %v3641_v60  ;;  %v2828_v42 = vsel %vm2826_vm2, %v3641_v60, 0  ;;  %v2200_v5 = vsel %vm4304_vm15, %v3420_v9, %v2199_v41  ;;  %3603 = vmatprep.subr.msk.bf16.mxu1 %vm2826_vm2, %v3641_v60  ;;  %v2398_v15 = vpop.permute.xlu0 %2397  ;;  %v3653_v10 = vld [vmem:[#allocation2 + $0x58] sm:$0xf]  ;;  %v6104_v9 = vld [vmem:[#allocation8_spill] sm:$0xff] }
 0x1b1   :  { %v2204_v38 = vsel %vm4304_vm15, %v3421_v0, %v2203_v19  ;;  %v3428_v53 = vrot.slane %v2139_v58, 9  ;;  %3567 = vmatpush3.bf16.msra.mxu0 %v2828_v42  ;;  %v3500_v32 = vcombine.low %v2224_v34, %v2228_v45  ;;  %v2236_v21 = vsel %vm4304_vm15, %v3429_v17, %v2235_v3  ;;  %v5450_v35 = vpop.permute.xlu1 %2351  ;;  %3597 = vmatpush3.bf16.msra.mxu1 %v2828_v42 }
 0x1b2   :  { %v2124_v52 = vsel %vm4288_vm12, %v2119_v31, %v2123_v59  ;;  %2579 = vrot.lane.b32.xlu0 %v3489_v40, %s3678_s9  ;;  %3568 = vmatprep.subr.bf16.mxu0 %v3642_v22  ;;  %v3497_v36 = vcombine.low %v2200_v5, %v2204_v38  ;;  %vm2629_vm5 = vcmask 64512   ;;  %v3430_v20 = vcombine.low %v3650_v61, %v3651_v54 }
 0x1b3   :  { %v3493_v47 = vcombine.low %v2110_v30, %v2124_v52  ;;  %v2232_v56 = vsel %vm4304_vm15, %v3428_v53, %v2231_v11  ;;  %3593 = vmatprep.subr.bf16.mxu1 %v3642_v22  ;;  %vm2654_vm10 = vcmask 130048   ;;  %vm2705_vm14 = vcmask 326656   ;;  %v6106_v53 = vld [vmem:[#allocation9_spill] sm:$0xff] }
 0x1b4   :  { %v3501_v39 = vcombine.low %v2232_v56, %v2236_v21  ;;  %v2632_v30 = vsel %vm2629_vm5, %v3430_v20, %v5391_v29  ;;  %v3434_v40 = vcombine.low %v3652_v33, %v3653_v10  ;;  %vm2722_vm0 = vcmask 392192  }
 0x1b5   :  { %2587 = vrot.lane.b32.xlu1 %v3493_v47, %s3678_s9  ;;  %3569 = vmatpush3.bf16.msra.mxu0 %v3642_v22  ;;  %v2656_v59 = vsel %vm2654_vm10, %v2632_v30, %v5414_v1  ;;  %vm2756_vm3 = vcmask 523264   ;;  %vm3086_vm6 = vcmask 1041409   ;;  %vm3095_vm12 = vcmask 1044484  }
 0x1b6   :  { %2617 = vrot.lane.b32.xlu0 %v3496_v46, %s3679_s10  ;;  %3570 = vmatprep.subr.bf16.mxu0 %v3643_v14  ;;  %v2673_v37 = vsel %vm2671_vm11, %v2656_v59, %v2398_v15  ;;  %v2644_v60 = vsel %vm2629_vm5, %v3434_v40, %v5396_v27  ;;  %v6103_v27 = vld [vmem:[#allocation7_spill] sm:$0xff]  ;;  %vm3101_vm15 = vcmask 1046534   ;;  %vm3104_vm2 = vcmask 1047559  }
 0x1b7   :  { %3598 = vmatpush3.bf16.msra.mxu1 %v3642_v22  ;;  %v2664_v1 = vsel %vm2654_vm10, %v2644_v60, %v5432_v62  ;;  %v6105_v58 = vcombine.low %v6103_v27, %v6104_v9  ;;  %v3654_v60 = vld [vmem:[#allocation2 + $0x20] sm:$0xf]  ;;  %v3658_v27 = vld [vmem:[#allocation2 + $0x30] sm:$0xf]  ;;  %v3659_v9 = vld [vmem:[#allocation2 + $0x38] sm:$0xf] }
 0x1b8   :  { %3594 = vmatprep.subr.bf16.mxu1 %v3643_v14 }
 0x1b9   :  { %2625 = vrot.lane.b32.xlu1 %v3500_v32, %s3679_s10  ;;  %v5457_v28 = vpop.permute.xlu0 %2399  ;;  %3571 = vmatpush3.bf16.msra.mxu0 %v3643_v14  ;;  %v2635_v22 = vsel %vm2629_vm5, %v6105_v58, %v5398_v7  ;;  %v6107_v32 = vld [vmem:[#allocation10_spill] sm:$0xff]  ;;  %v3433_v58 = vcombine.low %v3658_v27, %v3659_v9 }
 0x1ba   :  { %2619 = vrot.lane.b32.xlu0 %v3497_v36, %s3679_s10  ;;  %v2406_v25 = vpop.permute.xlu1 %2405  ;;  %3572 = vmatprep.subr.bf16.mxu0 %v3644_v44  ;;  %v2658_v11 = vsel %vm2654_vm10, %v2635_v22, %v5434_v2 }
 0x1bb   :  { %3599 = vmatpush3.bf16.msra.mxu1 %v3643_v14  ;;  %v2681_v41 = vsel %vm2671_vm11, %v2664_v1, %v2406_v25  ;;  %v2675_v3 = vsel %vm2671_vm11, %v2658_v11, %v5457_v28  ;;  %v6108_v14 = vcombine.low %v6106_v53, %v6107_v32 }
 0x1bc   :  { %3595 = vmatprep.subr.bf16.mxu1 %v3644_v44 }
 0x1bd   :  { %2627 = vrot.lane.b32.xlu1 %v3501_v39, %s3679_s10  ;;  %v2438_v55 = vpop.permute.xlu0 %2437  ;;  %3573 = vmatpush3.bf16.msra.mxu0 %v3644_v44  ;;  %v2647_v56 = vsel %vm2629_vm5, %v6108_v14, %v5412_v50 }
 0x1be   :  { %v5463_v43 = vpop.permute.xlu1 %2407  ;;  %3574 = vmatprep.subr.bf16.mxu0 %v3646_v12  ;;  %v2690_v63 = vsel %vm2688_vm13, %v2673_v37, %v2438_v55  ;;  %v2666_v21 = vsel %vm2654_vm10, %v2647_v56, %v5450_v35 }
 0x1bf   :  { %3600 = vmatpush3.bf16.msra.mxu1 %v3644_v44  ;;  %v2683_v36 = vsel %vm2671_vm11, %v2666_v21, %v5463_v43 }
 0x1c0   :  { %3596 = vmatprep.subr.bf16.mxu1 %v3646_v12 }
 0x1c1   :  { %v2440_v48 = vpop.permute.xlu0 %2439  ;;  %3575 = vmatpush3.bf16.msra.mxu0 %v3646_v12 }
 0x1c2   :  { %v2446_v49 = vpop.permute.xlu1 %2445  ;;  %v2692_v38 = vsel %vm2688_vm13, %v2675_v3, %v2440_v48 }
 0x1c3   :  { %3601 = vmatpush3.bf16.msra.mxu1 %v3646_v12  ;;  %v2698_v34 = vsel %vm2688_vm13, %v2681_v41, %v2446_v49 }
 0x1c5   :  { %v2478_v8 = vpop.permute.xlu0 %2477 }
 0x1c6   :  { %v5465_v18 = vpop.permute.xlu1 %2447  ;;  %v2707_v29 = vsel %vm2705_vm14, %v2690_v63, %v2478_v8 }
 0x1c7   :  { %v2700_v28 = vsel %vm2688_vm13, %v2683_v36, %v5465_v18 }
 0x1c9   :  { %v2480_v23 = vpop.permute.xlu0 %2479 }
 0x1ca   :  { %v2486_v57 = vpop.permute.xlu1 %2485  ;;  %v2709_v2 = vsel %vm2705_vm14, %v2692_v38, %v2480_v23 }
 0x1cb   :  { %v2715_v62 = vsel %vm2705_vm14, %v2698_v34, %v2486_v57 }
 0x1ce   :  { %v2488_v26 = vpop.permute.xlu1 %2487 }
 0x1cf   :  { %v2717_v12 = vsel %vm2705_vm14, %v2700_v28, %v2488_v26 }
 0x1d0   :  { %v2534_v31 = vpop.permute.xlu0 %2533 }
 0x1d1   :  { %v2724_v52 = vsel %vm2722_vm0, %v2707_v29, %v2534_v31  ;;  %v3655_v29 = vld [vmem:[#allocation2 + $0x28] sm:$0xf] }
 0x1d2   :  { %v3432_v1 = vcombine.low %v3654_v60, %v3655_v29 }
 0x1d4   :  { %v2536_v16 = vpop.permute.xlu0 %2535 }
 0x1d5   :  { %v2542_v51 = vpop.permute.xlu1 %2541  ;;  %v2726_v15 = vsel %vm2722_vm0, %v2709_v2, %v2536_v16 }
 0x1d6   :  { %v2732_v17 = vsel %vm2722_vm0, %v2715_v62, %v2542_v51 }
 0x1d8   :  { %v2574_v24 = vpop.permute.xlu0 %2573 }
 0x1d9   :  { %v2544_v6 = vpop.permute.xlu1 %2543  ;;  %v2741_v0 = vsel %vm2739_vm1, %v2724_v52, %v2574_v24 }
 0x1da   :  { %v2734_v35 = vsel %vm2722_vm0, %v2717_v12, %v2544_v6 }
 0x1dc   :  { %v2576_v4 = vpop.permute.xlu0 %2575 }
 0x1dd   :  { %v2582_v13 = vpop.permute.xlu1 %2581  ;;  %v2743_v39 = vsel %vm2739_vm1, %v2726_v15, %v2576_v4 }
 0x1de   :  { %v2749_v46 = vsel %vm2739_vm1, %v2732_v17, %v2582_v13 }
 0x1e0   :  { %v2614_v47 = vpop.permute.xlu0 %2613 }
 0x1e1   :  { %v2584_v19 = vpop.permute.xlu1 %2583  ;;  %v2758_v45 = vsel %vm2756_vm3, %v2741_v0, %v2614_v47  ;;  %v3656_v0 = vld [vmem:[#allocation2 + $0x70] sm:$0xf] }
 0x1e2   :  { %3576 = vmatprep.mubr.msk.bf16.mxu0 %vm2809_vm4, %v2758_v45  ;;  %v2751_v55 = vsel %vm2739_vm1, %v2734_v35, %v2584_v19  ;;  %v3657_v19 = vld [vmem:[#allocation2 + $0x78] sm:$0xf] }
 0x1e3   :  { %v3436_v47 = vcombine.low %v3656_v0, %v3657_v19 }
 0x1e4   :  { %v2306_v5 = vpop.permute.xlu0 %2305 }
 0x1e5   :  { %v2622_v42 = vpop.permute.xlu1 %2621  ;;  %v2638_v41 = vsel %vm2629_vm5, %v3432_v1, %v2306_v5 }
 0x1e6   :  { %v2766_v7 = vsel %vm2756_vm3, %v2749_v46, %v2622_v42  ;;  %v3660_v46 = vld [vmem:[#allocation2 + $0x80] sm:$0xf]  ;;  %v3661_v42 = vld [vmem:[#allocation2 + $0x88] sm:$0xf] }
 0x1e7   :  { %3584 = vmatprep.mubr.msk.bf16.mxu1 %vm2809_vm4, %v2766_v7  ;;  %v3437_v5 = vcombine.low %v3660_v46, %v3661_v42 }
 0x1e8   :  { %v2616_v25 = vpop.permute.xlu0 %2615 }
 0x1e9   :  { %v2314_v44 = vpop.permute.xlu1 %2313  ;;  %v2760_v50 = vsel %vm2756_vm3, %v2743_v39, %v2616_v25 }
 0x1ea   :  { %3577 = vmatmul.mubr.msk.bf16.vlgmr.msra.gmra.mxu0 %vm2809_vm4, %v2760_v50  ;;  %v2650_v45 = vsel %vm2629_vm5, %v3436_v47, %v2314_v44 }
 0x1ec   :  { %v2308_v48 = vpop.permute.xlu0 %2307 }
 0x1ed   :  { %v2624_v49 = vpop.permute.xlu1 %2623  ;;  %v2641_v3 = vsel %vm2629_vm5, %v3433_v58, %v2308_v48 }
 0x1ee   :  { %v2768_v43 = vsel %vm2756_vm3, %v2751_v55, %v2624_v49 }
 0x1ef   :  { %3585 = vmatmul.mubr.msk.bf16.vlgmr.msra.gmra.mxu1 %vm2809_vm4, %v2768_v43 }
 0x1f0   :  { %v2346_v8 = vpop.permute.xlu0 %2345 }
 0x1f1   :  { %v2316_v57 = vpop.permute.xlu1 %2315  ;;  %v2660_v34 = vsel %vm2654_vm10, %v2638_v41, %v2346_v8 }
 0x1f2   :  { %v2653_v2 = vsel %vm2629_vm5, %v3437_v5, %v2316_v57 }
 0x1f4   :  { %v2348_v23 = vpop.permute.xlu0 %2347 }
 0x1f5   :  { %v2354_v18 = vpop.permute.xlu1 %2353  ;;  %v2662_v32 = vsel %vm2654_vm10, %v2641_v3, %v2348_v23 }
 0x1f6   :  { %v2668_v11 = vsel %vm2654_vm10, %v2650_v45, %v2354_v18 }
 0x1f8   :  { %v2402_v31 = vpop.permute.xlu0 %2401 }
 0x1f9   :  { %v2356_v51 = vpop.permute.xlu1 %2355  ;;  %v2677_v22 = vsel %vm2671_vm11, %v2660_v34, %v2402_v31 }
 0x1fa   :  { %v2670_v44 = vsel %vm2654_vm10, %v2653_v2, %v2356_v51 }
 0x1fc   :  { %v2404_v16 = vpop.permute.xlu0 %2403 }
 0x1fd   :  { %v2410_v26 = vpop.permute.xlu1 %2409  ;;  %v2679_v21 = vsel %vm2671_vm11, %v2662_v32, %v2404_v16 }
 0x1fe   :  { %v2685_v38 = vsel %vm2671_vm11, %v2668_v11, %v2410_v26 }
 0x200   :  { %v2442_v61 = vpop.permute.xlu0 %2441 }
 0x201   :  { %v2412_v54 = vpop.permute.xlu1 %2411  ;;  %v2694_v17 = vsel %vm2688_vm13, %v2677_v22, %v2442_v61 }
 0x202   :  { %v2687_v12 = vsel %vm2671_vm11, %v2670_v44, %v2412_v54 }
 0x204   :  { %v2444_v20 = vpop.permute.xlu0 %2443 }
 0x205   :  { %v2450_v6 = vpop.permute.xlu1 %2449  ;;  %v2696_v25 = vsel %vm2688_vm13, %v2679_v21, %v2444_v20 }
 0x206   :  { %v2702_v14 = vsel %vm2688_vm13, %v2685_v38, %v2450_v6 }
 0x208   :  { %v2482_v24 = vpop.permute.xlu0 %2481 }
 0x209   :  { %v2452_v30 = vpop.permute.xlu1 %2451  ;;  %v2711_v7 = vsel %vm2705_vm14, %v2694_v17, %v2482_v24 }
 0x20a   :  { %v2704_v48 = vsel %vm2688_vm13, %v2687_v12, %v2452_v30 }
 0x20c   :  { %v2484_v33 = vpop.permute.xlu0 %2483 }
 0x20d   :  { %v2490_v59 = vpop.permute.xlu1 %2489  ;;  %v2713_v35 = vsel %vm2705_vm14, %v2696_v25, %v2484_v33 }
 0x20e   :  { %v2719_v15 = vsel %vm2705_vm14, %v2702_v14, %v2490_v59 }
 0x210   :  { %v2538_v40 = vpop.permute.xlu0 %2537 }
 0x211   :  { %v2492_v10 = vpop.permute.xlu1 %2491  ;;  %v2728_v56 = vsel %vm2722_vm0, %v2711_v7, %v2538_v40 }
 0x212   :  { %v2721_v57 = vsel %vm2705_vm14, %v2704_v48, %v2492_v10 }
 0x214   :  { %v2540_v13 = vpop.permute.xlu0 %2539 }
 0x215   :  { %v2546_v37 = vpop.permute.xlu1 %2545  ;;  %v2730_v43 = vsel %vm2722_vm0, %v2713_v35, %v2540_v13 }
 0x216   :  { %v2736_v28 = vsel %vm2722_vm0, %v2719_v15, %v2546_v37 }
 0x219   :  { %v2548_v4 = vpop.permute.xlu1 %2547  ;;  %v2578_v63 = vpop.permute.xlu0 %2577 }
 0x21a   :  { %v2745_v36 = vsel %vm2739_vm1, %v2728_v56, %v2578_v63  ;;  %v2738_v31 = vsel %vm2722_vm0, %v2721_v57, %v2548_v4 }
 0x21d   :  { %v2586_v52 = vpop.permute.xlu1 %2585 }
 0x21e   :  { %v2753_v55 = vsel %vm2739_vm1, %v2736_v28, %v2586_v52 }
 0x224   :  { %v2580_v62 = vpop.permute.xlu0 %2579 }
 0x225   :  { %v2747_v23 = vsel %vm2739_vm1, %v2730_v43, %v2580_v62 }
 0x227   :  { %v2588_v53 = vpop.permute.xlu1 %2587 }
 0x228   :  { %v2618_v39 = vpop.permute.xlu0 %2617  ;;  %v2755_v16 = vsel %vm2739_vm1, %v2738_v31, %v2588_v53 }
 0x229   :  { %v2762_v50 = vsel %vm2756_vm3, %v2745_v36, %v2618_v39 }
 0x22a   :  { %3580 = vmatprep.mubr.msk.bf16.mxu0 %vm2809_vm4, %v2762_v50 }
 0x22b   :  { %v2626_v49 = vpop.permute.xlu1 %2625 }
 0x22c   :  { %v2770_v8 = vsel %vm2756_vm3, %v2753_v55, %v2626_v49  ;;  %v2620_v18 = vpop.permute.xlu0 %2619 }
 0x22d   :  { %3588 = vmatprep.mubr.msk.bf16.mxu1 %vm2809_vm4, %v2770_v8  ;;  %v2764_v51 = vsel %vm2756_vm3, %v2747_v23, %v2620_v18 }
 0x22e   :  { %3581 = vmatmul.mubr.msk.bf16.gmra.mxu0 %vm2809_vm4, %v2764_v51 }
 0x22f   :  { %v2628_v26 = vpop.permute.xlu1 %2627 }
 0x230   :  { %v2772_v61 = vsel %vm2756_vm3, %v2755_v16, %v2628_v26  ;;  %vm3017_vm3 = vcmask 1040384  }
 0x231   :  { %3589 = vmatmul.mubr.msk.bf16.gmra.mxu1 %vm2809_vm4, %v2772_v61  ;;  %vm3019_vm4 = vcmask 58368  }
 0x2aa   :  { %v3578_v54 = vpop.f32.mrf.mxu0 }
 0x2ab   :  { %v3535_v37 = vpack.c.bf16 %v3578_v54, %v3578_v54  ;;  %v2966_v45 = vmul.f32 %v3578_v54, %v3578_v54  ;;  %v2930_v44 = vsel %vm2629_vm5, %v3578_v54, 0.0 }
 0x2ac   :  { %v2864_v6 = vpop.f32.mrf.mxu0 }
 0x2ad   :  { %v3533_v29 = vpack.c.bf16 %v2864_v6, %v2864_v6  ;;  %v5558_v52 = vunpack.c.l.b16 %v3535_v37  ;;  %v2964_v5 = vmul.f32 %v2864_v6, %v2864_v6  ;;  %v2927_v32 = vsel %vm2629_vm5, %v2864_v6, 0.0 }
 0x2ae   :  { %v3579_v30 = vpop.f32.mrf.mxu0  ;;  %v2983_v50 = vsel %vm2629_vm5, %v2966_v45, 0.0 }
 0x2af   :  { %v3586_v20 = vpop.f32.mrf.mxu1  ;;  %v3536_v4 = vpack.c.bf16 %v3579_v30, %v3579_v30  ;;  %v5568_v27 = vunpack.c.l.b16 %v3533_v29  ;;  %v3088_v62 = vrot.slane %v5558_v52, 6  ;;  %v2967_v14 = vmul.f32 %v3579_v30, %v3579_v30 }
 0x2b0   :  { %v2867_v33 = vpop.f32.mrf.mxu0  ;;  %v3543_v63 = vpack.c.bf16 %v3586_v20, %v3586_v20  ;;  %v2974_v21 = vmul.f32 %v3586_v20, %v3586_v20  ;;  %v2980_v25 = vsel %vm2629_vm5, %v2964_v5, 0.0  ;;  %v2932_v12 = vsel %vm2629_vm5, %v3579_v30, 0.0 }
 0x2b1   :  { %v2896_v24 = vpop.f32.mrf.mxu1  ;;  %v3534_v40 = vpack.c.bf16 %v2867_v33, %v2867_v33  ;;  %v5562_v19 = vunpack.c.l.b16 %v3536_v4  ;;  %v2965_v58 = vmul.f32 %v2867_v33, %v2867_v33  ;;  %v2928_v17 = vsel %vm2629_vm5, %v2867_v33, 0.0 }
 0x2b2   :  { %v3541_v41 = vpack.c.bf16 %v2896_v24, %v2896_v24  ;;  %v5564_v47 = vunpack.c.l.b16 %v3543_v63  ;;  %v2929_v15 = vadd.f32 %v2928_v17, %v2927_v32  ;;  %v2972_v28 = vmul.f32 %v2896_v24, %v2896_v24 }
 0x2b3   :  { %v3587_v59 = vpop.f32.mrf.mxu1  ;;  %v5556_v1 = vunpack.c.l.b16 %v3534_v40  ;;  %v3091_v46 = vrot.slane %v5562_v19, 5  ;;  %v2981_v36 = vsel %vm2629_vm5, %v2965_v58, 0.0  ;;  %v5598_v35 = vsel %vm2629_vm5, %v3586_v20, 0.0 }
 0x2b4   :  { %v3544_v60 = vpack.c.bf16 %v3587_v59, %v3587_v59  ;;  %v5571_v22 = vunpack.c.l.b16 %v3541_v41  ;;  %v3108_v42 = vrot.slane %v5564_v47, 6  ;;  %v2982_v55 = vadd.f32 %v2981_v36, %v2980_v25 }
 0x2b5   :  { %v2899_v10 = vpop.f32.mrf.mxu1  ;;  %v3085_v9 = vrot.slane %v5556_v1, 7  ;;  %v2985_v49 = vsel %vm2629_vm5, %v2967_v14, 0.0  ;;  %v5602_v48 = vsel %vm2629_vm5, %v2974_v21, 0.0  ;;  %v2931_v43 = vadd.f32 %v2930_v44, %v2929_v15 }
 0x2b6   :  { %v3542_v13 = vpack.c.bf16 %v2899_v10, %v2899_v10  ;;  %v5566_v34 = vunpack.c.l.b16 %v3544_v60  ;;  %v2975_v8 = vmul.f32 %v3587_v59, %v3587_v59  ;;  %v5605_v57 = vsel %vm2629_vm5, %v2896_v24, 0.0 }
 0x2b7   :  { %v3087_v3 = vsel %vm3086_vm6, %v3085_v9, %v5568_v27  ;;  %v2973_v23 = vmul.f32 %v2899_v10, %v2899_v10  ;;  %v3246_v18 = vrot.slane %v5556_v1, 4  ;;  %v5610_v51 = vsel %vm2629_vm5, %v2972_v28, 0.0 }
 0x2b8   :  { %v5560_v0 = vunpack.c.l.b16 %v3542_v13  ;;  %v3090_v38 = vsel %vm3089_vm7, %v3088_v62, %v3087_v3  ;;  %v3110_v53 = vrot.slane %v5566_v34, 5  ;;  %v5613_v16 = vsel %vm2629_vm5, %v3587_v59, 0.0 }
 0x2b9   :  { %v5586_v56 = vsel %vm3092_vm8, %v3091_v46, %v3090_v38  ;;  %v3153_v26 = vrot.slane %v5556_v1, 1  ;;  %v2984_v54 = vadd.f32 %v2983_v50, %v2982_v55  ;;  %v5618_v20 = vsel %vm2629_vm5, %v2899_v10, 0.0 }
 0x2ba   :  { %v3106_v11 = vrot.slane %v5560_v0, 7  ;;  %v3260_v31 = vrot.slane %v5560_v0, 4  ;;  %v3167_v61 = vrot.slane %v5560_v0, 1  ;;  %v3245_v6 = vrot.slane %v5568_v27, 5 }
 0x2bb   :  { %v3259_v24 = vrot.slane %v5571_v22, 5  ;;  %v5623_v30 = vsel %vm2629_vm5, %v2975_v8, 0.0  ;;  %v5625_v33 = vadd.f32 %v2932_v12, %v2931_v43  ;;  %v3152_v59 = vrot.slane %v5568_v27, 2 }
 0x2bc   :  { %v3107_v7 = vsel %vm3086_vm6, %v3106_v11, %v5571_v22  ;;  %v3166_v40 = vrot.slane %v5571_v22, 2  ;;  %v5630_v37 = vsel %vm2629_vm5, %v2973_v23, 0.0  ;;  %v3247_v13 = vsel %vm3086_vm6, %v3246_v18, %v3245_v6 }
 0x2bd   :  { %v3109_v2 = vsel %vm3089_vm7, %v3108_v42, %v3107_v7  ;;  %v3261_v10 = vsel %vm3086_vm6, %v3260_v31, %v3259_v24  ;;  %v3121_v4 = vrot.slane %v5568_v27, 1  ;;  %v3248_v63 = vrot.slane %v5558_v52, 3 }
 0x2be   :  { %v5591_v39 = vsel %vm3092_vm8, %v3110_v53, %v3109_v2  ;;  %v3262_v60 = vrot.slane %v5564_v47, 3  ;;  %v3154_v29 = vsel %vm3086_vm6, %v3153_v26, %v3152_v59  ;;  %v3168_v41 = vsel %vm3086_vm6, %v3167_v61, %v3166_v40 }
 0x2bf   :  { %v5639_v45 = vadd.f32 %v2985_v49, %v2984_v54  ;;  %v3250_v9 = vrot.slane %v5562_v19, 2  ;;  %v3122_v58 = vsel %vm3086_vm6, %v5556_v1, %v3121_v4  ;;  %v3135_v62 = vrot.slane %v5571_v22, 1 }
 0x2c0   :  { %v3249_v11 = vsel %vm3089_vm7, %v3248_v63, %v3247_v13  ;;  %v3263_v17 = vsel %vm3089_vm7, %v3262_v60, %v3261_v10  ;;  %v3264_v3 = vrot.slane %v5566_v34, 2  ;;  %v3123_v46 = vrot.slane %v5558_v52, 7 }
 0x2c1   :  { %v3155_v42 = vsel %vm3089_vm7, %v5558_v52, %v3154_v29  ;;  %v3156_v5 = vrot.slane %v5562_v19, 7  ;;  %v3169_v38 = vsel %vm3089_vm7, %v5564_v47, %v3168_v41  ;;  %v3136_v7 = vsel %vm3086_vm6, %v5560_v0, %v3135_v62 }
 0x2c2   :  { %v3170_v53 = vrot.slane %v5566_v34, 7  ;;  %v3124_v32 = vsel %vm3089_vm7, %v3123_v46, %v3122_v58  ;;  %v3137_v14 = vrot.slane %v5564_v47, 7  ;;  %v3215_v2 = vrot.slane %v5556_v1, 3 }
 0x2c3   :  { %v5661_v21 = vsel %vm3092_vm8, %v3250_v9, %v3249_v11  ;;  %v5664_v15 = vsel %vm3092_vm8, %v3264_v3, %v3263_v17  ;;  %v3125_v36 = vrot.slane %v5562_v19, 6  ;;  %v3229_v44 = vrot.slane %v5560_v0, 3 }
 0x2c4   :  { %v5669_v25 = vsel %vm3092_vm8, %v3156_v5, %v3155_v42  ;;  %v5672_v28 = vsel %vm3092_vm8, %v3170_v53, %v3169_v38  ;;  %v3138_v50 = vsel %vm3089_vm7, %v3137_v14, %v3136_v7  ;;  %v3214_v12 = vrot.slane %v5568_v27, 4 }
 0x2c5   :  { %v5677_v55 = vsel %vm3092_vm8, %v3125_v36, %v3124_v32  ;;  %v3139_v49 = vrot.slane %v5566_v34, 6  ;;  %v3217_v43 = vrot.slane %v5558_v52, 2  ;;  %v3228_v8 = vrot.slane %v5571_v22, 4 }
 0x2c6   :  { %v3216_v23 = vsel %vm3086_vm6, %v3215_v2, %v3214_v12  ;;  %v3219_v18 = vrot.slane %v5562_v19, 1  ;;  %v3184_v31 = vrot.slane %v5556_v1, 2  ;;  %v3198_v26 = vrot.slane %v5560_v0, 2 }
 0x2c7   :  { %v5687_v61 = vsel %vm3092_vm8, %v3139_v49, %v3138_v50  ;;  %v3230_v54 = vsel %vm3086_vm6, %v3229_v44, %v3228_v8  ;;  %v3277_v6 = vrot.slane %v5556_v1, 5  ;;  %v3291_v24 = vrot.slane %v5560_v0, 5 }
 0x2c8   :  { %v3231_v59 = vrot.slane %v5564_v47, 2  ;;  %v3183_v40 = vrot.slane %v5568_v27, 3  ;;  %v3197_v13 = vrot.slane %v5571_v22, 3  ;;  %v3308_v10 = vrot.slane %v5556_v1, 6 }
 0x2c9   :  { %v3218_v4 = vsel %vm3089_vm7, %v3217_v43, %v3216_v23  ;;  %v3186_v63 = vrot.slane %v5558_v52, 1  ;;  %v3276_v60 = vrot.slane %v5568_v27, 6  ;;  %v3290_v29 = vrot.slane %v5571_v22, 6 }
 0x2ca   :  { %v3232_v41 = vsel %vm3089_vm7, %v3231_v59, %v3230_v54  ;;  %v3185_v9 = vsel %vm3086_vm6, %v3184_v31, %v3183_v40  ;;  %v3199_v58 = vsel %vm3086_vm6, %v3198_v26, %v3197_v13  ;;  %v3307_v62 = vrot.slane %v5568_v27, 7 }
 0x2cb   :  { %v3200_v11 = vrot.slane %v5564_v47, 1  ;;  %v3278_v1 = vsel %vm3086_vm6, %v3277_v6, %v3276_v60  ;;  %v3292_v17 = vsel %vm3086_vm6, %v3291_v24, %v3290_v29  ;;  %v3322_v3 = vrot.slane %v5560_v0, 6 }
 0x2cc   :  { %v3233_v46 = vrot.slane %v5566_v34, 1  ;;  %v3279_v42 = vrot.slane %v5558_v52, 4  ;;  %v3293_v5 = vrot.slane %v5564_v47, 4  ;;  %v3309_v38 = vsel %vm3086_vm6, %v3308_v10, %v3307_v62 }
 0x2cd   :  { %v3187_v7 = vsel %vm3089_vm7, %v3186_v63, %v3185_v9  ;;  %v3201_v27 = vsel %vm3089_vm7, %v3200_v11, %v3199_v58  ;;  %v3310_v53 = vrot.slane %v5558_v52, 5  ;;  %v3321_v32 = vrot.slane %v5571_v22, 7 }
 0x2ce   :  { %v5717_v14 = vsel %vm3092_vm8, %v3219_v18, %v3218_v4  ;;  %v5720_v0 = vsel %vm3092_vm8, %v3233_v46, %v3232_v41  ;;  %v3280_v2 = vsel %vm3089_vm7, %v3279_v42, %v3278_v1  ;;  %v3294_v36 = vsel %vm3089_vm7, %v3293_v5, %v3292_v17 }
 0x2cf   :  { %v3281_v44 = vrot.slane %v5562_v19, 3  ;;  %v3295_v50 = vrot.slane %v5566_v34, 3  ;;  %v3311_v12 = vsel %vm3089_vm7, %v3310_v53, %v3309_v38  ;;  %v3323_v52 = vsel %vm3086_vm6, %v3322_v3, %v3321_v32 }
 0x2d0   :  { %v5730_v22 = vsel %vm3092_vm8, %v5562_v19, %v3187_v7  ;;  %v5734_v43 = vsel %vm3092_vm8, %v5566_v34, %v3201_v27  ;;  %v3312_v8 = vrot.slane %v5562_v19, 4  ;;  %v3324_v23 = vrot.slane %v5564_v47, 5 }
 0x2d1   :  { %v5739_v26 = vsel %vm3092_vm8, %v3281_v44, %v3280_v2  ;;  %v5742_v54 = vsel %vm3092_vm8, %v3295_v50, %v3294_v36  ;;  %v3326_v19 = vrot.slane %v5566_v34, 4  ;;  %vm3360_vm6 = vcmask 519168  }
 0x2d2   :  { %v5746_v40 = vsel %vm3092_vm8, %v3312_v8, %v3311_v12  ;;  %v5749_v13 = vsel %vm3089_vm7, %v3324_v23, %v3323_v52 }
 0x2ee   :  { %v3582_v49 = vpop.f32.mrf.mxu0 }
 0x2ef   :  { %v2970_v18 = vmul.f32 %v3582_v49, %v3582_v49  ;;  %v3539_v31 = vpack.c.bf16 %v3582_v49, %v3582_v49  ;;  %v2938_v6 = vsel %vm2629_vm5, %v3582_v49, 0.0 }
 0x2f0   :  { %v2880_v24 = vpop.f32.mrf.mxu0 }
 0x2f1   :  { %v3590_v59 = vpop.f32.mrf.mxu1  ;;  %v2991_v47 = vsel %vm2629_vm5, %v2970_v18, 0.0  ;;  %v5753_v10 = vunpack.c.l.b16 %v3539_v31  ;;  %v2934_v4 = vsel %vm2629_vm5, %v2880_v24, 0.0  ;;  %v2968_v63 = vmul.f32 %v2880_v24, %v2880_v24 }
 0x2f2   :  { %v2935_v60 = vadd.f32 %v2934_v4, %v5625_v33  ;;  %v3537_v29 = vpack.c.bf16 %v2880_v24, %v2880_v24  ;;  %v3583_v41 = vpop.f32.mrf.mxu0  ;;  %v5758_v9 = vsel %vm2629_vm5, %v3590_v59, 0.0  ;;  %v2978_v58 = vmul.f32 %v3590_v59, %v3590_v59 }
 0x2f3   :  { %v2912_v62 = vpop.f32.mrf.mxu1  ;;  %v2987_v11 = vsel %vm2629_vm5, %v2968_v63, 0.0  ;;  %v2940_v1 = vsel %vm2629_vm5, %v3583_v41, 0.0  ;;  %v2971_v17 = vmul.f32 %v3583_v41, %v3583_v41  ;;  %v3540_v3 = vpack.c.bf16 %v3583_v41, %v3583_v41 }
 0x2f4   :  { %v2988_v46 = vadd.f32 %v2987_v11, %v5639_v45  ;;  %v5763_v42 = vunpack.c.l.b16 %v3537_v29  ;;  %v5766_v33 = vsel %vm2629_vm5, %v2978_v58, 0.0  ;;  %v3547_v5 = vpack.c.bf16 %v3590_v59, %v3590_v59  ;;  %v2883_v38 = vpop.f32.mrf.mxu0 }
 0x2f5   :  { %v3591_v7 = vpop.f32.mrf.mxu1  ;;  %v2993_v27 = vsel %vm2629_vm5, %v2971_v17, 0.0  ;;  %v5769_v53 = vunpack.c.l.b16 %v3540_v3  ;;  %v2936_v32 = vsel %vm2629_vm5, %v2883_v38, 0.0  ;;  %v2969_v2 = vmul.f32 %v2883_v38, %v2883_v38 }
 0x2f6   :  { %v5772_v36 = vunpack.c.l.b16 %v3547_v5  ;;  %v2937_v45 = vadd.f32 %v2936_v32, %v2935_v60  ;;  %v3538_v44 = vpack.c.bf16 %v2883_v38, %v2883_v38  ;;  %v2950_v50 = vsel %vm2629_vm5, %v2912_v62, 0.0 }
 0x2f7   :  { %v2915_v12 = vpop.f32.mrf.mxu1  ;;  %v2989_v52 = vsel %vm2629_vm5, %v2969_v2, 0.0  ;;  %v2976_v49 = vmul.f32 %v2912_v62, %v2912_v62  ;;  %v3545_v8 = vpack.c.bf16 %v2912_v62, %v2912_v62  ;;  %v5777_v23 = vsel %vm2629_vm5, %v3591_v7, 0.0 }
 0x2f8   :  { %v2939_v18 = vadd.f32 %v2938_v6, %v2937_v45  ;;  %v2990_v31 = vadd.f32 %v2989_v52, %v2988_v46  ;;  %v5779_v24 = vunpack.c.l.b16 %v3538_v44  ;;  %v2979_v59 = vmul.f32 %v3591_v7, %v3591_v7 }
 0x2f9   :  { %v3003_v4 = vsel %vm2629_vm5, %v2976_v49, 0.0  ;;  %v5782_v63 = vunpack.c.l.b16 %v3545_v8  ;;  %v3548_v60 = vpack.c.bf16 %v3591_v7, %v3591_v7  ;;  %v2952_v29 = vsel %vm2629_vm5, %v2915_v12, 0.0 }
 0x2fa   :  { %v2941_v41 = vadd.f32 %v2940_v1, %v2939_v18  ;;  %v2992_v58 = vadd.f32 %v2991_v47, %v2990_v31  ;;  %v5786_v11 = vsel %vm2629_vm5, %v2979_v59, 0.0  ;;  %v2977_v62 = vmul.f32 %v2915_v12, %v2915_v12 }
 0x2fb   :  { %v5788_v17 = vunpack.c.l.b16 %v3548_v60  ;;  %v3546_v6 = vpack.c.bf16 %v2915_v12, %v2915_v12  ;;  %v3252_v3 = vrot.slane %v5763_v42, 1  ;;  %v3255_v46 = vrot.slane %v5753_v10, 7 }
 0x2fc   :  { %v2943_v5 = vadd.f32 %v5605_v57, %v2941_v41  ;;  %v2994_v38 = vadd.f32 %v2993_v27, %v2992_v58  ;;  %v3005_v7 = vsel %vm2629_vm5, %v2977_v62, 0.0  ;;  %v3257_v32 = vrot.slane %v5769_v53, 6 }
 0x2fd   :  { %v5795_v1 = vunpack.c.l.b16 %v3546_v6  ;;  %v3253_v47 = vsel %vm3095_vm12, %v3252_v3, %v5661_v21  ;;  %v3266_v2 = vrot.slane %v5782_v63, 1  ;;  %v3269_v45 = vrot.slane %v5772_v36, 7 }
 0x2fe   :  { %v2996_v44 = vadd.f32 %v5610_v51, %v2994_v38  ;;  %v2945_v12 = vadd.f32 %v5618_v20, %v2943_v5  ;;  %v3254_v57 = vsel %vm3098_vm9, %v5779_v24, %v3253_v47  ;;  %v3271_v27 = vrot.slane %v5788_v17, 6 }
 0x2ff   :  { %v3256_v52 = vsel %vm3101_vm15, %v3255_v46, %v3254_v57  ;;  %v3267_v49 = vsel %vm3095_vm12, %v3266_v2, %v5664_v15  ;;  %v3158_v21 = vrot.slane %v5763_v42, 6  ;;  %v3160_v8 = vrot.slane %v5779_v24, 5 }
 0x300   :  { %v2947_v18 = vadd.f32 %v5598_v35, %v2945_v12  ;;  %v2998_v51 = vadd.f32 %v5630_v37, %v2996_v44  ;;  %v3258_v20 = vsel %vm3104_vm2, %v3257_v32, %v3256_v52  ;;  %v3268_v31 = vsel %vm3098_vm9, %v5795_v1, %v3267_v49 }
 0x301   :  { %v3270_v59 = vsel %vm3101_vm15, %v3269_v45, %v3268_v31  ;;  %v3159_v60 = vsel %vm3095_vm12, %v3158_v21, %v5669_v25  ;;  %v3162_v15 = vrot.slane %v5753_v10, 4  ;;  %v3164_v41 = vrot.slane %v5769_v53, 3 }
 0x302   :  { %v2949_v58 = vadd.f32 %v5613_v16, %v2947_v18  ;;  %v3000_v35 = vadd.f32 %v5602_v48, %v2998_v51  ;;  %v3272_v37 = vsel %vm3104_vm2, %v3271_v27, %v3270_v59  ;;  %v3161_v62 = vsel %vm3098_vm9, %v3160_v8, %v3159_v60 }
 0x303   :  { %v3273_v6 = vpack.c.b16 %v3272_v37, %v3258_v20  ;;  %v3163_v3 = vsel %vm3101_vm15, %v3162_v15, %v3161_v62  ;;  %v3172_v46 = vrot.slane %v5782_v63, 6  ;;  %v3174_v5 = vrot.slane %v5795_v1, 5 }
 0x304   :  { %v2951_v25 = vadd.f32 %v2950_v50, %v2949_v58  ;;  %v3002_v38 = vadd.f32 %v5623_v30, %v3000_v35  ;;  %v3165_v32 = vsel %vm3104_vm2, %v3164_v41, %v3163_v3  ;;  %v3176_v16 = vrot.slane %v5772_v36, 4 }
 0x305   :  { %3274 = vrot.lane.b32.xlu0 %v3273_v6, %s3676_s7  ;;  %v3173_v48 = vsel %vm3095_vm12, %v3172_v46, %v5672_v28  ;;  %v3178_v47 = vrot.slane %v5788_v17, 3  ;;  %v3127_v2 = vrot.slane %v5763_v42, 5  ;;  %v3129_v45 = vrot.slane %v5779_v24, 4 }
 0x306   :  { %v3004_v44 = vadd.f32 %v3003_v4, %v3002_v38  ;;  %v2953_v12 = vadd.f32 %v2952_v29, %v2951_v25  ;;  %v3175_v50 = vsel %vm3098_vm9, %v3174_v5, %v3173_v48  ;;  %v3131_v30 = vrot.slane %v5753_v10, 3 }
 0x307   :  { %v3177_v57 = vsel %vm3101_vm15, %v3176_v16, %v3175_v50  ;;  %v3128_v27 = vsel %vm3095_vm12, %v3127_v2, %v5677_v55  ;;  %v3133_v52 = vrot.slane %v5769_v53, 2  ;;  %v3141_v28 = vrot.slane %v5782_v63, 5 }
 0x308   :  { %v2955_v49 = vadd.f32 %v5758_v9, %v2953_v12  ;;  %v3006_v21 = vadd.f32 %v3005_v7, %v3004_v44  ;;  %v3179_v8 = vsel %vm3104_vm2, %v3178_v47, %v3177_v57  ;;  %v3130_v4 = vsel %vm3098_vm9, %v3129_v45, %v3128_v27 }
 0x309   :  { %v3180_v29 = vpack.c.b16 %v3179_v8, %v3165_v32  ;;  %v3132_v18 = vsel %vm3101_vm15, %v3131_v30, %v3130_v4  ;;  %v3142_v51 = vsel %vm3095_vm12, %v3141_v28, %v5687_v61  ;;  %v3143_v20 = vrot.slane %v5795_v1, 4 }
 0x30a   :  { %v2957_v55 = vadd.f32 %v5777_v23, %v2955_v49  ;;  %v3008_v31 = vadd.f32 %v5766_v33, %v3006_v21  ;;  %v3134_v59 = vsel %vm3104_vm2, %v3133_v52, %v3132_v18  ;;  %v3145_v9 = vrot.slane %v5772_v36, 3 }
 0x30b   :  { %3181 = vrot.lane.b32.xlu1 %v3180_v29, %s3673_s29  ;;  %v3144_v7 = vsel %vm3098_vm9, %v3143_v20, %v3142_v51  ;;  %v3147_v60 = vrot.slane %v5788_v17, 2  ;;  %v3221_v61 = vsel %vm3095_vm12, %v5763_v42, %v5717_v14  ;;  %v3222_v15 = vrot.slane %v5779_v24, 7 }
 0x30c   :  { %v2958_v41 = vrot.slane %v2957_v55, 4  ;;  %v3010_v23 = vadd.f32 %v5786_v11, %v3008_v31  ;;  %v3146_v33 = vsel %vm3101_vm15, %v3145_v9, %v3144_v7  ;;  %v3224_v58 = vrot.slane %v5753_v10, 6 }
 0x30d   :  { %v3148_v35 = vsel %vm3104_vm2, %v3147_v60, %v3146_v33  ;;  %v3223_v37 = vsel %vm3098_vm9, %v3222_v15, %v3221_v61  ;;  %v3226_v62 = vrot.slane %v5769_v53, 5  ;;  %v3235_v6 = vsel %vm3095_vm12, %v5782_v63, %v5720_v0 }
 0x30e   :  { %v2959_v14 = vadd.f32 %v2958_v41, %v2957_v55  ;;  %v3011_v3 = vrot.slane %v3010_v23, 4  ;;  %v3149_v46 = vpack.c.b16 %v3148_v35, %v3134_v59  ;;  %v3225_v5 = vsel %vm3101_vm15, %v3224_v58, %v3223_v37 }
 0x30f   :  { %v3227_v11 = vsel %vm3104_vm2, %v3226_v62, %v3225_v5  ;;  %v3236_v25 = vrot.slane %v5795_v1, 7  ;;  %v3238_v38 = vrot.slane %v5772_v36, 6  ;;  %v3240_v32 = vrot.slane %v5788_v17, 5 }
 0x310   :  { %v2960_v16 = vrot.slane %v2959_v14, 2  ;;  %v3012_v48 = vadd.f32 %v3011_v3, %v3010_v23  ;;  %3150 = vrot.lane.b32.xlu0 %v3149_v46, %s3672_s28  ;;  %v3189_v0 = vrot.slane %v5763_v42, 7  ;;  %v3191_v47 = vrot.slane %v5779_v24, 6 }
 0x311   :  { %v3237_v2 = vsel %vm3098_vm9, %v3236_v25, %v3235_v6  ;;  %v3193_v45 = vrot.slane %v5753_v10, 5  ;;  %v3195_v44 = vrot.slane %v5769_v53, 4  ;;  %v3203_v12 = vrot.slane %v5782_v63, 7 }
 0x312   :  { %v2961_v50 = vadd.f32 %v2960_v16, %v2959_v14  ;;  %v3013_v30 = vrot.slane %v3012_v48, 2  ;;  %v3239_v57 = vsel %vm3101_vm15, %v3238_v38, %v3237_v2  ;;  %v3190_v27 = vsel %vm3095_vm12, %v3189_v0, %v5730_v22 }
 0x313   :  { %v3241_v52 = vsel %vm3104_vm2, %v3240_v32, %v3239_v57  ;;  %v3192_v28 = vsel %vm3098_vm9, %v3191_v47, %v3190_v27  ;;  %v3204_v49 = vsel %vm3095_vm12, %v3203_v12, %v5734_v43  ;;  %v3205_v21 = vrot.slane %v5795_v1, 6 }
 0x314   :  { %v2962_v8 = vrot.slane %v2961_v50, 1  ;;  %v3014_v4 = vadd.f32 %v3013_v30, %v3012_v48  ;;  %v3242_v29 = vpack.c.b16 %v3241_v52, %v3227_v11  ;;  %v3194_v18 = vsel %vm3101_vm15, %v3193_v45, %v3192_v28 }
 0x315   :  { %v3196_v51 = vsel %vm3104_vm2, %v3195_v44, %v3194_v18  ;;  %v3206_v20 = vsel %vm3098_vm9, %v3205_v21, %v3204_v49  ;;  %v3207_v22 = vrot.slane %v5772_v36, 5  ;;  %v3209_v55 = vrot.slane %v5788_v17, 4 }
 0x316   :  { %v2963_v31 = vadd.f32 %v2962_v8, %v2961_v50  ;;  %v3015_v59 = vrot.slane %v3014_v4, 1  ;;  %3243 = vrot.lane.b32.xlu1 %v3242_v29, %s3675_s6  ;;  %v3283_v43 = vrot.slane %v5763_v42, 2  ;;  %v3285_v9 = vrot.slane %v5779_v24, 1 }
 0x317   :  { %v3208_v7 = vsel %vm3101_vm15, %v3207_v22, %v3206_v20  ;;  %v3288_v60 = vrot.slane %v5769_v53, 7  ;;  %v3297_v61 = vrot.slane %v5782_v63, 2  ;;  %v3299_v15 = vrot.slane %v5795_v1, 1 }
 0x318   :  { %v3016_v41 = vadd.f32 %v3015_v59, %v3014_v4  ;;  %v3210_v23 = vsel %vm3104_vm2, %v3209_v55, %v3208_v7  ;;  %v3284_v33 = vsel %vm3095_vm12, %v3283_v43, %v5739_v26  ;;  %v3302_v58 = vrot.slane %v5788_v17, 7 }
 0x319   :  { %v3211_v35 = vpack.c.b16 %v3210_v23, %v3196_v51  ;;  %v3286_v37 = vsel %vm3098_vm9, %v3285_v9, %v3284_v33  ;;  %v3298_v62 = vsel %vm3095_vm12, %v3297_v61, %v5742_v54  ;;  %v3314_v6 = vrot.slane %v5763_v42, 3 }
 0x31a   :  { %v3018_v14 = vsel %vm3017_vm3, %v2963_v31, %v3016_v41  ;;  %v3287_v3 = vsel %vm3101_vm15, %v5753_v10, %v3286_v37  ;;  %v3300_v46 = vsel %vm3098_vm9, %v3299_v15, %v3298_v62  ;;  %v3316_v5 = vrot.slane %v5779_v24, 2 }
 0x31b   :  { %3020 = vst.msk [vmem:[%s5981_s5] sm:$0x3] %vm3019_vm4, %v3018_v14  ;;  %3212 = vrot.lane.b32.xlu0 %v3211_v35, %s3674_s30  ;;  %v3289_v26 = vsel %vm3104_vm2, %v3288_v60, %v3287_v3  ;;  %v3301_v54 = vsel %vm3101_vm15, %v5772_v36, %v3300_v46  ;;  %v3315_v11 = vsel %vm3095_vm12, %v3314_v6, %v5746_v40  ;;  %v3318_v25 = vrot.slane %v5753_v10, 1 }
 0x31c   :  { %v3303_v38 = vsel %vm3104_vm2, %v3302_v58, %v3301_v54  ;;  %v3317_v32 = vsel %vm3098_vm9, %v3316_v5, %v3315_v11  ;;  %v3328_v16 = vrot.slane %v5782_v63, 3  ;;  %v3330_v48 = vrot.slane %v5795_v1, 2 }
 0x31d   :  { %v3304_v0 = vpack.c.b16 %v3303_v38, %v3289_v26  ;;  %v3319_v47 = vsel %vm3101_vm15, %v3318_v25, %v3317_v32  ;;  %v3327_v2 = vsel %vm3092_vm8, %v3326_v19, %v5749_v13  ;;  %v3094_v40 = vrot.slane %v5763_v42, 4 }
 0x31e   :  { %v3329_v45 = vsel %vm3095_vm12, %v3328_v16, %v3327_v2  ;;  %v3332_v44 = vrot.slane %v5772_v36, 1  ;;  %v3112_v30 = vrot.slane %v5782_v63, 4  ;;  %v3114_v57 = vrot.slane %v5795_v1, 3 }
 0x31f   :  { %3305 = vrot.lane.b32.xlu1 %v3304_v0, %s3677_s8  ;;  %v3331_v12 = vsel %vm3098_vm9, %v3330_v48, %v3329_v45  ;;  %v3096_v50 = vsel %vm3095_vm12, %v3094_v40, %v5586_v56  ;;  %v3320_v34 = vsel %vm3104_vm2, %v5769_v53, %v3319_v47  ;;  %v3100_v19 = vrot.slane %v5753_v10, 2 }
 0x320   :  { %v3333_v13 = vsel %vm3101_vm15, %v3332_v44, %v3331_v12  ;;  %v3097_v42 = vrot.slane %v5779_v24, 3  ;;  %v3103_v52 = vrot.slane %v5769_v53, 1  ;;  %v3113_v56 = vsel %vm3095_vm12, %v3112_v30, %v5591_v39 }
 0x321   :  { %v3334_v27 = vsel %vm3104_vm2, %v5788_v17, %v3333_v13  ;;  %v3116_v63 = vrot.slane %v5772_v36, 2  ;;  %v3115_v28 = vsel %vm3098_vm9, %v3114_v57, %v3113_v56  ;;  %v3118_v49 = vrot.slane %v5788_v17, 1 }
 0x322   :  { %v3335_v1 = vpack.c.b16 %v3334_v27, %v3320_v34  ;;  %v3099_v21 = vsel %vm3098_vm9, %v3097_v42, %v3096_v50 }
 0x323   :  { %v3117_v10 = vsel %vm3101_vm15, %v3116_v63, %v3115_v28  ;;  %v3102_v24 = vsel %vm3101_vm15, %v3100_v19, %v3099_v21 }
 0x324   :  { %3336 = vrot.lane.b32.xlu0 %v3335_v1, %s3678_s9  ;;  %v3119_v53 = vsel %vm3104_vm2, %v3118_v49, %v3117_v10  ;;  %v3105_v8 = vsel %vm3104_vm2, %v3103_v52, %v3102_v24 }
 0x325   :  { %v3120_v39 = vpack.c.b16 %v3119_v53, %v3105_v8 }
 0x377   :  { %v3275_v4 = vpop.permute.xlu0 %3274 }
 0x37d   :  { %v3182_v36 = vpop.permute.xlu1 %3181 }
 0x382   :  { %v3151_v29 = vpop.permute.xlu0 %3150 }
 0x383   :  { %v3340_v18 = vsel %vm2629_vm5, %v3120_v39, %v3151_v29 }
 0x384   :  { %v3342_v20 = vsel %vm2654_vm10, %v3340_v18, %v3182_v36 }
 0x388   :  { %v3244_v51 = vpop.permute.xlu1 %3243 }
 0x38d   :  { %v3213_v17 = vpop.permute.xlu0 %3212 }
 0x38e   :  { %v3344_v22 = vsel %vm2671_vm11, %v3342_v20, %v3213_v17 }
 0x38f   :  { %v3346_v55 = vsel %vm2688_vm13, %v3344_v22, %v3244_v51 }
 0x390   :  { %v3348_v59 = vsel %vm2705_vm14, %v3346_v55, %v3275_v4 }
 0x391   :  { %v3306_v31 = vpop.permute.xlu1 %3305 }
 0x392   :  { %v3350_v43 = vsel %vm2722_vm0, %v3348_v59, %v3306_v31 }
 0x396   :  { %v3337_v9 = vpop.permute.xlu0 %3336 }
 0x397   :  { %v3352_v7 = vsel %vm2739_vm1, %v3350_v43, %v3337_v9 }
 0x398   :  { %v3531_v60 = vcombine.low %v3352_v7, %v3352_v7  ;;  %v3532_v61 = vcombine.high %v3352_v7, %v3352_v7 }
 0x39a   :  { %3361 = vst.msk [vmem:[%s5982_s4] sm:$0xf] %vm3360_vm6, %v3531_v60  ;;  %3362 = vst.msk [vmem:[%s5982_s4 + $0x4] sm:$0xf] %vm3360_vm6, %v3532_v61 }

</bundles_post_ra>
